<compile_context>
chip_gen: v7x
topology: tpu7x:2x2x1
jax: 0.10.0
libtpu: 0.0.40
codegen_flags: <defaults>
</compile_context>

<pallas_src>
import functools

import numpy as np
import jax
import jax.numpy as jnp
from jax import lax
from jax.experimental import pallas as pl
from jax.experimental.pallas import tpu as pltpu

_BN_EPS = 1e-5
_IN_EPS = 1e-5

_VMEM = pl.BlockSpec(memory_space=pltpu.MemorySpace.VMEM)

_bf = lambda a: jnp.asarray(a, jnp.bfloat16)
_f32 = lambda a: jnp.asarray(a, jnp.float32)


# --------------------------------------------------------------------------
# Offline folding helpers (numpy, run once at model build time)
# --------------------------------------------------------------------------

def _conv_dense(w, hin, win, stride, pad, scale=1.0):
    """Conv2d (NCHW weights, zero pad) as a dense GEMM on channels-last
    flattened images: y_flat = x_flat @ K, x index = (i*W+j)*Cin + ci."""
    cout, cin, kh, kw = w.shape
    hout = (hin + 2 * pad - kh) // stride + 1
    wout = (win + 2 * pad - kw) // stride + 1
    K = np.zeros((hin * win * cin, hout * wout * cout), np.float32)
    wt = np.transpose(np.asarray(w, np.float32), (1, 0, 2, 3)) * scale  # (Cin,Cout,kh,kw)
    for io in range(hout):
        for jo in range(wout):
            po = io * wout + jo
            for di in range(kh):
                for dj in range(kw):
                    ii = io * stride + di - pad
                    jj = jo * stride + dj - pad
                    if 0 <= ii < hin and 0 <= jj < win:
                        pi = ii * win + jj
                        K[pi * cin:(pi + 1) * cin,
                          po * cout:(po + 1) * cout] += wt[:, :, di, dj]
    return K


def _pool_selectors(hin, win, c, k=3, stride=2, pad=1):
    """9 routing matrices (Pin*C, Pout*C) for MaxPool2d(3, 2, 1) taps."""
    hout = (hin + 2 * pad - k) // stride + 1
    wout = (win + 2 * pad - k) // stride + 1
    eye = np.eye(c, dtype=np.float32)
    sels = []
    for di in range(k):
        for dj in range(k):
            R = np.zeros((hout * wout, hin * win), np.float32)
            for io in range(hout):
                for jo in range(wout):
                    ii = io * stride + di - pad
                    jj = jo * stride + dj - pad
                    if 0 <= ii < hin and 0 <= jj < win:
                        R[io * wout + jo, ii * win + jj] = 1.0
            sels.append(np.kron(R.T, eye))
    return np.stack(sels, axis=0)            # (9, Pin*C, Pout*C)


def _bilinear_axis(n_in, n_out):
    # Upsample(mode='bilinear', align_corners=True) 1-D interpolation matrix.
    if n_out == 1:
        U = np.zeros((1, n_in), np.float32)
        U[0, 0] = 1.0
        return U
    scale = (n_in - 1) / (n_out - 1)
    src = np.arange(n_out) * scale
    lo = np.clip(np.floor(src).astype(np.int64), 0, n_in - 1)
    hi = np.clip(lo + 1, 0, n_in - 1)
    frac = (src - lo).astype(np.float32)
    U = np.zeros((n_out, n_in), np.float32)
    U[np.arange(n_out), lo] += 1.0 - frac
    U[np.arange(n_out), hi] += frac
    return U


def _upsample_dense(hin, win, c):
    """Bilinear x2 (align_corners=True) as (Pin*C, Pout*C) dense matrix."""
    Uspat = np.kron(_bilinear_axis(hin, 2 * hin), _bilinear_axis(win, 2 * win))
    return np.kron(Uspat.T, np.eye(c, dtype=np.float32))


def _in_stat_mats(p, c):
    """InstanceNorm helpers: spatial-sum (P*C, C) and broadcast (C, P*C)."""
    S = np.zeros((p * c, c), np.float32)
    for pp in range(p):
        S[pp * c:(pp + 1) * c, :] = np.eye(c, dtype=np.float32)
    return S, S.T.copy()


# --------------------------------------------------------------------------
# Parameter construction (PyTorch-layout weights) and folding
# --------------------------------------------------------------------------

def init_params(key):
    def nrm(k, shape, s=0.1):
        return s * jax.random.normal(k, shape, jnp.float32)

    keys = iter(jax.random.split(key, 64))
    enc = {"conv1": nrm(next(keys), (32, 5, 7, 7))}
    # layer1: BasicBlock(32->64, 1x1 downsample) + BasicBlock(64->64)
    enc["layer1"] = [
        {"w1": nrm(next(keys), (64, 32, 3, 3)),
         "w2": nrm(next(keys), (64, 64, 3, 3)),
         "wd": nrm(next(keys), (64, 32, 1, 1))},
        {"w1": nrm(next(keys), (64, 64, 3, 3)),
         "w2": nrm(next(keys), (64, 64, 3, 3))},
    ]
    for name in ("layer2", "layer3", "layer4"):
        enc[name] = [{"w1": nrm(next(keys), (64, 64, 3, 3)),
                      "w2": nrm(next(keys), (64, 64, 3, 3))} for _ in range(2)]

    def dc(cin):
        return {"w1": nrm(next(keys), (32, cin, 3, 3)), "b1": nrm(next(keys), (32,)),
                "w2": nrm(next(keys), (32, 32, 3, 3)), "b2": nrm(next(keys), (32,))}

    dec = {"up4": dc(128), "up3": dc(96), "up2": dc(96), "up1": dc(64),
           "last_w": nrm(next(keys), (1, 32, 1, 1)),
           "last_b": nrm(next(keys), (1,))}
    return {"enc": enc, "dec": dec}


def fuse_params(params):
    """Fold conv/BN/bias/upsample/concat into dense GEMM constants."""
    to_np = lambda a: np.asarray(a, np.float32)
    bn_s = 1.0 / np.sqrt(1.0 + _BN_EPS)   # eval BN: gamma=1, beta=0, mu=0, var=1
    enc, dec = params["enc"], params["dec"]

    fused = {}
    # stem: 7x7/s2/p3 conv on 8x8x5 -> 4x4x32 (+BN scale folded)
    fused["conv1"] = _bf(_conv_dense(to_np(enc["conv1"]), 8, 8, 2, 3, bn_s))
    # maxpool 3x3/s2/p1 on 4x4x32 -> 2x2x32
    fused["pool_sel"] = _bf(_pool_selectors(4, 4, 32))

    blocks = []
    for layer in ("layer1", "layer2", "layer3", "layer4"):
        for blk in enc[layer]:
            d = {"k1": _bf(_conv_dense(to_np(blk["w1"]), 2, 2, 1, 1, bn_s)),
                 "k2": _bf(_conv_dense(to_np(blk["w2"]), 2, 2, 1, 1, bn_s))}
            if "wd" in blk:
                d["kd"] = _bf(_conv_dense(to_np(blk["wd"]), 2, 2, 1, 0, bn_s))
            blocks.append(d)
    fused["enc_blocks"] = blocks

    def dconv_fold(p, split, hh, ww, up_pre=None):
        w1, w2 = to_np(p["w1"]), to_np(p["w2"])
        pc = hh * ww
        ka = _conv_dense(w1[:, :split], hh, ww, 1, 1)
        if up_pre is not None:          # fold bilinear x2 into the conv GEMM
            ka = up_pre @ ka
        return {"ka": _bf(ka),
                "kb": _bf(_conv_dense(w1[:, split:], hh, ww, 1, 1)),
                "b1": _f32(np.tile(to_np(p["b1"]), pc)[None, :]),
                "k2": _bf(_conv_dense(w2, hh, ww, 1, 1)),
                "b2": _f32(np.tile(to_np(p["b2"]), pc)[None, :])}

    fused["dec"] = [
        dconv_fold(dec["up4"], 64, 2, 2),                                  # cat(out5,out4)
        dconv_fold(dec["up3"], 32, 2, 2),                                  # cat(y,out3)
        dconv_fold(dec["up2"], 32, 2, 2),                                  # cat(y,out2)
        dconv_fold(dec["up1"], 32, 4, 4, up_pre=_upsample_dense(2, 2, 32)),  # up+cat(y,out1)
    ]
    # bilinear x2 (4x4->8x8) folded into the final 1x1 conv
    k_last = _conv_dense(to_np(dec["last_w"]), 8, 8, 1, 0)
    fused["last_k"] = _bf(_upsample_dense(4, 4, 32) @ k_last)
    fused["last_b"] = _f32(np.tile(to_np(dec["last_b"]), 64)[None, :])

    s2, b2 = _in_stat_mats(4, 32)       # instance-norm stats at 2x2
    s4, b4 = _in_stat_mats(16, 32)      # instance-norm stats at 4x4
    fused["in2_sum"], fused["in2_bcast"] = _f32(s2), _f32(b2)
    fused["in4_sum"], fused["in4_bcast"] = _f32(s4), _f32(b4)
    return fused


# --------------------------------------------------------------------------
# The single fused Pallas kernel (entire ResUNet forward)
# --------------------------------------------------------------------------

def _resunet_kernel(treedef, *refs):
    x_ref, out_ref = refs[0], refs[-1]
    w = jax.tree_util.tree_unflatten(treedef, refs[1:-1])

    def mm(a, kref):
        # bf16 MXU matmul, f32 accumulation; weight loaded adjacent to its use.
        return jnp.dot(a.astype(jnp.bfloat16), kref[...],
                       preferred_element_type=jnp.float32)

    def mm_f32(a, kref):
        return jnp.dot(a, kref[...], preferred_element_type=jnp.float32)

    relu = lambda v: jnp.maximum(v, 0.0)
    leaky = lambda v: jnp.where(v >= 0.0, v, 0.2 * v)     # LeakyReLU(0.2)

    def inst_norm_leaky(v, sum_ref, bcast_ref, inv_p):
        mean = mm_f32(v, sum_ref) * inv_p                  # (B, C)
        mean_b = mm_f32(mean, bcast_ref)                   # (B, P*C)
        xc = v - mean_b
        var = mm_f32(xc * xc, sum_ref) * inv_p
        var_b = mm_f32(var, bcast_ref)
        return leaky(xc * lax.rsqrt(var_b + _IN_EPS))

    x = x_ref[...]                                         # (B, 8*8*5) f32

    # --- encoder stem: 7x7/s2 conv + BN(eval) + ReLU ---
    out1 = relu(mm(x, w["conv1"]))                         # (B, 4*4*32)

    # --- maxpool 3x3/s2/p1 (4x4 -> 2x2): max of 9 routed taps.
    #     out1 >= 0 post-ReLU, so zero-filled out-of-bounds taps are harmless.
    sel = w["pool_sel"]                                    # (9, 512, 128) bf16
    out1_b = out1.astype(jnp.bfloat16)
    pooled = jnp.dot(out1_b, sel[0], preferred_element_type=jnp.float32)
    for t in range(1, 9):
        pooled = jnp.maximum(
            pooled, jnp.dot(out1_b, sel[t], preferred_element_type=jnp.float32))

    # --- residual encoder blocks (all at 2x2 spatial) ---
    def basic_block(v, blk):
        h = relu(mm(v, blk["k1"]))
        h = mm(h, blk["k2"])
        idn = mm(v, blk["kd"]) if "kd" in blk else v
        return relu(h + idn)

    feats = []
    h = pooled
    for i, blk in enumerate(w["enc_blocks"]):
        h = basic_block(h, blk)
        if i % 2 == 1:
            feats.append(h)
    out2, out3, out4, out5 = feats
    # NOTE: encoder avgpool/fc/sigmoid head is discarded by ResUNet -> skipped.

    # --- decoder: double_conv = conv+IN+leaky, conv+IN+leaky (dropout = id) ---
    def double_conv(a, skip, dc, sum_ref, bcast_ref, inv_p):
        h = mm(a, dc["ka"]) + mm(skip, dc["kb"]) + dc["b1"][...]
        h = inst_norm_leaky(h, sum_ref, bcast_ref, inv_p)
        h = mm(h, dc["k2"]) + dc["b2"][...]
        return inst_norm_leaky(h, sum_ref, bcast_ref, inv_p)

    dec = w["dec"]
    s2, b2 = w["in2_sum"], w["in2_bcast"]
    y = double_conv(out5, out4, dec[0], s2, b2, 0.25)      # up4 (2x2)
    y = double_conv(y, out3, dec[1], s2, b2, 0.25)         # up3 (2x2)
    y = double_conv(y, out2, dec[2], s2, b2, 0.25)         # up2 (2x2)
    # bilinear x2 (2x2->4x4) is folded into dec[3]["ka"]; skip = out1 at 4x4
    y = double_conv(y, out1, dec[3], w["in4_sum"], w["in4_bcast"], 1.0 / 16.0)
    # bilinear x2 (4x4->8x8) folded into last_k; final 1x1 conv + bias
    out_ref[...] = mm(y, w["last_k"]) + w["last_b"][...]


# --------------------------------------------------------------------------
# Wrapper: build jit-compiled forward once (jit hoisted out of per-call path)
# --------------------------------------------------------------------------

def _cost_estimate(leaves, batch):
    flops = 0
    bytes_accessed = batch * (8 * 8 * 5 + 8 * 8) * 4
    for a in leaves:
        bytes_accessed += int(a.size) * int(a.dtype.itemsize)
        if a.ndim == 2:
            flops += 2 * batch * a.shape[0] * a.shape[1]
        elif a.ndim == 3:
            flops += 2 * batch * a.shape[0] * a.shape[1] * a.shape[2]
    return pl.CostEstimate(flops=int(flops),
                           transcendentals=int(8 * batch * 512),
                           bytes_accessed=int(bytes_accessed))


def make_res_unet_forward(params):
    fused = fuse_params(params)
    leaves, treedef = jax.tree_util.tree_flatten(fused)
    kernel = functools.partial(_resunet_kernel, treedef)
    n_leaves = len(leaves)

    @jax.jit
    def run(x_flat, consts):
        batch = x_flat.shape[0]
        out = pl.pallas_call(
            kernel,
            out_shape=jax.ShapeDtypeStruct((batch, 64), jnp.float32),
            in_specs=[_VMEM] * (1 + n_leaves),
            out_specs=_VMEM,
            compiler_params=pltpu.CompilerParams(
                vmem_limit_bytes=32 * 1024 * 1024),
            cost_estimate=_cost_estimate(leaves, 2),
        )(x_flat, *consts)
        return out.reshape(batch, 1, 8, 8)

    def forward(model_input_nhwc):
        x_flat = jnp.asarray(
            model_input_nhwc.reshape(model_input_nhwc.shape[0], -1), jnp.float32)
        return run(x_flat, leaves)

    return forward


# --------------------------------------------------------------------------
# WarGamesAI input encoding (channels-last, so no layout transpose needed)
# --------------------------------------------------------------------------

def build_model_input(level_states, curr_player):
    batch = []
    for state in level_states:
        a = np.asarray(state)
        a = np.pad(a, ((0, max(0, 8 - a.shape[0])), (0, max(0, 8 - a.shape[1]))),
                   mode="constant", constant_values=0)
        signs = np.sign(a) * curr_player
        absv = np.abs(a)
        chans = [(absv >= 1).astype(np.float32)]
        for i in range(6):
            if i in (0, 3):
                continue
            chans.append((absv == i + 2).astype(np.float32) * signs)
        batch.append(np.stack(chans, axis=-1).astype(np.float32))   # (8,8,5) HWC
    return np.stack(batch, axis=0)                                   # (B,8,8,5)


def wargames_ai_forward(forward_fn, level_states, curr_player):
    model_input = build_model_input(level_states, curr_player)
    unet_output = forward_fn(model_input)
    # TODO(synk): MinMaxAI.getValidMoves-based move selection has no Pallas
    # equivalent (undefined external dependency / data-dependent Python logic);
    # returning the U-Net priority map instead (no sigmoid, matching PyTorch).
    return unet_output


# --------------------------------------------------------------------------
# main
# --------------------------------------------------------------------------

if __name__ == "__main__":
    key = jax.random.PRNGKey(0)
    pkey, dkey = jax.random.split(key)
    params = init_params(pkey)
    forward_fn = make_res_unet_forward(params)   # jit + folding built once

    # Two deterministic 8x8 integer "level state" boards, values in [-7, 7].
    boards = np.asarray(jax.random.randint(dkey, (2, 8, 8), -7, 8))
    level_states = [boards[0], boards[1]]
    curr_player = 1

    out = wargames_ai_forward(forward_fn, level_states, curr_player)
    out = jax.block_until_ready(out)
    assert out.shape == (2, 1, 8, 8), out.shape
    assert bool(jnp.all(jnp.isfinite(out)))
    print("KERNEL_OK")
</pallas_src>

<mosaic_0001>
module attributes {stable_mosaic.version = 11 : i64} {
  func.func @_resunet_kernel(%arg0: memref<2x320xf32, #tpu.memory_space<vmem>>, %arg1: memref<320x512xbf16, #tpu.memory_space<vmem>>, %arg2: memref<1x128xf32, #tpu.memory_space<vmem>>, %arg3: memref<1x128xf32, #tpu.memory_space<vmem>>, %arg4: memref<128x128xbf16, #tpu.memory_space<vmem>>, %arg5: memref<256x128xbf16, #tpu.memory_space<vmem>>, %arg6: memref<256x128xbf16, #tpu.memory_space<vmem>>, %arg7: memref<1x128xf32, #tpu.memory_space<vmem>>, %arg8: memref<1x128xf32, #tpu.memory_space<vmem>>, %arg9: memref<128x128xbf16, #tpu.memory_space<vmem>>, %arg10: memref<128x128xbf16, #tpu.memory_space<vmem>>, %arg11: memref<256x128xbf16, #tpu.memory_space<vmem>>, %arg12: memref<1x128xf32, #tpu.memory_space<vmem>>, %arg13: memref<1x128xf32, #tpu.memory_space<vmem>>, %arg14: memref<128x128xbf16, #tpu.memory_space<vmem>>, %arg15: memref<128x128xbf16, #tpu.memory_space<vmem>>, %arg16: memref<256x128xbf16, #tpu.memory_space<vmem>>, %arg17: memref<1x512xf32, #tpu.memory_space<vmem>>, %arg18: memref<1x512xf32, #tpu.memory_space<vmem>>, %arg19: memref<512x512xbf16, #tpu.memory_space<vmem>>, %arg20: memref<128x512xbf16, #tpu.memory_space<vmem>>, %arg21: memref<512x512xbf16, #tpu.memory_space<vmem>>, %arg22: memref<128x256xbf16, #tpu.memory_space<vmem>>, %arg23: memref<256x256xbf16, #tpu.memory_space<vmem>>, %arg24: memref<128x256xbf16, #tpu.memory_space<vmem>>, %arg25: memref<256x256xbf16, #tpu.memory_space<vmem>>, %arg26: memref<256x256xbf16, #tpu.memory_space<vmem>>, %arg27: memref<256x256xbf16, #tpu.memory_space<vmem>>, %arg28: memref<256x256xbf16, #tpu.memory_space<vmem>>, %arg29: memref<256x256xbf16, #tpu.memory_space<vmem>>, %arg30: memref<256x256xbf16, #tpu.memory_space<vmem>>, %arg31: memref<256x256xbf16, #tpu.memory_space<vmem>>, %arg32: memref<256x256xbf16, #tpu.memory_space<vmem>>, %arg33: memref<256x256xbf16, #tpu.memory_space<vmem>>, %arg34: memref<256x256xbf16, #tpu.memory_space<vmem>>, %arg35: memref<256x256xbf16, #tpu.memory_space<vmem>>, %arg36: memref<256x256xbf16, #tpu.memory_space<vmem>>, %arg37: memref<256x256xbf16, #tpu.memory_space<vmem>>, %arg38: memref<256x256xbf16, #tpu.memory_space<vmem>>, %arg39: memref<32x128xf32, #tpu.memory_space<vmem>>, %arg40: memref<128x32xf32, #tpu.memory_space<vmem>>, %arg41: memref<32x512xf32, #tpu.memory_space<vmem>>, %arg42: memref<512x32xf32, #tpu.memory_space<vmem>>, %arg43: memref<1x64xf32, #tpu.memory_space<vmem>>, %arg44: memref<512x64xbf16, #tpu.memory_space<vmem>>, %arg45: memref<9x512x128xbf16, #tpu.memory_space<vmem>>, %arg46: memref<2x64xf32, #tpu.memory_space<vmem>>) attributes {dimension_semantics = [], scalar_prefetch = 0 : i64, scratch_operands = 0 : i64, tpu.core_type = #tpu.core_type<tc>} {
    %c0 = arith.constant 0 : index
    %c0_0 = arith.constant 0 : index
    %0 = vector.load %arg0[%c0, %c0_0] : memref<2x320xf32, #tpu.memory_space<vmem>>, vector<2x320xf32>
    %1 = arith.truncf %0 : vector<2x320xf32> to vector<2x320xbf16>
    %c0_1 = arith.constant 0 : index
    %c0_2 = arith.constant 0 : index
    %2 = vector.load %arg1[%c0_1, %c0_2] : memref<320x512xbf16, #tpu.memory_space<vmem>>, vector<320x512xbf16>
    %cst = arith.constant dense<0.000000e+00> : vector<2x512xf32>
    %3 = tpu.matmul %1, %2, %cst {dimension_numbers = #tpu.dot_dimension_numbers<[1], [0], [0], [1], [0, 0, 1, 1], [], []>} : vector<2x320xbf16>, vector<320x512xbf16>, vector<2x512xf32> -> vector<2x512xf32>
    %cst_3 = arith.constant 0.000000e+00 : f32
    %4 = vector.broadcast %cst_3 : f32 to vector<2x512xf32>
    %5 = arith.maximumf %3, %4 : vector<2x512xf32>
    %6 = arith.truncf %5 : vector<2x512xf32> to vector<2x512xbf16>
    %c0_4 = arith.constant 0 : index
    %c0_5 = arith.constant 0 : index
    %c0_6 = arith.constant 0 : index
    %7 = vector.load %arg45[%c0_4, %c0_5, %c0_6] : memref<9x512x128xbf16, #tpu.memory_space<vmem>>, vector<1x512x128xbf16>
    %8 = vector.shape_cast %7 : vector<1x512x128xbf16> to vector<512x128xbf16>
    %cst_7 = arith.constant dense<0.000000e+00> : vector<2x128xf32>
    %9 = tpu.matmul %6, %8, %cst_7 {dimension_numbers = #tpu.dot_dimension_numbers<[1], [0], [0], [1], [0, 0, 1, 1], [], []>} : vector<2x512xbf16>, vector<512x128xbf16>, vector<2x128xf32> -> vector<2x128xf32>
    %c1 = arith.constant 1 : index
    %c0_8 = arith.constant 0 : index
    %c0_9 = arith.constant 0 : index
    %10 = vector.load %arg45[%c1, %c0_8, %c0_9] : memref<9x512x128xbf16, #tpu.memory_space<vmem>>, vector<1x512x128xbf16>
    %11 = vector.shape_cast %10 : vector<1x512x128xbf16> to vector<512x128xbf16>
    %cst_10 = arith.constant dense<0.000000e+00> : vector<2x128xf32>
    %12 = tpu.matmul %6, %11, %cst_10 {dimension_numbers = #tpu.dot_dimension_numbers<[1], [0], [0], [1], [0, 0, 1, 1], [], []>} : vector<2x512xbf16>, vector<512x128xbf16>, vector<2x128xf32> -> vector<2x128xf32>
    %13 = arith.maximumf %9, %12 : vector<2x128xf32>
    %c2 = arith.constant 2 : index
    %c0_11 = arith.constant 0 : index
    %c0_12 = arith.constant 0 : index
    %14 = vector.load %arg45[%c2, %c0_11, %c0_12] : memref<9x512x128xbf16, #tpu.memory_space<vmem>>, vector<1x512x128xbf16>
    %15 = vector.shape_cast %14 : vector<1x512x128xbf16> to vector<512x128xbf16>
    %cst_13 = arith.constant dense<0.000000e+00> : vector<2x128xf32>
    %16 = tpu.matmul %6, %15, %cst_13 {dimension_numbers = #tpu.dot_dimension_numbers<[1], [0], [0], [1], [0, 0, 1, 1], [], []>} : vector<2x512xbf16>, vector<512x128xbf16>, vector<2x128xf32> -> vector<2x128xf32>
    %17 = arith.maximumf %13, %16 : vector<2x128xf32>
    %c3 = arith.constant 3 : index
    %c0_14 = arith.constant 0 : index
    %c0_15 = arith.constant 0 : index
    %18 = vector.load %arg45[%c3, %c0_14, %c0_15] : memref<9x512x128xbf16, #tpu.memory_space<vmem>>, vector<1x512x128xbf16>
    %19 = vector.shape_cast %18 : vector<1x512x128xbf16> to vector<512x128xbf16>
    %cst_16 = arith.constant dense<0.000000e+00> : vector<2x128xf32>
    %20 = tpu.matmul %6, %19, %cst_16 {dimension_numbers = #tpu.dot_dimension_numbers<[1], [0], [0], [1], [0, 0, 1, 1], [], []>} : vector<2x512xbf16>, vector<512x128xbf16>, vector<2x128xf32> -> vector<2x128xf32>
    %21 = arith.maximumf %17, %20 : vector<2x128xf32>
    %c4 = arith.constant 4 : index
    %c0_17 = arith.constant 0 : index
    %c0_18 = arith.constant 0 : index
    %22 = vector.load %arg45[%c4, %c0_17, %c0_18] : memref<9x512x128xbf16, #tpu.memory_space<vmem>>, vector<1x512x128xbf16>
    %23 = vector.shape_cast %22 : vector<1x512x128xbf16> to vector<512x128xbf16>
    %cst_19 = arith.constant dense<0.000000e+00> : vector<2x128xf32>
    %24 = tpu.matmul %6, %23, %cst_19 {dimension_numbers = #tpu.dot_dimension_numbers<[1], [0], [0], [1], [0, 0, 1, 1], [], []>} : vector<2x512xbf16>, vector<512x128xbf16>, vector<2x128xf32> -> vector<2x128xf32>
    %25 = arith.maximumf %21, %24 : vector<2x128xf32>
    %c5 = arith.constant 5 : index
    %c0_20 = arith.constant 0 : index
    %c0_21 = arith.constant 0 : index
    %26 = vector.load %arg45[%c5, %c0_20, %c0_21] : memref<9x512x128xbf16, #tpu.memory_space<vmem>>, vector<1x512x128xbf16>
    %27 = vector.shape_cast %26 : vector<1x512x128xbf16> to vector<512x128xbf16>
    %cst_22 = arith.constant dense<0.000000e+00> : vector<2x128xf32>
    %28 = tpu.matmul %6, %27, %cst_22 {dimension_numbers = #tpu.dot_dimension_numbers<[1], [0], [0], [1], [0, 0, 1, 1], [], []>} : vector<2x512xbf16>, vector<512x128xbf16>, vector<2x128xf32> -> vector<2x128xf32>
    %29 = arith.maximumf %25, %28 : vector<2x128xf32>
    %c6 = arith.constant 6 : index
    %c0_23 = arith.constant 0 : index
    %c0_24 = arith.constant 0 : index
    %30 = vector.load %arg45[%c6, %c0_23, %c0_24] : memref<9x512x128xbf16, #tpu.memory_space<vmem>>, vector<1x512x128xbf16>
    %31 = vector.shape_cast %30 : vector<1x512x128xbf16> to vector<512x128xbf16>
    %cst_25 = arith.constant dense<0.000000e+00> : vector<2x128xf32>
    %32 = tpu.matmul %6, %31, %cst_25 {dimension_numbers = #tpu.dot_dimension_numbers<[1], [0], [0], [1], [0, 0, 1, 1], [], []>} : vector<2x512xbf16>, vector<512x128xbf16>, vector<2x128xf32> -> vector<2x128xf32>
    %33 = arith.maximumf %29, %32 : vector<2x128xf32>
    %c7 = arith.constant 7 : index
    %c0_26 = arith.constant 0 : index
    %c0_27 = arith.constant 0 : index
    %34 = vector.load %arg45[%c7, %c0_26, %c0_27] : memref<9x512x128xbf16, #tpu.memory_space<vmem>>, vector<1x512x128xbf16>
    %35 = vector.shape_cast %34 : vector<1x512x128xbf16> to vector<512x128xbf16>
    %cst_28 = arith.constant dense<0.000000e+00> : vector<2x128xf32>
    %36 = tpu.matmul %6, %35, %cst_28 {dimension_numbers = #tpu.dot_dimension_numbers<[1], [0], [0], [1], [0, 0, 1, 1], [], []>} : vector<2x512xbf16>, vector<512x128xbf16>, vector<2x128xf32> -> vector<2x128xf32>
    %37 = arith.maximumf %33, %36 : vector<2x128xf32>
    %c8 = arith.constant 8 : index
    %c0_29 = arith.constant 0 : index
    %c0_30 = arith.constant 0 : index
    %38 = vector.load %arg45[%c8, %c0_29, %c0_30] : memref<9x512x128xbf16, #tpu.memory_space<vmem>>, vector<1x512x128xbf16>
    %39 = vector.shape_cast %38 : vector<1x512x128xbf16> to vector<512x128xbf16>
    %cst_31 = arith.constant dense<0.000000e+00> : vector<2x128xf32>
    %40 = tpu.matmul %6, %39, %cst_31 {dimension_numbers = #tpu.dot_dimension_numbers<[1], [0], [0], [1], [0, 0, 1, 1], [], []>} : vector<2x512xbf16>, vector<512x128xbf16>, vector<2x128xf32> -> vector<2x128xf32>
    %41 = arith.maximumf %37, %40 : vector<2x128xf32>
    %42 = arith.truncf %41 : vector<2x128xf32> to vector<2x128xbf16>
    %c0_32 = arith.constant 0 : index
    %c0_33 = arith.constant 0 : index
    %43 = vector.load %arg22[%c0_32, %c0_33] : memref<128x256xbf16, #tpu.memory_space<vmem>>, vector<128x256xbf16>
    %cst_34 = arith.constant dense<0.000000e+00> : vector<2x256xf32>
    %44 = tpu.matmul %42, %43, %cst_34 {dimension_numbers = #tpu.dot_dimension_numbers<[1], [0], [0], [1], [0, 0, 1, 1], [], []>} : vector<2x128xbf16>, vector<128x256xbf16>, vector<2x256xf32> -> vector<2x256xf32>
    %cst_35 = arith.constant 0.000000e+00 : f32
    %45 = vector.broadcast %cst_35 : f32 to vector<2x256xf32>
    %46 = arith.maximumf %44, %45 : vector<2x256xf32>
    %47 = arith.truncf %46 : vector<2x256xf32> to vector<2x256xbf16>
    %c0_36 = arith.constant 0 : index
    %c0_37 = arith.constant 0 : index
    %48 = vector.load %arg23[%c0_36, %c0_37] : memref<256x256xbf16, #tpu.memory_space<vmem>>, vector<256x256xbf16>
    %cst_38 = arith.constant dense<0.000000e+00> : vector<2x256xf32>
    %49 = tpu.matmul %47, %48, %cst_38 {dimension_numbers = #tpu.dot_dimension_numbers<[1], [0], [0], [1], [0, 0, 1, 1], [], []>} : vector<2x256xbf16>, vector<256x256xbf16>, vector<2x256xf32> -> vector<2x256xf32>
    %50 = arith.truncf %41 : vector<2x128xf32> to vector<2x128xbf16>
    %c0_39 = arith.constant 0 : index
    %c0_40 = arith.constant 0 : index
    %51 = vector.load %arg24[%c0_39, %c0_40] : memref<128x256xbf16, #tpu.memory_space<vmem>>, vector<128x256xbf16>
    %cst_41 = arith.constant dense<0.000000e+00> : vector<2x256xf32>
    %52 = tpu.matmul %50, %51, %cst_41 {dimension_numbers = #tpu.dot_dimension_numbers<[1], [0], [0], [1], [0, 0, 1, 1], [], []>} : vector<2x128xbf16>, vector<128x256xbf16>, vector<2x256xf32> -> vector<2x256xf32>
    %53 = arith.addf %49, %52 : vector<2x256xf32>
    %cst_42 = arith.constant 0.000000e+00 : f32
    %54 = vector.broadcast %cst_42 : f32 to vector<2x256xf32>
    %55 = arith.maximumf %53, %54 : vector<2x256xf32>
    %56 = arith.truncf %55 : vector<2x256xf32> to vector<2x256xbf16>
    %c0_43 = arith.constant 0 : index
    %c0_44 = arith.constant 0 : index
    %57 = vector.load %arg25[%c0_43, %c0_44] : memref<256x256xbf16, #tpu.memory_space<vmem>>, vector<256x256xbf16>
    %cst_45 = arith.constant dense<0.000000e+00> : vector<2x256xf32>
    %58 = tpu.matmul %56, %57, %cst_45 {dimension_numbers = #tpu.dot_dimension_numbers<[1], [0], [0], [1], [0, 0, 1, 1], [], []>} : vector<2x256xbf16>, vector<256x256xbf16>, vector<2x256xf32> -> vector<2x256xf32>
    %cst_46 = arith.constant 0.000000e+00 : f32
    %59 = vector.broadcast %cst_46 : f32 to vector<2x256xf32>
    %60 = arith.maximumf %58, %59 : vector<2x256xf32>
    %61 = arith.truncf %60 : vector<2x256xf32> to vector<2x256xbf16>
    %c0_47 = arith.constant 0 : index
    %c0_48 = arith.constant 0 : index
    %62 = vector.load %arg26[%c0_47, %c0_48] : memref<256x256xbf16, #tpu.memory_space<vmem>>, vector<256x256xbf16>
    %cst_49 = arith.constant dense<0.000000e+00> : vector<2x256xf32>
    %63 = tpu.matmul %61, %62, %cst_49 {dimension_numbers = #tpu.dot_dimension_numbers<[1], [0], [0], [1], [0, 0, 1, 1], [], []>} : vector<2x256xbf16>, vector<256x256xbf16>, vector<2x256xf32> -> vector<2x256xf32>
    %64 = arith.addf %63, %55 : vector<2x256xf32>
    %cst_50 = arith.constant 0.000000e+00 : f32
    %65 = vector.broadcast %cst_50 : f32 to vector<2x256xf32>
    %66 = arith.maximumf %64, %65 : vector<2x256xf32>
    %67 = arith.truncf %66 : vector<2x256xf32> to vector<2x256xbf16>
    %c0_51 = arith.constant 0 : index
    %c0_52 = arith.constant 0 : index
    %68 = vector.load %arg27[%c0_51, %c0_52] : memref<256x256xbf16, #tpu.memory_space<vmem>>, vector<256x256xbf16>
    %cst_53 = arith.constant dense<0.000000e+00> : vector<2x256xf32>
    %69 = tpu.matmul %67, %68, %cst_53 {dimension_numbers = #tpu.dot_dimension_numbers<[1], [0], [0], [1], [0, 0, 1, 1], [], []>} : vector<2x256xbf16>, vector<256x256xbf16>, vector<2x256xf32> -> vector<2x256xf32>
    %cst_54 = arith.constant 0.000000e+00 : f32
    %70 = vector.broadcast %cst_54 : f32 to vector<2x256xf32>
    %71 = arith.maximumf %69, %70 : vector<2x256xf32>
    %72 = arith.truncf %71 : vector<2x256xf32> to vector<2x256xbf16>
    %c0_55 = arith.constant 0 : index
    %c0_56 = arith.constant 0 : index
    %73 = vector.load %arg28[%c0_55, %c0_56] : memref<256x256xbf16, #tpu.memory_space<vmem>>, vector<256x256xbf16>
    %cst_57 = arith.constant dense<0.000000e+00> : vector<2x256xf32>
    %74 = tpu.matmul %72, %73, %cst_57 {dimension_numbers = #tpu.dot_dimension_numbers<[1], [0], [0], [1], [0, 0, 1, 1], [], []>} : vector<2x256xbf16>, vector<256x256xbf16>, vector<2x256xf32> -> vector<2x256xf32>
    %75 = arith.addf %74, %66 : vector<2x256xf32>
    %cst_58 = arith.constant 0.000000e+00 : f32
    %76 = vector.broadcast %cst_58 : f32 to vector<2x256xf32>
    %77 = arith.maximumf %75, %76 : vector<2x256xf32>
    %78 = arith.truncf %77 : vector<2x256xf32> to vector<2x256xbf16>
    %c0_59 = arith.constant 0 : index
    %c0_60 = arith.constant 0 : index
    %79 = vector.load %arg29[%c0_59, %c0_60] : memref<256x256xbf16, #tpu.memory_space<vmem>>, vector<256x256xbf16>
    %cst_61 = arith.constant dense<0.000000e+00> : vector<2x256xf32>
    %80 = tpu.matmul %78, %79, %cst_61 {dimension_numbers = #tpu.dot_dimension_numbers<[1], [0], [0], [1], [0, 0, 1, 1], [], []>} : vector<2x256xbf16>, vector<256x256xbf16>, vector<2x256xf32> -> vector<2x256xf32>
    %cst_62 = arith.constant 0.000000e+00 : f32
    %81 = vector.broadcast %cst_62 : f32 to vector<2x256xf32>
    %82 = arith.maximumf %80, %81 : vector<2x256xf32>
    %83 = arith.truncf %82 : vector<2x256xf32> to vector<2x256xbf16>
    %c0_63 = arith.constant 0 : index
    %c0_64 = arith.constant 0 : index
    %84 = vector.load %arg30[%c0_63, %c0_64] : memref<256x256xbf16, #tpu.memory_space<vmem>>, vector<256x256xbf16>
    %cst_65 = arith.constant dense<0.000000e+00> : vector<2x256xf32>
    %85 = tpu.matmul %83, %84, %cst_65 {dimension_numbers = #tpu.dot_dimension_numbers<[1], [0], [0], [1], [0, 0, 1, 1], [], []>} : vector<2x256xbf16>, vector<256x256xbf16>, vector<2x256xf32> -> vector<2x256xf32>
    %86 = arith.addf %85, %77 : vector<2x256xf32>
    %cst_66 = arith.constant 0.000000e+00 : f32
    %87 = vector.broadcast %cst_66 : f32 to vector<2x256xf32>
    %88 = arith.maximumf %86, %87 : vector<2x256xf32>
    %89 = arith.truncf %88 : vector<2x256xf32> to vector<2x256xbf16>
    %c0_67 = arith.constant 0 : index
    %c0_68 = arith.constant 0 : index
    %90 = vector.load %arg31[%c0_67, %c0_68] : memref<256x256xbf16, #tpu.memory_space<vmem>>, vector<256x256xbf16>
    %cst_69 = arith.constant dense<0.000000e+00> : vector<2x256xf32>
    %91 = tpu.matmul %89, %90, %cst_69 {dimension_numbers = #tpu.dot_dimension_numbers<[1], [0], [0], [1], [0, 0, 1, 1], [], []>} : vector<2x256xbf16>, vector<256x256xbf16>, vector<2x256xf32> -> vector<2x256xf32>
    %cst_70 = arith.constant 0.000000e+00 : f32
    %92 = vector.broadcast %cst_70 : f32 to vector<2x256xf32>
    %93 = arith.maximumf %91, %92 : vector<2x256xf32>
    %94 = arith.truncf %93 : vector<2x256xf32> to vector<2x256xbf16>
    %c0_71 = arith.constant 0 : index
    %c0_72 = arith.constant 0 : index
    %95 = vector.load %arg32[%c0_71, %c0_72] : memref<256x256xbf16, #tpu.memory_space<vmem>>, vector<256x256xbf16>
    %cst_73 = arith.constant dense<0.000000e+00> : vector<2x256xf32>
    %96 = tpu.matmul %94, %95, %cst_73 {dimension_numbers = #tpu.dot_dimension_numbers<[1], [0], [0], [1], [0, 0, 1, 1], [], []>} : vector<2x256xbf16>, vector<256x256xbf16>, vector<2x256xf32> -> vector<2x256xf32>
    %97 = arith.addf %96, %88 : vector<2x256xf32>
    %cst_74 = arith.constant 0.000000e+00 : f32
    %98 = vector.broadcast %cst_74 : f32 to vector<2x256xf32>
    %99 = arith.maximumf %97, %98 : vector<2x256xf32>
    %100 = arith.truncf %99 : vector<2x256xf32> to vector<2x256xbf16>
    %c0_75 = arith.constant 0 : index
    %c0_76 = arith.constant 0 : index
    %101 = vector.load %arg33[%c0_75, %c0_76] : memref<256x256xbf16, #tpu.memory_space<vmem>>, vector<256x256xbf16>
    %cst_77 = arith.constant dense<0.000000e+00> : vector<2x256xf32>
    %102 = tpu.matmul %100, %101, %cst_77 {dimension_numbers = #tpu.dot_dimension_numbers<[1], [0], [0], [1], [0, 0, 1, 1], [], []>} : vector<2x256xbf16>, vector<256x256xbf16>, vector<2x256xf32> -> vector<2x256xf32>
    %cst_78 = arith.constant 0.000000e+00 : f32
    %103 = vector.broadcast %cst_78 : f32 to vector<2x256xf32>
    %104 = arith.maximumf %102, %103 : vector<2x256xf32>
    %105 = arith.truncf %104 : vector<2x256xf32> to vector<2x256xbf16>
    %c0_79 = arith.constant 0 : index
    %c0_80 = arith.constant 0 : index
    %106 = vector.load %arg34[%c0_79, %c0_80] : memref<256x256xbf16, #tpu.memory_space<vmem>>, vector<256x256xbf16>
    %cst_81 = arith.constant dense<0.000000e+00> : vector<2x256xf32>
    %107 = tpu.matmul %105, %106, %cst_81 {dimension_numbers = #tpu.dot_dimension_numbers<[1], [0], [0], [1], [0, 0, 1, 1], [], []>} : vector<2x256xbf16>, vector<256x256xbf16>, vector<2x256xf32> -> vector<2x256xf32>
    %108 = arith.addf %107, %99 : vector<2x256xf32>
    %cst_82 = arith.constant 0.000000e+00 : f32
    %109 = vector.broadcast %cst_82 : f32 to vector<2x256xf32>
    %110 = arith.maximumf %108, %109 : vector<2x256xf32>
    %111 = arith.truncf %110 : vector<2x256xf32> to vector<2x256xbf16>
    %c0_83 = arith.constant 0 : index
    %c0_84 = arith.constant 0 : index
    %112 = vector.load %arg35[%c0_83, %c0_84] : memref<256x256xbf16, #tpu.memory_space<vmem>>, vector<256x256xbf16>
    %cst_85 = arith.constant dense<0.000000e+00> : vector<2x256xf32>
    %113 = tpu.matmul %111, %112, %cst_85 {dimension_numbers = #tpu.dot_dimension_numbers<[1], [0], [0], [1], [0, 0, 1, 1], [], []>} : vector<2x256xbf16>, vector<256x256xbf16>, vector<2x256xf32> -> vector<2x256xf32>
    %cst_86 = arith.constant 0.000000e+00 : f32
    %114 = vector.broadcast %cst_86 : f32 to vector<2x256xf32>
    %115 = arith.maximumf %113, %114 : vector<2x256xf32>
    %116 = arith.truncf %115 : vector<2x256xf32> to vector<2x256xbf16>
    %c0_87 = arith.constant 0 : index
    %c0_88 = arith.constant 0 : index
    %117 = vector.load %arg36[%c0_87, %c0_88] : memref<256x256xbf16, #tpu.memory_space<vmem>>, vector<256x256xbf16>
    %cst_89 = arith.constant dense<0.000000e+00> : vector<2x256xf32>
    %118 = tpu.matmul %116, %117, %cst_89 {dimension_numbers = #tpu.dot_dimension_numbers<[1], [0], [0], [1], [0, 0, 1, 1], [], []>} : vector<2x256xbf16>, vector<256x256xbf16>, vector<2x256xf32> -> vector<2x256xf32>
    %119 = arith.addf %118, %110 : vector<2x256xf32>
    %cst_90 = arith.constant 0.000000e+00 : f32
    %120 = vector.broadcast %cst_90 : f32 to vector<2x256xf32>
    %121 = arith.maximumf %119, %120 : vector<2x256xf32>
    %122 = arith.truncf %121 : vector<2x256xf32> to vector<2x256xbf16>
    %c0_91 = arith.constant 0 : index
    %c0_92 = arith.constant 0 : index
    %123 = vector.load %arg37[%c0_91, %c0_92] : memref<256x256xbf16, #tpu.memory_space<vmem>>, vector<256x256xbf16>
    %cst_93 = arith.constant dense<0.000000e+00> : vector<2x256xf32>
    %124 = tpu.matmul %122, %123, %cst_93 {dimension_numbers = #tpu.dot_dimension_numbers<[1], [0], [0], [1], [0, 0, 1, 1], [], []>} : vector<2x256xbf16>, vector<256x256xbf16>, vector<2x256xf32> -> vector<2x256xf32>
    %cst_94 = arith.constant 0.000000e+00 : f32
    %125 = vector.broadcast %cst_94 : f32 to vector<2x256xf32>
    %126 = arith.maximumf %124, %125 : vector<2x256xf32>
    %127 = arith.truncf %126 : vector<2x256xf32> to vector<2x256xbf16>
    %c0_95 = arith.constant 0 : index
    %c0_96 = arith.constant 0 : index
    %128 = vector.load %arg38[%c0_95, %c0_96] : memref<256x256xbf16, #tpu.memory_space<vmem>>, vector<256x256xbf16>
    %cst_97 = arith.constant dense<0.000000e+00> : vector<2x256xf32>
    %129 = tpu.matmul %127, %128, %cst_97 {dimension_numbers = #tpu.dot_dimension_numbers<[1], [0], [0], [1], [0, 0, 1, 1], [], []>} : vector<2x256xbf16>, vector<256x256xbf16>, vector<2x256xf32> -> vector<2x256xf32>
    %130 = arith.addf %129, %121 : vector<2x256xf32>
    %cst_98 = arith.constant 0.000000e+00 : f32
    %131 = vector.broadcast %cst_98 : f32 to vector<2x256xf32>
    %132 = arith.maximumf %130, %131 : vector<2x256xf32>
    %133 = arith.truncf %132 : vector<2x256xf32> to vector<2x256xbf16>
    %c0_99 = arith.constant 0 : index
    %c0_100 = arith.constant 0 : index
    %134 = vector.load %arg5[%c0_99, %c0_100] : memref<256x128xbf16, #tpu.memory_space<vmem>>, vector<256x128xbf16>
    %cst_101 = arith.constant dense<0.000000e+00> : vector<2x128xf32>
    %135 = tpu.matmul %133, %134, %cst_101 {dimension_numbers = #tpu.dot_dimension_numbers<[1], [0], [0], [1], [0, 0, 1, 1], [], []>} : vector<2x256xbf16>, vector<256x128xbf16>, vector<2x128xf32> -> vector<2x128xf32>
    %136 = arith.truncf %110 : vector<2x256xf32> to vector<2x256xbf16>
    %c0_102 = arith.constant 0 : index
    %c0_103 = arith.constant 0 : index
    %137 = vector.load %arg6[%c0_102, %c0_103] : memref<256x128xbf16, #tpu.memory_space<vmem>>, vector<256x128xbf16>
    %cst_104 = arith.constant dense<0.000000e+00> : vector<2x128xf32>
    %138 = tpu.matmul %136, %137, %cst_104 {dimension_numbers = #tpu.dot_dimension_numbers<[1], [0], [0], [1], [0, 0, 1, 1], [], []>} : vector<2x256xbf16>, vector<256x128xbf16>, vector<2x128xf32> -> vector<2x128xf32>
    %139 = arith.addf %135, %138 : vector<2x128xf32>
    %c0_105 = arith.constant 0 : index
    %c0_106 = arith.constant 0 : index
    %140 = vector.load %arg2[%c0_105, %c0_106] : memref<1x128xf32, #tpu.memory_space<vmem>>, vector<1x128xf32>
    %141 = vector.broadcast %140 : vector<1x128xf32> to vector<2x128xf32>
    %142 = arith.addf %139, %141 : vector<2x128xf32>
    %c0_107 = arith.constant 0 : index
    %c0_108 = arith.constant 0 : index
    %143 = vector.load %arg40[%c0_107, %c0_108] : memref<128x32xf32, #tpu.memory_space<vmem>>, vector<128x32xf32>
    %cst_109 = arith.constant dense<0.000000e+00> : vector<2x32xf32>
    %144 = tpu.matmul %142, %143, %cst_109 {dimension_numbers = #tpu.dot_dimension_numbers<[1], [0], [0], [1], [0, 0, 1, 1], [], []>} : vector<2x128xf32>, vector<128x32xf32>, vector<2x32xf32> -> vector<2x32xf32>
    %cst_110 = arith.constant 2.500000e-01 : f32
    %145 = vector.broadcast %cst_110 : f32 to vector<2x32xf32>
    %146 = arith.mulf %144, %145 : vector<2x32xf32>
    %c0_111 = arith.constant 0 : index
    %c0_112 = arith.constant 0 : index
    %147 = vector.load %arg39[%c0_111, %c0_112] : memref<32x128xf32, #tpu.memory_space<vmem>>, vector<32x128xf32>
    %cst_113 = arith.constant dense<0.000000e+00> : vector<2x128xf32>
    %148 = tpu.matmul %146, %147, %cst_113 {dimension_numbers = #tpu.dot_dimension_numbers<[1], [0], [0], [1], [0, 0, 1, 1], [], []>} : vector<2x32xf32>, vector<32x128xf32>, vector<2x128xf32> -> vector<2x128xf32>
    %149 = arith.subf %142, %148 : vector<2x128xf32>
    %150 = arith.mulf %149, %149 : vector<2x128xf32>
    %c0_114 = arith.constant 0 : index
    %c0_115 = arith.constant 0 : index
    %151 = vector.load %arg40[%c0_114, %c0_115] : memref<128x32xf32, #tpu.memory_space<vmem>>, vector<128x32xf32>
    %cst_116 = arith.constant dense<0.000000e+00> : vector<2x32xf32>
    %152 = tpu.matmul %150, %151, %cst_116 {dimension_numbers = #tpu.dot_dimension_numbers<[1], [0], [0], [1], [0, 0, 1, 1], [], []>} : vector<2x128xf32>, vector<128x32xf32>, vector<2x32xf32> -> vector<2x32xf32>
    %cst_117 = arith.constant 2.500000e-01 : f32
    %153 = vector.broadcast %cst_117 : f32 to vector<2x32xf32>
    %154 = arith.mulf %152, %153 : vector<2x32xf32>
    %c0_118 = arith.constant 0 : index
    %c0_119 = arith.constant 0 : index
    %155 = vector.load %arg39[%c0_118, %c0_119] : memref<32x128xf32, #tpu.memory_space<vmem>>, vector<32x128xf32>
    %cst_120 = arith.constant dense<0.000000e+00> : vector<2x128xf32>
    %156 = tpu.matmul %154, %155, %cst_120 {dimension_numbers = #tpu.dot_dimension_numbers<[1], [0], [0], [1], [0, 0, 1, 1], [], []>} : vector<2x32xf32>, vector<32x128xf32>, vector<2x128xf32> -> vector<2x128xf32>
    %cst_121 = arith.constant 9.99999974E-6 : f32
    %157 = vector.broadcast %cst_121 : f32 to vector<2x128xf32>
    %158 = arith.addf %156, %157 : vector<2x128xf32>
    %159 = math.rsqrt %158 : vector<2x128xf32>
    %160 = arith.mulf %149, %159 : vector<2x128xf32>
    %cst_122 = arith.constant 0.000000e+00 : f32
    %161 = vector.broadcast %cst_122 : f32 to vector<2x128xf32>
    %162 = arith.cmpf oge, %160, %161 : vector<2x128xf32>
    %cst_123 = arith.constant 2.000000e-01 : f32
    %163 = vector.broadcast %cst_123 : f32 to vector<2x128xf32>
    %164 = arith.mulf %163, %160 : vector<2x128xf32>
    %165 = arith.select %162, %160, %164 : vector<2x128xi1>, vector<2x128xf32>
    %166 = arith.truncf %165 : vector<2x128xf32> to vector<2x128xbf16>
    %c0_124 = arith.constant 0 : index
    %c0_125 = arith.constant 0 : index
    %167 = vector.load %arg4[%c0_124, %c0_125] : memref<128x128xbf16, #tpu.memory_space<vmem>>, vector<128x128xbf16>
    %cst_126 = arith.constant dense<0.000000e+00> : vector<2x128xf32>
    %168 = tpu.matmul %166, %167, %cst_126 {dimension_numbers = #tpu.dot_dimension_numbers<[1], [0], [0], [1], [0, 0, 1, 1], [], []>} : vector<2x128xbf16>, vector<128x128xbf16>, vector<2x128xf32> -> vector<2x128xf32>
    %c0_127 = arith.constant 0 : index
    %c0_128 = arith.constant 0 : index
    %169 = vector.load %arg3[%c0_127, %c0_128] : memref<1x128xf32, #tpu.memory_space<vmem>>, vector<1x128xf32>
    %170 = vector.broadcast %169 : vector<1x128xf32> to vector<2x128xf32>
    %171 = arith.addf %168, %170 : vector<2x128xf32>
    %c0_129 = arith.constant 0 : index
    %c0_130 = arith.constant 0 : index
    %172 = vector.load %arg40[%c0_129, %c0_130] : memref<128x32xf32, #tpu.memory_space<vmem>>, vector<128x32xf32>
    %cst_131 = arith.constant dense<0.000000e+00> : vector<2x32xf32>
    %173 = tpu.matmul %171, %172, %cst_131 {dimension_numbers = #tpu.dot_dimension_numbers<[1], [0], [0], [1], [0, 0, 1, 1], [], []>} : vector<2x128xf32>, vector<128x32xf32>, vector<2x32xf32> -> vector<2x32xf32>
    %cst_132 = arith.constant 2.500000e-01 : f32
    %174 = vector.broadcast %cst_132 : f32 to vector<2x32xf32>
    %175 = arith.mulf %173, %174 : vector<2x32xf32>
    %c0_133 = arith.constant 0 : index
    %c0_134 = arith.constant 0 : index
    %176 = vector.load %arg39[%c0_133, %c0_134] : memref<32x128xf32, #tpu.memory_space<vmem>>, vector<32x128xf32>
    %cst_135 = arith.constant dense<0.000000e+00> : vector<2x128xf32>
    %177 = tpu.matmul %175, %176, %cst_135 {dimension_numbers = #tpu.dot_dimension_numbers<[1], [0], [0], [1], [0, 0, 1, 1], [], []>} : vector<2x32xf32>, vector<32x128xf32>, vector<2x128xf32> -> vector<2x128xf32>
    %178 = arith.subf %171, %177 : vector<2x128xf32>
    %179 = arith.mulf %178, %178 : vector<2x128xf32>
    %c0_136 = arith.constant 0 : index
    %c0_137 = arith.constant 0 : index
    %180 = vector.load %arg40[%c0_136, %c0_137] : memref<128x32xf32, #tpu.memory_space<vmem>>, vector<128x32xf32>
    %cst_138 = arith.constant dense<0.000000e+00> : vector<2x32xf32>
    %181 = tpu.matmul %179, %180, %cst_138 {dimension_numbers = #tpu.dot_dimension_numbers<[1], [0], [0], [1], [0, 0, 1, 1], [], []>} : vector<2x128xf32>, vector<128x32xf32>, vector<2x32xf32> -> vector<2x32xf32>
    %cst_139 = arith.constant 2.500000e-01 : f32
    %182 = vector.broadcast %cst_139 : f32 to vector<2x32xf32>
    %183 = arith.mulf %181, %182 : vector<2x32xf32>
    %c0_140 = arith.constant 0 : index
    %c0_141 = arith.constant 0 : index
    %184 = vector.load %arg39[%c0_140, %c0_141] : memref<32x128xf32, #tpu.memory_space<vmem>>, vector<32x128xf32>
    %cst_142 = arith.constant dense<0.000000e+00> : vector<2x128xf32>
    %185 = tpu.matmul %183, %184, %cst_142 {dimension_numbers = #tpu.dot_dimension_numbers<[1], [0], [0], [1], [0, 0, 1, 1], [], []>} : vector<2x32xf32>, vector<32x128xf32>, vector<2x128xf32> -> vector<2x128xf32>
    %cst_143 = arith.constant 9.99999974E-6 : f32
    %186 = vector.broadcast %cst_143 : f32 to vector<2x128xf32>
    %187 = arith.addf %185, %186 : vector<2x128xf32>
    %188 = math.rsqrt %187 : vector<2x128xf32>
    %189 = arith.mulf %178, %188 : vector<2x128xf32>
    %cst_144 = arith.constant 0.000000e+00 : f32
    %190 = vector.broadcast %cst_144 : f32 to vector<2x128xf32>
    %191 = arith.cmpf oge, %189, %190 : vector<2x128xf32>
    %cst_145 = arith.constant 2.000000e-01 : f32
    %192 = vector.broadcast %cst_145 : f32 to vector<2x128xf32>
    %193 = arith.mulf %192, %189 : vector<2x128xf32>
    %194 = arith.select %191, %189, %193 : vector<2x128xi1>, vector<2x128xf32>
    %195 = arith.truncf %194 : vector<2x128xf32> to vector<2x128xbf16>
    %c0_146 = arith.constant 0 : index
    %c0_147 = arith.constant 0 : index
    %196 = vector.load %arg10[%c0_146, %c0_147] : memref<128x128xbf16, #tpu.memory_space<vmem>>, vector<128x128xbf16>
    %cst_148 = arith.constant dense<0.000000e+00> : vector<2x128xf32>
    %197 = tpu.matmul %195, %196, %cst_148 {dimension_numbers = #tpu.dot_dimension_numbers<[1], [0], [0], [1], [0, 0, 1, 1], [], []>} : vector<2x128xbf16>, vector<128x128xbf16>, vector<2x128xf32> -> vector<2x128xf32>
    %198 = arith.truncf %88 : vector<2x256xf32> to vector<2x256xbf16>
    %c0_149 = arith.constant 0 : index
    %c0_150 = arith.constant 0 : index
    %199 = vector.load %arg11[%c0_149, %c0_150] : memref<256x128xbf16, #tpu.memory_space<vmem>>, vector<256x128xbf16>
    %cst_151 = arith.constant dense<0.000000e+00> : vector<2x128xf32>
    %200 = tpu.matmul %198, %199, %cst_151 {dimension_numbers = #tpu.dot_dimension_numbers<[1], [0], [0], [1], [0, 0, 1, 1], [], []>} : vector<2x256xbf16>, vector<256x128xbf16>, vector<2x128xf32> -> vector<2x128xf32>
    %201 = arith.addf %197, %200 : vector<2x128xf32>
    %c0_152 = arith.constant 0 : index
    %c0_153 = arith.constant 0 : index
    %202 = vector.load %arg7[%c0_152, %c0_153] : memref<1x128xf32, #tpu.memory_space<vmem>>, vector<1x128xf32>
    %203 = vector.broadcast %202 : vector<1x128xf32> to vector<2x128xf32>
    %204 = arith.addf %201, %203 : vector<2x128xf32>
    %c0_154 = arith.constant 0 : index
    %c0_155 = arith.constant 0 : index
    %205 = vector.load %arg40[%c0_154, %c0_155] : memref<128x32xf32, #tpu.memory_space<vmem>>, vector<128x32xf32>
    %cst_156 = arith.constant dense<0.000000e+00> : vector<2x32xf32>
    %206 = tpu.matmul %204, %205, %cst_156 {dimension_numbers = #tpu.dot_dimension_numbers<[1], [0], [0], [1], [0, 0, 1, 1], [], []>} : vector<2x128xf32>, vector<128x32xf32>, vector<2x32xf32> -> vector<2x32xf32>
    %cst_157 = arith.constant 2.500000e-01 : f32
    %207 = vector.broadcast %cst_157 : f32 to vector<2x32xf32>
    %208 = arith.mulf %206, %207 : vector<2x32xf32>
    %c0_158 = arith.constant 0 : index
    %c0_159 = arith.constant 0 : index
    %209 = vector.load %arg39[%c0_158, %c0_159] : memref<32x128xf32, #tpu.memory_space<vmem>>, vector<32x128xf32>
    %cst_160 = arith.constant dense<0.000000e+00> : vector<2x128xf32>
    %210 = tpu.matmul %208, %209, %cst_160 {dimension_numbers = #tpu.dot_dimension_numbers<[1], [0], [0], [1], [0, 0, 1, 1], [], []>} : vector<2x32xf32>, vector<32x128xf32>, vector<2x128xf32> -> vector<2x128xf32>
    %211 = arith.subf %204, %210 : vector<2x128xf32>
    %212 = arith.mulf %211, %211 : vector<2x128xf32>
    %c0_161 = arith.constant 0 : index
    %c0_162 = arith.constant 0 : index
    %213 = vector.load %arg40[%c0_161, %c0_162] : memref<128x32xf32, #tpu.memory_space<vmem>>, vector<128x32xf32>
    %cst_163 = arith.constant dense<0.000000e+00> : vector<2x32xf32>
    %214 = tpu.matmul %212, %213, %cst_163 {dimension_numbers = #tpu.dot_dimension_numbers<[1], [0], [0], [1], [0, 0, 1, 1], [], []>} : vector<2x128xf32>, vector<128x32xf32>, vector<2x32xf32> -> vector<2x32xf32>
    %cst_164 = arith.constant 2.500000e-01 : f32
    %215 = vector.broadcast %cst_164 : f32 to vector<2x32xf32>
    %216 = arith.mulf %214, %215 : vector<2x32xf32>
    %c0_165 = arith.constant 0 : index
    %c0_166 = arith.constant 0 : index
    %217 = vector.load %arg39[%c0_165, %c0_166] : memref<32x128xf32, #tpu.memory_space<vmem>>, vector<32x128xf32>
    %cst_167 = arith.constant dense<0.000000e+00> : vector<2x128xf32>
    %218 = tpu.matmul %216, %217, %cst_167 {dimension_numbers = #tpu.dot_dimension_numbers<[1], [0], [0], [1], [0, 0, 1, 1], [], []>} : vector<2x32xf32>, vector<32x128xf32>, vector<2x128xf32> -> vector<2x128xf32>
    %cst_168 = arith.constant 9.99999974E-6 : f32
    %219 = vector.broadcast %cst_168 : f32 to vector<2x128xf32>
    %220 = arith.addf %218, %219 : vector<2x128xf32>
    %221 = math.rsqrt %220 : vector<2x128xf32>
    %222 = arith.mulf %211, %221 : vector<2x128xf32>
    %cst_169 = arith.constant 0.000000e+00 : f32
    %223 = vector.broadcast %cst_169 : f32 to vector<2x128xf32>
    %224 = arith.cmpf oge, %222, %223 : vector<2x128xf32>
    %cst_170 = arith.constant 2.000000e-01 : f32
    %225 = vector.broadcast %cst_170 : f32 to vector<2x128xf32>
    %226 = arith.mulf %225, %222 : vector<2x128xf32>
    %227 = arith.select %224, %222, %226 : vector<2x128xi1>, vector<2x128xf32>
    %228 = arith.truncf %227 : vector<2x128xf32> to vector<2x128xbf16>
    %c0_171 = arith.constant 0 : index
    %c0_172 = arith.constant 0 : index
    %229 = vector.load %arg9[%c0_171, %c0_172] : memref<128x128xbf16, #tpu.memory_space<vmem>>, vector<128x128xbf16>
    %cst_173 = arith.constant dense<0.000000e+00> : vector<2x128xf32>
    %230 = tpu.matmul %228, %229, %cst_173 {dimension_numbers = #tpu.dot_dimension_numbers<[1], [0], [0], [1], [0, 0, 1, 1], [], []>} : vector<2x128xbf16>, vector<128x128xbf16>, vector<2x128xf32> -> vector<2x128xf32>
    %c0_174 = arith.constant 0 : index
    %c0_175 = arith.constant 0 : index
    %231 = vector.load %arg8[%c0_174, %c0_175] : memref<1x128xf32, #tpu.memory_space<vmem>>, vector<1x128xf32>
    %232 = vector.broadcast %231 : vector<1x128xf32> to vector<2x128xf32>
    %233 = arith.addf %230, %232 : vector<2x128xf32>
    %c0_176 = arith.constant 0 : index
    %c0_177 = arith.constant 0 : index
    %234 = vector.load %arg40[%c0_176, %c0_177] : memref<128x32xf32, #tpu.memory_space<vmem>>, vector<128x32xf32>
    %cst_178 = arith.constant dense<0.000000e+00> : vector<2x32xf32>
    %235 = tpu.matmul %233, %234, %cst_178 {dimension_numbers = #tpu.dot_dimension_numbers<[1], [0], [0], [1], [0, 0, 1, 1], [], []>} : vector<2x128xf32>, vector<128x32xf32>, vector<2x32xf32> -> vector<2x32xf32>
    %cst_179 = arith.constant 2.500000e-01 : f32
    %236 = vector.broadcast %cst_179 : f32 to vector<2x32xf32>
    %237 = arith.mulf %235, %236 : vector<2x32xf32>
    %c0_180 = arith.constant 0 : index
    %c0_181 = arith.constant 0 : index
    %238 = vector.load %arg39[%c0_180, %c0_181] : memref<32x128xf32, #tpu.memory_space<vmem>>, vector<32x128xf32>
    %cst_182 = arith.constant dense<0.000000e+00> : vector<2x128xf32>
    %239 = tpu.matmul %237, %238, %cst_182 {dimension_numbers = #tpu.dot_dimension_numbers<[1], [0], [0], [1], [0, 0, 1, 1], [], []>} : vector<2x32xf32>, vector<32x128xf32>, vector<2x128xf32> -> vector<2x128xf32>
    %240 = arith.subf %233, %239 : vector<2x128xf32>
    %241 = arith.mulf %240, %240 : vector<2x128xf32>
    %c0_183 = arith.constant 0 : index
    %c0_184 = arith.constant 0 : index
    %242 = vector.load %arg40[%c0_183, %c0_184] : memref<128x32xf32, #tpu.memory_space<vmem>>, vector<128x32xf32>
    %cst_185 = arith.constant dense<0.000000e+00> : vector<2x32xf32>
    %243 = tpu.matmul %241, %242, %cst_185 {dimension_numbers = #tpu.dot_dimension_numbers<[1], [0], [0], [1], [0, 0, 1, 1], [], []>} : vector<2x128xf32>, vector<128x32xf32>, vector<2x32xf32> -> vector<2x32xf32>
    %cst_186 = arith.constant 2.500000e-01 : f32
    %244 = vector.broadcast %cst_186 : f32 to vector<2x32xf32>
    %245 = arith.mulf %243, %244 : vector<2x32xf32>
    %c0_187 = arith.constant 0 : index
    %c0_188 = arith.constant 0 : index
    %246 = vector.load %arg39[%c0_187, %c0_188] : memref<32x128xf32, #tpu.memory_space<vmem>>, vector<32x128xf32>
    %cst_189 = arith.constant dense<0.000000e+00> : vector<2x128xf32>
    %247 = tpu.matmul %245, %246, %cst_189 {dimension_numbers = #tpu.dot_dimension_numbers<[1], [0], [0], [1], [0, 0, 1, 1], [], []>} : vector<2x32xf32>, vector<32x128xf32>, vector<2x128xf32> -> vector<2x128xf32>
    %cst_190 = arith.constant 9.99999974E-6 : f32
    %248 = vector.broadcast %cst_190 : f32 to vector<2x128xf32>
    %249 = arith.addf %247, %248 : vector<2x128xf32>
    %250 = math.rsqrt %249 : vector<2x128xf32>
    %251 = arith.mulf %240, %250 : vector<2x128xf32>
    %cst_191 = arith.constant 0.000000e+00 : f32
    %252 = vector.broadcast %cst_191 : f32 to vector<2x128xf32>
    %253 = arith.cmpf oge, %251, %252 : vector<2x128xf32>
    %cst_192 = arith.constant 2.000000e-01 : f32
    %254 = vector.broadcast %cst_192 : f32 to vector<2x128xf32>
    %255 = arith.mulf %254, %251 : vector<2x128xf32>
    %256 = arith.select %253, %251, %255 : vector<2x128xi1>, vector<2x128xf32>
    %257 = arith.truncf %256 : vector<2x128xf32> to vector<2x128xbf16>
    %c0_193 = arith.constant 0 : index
    %c0_194 = arith.constant 0 : index
    %258 = vector.load %arg15[%c0_193, %c0_194] : memref<128x128xbf16, #tpu.memory_space<vmem>>, vector<128x128xbf16>
    %cst_195 = arith.constant dense<0.000000e+00> : vector<2x128xf32>
    %259 = tpu.matmul %257, %258, %cst_195 {dimension_numbers = #tpu.dot_dimension_numbers<[1], [0], [0], [1], [0, 0, 1, 1], [], []>} : vector<2x128xbf16>, vector<128x128xbf16>, vector<2x128xf32> -> vector<2x128xf32>
    %260 = arith.truncf %66 : vector<2x256xf32> to vector<2x256xbf16>
    %c0_196 = arith.constant 0 : index
    %c0_197 = arith.constant 0 : index
    %261 = vector.load %arg16[%c0_196, %c0_197] : memref<256x128xbf16, #tpu.memory_space<vmem>>, vector<256x128xbf16>
    %cst_198 = arith.constant dense<0.000000e+00> : vector<2x128xf32>
    %262 = tpu.matmul %260, %261, %cst_198 {dimension_numbers = #tpu.dot_dimension_numbers<[1], [0], [0], [1], [0, 0, 1, 1], [], []>} : vector<2x256xbf16>, vector<256x128xbf16>, vector<2x128xf32> -> vector<2x128xf32>
    %263 = arith.addf %259, %262 : vector<2x128xf32>
    %c0_199 = arith.constant 0 : index
    %c0_200 = arith.constant 0 : index
    %264 = vector.load %arg12[%c0_199, %c0_200] : memref<1x128xf32, #tpu.memory_space<vmem>>, vector<1x128xf32>
    %265 = vector.broadcast %264 : vector<1x128xf32> to vector<2x128xf32>
    %266 = arith.addf %263, %265 : vector<2x128xf32>
    %c0_201 = arith.constant 0 : index
    %c0_202 = arith.constant 0 : index
    %267 = vector.load %arg40[%c0_201, %c0_202] : memref<128x32xf32, #tpu.memory_space<vmem>>, vector<128x32xf32>
    %cst_203 = arith.constant dense<0.000000e+00> : vector<2x32xf32>
    %268 = tpu.matmul %266, %267, %cst_203 {dimension_numbers = #tpu.dot_dimension_numbers<[1], [0], [0], [1], [0, 0, 1, 1], [], []>} : vector<2x128xf32>, vector<128x32xf32>, vector<2x32xf32> -> vector<2x32xf32>
    %cst_204 = arith.constant 2.500000e-01 : f32
    %269 = vector.broadcast %cst_204 : f32 to vector<2x32xf32>
    %270 = arith.mulf %268, %269 : vector<2x32xf32>
    %c0_205 = arith.constant 0 : index
    %c0_206 = arith.constant 0 : index
    %271 = vector.load %arg39[%c0_205, %c0_206] : memref<32x128xf32, #tpu.memory_space<vmem>>, vector<32x128xf32>
    %cst_207 = arith.constant dense<0.000000e+00> : vector<2x128xf32>
    %272 = tpu.matmul %270, %271, %cst_207 {dimension_numbers = #tpu.dot_dimension_numbers<[1], [0], [0], [1], [0, 0, 1, 1], [], []>} : vector<2x32xf32>, vector<32x128xf32>, vector<2x128xf32> -> vector<2x128xf32>
    %273 = arith.subf %266, %272 : vector<2x128xf32>
    %274 = arith.mulf %273, %273 : vector<2x128xf32>
    %c0_208 = arith.constant 0 : index
    %c0_209 = arith.constant 0 : index
    %275 = vector.load %arg40[%c0_208, %c0_209] : memref<128x32xf32, #tpu.memory_space<vmem>>, vector<128x32xf32>
    %cst_210 = arith.constant dense<0.000000e+00> : vector<2x32xf32>
    %276 = tpu.matmul %274, %275, %cst_210 {dimension_numbers = #tpu.dot_dimension_numbers<[1], [0], [0], [1], [0, 0, 1, 1], [], []>} : vector<2x128xf32>, vector<128x32xf32>, vector<2x32xf32> -> vector<2x32xf32>
    %cst_211 = arith.constant 2.500000e-01 : f32
    %277 = vector.broadcast %cst_211 : f32 to vector<2x32xf32>
    %278 = arith.mulf %276, %277 : vector<2x32xf32>
    %c0_212 = arith.constant 0 : index
    %c0_213 = arith.constant 0 : index
    %279 = vector.load %arg39[%c0_212, %c0_213] : memref<32x128xf32, #tpu.memory_space<vmem>>, vector<32x128xf32>
    %cst_214 = arith.constant dense<0.000000e+00> : vector<2x128xf32>
    %280 = tpu.matmul %278, %279, %cst_214 {dimension_numbers = #tpu.dot_dimension_numbers<[1], [0], [0], [1], [0, 0, 1, 1], [], []>} : vector<2x32xf32>, vector<32x128xf32>, vector<2x128xf32> -> vector<2x128xf32>
    %cst_215 = arith.constant 9.99999974E-6 : f32
    %281 = vector.broadcast %cst_215 : f32 to vector<2x128xf32>
    %282 = arith.addf %280, %281 : vector<2x128xf32>
    %283 = math.rsqrt %282 : vector<2x128xf32>
    %284 = arith.mulf %273, %283 : vector<2x128xf32>
    %cst_216 = arith.constant 0.000000e+00 : f32
    %285 = vector.broadcast %cst_216 : f32 to vector<2x128xf32>
    %286 = arith.cmpf oge, %284, %285 : vector<2x128xf32>
    %cst_217 = arith.constant 2.000000e-01 : f32
    %287 = vector.broadcast %cst_217 : f32 to vector<2x128xf32>
    %288 = arith.mulf %287, %284 : vector<2x128xf32>
    %289 = arith.select %286, %284, %288 : vector<2x128xi1>, vector<2x128xf32>
    %290 = arith.truncf %289 : vector<2x128xf32> to vector<2x128xbf16>
    %c0_218 = arith.constant 0 : index
    %c0_219 = arith.constant 0 : index
    %291 = vector.load %arg14[%c0_218, %c0_219] : memref<128x128xbf16, #tpu.memory_space<vmem>>, vector<128x128xbf16>
    %cst_220 = arith.constant dense<0.000000e+00> : vector<2x128xf32>
    %292 = tpu.matmul %290, %291, %cst_220 {dimension_numbers = #tpu.dot_dimension_numbers<[1], [0], [0], [1], [0, 0, 1, 1], [], []>} : vector<2x128xbf16>, vector<128x128xbf16>, vector<2x128xf32> -> vector<2x128xf32>
    %c0_221 = arith.constant 0 : index
    %c0_222 = arith.constant 0 : index
    %293 = vector.load %arg13[%c0_221, %c0_222] : memref<1x128xf32, #tpu.memory_space<vmem>>, vector<1x128xf32>
    %294 = vector.broadcast %293 : vector<1x128xf32> to vector<2x128xf32>
    %295 = arith.addf %292, %294 : vector<2x128xf32>
    %c0_223 = arith.constant 0 : index
    %c0_224 = arith.constant 0 : index
    %296 = vector.load %arg40[%c0_223, %c0_224] : memref<128x32xf32, #tpu.memory_space<vmem>>, vector<128x32xf32>
    %cst_225 = arith.constant dense<0.000000e+00> : vector<2x32xf32>
    %297 = tpu.matmul %295, %296, %cst_225 {dimension_numbers = #tpu.dot_dimension_numbers<[1], [0], [0], [1], [0, 0, 1, 1], [], []>} : vector<2x128xf32>, vector<128x32xf32>, vector<2x32xf32> -> vector<2x32xf32>
    %cst_226 = arith.constant 2.500000e-01 : f32
    %298 = vector.broadcast %cst_226 : f32 to vector<2x32xf32>
    %299 = arith.mulf %297, %298 : vector<2x32xf32>
    %c0_227 = arith.constant 0 : index
    %c0_228 = arith.constant 0 : index
    %300 = vector.load %arg39[%c0_227, %c0_228] : memref<32x128xf32, #tpu.memory_space<vmem>>, vector<32x128xf32>
    %cst_229 = arith.constant dense<0.000000e+00> : vector<2x128xf32>
    %301 = tpu.matmul %299, %300, %cst_229 {dimension_numbers = #tpu.dot_dimension_numbers<[1], [0], [0], [1], [0, 0, 1, 1], [], []>} : vector<2x32xf32>, vector<32x128xf32>, vector<2x128xf32> -> vector<2x128xf32>
    %302 = arith.subf %295, %301 : vector<2x128xf32>
    %303 = arith.mulf %302, %302 : vector<2x128xf32>
    %c0_230 = arith.constant 0 : index
    %c0_231 = arith.constant 0 : index
    %304 = vector.load %arg40[%c0_230, %c0_231] : memref<128x32xf32, #tpu.memory_space<vmem>>, vector<128x32xf32>
    %cst_232 = arith.constant dense<0.000000e+00> : vector<2x32xf32>
    %305 = tpu.matmul %303, %304, %cst_232 {dimension_numbers = #tpu.dot_dimension_numbers<[1], [0], [0], [1], [0, 0, 1, 1], [], []>} : vector<2x128xf32>, vector<128x32xf32>, vector<2x32xf32> -> vector<2x32xf32>
    %cst_233 = arith.constant 2.500000e-01 : f32
    %306 = vector.broadcast %cst_233 : f32 to vector<2x32xf32>
    %307 = arith.mulf %305, %306 : vector<2x32xf32>
    %c0_234 = arith.constant 0 : index
    %c0_235 = arith.constant 0 : index
    %308 = vector.load %arg39[%c0_234, %c0_235] : memref<32x128xf32, #tpu.memory_space<vmem>>, vector<32x128xf32>
    %cst_236 = arith.constant dense<0.000000e+00> : vector<2x128xf32>
    %309 = tpu.matmul %307, %308, %cst_236 {dimension_numbers = #tpu.dot_dimension_numbers<[1], [0], [0], [1], [0, 0, 1, 1], [], []>} : vector<2x32xf32>, vector<32x128xf32>, vector<2x128xf32> -> vector<2x128xf32>
    %cst_237 = arith.constant 9.99999974E-6 : f32
    %310 = vector.broadcast %cst_237 : f32 to vector<2x128xf32>
    %311 = arith.addf %309, %310 : vector<2x128xf32>
    %312 = math.rsqrt %311 : vector<2x128xf32>
    %313 = arith.mulf %302, %312 : vector<2x128xf32>
    %cst_238 = arith.constant 0.000000e+00 : f32
    %314 = vector.broadcast %cst_238 : f32 to vector<2x128xf32>
    %315 = arith.cmpf oge, %313, %314 : vector<2x128xf32>
    %cst_239 = arith.constant 2.000000e-01 : f32
    %316 = vector.broadcast %cst_239 : f32 to vector<2x128xf32>
    %317 = arith.mulf %316, %313 : vector<2x128xf32>
    %318 = arith.select %315, %313, %317 : vector<2x128xi1>, vector<2x128xf32>
    %319 = arith.truncf %318 : vector<2x128xf32> to vector<2x128xbf16>
    %c0_240 = arith.constant 0 : index
    %c0_241 = arith.constant 0 : index
    %320 = vector.load %arg20[%c0_240, %c0_241] : memref<128x512xbf16, #tpu.memory_space<vmem>>, vector<128x512xbf16>
    %cst_242 = arith.constant dense<0.000000e+00> : vector<2x512xf32>
    %321 = tpu.matmul %319, %320, %cst_242 {dimension_numbers = #tpu.dot_dimension_numbers<[1], [0], [0], [1], [0, 0, 1, 1], [], []>} : vector<2x128xbf16>, vector<128x512xbf16>, vector<2x512xf32> -> vector<2x512xf32>
    %322 = arith.truncf %5 : vector<2x512xf32> to vector<2x512xbf16>
    %c0_243 = arith.constant 0 : index
    %c0_244 = arith.constant 0 : index
    %323 = vector.load %arg21[%c0_243, %c0_244] : memref<512x512xbf16, #tpu.memory_space<vmem>>, vector<512x512xbf16>
    %cst_245 = arith.constant dense<0.000000e+00> : vector<2x512xf32>
    %324 = tpu.matmul %322, %323, %cst_245 {dimension_numbers = #tpu.dot_dimension_numbers<[1], [0], [0], [1], [0, 0, 1, 1], [], []>} : vector<2x512xbf16>, vector<512x512xbf16>, vector<2x512xf32> -> vector<2x512xf32>
    %325 = arith.addf %321, %324 : vector<2x512xf32>
    %c0_246 = arith.constant 0 : index
    %c0_247 = arith.constant 0 : index
    %326 = vector.load %arg17[%c0_246, %c0_247] : memref<1x512xf32, #tpu.memory_space<vmem>>, vector<1x512xf32>
    %327 = vector.broadcast %326 : vector<1x512xf32> to vector<2x512xf32>
    %328 = arith.addf %325, %327 : vector<2x512xf32>
    %c0_248 = arith.constant 0 : index
    %c0_249 = arith.constant 0 : index
    %329 = vector.load %arg42[%c0_248, %c0_249] : memref<512x32xf32, #tpu.memory_space<vmem>>, vector<512x32xf32>
    %cst_250 = arith.constant dense<0.000000e+00> : vector<2x32xf32>
    %330 = tpu.matmul %328, %329, %cst_250 {dimension_numbers = #tpu.dot_dimension_numbers<[1], [0], [0], [1], [0, 0, 1, 1], [], []>} : vector<2x512xf32>, vector<512x32xf32>, vector<2x32xf32> -> vector<2x32xf32>
    %cst_251 = arith.constant 6.250000e-02 : f32
    %331 = vector.broadcast %cst_251 : f32 to vector<2x32xf32>
    %332 = arith.mulf %330, %331 : vector<2x32xf32>
    %c0_252 = arith.constant 0 : index
    %c0_253 = arith.constant 0 : index
    %333 = vector.load %arg41[%c0_252, %c0_253] : memref<32x512xf32, #tpu.memory_space<vmem>>, vector<32x512xf32>
    %cst_254 = arith.constant dense<0.000000e+00> : vector<2x512xf32>
    %334 = tpu.matmul %332, %333, %cst_254 {dimension_numbers = #tpu.dot_dimension_numbers<[1], [0], [0], [1], [0, 0, 1, 1], [], []>} : vector<2x32xf32>, vector<32x512xf32>, vector<2x512xf32> -> vector<2x512xf32>
    %335 = arith.subf %328, %334 : vector<2x512xf32>
    %336 = arith.mulf %335, %335 : vector<2x512xf32>
    %c0_255 = arith.constant 0 : index
    %c0_256 = arith.constant 0 : index
    %337 = vector.load %arg42[%c0_255, %c0_256] : memref<512x32xf32, #tpu.memory_space<vmem>>, vector<512x32xf32>
    %cst_257 = arith.constant dense<0.000000e+00> : vector<2x32xf32>
    %338 = tpu.matmul %336, %337, %cst_257 {dimension_numbers = #tpu.dot_dimension_numbers<[1], [0], [0], [1], [0, 0, 1, 1], [], []>} : vector<2x512xf32>, vector<512x32xf32>, vector<2x32xf32> -> vector<2x32xf32>
    %cst_258 = arith.constant 6.250000e-02 : f32
    %339 = vector.broadcast %cst_258 : f32 to vector<2x32xf32>
    %340 = arith.mulf %338, %339 : vector<2x32xf32>
    %c0_259 = arith.constant 0 : index
    %c0_260 = arith.constant 0 : index
    %341 = vector.load %arg41[%c0_259, %c0_260] : memref<32x512xf32, #tpu.memory_space<vmem>>, vector<32x512xf32>
    %cst_261 = arith.constant dense<0.000000e+00> : vector<2x512xf32>
    %342 = tpu.matmul %340, %341, %cst_261 {dimension_numbers = #tpu.dot_dimension_numbers<[1], [0], [0], [1], [0, 0, 1, 1], [], []>} : vector<2x32xf32>, vector<32x512xf32>, vector<2x512xf32> -> vector<2x512xf32>
    %cst_262 = arith.constant 9.99999974E-6 : f32
    %343 = vector.broadcast %cst_262 : f32 to vector<2x512xf32>
    %344 = arith.addf %342, %343 : vector<2x512xf32>
    %345 = math.rsqrt %344 : vector<2x512xf32>
    %346 = arith.mulf %335, %345 : vector<2x512xf32>
    %cst_263 = arith.constant 0.000000e+00 : f32
    %347 = vector.broadcast %cst_263 : f32 to vector<2x512xf32>
    %348 = arith.cmpf oge, %346, %347 : vector<2x512xf32>
    %cst_264 = arith.constant 2.000000e-01 : f32
    %349 = vector.broadcast %cst_264 : f32 to vector<2x512xf32>
    %350 = arith.mulf %349, %346 : vector<2x512xf32>
    %351 = arith.select %348, %346, %350 : vector<2x512xi1>, vector<2x512xf32>
    %352 = arith.truncf %351 : vector<2x512xf32> to vector<2x512xbf16>
    %c0_265 = arith.constant 0 : index
    %c0_266 = arith.constant 0 : index
    %353 = vector.load %arg19[%c0_265, %c0_266] : memref<512x512xbf16, #tpu.memory_space<vmem>>, vector<512x512xbf16>
    %cst_267 = arith.constant dense<0.000000e+00> : vector<2x512xf32>
    %354 = tpu.matmul %352, %353, %cst_267 {dimension_numbers = #tpu.dot_dimension_numbers<[1], [0], [0], [1], [0, 0, 1, 1], [], []>} : vector<2x512xbf16>, vector<512x512xbf16>, vector<2x512xf32> -> vector<2x512xf32>
    %c0_268 = arith.constant 0 : index
    %c0_269 = arith.constant 0 : index
    %355 = vector.load %arg18[%c0_268, %c0_269] : memref<1x512xf32, #tpu.memory_space<vmem>>, vector<1x512xf32>
    %356 = vector.broadcast %355 : vector<1x512xf32> to vector<2x512xf32>
    %357 = arith.addf %354, %356 : vector<2x512xf32>
    %c0_270 = arith.constant 0 : index
    %c0_271 = arith.constant 0 : index
    %358 = vector.load %arg42[%c0_270, %c0_271] : memref<512x32xf32, #tpu.memory_space<vmem>>, vector<512x32xf32>
    %cst_272 = arith.constant dense<0.000000e+00> : vector<2x32xf32>
    %359 = tpu.matmul %357, %358, %cst_272 {dimension_numbers = #tpu.dot_dimension_numbers<[1], [0], [0], [1], [0, 0, 1, 1], [], []>} : vector<2x512xf32>, vector<512x32xf32>, vector<2x32xf32> -> vector<2x32xf32>
    %cst_273 = arith.constant 6.250000e-02 : f32
    %360 = vector.broadcast %cst_273 : f32 to vector<2x32xf32>
    %361 = arith.mulf %359, %360 : vector<2x32xf32>
    %c0_274 = arith.constant 0 : index
    %c0_275 = arith.constant 0 : index
    %362 = vector.load %arg41[%c0_274, %c0_275] : memref<32x512xf32, #tpu.memory_space<vmem>>, vector<32x512xf32>
    %cst_276 = arith.constant dense<0.000000e+00> : vector<2x512xf32>
    %363 = tpu.matmul %361, %362, %cst_276 {dimension_numbers = #tpu.dot_dimension_numbers<[1], [0], [0], [1], [0, 0, 1, 1], [], []>} : vector<2x32xf32>, vector<32x512xf32>, vector<2x512xf32> -> vector<2x512xf32>
    %364 = arith.subf %357, %363 : vector<2x512xf32>
    %365 = arith.mulf %364, %364 : vector<2x512xf32>
    %c0_277 = arith.constant 0 : index
    %c0_278 = arith.constant 0 : index
    %366 = vector.load %arg42[%c0_277, %c0_278] : memref<512x32xf32, #tpu.memory_space<vmem>>, vector<512x32xf32>
    %cst_279 = arith.constant dense<0.000000e+00> : vector<2x32xf32>
    %367 = tpu.matmul %365, %366, %cst_279 {dimension_numbers = #tpu.dot_dimension_numbers<[1], [0], [0], [1], [0, 0, 1, 1], [], []>} : vector<2x512xf32>, vector<512x32xf32>, vector<2x32xf32> -> vector<2x32xf32>
    %cst_280 = arith.constant 6.250000e-02 : f32
    %368 = vector.broadcast %cst_280 : f32 to vector<2x32xf32>
    %369 = arith.mulf %367, %368 : vector<2x32xf32>
    %c0_281 = arith.constant 0 : index
    %c0_282 = arith.constant 0 : index
    %370 = vector.load %arg41[%c0_281, %c0_282] : memref<32x512xf32, #tpu.memory_space<vmem>>, vector<32x512xf32>
    %cst_283 = arith.constant dense<0.000000e+00> : vector<2x512xf32>
    %371 = tpu.matmul %369, %370, %cst_283 {dimension_numbers = #tpu.dot_dimension_numbers<[1], [0], [0], [1], [0, 0, 1, 1], [], []>} : vector<2x32xf32>, vector<32x512xf32>, vector<2x512xf32> -> vector<2x512xf32>
    %cst_284 = arith.constant 9.99999974E-6 : f32
    %372 = vector.broadcast %cst_284 : f32 to vector<2x512xf32>
    %373 = arith.addf %371, %372 : vector<2x512xf32>
    %374 = math.rsqrt %373 : vector<2x512xf32>
    %375 = arith.mulf %364, %374 : vector<2x512xf32>
    %cst_285 = arith.constant 0.000000e+00 : f32
    %376 = vector.broadcast %cst_285 : f32 to vector<2x512xf32>
    %377 = arith.cmpf oge, %375, %376 : vector<2x512xf32>
    %cst_286 = arith.constant 2.000000e-01 : f32
    %378 = vector.broadcast %cst_286 : f32 to vector<2x512xf32>
    %379 = arith.mulf %378, %375 : vector<2x512xf32>
    %380 = arith.select %377, %375, %379 : vector<2x512xi1>, vector<2x512xf32>
    %381 = arith.truncf %380 : vector<2x512xf32> to vector<2x512xbf16>
    %c0_287 = arith.constant 0 : index
    %c0_288 = arith.constant 0 : index
    %382 = vector.load %arg44[%c0_287, %c0_288] : memref<512x64xbf16, #tpu.memory_space<vmem>>, vector<512x64xbf16>
    %cst_289 = arith.constant dense<0.000000e+00> : vector<2x64xf32>
    %383 = tpu.matmul %381, %382, %cst_289 {dimension_numbers = #tpu.dot_dimension_numbers<[1], [0], [0], [1], [0, 0, 1, 1], [], []>} : vector<2x512xbf16>, vector<512x64xbf16>, vector<2x64xf32> -> vector<2x64xf32>
    %c0_290 = arith.constant 0 : index
    %c0_291 = arith.constant 0 : index
    %384 = vector.load %arg43[%c0_290, %c0_291] : memref<1x64xf32, #tpu.memory_space<vmem>>, vector<1x64xf32>
    %385 = vector.broadcast %384 : vector<1x64xf32> to vector<2x64xf32>
    %386 = arith.addf %383, %385 : vector<2x64xf32>
    %c0_292 = arith.constant 0 : index
    %c0_293 = arith.constant 0 : index
    %387 = vector.load %arg46[%c0_292, %c0_293] : memref<2x64xf32, #tpu.memory_space<vmem>>, vector<2x64xf32>
    tpu.vector_store %arg46[%c0_292, %c0_293], %386 {strides = array<i32>} : memref<2x64xf32, #tpu.memory_space<vmem>>, vector<2x64xf32>,
    return
  }
}

</mosaic_0001>

<bundles_post_ra>
// kernel: run.1
= control target key start
LH: loop header
LB: loop body
LE: loop exit
PB: predicated region body
PF: predicated region fallthrough
CT: control target
= control target key end

     0   :  { %s21902_s6 = smov 1   ;;  %s21903_s10 = smov 2   ;;  %s23573_s0 = inlined_call_operand.smem [shape: u32[47], index: -1, kind: input, shape index: {}] }
   0x1   :  { %s22012_s5 = sld [smem:[%s23573_s0]]   ;;  %s21904_s14 = smov 3  }
   0x2   :  { %s22017_s9 = sld [smem:[%s23573_s0 + %s21902_s6]]   ;;  %s21905_s18 = smov 4  }
   0x3   :  { %s22022_s13 = sld [smem:[%s23573_s0 + %s21903_s10]]   ;;  %s21906_s22 = smov 5  }
   0x4   :  { %s22027_s17 = sld [smem:[%s23573_s0 + %s21904_s14]]   ;;  %s21907_s26 = smov 6  }
   0x5   :  { %s22032_s21 = sld [smem:[%s23573_s0 + %s21905_s18]]   ;;  %s21908_s30 = smov 7  }
   0x6   :  { %s22037_s25 = sld [smem:[%s23573_s0 + %s21906_s22]]   ;;  %s21909_s4 = smov 8  }
   0x7   :  { %23607 = sst [smem:[#allocation89_spill]] %s22012_s5  ;;  %s21910_s10 = smov 9  }
   0x8   :  { %s22042_s29 = sld [smem:[%s23573_s0 + %s21907_s26]]   ;;  %s21911_s15 = smov 10  }
   0x9   :  { %23608 = sst [smem:[#allocation90_spill]] %s22022_s13  ;;  %s21912_s20 = smov 11  }
   0xa   :  { %s22047_s3 = sld [smem:[%s23573_s0 + %s21908_s30]]   ;;  %s21913_s26 = smov 12  }
   0xb   :  { %23609 = sst [smem:[#allocation91_spill]] %s22032_s21  ;;  %s21914_s1 = smov 13  }
   0xc   :  { %s22052_s8 = sld [smem:[%s23573_s0 + %s21909_s4]]   ;;  %s21915_s7 = smov 14  }
   0xd   :  { %s22057_s14 = sld [smem:[%s23573_s0 + %s21910_s10]]   ;;  %s21917_s22 = smov 16  }
   0xe   :  { %23610 = sst [smem:[#allocation92_spill]] %s22042_s29  ;;  %s21918_s28 = smov 17  }
   0xf   :  { %s22062_s19 = sld [smem:[%s23573_s0 + %s21911_s15]]   ;;  %s21916_s15 = smov 15  }
  0x10   :  { %s22067_s24 = sld [smem:[%s23573_s0 + %s21912_s20]]  }
  0x11   :  { %s22072_s30 = sld [smem:[%s23573_s0 + %s21913_s26]]  }
  0x12   :  { %23611 = sst [smem:[#allocation93_spill]] %s22052_s8 }
  0x13   :  { %s22077_s6 = sld [smem:[%s23573_s0 + %s21914_s1]]  }
  0x14   :  { %s22082_s12 = sld [smem:[%s23573_s0 + %s21915_s7]]   ;;  %s21919_s7 = smov 18  }
  0x15   :  { %23612 = sst [smem:[#allocation94_spill]] %s22062_s19 }
  0x16   :  { %s22087_s20 = sld [smem:[%s23573_s0 + %s21916_s15]]   ;;  %s21920_s15 = smov 19  }
  0x17   :  { %23613 = sst [smem:[#allocation95_spill]] %s22072_s30 }
  0x18   :  { %s22092_s27 = sld [smem:[%s23573_s0 + %s21917_s22]]   ;;  %s21921_s22 = smov 20  }
  0x19   :  { %s22097_s4 = sld [smem:[%s23573_s0 + %s21918_s28]]   ;;  %s21922_s28 = smov 21  }
  0x1a   :  { %23614 = sst [smem:[#allocation96_spill]] %s22082_s12 }
  0x1b   :  { %s22102_s12 = sld [smem:[%s23573_s0 + %s21919_s7]]   ;;  %s21923_s7 = smov 22  }
  0x1c   :  { %s22107_s30 = sld [smem:[%s23573_s0 + %s21920_s15]]   ;;  %s21924_s15 = smov 23  }
  0x1d   :  { %s22117_s19 = sld [smem:[%s23573_s0 + %s21922_s28]]   ;;  %s21926_s28 = smov 25  }
  0x1e   :  { %23615 = sst [smem:[#allocation97_spill]] %s22092_s27 }
  0x1f   :  { %s22112_s27 = sld [smem:[%s23573_s0 + %s21921_s22]]   ;;  %s21925_s22 = smov 24  }
  0x20   :  { %s22127_s8 = sld [smem:[%s23573_s0 + %s21924_s15]]   ;;  %s21928_s15 = smov 27  }
  0x21   :  { %23616 = sst [smem:[#allocation98_spill]] %s22102_s12 }
  0x22   :  { %s22122_s12 = sld [smem:[%s23573_s0 + %s21923_s7]]   ;;  %s21927_s7 = smov 26  }
  0x23   :  { %s22137_s29 = sld [smem:[%s23573_s0 + %s21926_s28]]   ;;  %s21930_s28 = smov 29  }
  0x24   :  { %s22147_s21 = sld [smem:[%s23573_s0 + %s21928_s15]]   ;;  %s21932_s15 = smov 31  }
  0x25   :  { %23617 = sst [smem:[#allocation99_spill]] %s22112_s27 }
  0x26   :  { %s22132_s27 = sld [smem:[%s23573_s0 + %s21925_s22]]   ;;  %s21929_s22 = smov 28  }
  0x27   :  { %s22157_s13 = sld [smem:[%s23573_s0 + %s21930_s28]]   ;;  %s21934_s28 = smov 33  }
  0x28   :  { %23618 = sst [smem:[#allocation100_spill]] %s22122_s12 }
  0x29   :  { %s22142_s12 = sld [smem:[%s23573_s0 + %s21927_s7]]   ;;  %s21931_s7 = smov 30  }
  0x2a   :  { %s22167_s5 = sld [smem:[%s23573_s0 + %s21932_s15]]   ;;  %s21936_s15 = smov 35  }
  0x2c   :  { %23619 = sst [smem:[#allocation101_spill]] %s22132_s27 }
  0x2d   :  { %s22152_s27 = sld [smem:[%s23573_s0 + %s21929_s22]]   ;;  %s21933_s22 = smov 32  }
  0x2e   :  { %23622 = sst [smem:[#allocation104_spill]] %s22157_s13 }
  0x2f   :  { %23620 = sst [smem:[#allocation102_spill]] %s22142_s12 }
  0x30   :  { %s22162_s12 = sld [smem:[%s23573_s0 + %s21931_s7]]   ;;  %s21935_s7 = smov 34  }
  0x31   :  { %23624 = sst [smem:[#allocation106_spill]] %s22167_s5 }
  0x32   :  { %s22177_s13 = sld [smem:[%s23573_s0 + %s21934_s28]]   ;;  %s21938_s28 = smov 37  }
  0x33   :  { %23621 = sst [smem:[#allocation103_spill]] %s22152_s27 }
  0x34   :  { %s22172_s27 = sld [smem:[%s23573_s0 + %s21933_s22]]   ;;  %s21937_s22 = smov 36  }
  0x35   :  { %s22187_s5 = sld [smem:[%s23573_s0 + %s21936_s15]]   ;;  %s21940_s15 = smov 39  }
  0x36   :  { %23623 = sst [smem:[#allocation105_spill]] %s22162_s12 }
  0x37   :  { %s22182_s12 = sld [smem:[%s23573_s0 + %s21935_s7]]   ;;  %s21939_s7 = smov 38  }
  0x38   :  { %23626 = sst [smem:[#allocation108_spill]] %s22177_s13 }
  0x39   :  { %s22197_s13 = sld [smem:[%s23573_s0 + %s21938_s28]]   ;;  %s21942_s28 = smov 41  }
  0x3a   :  { %23625 = sst [smem:[#allocation107_spill]] %s22172_s27 }
  0x3b   :  { %23628 = sst [smem:[#allocation110_spill]] %s22187_s5 }
  0x3c   :  { %s22192_s27 = sld [smem:[%s23573_s0 + %s21937_s22]]   ;;  %s21941_s22 = smov 40  }
  0x3d   :  { %23627 = sst [smem:[#allocation109_spill]] %s22182_s12 }
  0x3e   :  { %s22202_s12 = sld [smem:[%s23573_s0 + %s21939_s7]]   ;;  %s21943_s7 = smov 42  }
  0x3f   :  { %23630 = sst [smem:[#allocation112_spill]] %s22197_s13 }
  0x40   :  { %s22207_s5 = sld [smem:[%s23573_s0 + %s21940_s15]]   ;;  %s21944_s15 = smov 43  }
  0x41   :  { %s22217_s13 = sld [smem:[%s23573_s0 + %s21942_s28]]   ;;  %s21946_s28 = smov 45  }
  0x42   :  { %23629 = sst [smem:[#allocation111_spill]] %s22192_s27 }
  0x43   :  { %s22212_s27 = sld [smem:[%s23573_s0 + %s21941_s22]]   ;;  %s21945_s22 = smov 44  }
  0x44   :  { %23631 = sst [smem:[#allocation113_spill]] %s22202_s12 }
  0x45   :  { %s22222_s12 = sld [smem:[%s23573_s0 + %s21943_s7]]   ;;  %s21947_s7 = smov 46  }
  0x46   :  { %23632 = sst [smem:[#allocation114_spill]] %s22207_s5 }
  0x47   :  { %23634 = sst [smem:[#allocation116_spill]] %s22217_s13 }
  0x48   :  { %s22227_s5 = sld [smem:[%s23573_s0 + %s21944_s15]]  }
  0x49   :  { %23633 = sst [smem:[#allocation115_spill]] %s22212_s27 }
  0x4a   :  { %s22232_s27 = sld [smem:[%s23573_s0 + %s21945_s22]]  }
  0x4b   :  { %23635 = sst [smem:[#allocation117_spill]] %s22222_s12 }
  0x4c   :  { %s22237_s13 = sld [smem:[%s23573_s0 + %s21946_s28]]  }
  0x4d   :  { %s22242_s12 = sld [smem:[%s23573_s0 + %s21947_s7]]  }
  0x4e   :  { %98 = vsyncpa [#allocation3], 0 }
  0x4f   :  { %99 = vsyncpa [#allocation5], 0 }
  0x50   :  { %100 = vsyncpa [#allocation8], 0 }
  0x51   :  { %101 = vsyncpa [#allocation11], 0 }
  0x52   :  { %102 = vsyncpa [#allocation14], 0 }
  0x53   :  { %103 = vsyncpa [#allocation17], 0 }
  0x54   :  { %104 = vsyncpa [#allocation20], 0 }
  0x55   :  { %105 = vsyncpa [#allocation23], 0 }
  0x56   :  { %106 = vsyncpa [#allocation26], 0 }
  0x57   :  { %107 = vsyncpa [#allocation29], 0 }
  0x58   :  { %108 = vsyncpa [#allocation32], 0 }
  0x59   :  { %109 = vsyncpa [#allocation35], 0 }
  0x5a   :  { %110 = vsyncpa [#allocation38], 0 }
  0x5b   :  { %111 = vsyncpa [#allocation41], 0 }
  0x5c   :  { %112 = vsyncpa [#allocation44], 0 }
  0x5d   :  { %113 = vsyncpa [#allocation47], 0 }
  0x5e   :  { %114 = vsyncpa [#allocation50], 0 }
  0x5f   :  { %115 = vsyncpa [#allocation53], 0 }
  0x60   :  { %116 = vsyncpa [#allocation56], 0 }
  0x61   :  { %117 = vsyncpa [#allocation59], 0 }
  0x62   :  { %118 = vsyncpa [#allocation62], 0 }
  0x63   :  { %119 = vsyncpa [#allocation65], 0  ;;  %s21948_s0 = smov [#allocation4]   ;;  %s20912_s16 = scalar_lea.hbm %s22017_s9, 10240 }
  0x64   :  { %s135_s15 = sshll.u32 %s21948_s0, 4  ;;  %p20913_p0 = scmp.ne.s32.totalorder %s22017_s9, %s20912_s16  ;;  %s136_s15 = int_to_ptr.vmem [resolvable:$true] %s135_s15 }
  0x65   :  { %p20916_p1 = scmp.lt.u32.totalorder %s20912_s16, %s22017_s9 }
  0x67   :  { %p20918_p2 = pnand %p20916_p1, %p20913_p0 }
  0x69   :  { %20921 = shalt.err (!%p20918_p2)
}
  0x6a   :  { %s20922_s18 = scalar_lea.vmem %s136_s15, 10240  ;;  %p20927_p4 = scmp.lt.s32.totalorder %s136_s15, %s136_s15 }
  0x6b   :  { %p20923_p3 = scmp.ne.s32.totalorder %s136_s15, %s20922_s18  ;;  %p20928_p5 = scmp.lt.s32.totalorder %s20922_s18, %s20922_s18 }
  0x6d   :  { %p20929_p6 = por %p20928_p5, %p20927_p4 }
  0x6f   :  { %p20930_p7 = pnand %p20929_p6, %p20923_p3 }
  0x71   :  { %20933 = shalt.err (!%p20930_p7)
}
  0x72   :  { %s21949_s22 = smov 256   ;;  %s21950_s23 = smov 16  }
  0x73   :  { %141 = dma.hbm_to_vmem [thread:$0]  %s22017_s9, 10240, %s136_s15, [#allocation5], %s21949_s22, %s21949_s22, %s21950_s23  }
  0x74   :  { %s21951_s26 = smov [#allocation7]   ;;  %s20934_s1 = scalar_lea.hbm %s22027_s17, 16 }
  0x75   :  { %s158_s28 = sshll.u32 %s21951_s26, 4  ;;  %p20935_p8 = scmp.ne.s32.totalorder %s22027_s17, %s20934_s1  ;;  %s159_s28 = int_to_ptr.vmem [resolvable:$true] %s158_s28 }
  0x76   :  { %p20938_p9 = scmp.lt.u32.totalorder %s20934_s1, %s22027_s17 }
  0x78   :  { %p20940_p10 = pnand %p20938_p9, %p20935_p8 }
  0x7a   :  { %20943 = shalt.err (!%p20940_p10)
}
  0x7b   :  { %s20944_s2 = scalar_lea.vmem %s159_s28, 16  ;;  %s20948_s7 = scalar_lea.vmem %s159_s28, 32 }
  0x7c   :  { %p20945_p11 = scmp.ne.s32.totalorder %s159_s28, %s20944_s2  ;;  %p20949_p12 = scmp.lt.s32.totalorder %s159_s28, %s159_s28 }
  0x7d   :  { %p20950_p13 = scmp.lt.s32.totalorder %s20948_s7, %s20944_s2 }
  0x7f   :  { %p20951_p0 = por %p20950_p13, %p20949_p12 }
  0x81   :  { %p20952_p1 = pnand %p20951_p0, %p20945_p11 }
  0x83   :  { %20955 = shalt.err (!%p20952_p1)
}
  0x84   :  { %161 = dma.hbm_to_vmem [thread:$0]  %s22027_s17, 16, %s159_s28, [#allocation8]  }
  0x85   :  { %s21952_s9 = smov [#allocation10]   ;;  %s21953_s11 = smov [#allocation13]  }
  0x86   :  { %s179_s10 = sshll.u32 %s21952_s9, 4  ;;  %s204_s0 = sshll.u32 %s21953_s11, 4  ;;  %s180_s10 = int_to_ptr.vmem [resolvable:$true] %s179_s10  ;;  %s22255_s0 = int_to_ptr.vmem [resolvable:$true] %s204_s0 }
  0x87   :  { %s20956_s15 = scalar_lea.hbm %s22037_s25, 2048 }
  0x88   :  { %p20957_p2 = scmp.ne.s32.totalorder %s22037_s25, %s20956_s15  ;;  %p20960_p3 = scmp.lt.u32.totalorder %s20956_s15, %s22037_s25 }
  0x8a   :  { %p20962_p4 = pnand %p20960_p3, %p20957_p2 }
  0x8c   :  { %20965 = shalt.err (!%p20962_p4)
}
  0x8d   :  { %s20966_s16 = scalar_lea.vmem %s180_s10, 2048  ;;  %p20971_p6 = scmp.lt.s32.totalorder %s180_s10, %s180_s10 }
  0x8e   :  { %p20967_p5 = scmp.ne.s32.totalorder %s180_s10, %s20966_s16  ;;  %p20972_p7 = scmp.lt.s32.totalorder %s20966_s16, %s20966_s16 }
  0x90   :  { %p20973_p8 = por %p20972_p7, %p20971_p6 }
  0x92   :  { %p20974_p9 = pnand %p20973_p8, %p20967_p5 }
  0x94   :  { %20977 = shalt.err (!%p20974_p9)
}
  0x95   :  { %s21954_s17 = smov 64   ;;  %s21955_s18 = smov 4  }
  0x96   :  { %185 = dma.hbm_to_vmem [thread:$0]  %s22037_s25, 2048, %s180_s10, [#allocation11], %s21954_s17, %s21954_s17, %s21955_s18  }
  0x97   :  { %s20978_s26 = scalar_lea.hbm %s22047_s3, 16 }
  0x98   :  { %p20979_p10 = scmp.ne.s32.totalorder %s22047_s3, %s20978_s26  ;;  %p20982_p11 = scmp.lt.u32.totalorder %s20978_s26, %s22047_s3 }
  0x9a   :  { %p20984_p12 = pnand %p20982_p11, %p20979_p10 }
  0x9c   :  { %20987 = shalt.err (!%p20984_p12)
}
  0x9d   :  { %s20988_s28 = scalar_lea.vmem %s22255_s0, 16  ;;  %s20992_s1 = scalar_lea.vmem %s22255_s0, 32 }
  0x9e   :  { %p20989_p13 = scmp.ne.s32.totalorder %s22255_s0, %s20988_s28  ;;  %p20993_p0 = scmp.lt.s32.totalorder %s22255_s0, %s22255_s0 }
  0x9f   :  { %p20994_p1 = scmp.lt.s32.totalorder %s20992_s1, %s20988_s28 }
  0xa1   :  { %p20995_p2 = por %p20994_p1, %p20993_p0 }
  0xa3   :  { %p20996_p3 = pnand %p20995_p2, %p20989_p13 }
  0xa5   :  { %20999 = shalt.err (!%p20996_p3)
}
  0xa6   :  { %207 = dma.hbm_to_vmem [thread:$0]  %s22047_s3, 16, %s22255_s0, [#allocation14]  }
  0xa7   :  { %s21956_s25 = smov [#allocation16]   ;;  %s21957_s7 = smov [#allocation19]  }
  0xa8   :  { %s223_s2 = sshll.u32 %s21956_s25, 4  ;;  %s247_s9 = sshll.u32 %s21957_s7, 4  ;;  %s224_s2 = int_to_ptr.vmem [resolvable:$true] %s223_s2  ;;  %s22274_s9 = int_to_ptr.vmem [resolvable:$true] %s247_s9 }
  0xa9   :  { %s21000_s10 = scalar_lea.hbm %s22057_s14, 1024 }
  0xaa   :  { %p21001_p4 = scmp.ne.s32.totalorder %s22057_s14, %s21000_s10  ;;  %p21004_p5 = scmp.lt.u32.totalorder %s21000_s10, %s22057_s14 }
  0xac   :  { %p21006_p6 = pnand %p21004_p5, %p21001_p4 }
  0xae   :  { %21009 = shalt.err (!%p21006_p6)
}
  0xaf   :  { %s21010_s11 = scalar_lea.vmem %s224_s2, 1024  ;;  %p21015_p8 = scmp.lt.s32.totalorder %s224_s2, %s224_s2 }
  0xb0   :  { %p21011_p7 = scmp.ne.s32.totalorder %s224_s2, %s21010_s11  ;;  %p21016_p9 = scmp.lt.s32.totalorder %s21010_s11, %s21010_s11 }
  0xb2   :  { %p21017_p10 = por %p21016_p9, %p21015_p8 }
  0xb4   :  { %p21018_p11 = pnand %p21017_p10, %p21011_p7 }
  0xb6   :  { %21021 = shalt.err (!%p21018_p11)
}
  0xb7   :  { %229 = dma.hbm_to_vmem [thread:$0]  %s22057_s14, 1024, %s224_s2, [#allocation17], %s21954_s17, %s21954_s17, %s21955_s18  }
  0xb8   :  { %s21022_s3 = scalar_lea.hbm %s22067_s24, 2048 }
  0xb9   :  { %p21023_p12 = scmp.ne.s32.totalorder %s22067_s24, %s21022_s3  ;;  %p21026_p13 = scmp.lt.u32.totalorder %s21022_s3, %s22067_s24 }
  0xbb   :  { %p21028_p0 = pnand %p21026_p13, %p21023_p12 }
  0xbd   :  { %21031 = shalt.err (!%p21028_p0)
}
  0xbe   :  { %s21032_s0 = scalar_lea.vmem %s22274_s9, 2048  ;;  %p21037_p2 = scmp.lt.s32.totalorder %s22274_s9, %s22274_s9 }
  0xbf   :  { %p21033_p1 = scmp.ne.s32.totalorder %s22274_s9, %s21032_s0  ;;  %p21038_p3 = scmp.lt.s32.totalorder %s21032_s0, %s21032_s0 }
  0xc1   :  { %p21039_p4 = por %p21038_p3, %p21037_p2 }
  0xc3   :  { %p21040_p5 = pnand %p21039_p4, %p21033_p1 }
  0xc5   :  { %21043 = shalt.err (!%p21040_p5)
}
  0xc6   :  { %253 = dma.hbm_to_vmem [thread:$0]  %s22067_s24, 2048, %s22274_s9, [#allocation20], %s21954_s17, %s21954_s17, %s21955_s18  }
  0xc7   :  { %s21958_s14 = smov [#allocation22]   ;;  %s21959_s16 = smov [#allocation25]  }
  0xc8   :  { %s270_s15 = sshll.u32 %s21958_s14, 4  ;;  %s291_s26 = sshll.u32 %s21959_s16, 4  ;;  %s271_s15 = int_to_ptr.vmem [resolvable:$true] %s270_s15  ;;  %s22295_s26 = int_to_ptr.vmem [resolvable:$true] %s291_s26 }
  0xc9   :  { %s21044_s28 = scalar_lea.hbm %s22077_s6, 16 }
  0xca   :  { %p21045_p6 = scmp.ne.s32.totalorder %s22077_s6, %s21044_s28  ;;  %p21048_p7 = scmp.lt.u32.totalorder %s21044_s28, %s22077_s6 }
  0xcc   :  { %p21050_p8 = pnand %p21048_p7, %p21045_p6 }
  0xce   :  { %21053 = shalt.err (!%p21050_p8)
}
  0xcf   :  { %s21054_s1 = scalar_lea.vmem %s271_s15, 16  ;;  %s21058_s25 = scalar_lea.vmem %s271_s15, 32 }
  0xd0   :  { %p21055_p9 = scmp.ne.s32.totalorder %s271_s15, %s21054_s1  ;;  %p21059_p10 = scmp.lt.s32.totalorder %s271_s15, %s271_s15 }
  0xd1   :  { %p21060_p11 = scmp.lt.s32.totalorder %s21058_s25, %s21054_s1 }
  0xd3   :  { %p21061_p12 = por %p21060_p11, %p21059_p10 }
  0xd5   :  { %p21062_p13 = pnand %p21061_p12, %p21055_p9 }
  0xd7   :  { %21065 = shalt.err (!%p21062_p13)
}
  0xd8   :  { %273 = dma.hbm_to_vmem [thread:$0]  %s22077_s6, 16, %s271_s15, [#allocation23]  }
  0xd9   :  { %s21066_s24 = scalar_lea.hbm %s22087_s20, 1024 }
  0xda   :  { %p21067_p0 = scmp.ne.s32.totalorder %s22087_s20, %s21066_s24  ;;  %p21070_p1 = scmp.lt.u32.totalorder %s21066_s24, %s22087_s20 }
  0xdc   :  { %p21072_p2 = pnand %p21070_p1, %p21067_p0 }
  0xde   :  { %21075 = shalt.err (!%p21072_p2)
}
  0xdf   :  { %s21076_s2 = scalar_lea.vmem %s22295_s26, 1024  ;;  %p21081_p4 = scmp.lt.s32.totalorder %s22295_s26, %s22295_s26 }
  0xe0   :  { %p21077_p3 = scmp.ne.s32.totalorder %s22295_s26, %s21076_s2  ;;  %p21082_p5 = scmp.lt.s32.totalorder %s21076_s2, %s21076_s2 }
  0xe2   :  { %p21083_p6 = por %p21082_p5, %p21081_p4 }
  0xe4   :  { %p21084_p7 = pnand %p21083_p6, %p21077_p3 }
  0xe6   :  { %21087 = shalt.err (!%p21084_p7)
}
  0xe7   :  { %297 = dma.hbm_to_vmem [thread:$0]  %s22087_s20, 1024, %s22295_s26, [#allocation26], %s21954_s17, %s21954_s17, %s21955_s18  }
  0xe8   :  { %s21960_s6 = smov [#allocation28]   ;;  %s21961_s9 = smov [#allocation31]  }
  0xe9   :  { %s316_s7 = sshll.u32 %s21960_s6, 4  ;;  %s335_s10 = sshll.u32 %s21961_s9, 4  ;;  %s317_s7 = int_to_ptr.vmem [resolvable:$true] %s316_s7  ;;  %s22313_s10 = int_to_ptr.vmem [resolvable:$true] %s335_s10 }
  0xea   :  { %s21088_s11 = scalar_lea.hbm %s22097_s4, 64 }
  0xeb   :  { %p21089_p8 = scmp.ne.s32.totalorder %s22097_s4, %s21088_s11  ;;  %p21092_p9 = scmp.lt.u32.totalorder %s21088_s11, %s22097_s4 }
  0xed   :  { %p21094_p10 = pnand %p21092_p9, %p21089_p8 }
  0xef   :  { %21097 = shalt.err (!%p21094_p10)
}
  0xf0   :  { %s21098_s3 = scalar_lea.vmem %s317_s7, 64  ;;  %p21103_p12 = scmp.lt.s32.totalorder %s317_s7, %s317_s7 }
  0xf1   :  { %p21099_p11 = scmp.ne.s32.totalorder %s317_s7, %s21098_s3  ;;  %p21104_p13 = scmp.lt.s32.totalorder %s21098_s3, %s21098_s3 }
  0xf3   :  { %p21105_p0 = por %p21104_p13, %p21103_p12 }
  0xf5   :  { %p21106_p1 = pnand %p21105_p0, %p21099_p11 }
  0xf7   :  { %21109 = shalt.err (!%p21106_p1)
}
  0xf8   :  { %319 = dma.hbm_to_vmem [thread:$0]  %s22097_s4, 64, %s317_s7, [#allocation29]  }
  0xf9   :  { %s21110_s20 = scalar_lea.hbm %s22107_s30, 16384 }
  0xfa   :  { %p21111_p2 = scmp.ne.s32.totalorder %s22107_s30, %s21110_s20  ;;  %p21114_p3 = scmp.lt.u32.totalorder %s21110_s20, %s22107_s30 }
  0xfc   :  { %p21116_p4 = pnand %p21114_p3, %p21111_p2 }
  0xfe   :  { %21119 = shalt.err (!%p21116_p4)
}
  0xff   :  { %s21120_s0 = scalar_lea.vmem %s22313_s10, 16384  ;;  %p21125_p6 = scmp.lt.s32.totalorder %s22313_s10, %s22313_s10 }
 0x100   :  { %p21121_p5 = scmp.ne.s32.totalorder %s22313_s10, %s21120_s0  ;;  %p21126_p7 = scmp.lt.s32.totalorder %s21120_s0, %s21120_s0 }
 0x102   :  { %p21127_p8 = por %p21126_p7, %p21125_p6 }
 0x104   :  { %p21128_p9 = pnand %p21127_p8, %p21121_p5 }
 0x106   :  { %21131 = shalt.err (!%p21128_p9)
}
 0x107   :  { %341 = dma.hbm_to_vmem [thread:$0]  %s22107_s30, 16384, %s22313_s10, [#allocation32], %s21949_s22, %s21949_s22, %s21950_s23  }
 0x108   :  { %s21962_s4 = smov [#allocation34]   ;;  %s21132_s15 = scalar_lea.hbm %s22117_s19, 16384 }
 0x109   :  { %s359_s14 = sshll.u32 %s21962_s4, 4  ;;  %p21133_p10 = scmp.ne.s32.totalorder %s22117_s19, %s21132_s15  ;;  %s360_s14 = int_to_ptr.vmem [resolvable:$true] %s359_s14 }
 0x10a   :  { %p21136_p11 = scmp.lt.u32.totalorder %s21132_s15, %s22117_s19 }
 0x10c   :  { %p21138_p12 = pnand %p21136_p11, %p21133_p10 }
 0x10e   :  { %21141 = shalt.err (!%p21138_p12)
}
 0x10f   :  { %s21142_s16 = scalar_lea.vmem %s360_s14, 16384  ;;  %p21147_p0 = scmp.lt.s32.totalorder %s360_s14, %s360_s14 }
 0x110   :  { %p21143_p13 = scmp.ne.s32.totalorder %s360_s14, %s21142_s16  ;;  %p21148_p1 = scmp.lt.s32.totalorder %s21142_s16, %s21142_s16 }
 0x112   :  { %p21149_p2 = por %p21148_p1, %p21147_p0 }
 0x114   :  { %p21150_p3 = pnand %p21149_p2, %p21143_p13 }
 0x116   :  { %21153 = shalt.err (!%p21150_p3)
}
 0x117   :  { %365 = dma.hbm_to_vmem [thread:$0]  %s22117_s19, 16384, %s360_s14, [#allocation35], %s21949_s22, %s21949_s22, %s21950_s23  }
 0x118   :  { %s21963_s30 = smov [#allocation37]   ;;  %s21964_s28 = smov [#allocation40]  }
 0x119   :  { %s383_s26 = sshll.u32 %s21963_s30, 4  ;;  %s407_s1 = sshll.u32 %s21964_s28, 4  ;;  %s384_s26 = int_to_ptr.vmem [resolvable:$true] %s383_s26  ;;  %s408_s1 = int_to_ptr.vmem [resolvable:$true] %s407_s1 }
 0x11a   :  { %s21154_s25 = scalar_lea.hbm %s22127_s8, 4096 }
 0x11b   :  { %p21155_p4 = scmp.ne.s32.totalorder %s22127_s8, %s21154_s25  ;;  %p21158_p5 = scmp.lt.u32.totalorder %s21154_s25, %s22127_s8 }
 0x11d   :  { %p21160_p6 = pnand %p21158_p5, %p21155_p4 }
 0x11f   :  { %21163 = shalt.err (!%p21160_p6)
}
 0x120   :  { %s21164_s24 = scalar_lea.vmem %s384_s26, 4096  ;;  %p21169_p8 = scmp.lt.s32.totalorder %s384_s26, %s384_s26 }
 0x121   :  { %p21165_p7 = scmp.ne.s32.totalorder %s384_s26, %s21164_s24  ;;  %p21170_p9 = scmp.lt.s32.totalorder %s21164_s24, %s21164_s24 }
 0x123   :  { %p21171_p10 = por %p21170_p9, %p21169_p8 }
 0x125   :  { %p21172_p11 = pnand %p21171_p10, %p21165_p7 }
 0x127   :  { %21175 = shalt.err (!%p21172_p11)
}
 0x128   :  { %s21965_s2 = smov 128   ;;  %s21966_s19 = smov 8  }
 0x129   :  { %389 = dma.hbm_to_vmem [thread:$0]  %s22127_s8, 4096, %s384_s26, [#allocation38], %s21965_s2, %s21965_s2, %s21966_s19  }
 0x12a   :  { %s21176_s6 = scalar_lea.hbm %s22137_s29, 4096 }
 0x12b   :  { %p21177_p12 = scmp.ne.s32.totalorder %s22137_s29, %s21176_s6  ;;  %p21180_p13 = scmp.lt.u32.totalorder %s21176_s6, %s22137_s29 }
 0x12d   :  { %p21182_p0 = pnand %p21180_p13, %p21177_p12 }
 0x12f   :  { %21185 = shalt.err (!%p21182_p0)
}
 0x130   :  { %s21186_s7 = scalar_lea.vmem %s408_s1, 4096  ;;  %p21191_p2 = scmp.lt.s32.totalorder %s408_s1, %s408_s1 }
 0x131   :  { %p21187_p1 = scmp.ne.s32.totalorder %s408_s1, %s21186_s7  ;;  %p21192_p3 = scmp.lt.s32.totalorder %s21186_s7, %s21186_s7 }
 0x133   :  { %p21193_p4 = por %p21192_p3, %p21191_p2 }
 0x135   :  { %p21194_p5 = pnand %p21193_p4, %p21187_p1 }
 0x137   :  { %21197 = shalt.err (!%p21194_p5)
}
 0x138   :  { %413 = dma.hbm_to_vmem [thread:$0]  %s22137_s29, 4096, %s408_s1, [#allocation41], %s21965_s2, %s21965_s2, %s21966_s19  }
 0x139   :  { %s21967_s8 = smov [#allocation43]   ;;  %s21968_s10 = smov [#allocation46]  }
 0x13a   :  { %s431_s9 = sshll.u32 %s21967_s8, 4  ;;  %s455_s11 = sshll.u32 %s21968_s10, 4  ;;  %s432_s9 = int_to_ptr.vmem [resolvable:$true] %s431_s9  ;;  %s456_s11 = int_to_ptr.vmem [resolvable:$true] %s455_s11 }
 0x13b   :  { %s21198_s3 = scalar_lea.hbm %s22147_s21, 4096 }
 0x13c   :  { %p21199_p6 = scmp.ne.s32.totalorder %s22147_s21, %s21198_s3  ;;  %p21202_p7 = scmp.lt.u32.totalorder %s21198_s3, %s22147_s21 }
 0x13e   :  { %p21204_p8 = pnand %p21202_p7, %p21199_p6 }
 0x140   :  { %21207 = shalt.err (!%p21204_p8)
}
 0x141   :  { %s21208_s20 = scalar_lea.vmem %s432_s9, 4096  ;;  %p21213_p10 = scmp.lt.s32.totalorder %s432_s9, %s432_s9 }
 0x142   :  { %p21209_p9 = scmp.ne.s32.totalorder %s432_s9, %s21208_s20  ;;  %p21214_p11 = scmp.lt.s32.totalorder %s21208_s20, %s21208_s20 }
 0x144   :  { %p21215_p12 = por %p21214_p11, %p21213_p10 }
 0x146   :  { %p21216_p13 = pnand %p21215_p12, %p21209_p9 }
 0x148   :  { %21219 = shalt.err (!%p21216_p13)
}
 0x149   :  { %s23636_s29 = sld [smem:[#allocation104_spill]] }
 0x14a   :  { %437 = dma.hbm_to_vmem [thread:$0]  %s22147_s21, 4096, %s432_s9, [#allocation44], %s21965_s2, %s21965_s2, %s21966_s19  }
 0x14f   :  { %s21220_s0 = scalar_lea.hbm %s23636_s29, 4096 }
 0x150   :  { %p21221_p0 = scmp.ne.s32.totalorder %s23636_s29, %s21220_s0  ;;  %p21224_p1 = scmp.lt.u32.totalorder %s21220_s0, %s23636_s29 }
 0x152   :  { %p21226_p2 = pnand %p21224_p1, %p21221_p0 }
 0x154   :  { %21229 = shalt.err (!%p21226_p2)
}
 0x155   :  { %s21230_s4 = scalar_lea.vmem %s456_s11, 4096  ;;  %p21235_p4 = scmp.lt.s32.totalorder %s456_s11, %s456_s11 }
 0x156   :  { %p21231_p3 = scmp.ne.s32.totalorder %s456_s11, %s21230_s4  ;;  %p21236_p5 = scmp.lt.s32.totalorder %s21230_s4, %s21230_s4 }
 0x158   :  { %p21237_p6 = por %p21236_p5, %p21235_p4 }
 0x15a   :  { %p21238_p7 = pnand %p21237_p6, %p21231_p3 }
 0x15c   :  { %21241 = shalt.err (!%p21238_p7)
}
 0x15d   :  { %s23637_s14 = sld [smem:[#allocation106_spill]]  ;;  %s21969_s21 = smov [#allocation49]  }
 0x15e   :  { %461 = dma.hbm_to_vmem [thread:$0]  %s23636_s29, 4096, %s456_s11, [#allocation47], %s21965_s2, %s21965_s2, %s21966_s19  }
 0x15f   :  { %s479_s15 = sshll.u32 %s21969_s21, 4  ;;  %s21970_s16 = smov [#allocation52]   ;;  %s480_s15 = int_to_ptr.vmem [resolvable:$true] %s479_s15 }
 0x160   :  { %s503_s30 = sshll.u32 %s21970_s16, 4  ;;  %s504_s30 = int_to_ptr.vmem [resolvable:$true] %s503_s30 }
 0x163   :  { %s21242_s26 = scalar_lea.hbm %s23637_s14, 4096 }
 0x164   :  { %p21243_p8 = scmp.ne.s32.totalorder %s23637_s14, %s21242_s26  ;;  %p21246_p9 = scmp.lt.u32.totalorder %s21242_s26, %s23637_s14 }
 0x166   :  { %p21248_p10 = pnand %p21246_p9, %p21243_p8 }
 0x168   :  { %21251 = shalt.err (!%p21248_p10)
}
 0x169   :  { %s21252_s28 = scalar_lea.vmem %s480_s15, 4096  ;;  %p21257_p12 = scmp.lt.s32.totalorder %s480_s15, %s480_s15 }
 0x16a   :  { %p21253_p11 = scmp.ne.s32.totalorder %s480_s15, %s21252_s28  ;;  %p21258_p13 = scmp.lt.s32.totalorder %s21252_s28, %s21252_s28 }
 0x16c   :  { %p21259_p0 = por %p21258_p13, %p21257_p12 }
 0x16e   :  { %p21260_p1 = pnand %p21259_p0, %p21253_p11 }
 0x170   :  { %21263 = shalt.err (!%p21260_p1)
}
 0x171   :  { %s23638_s1 = sld [smem:[#allocation108_spill]] }
 0x172   :  { %485 = dma.hbm_to_vmem [thread:$0]  %s23637_s14, 4096, %s480_s15, [#allocation50], %s21965_s2, %s21965_s2, %s21966_s19  }
 0x177   :  { %s21264_s25 = scalar_lea.hbm %s23638_s1, 4096 }
 0x178   :  { %p21265_p2 = scmp.ne.s32.totalorder %s23638_s1, %s21264_s25  ;;  %p21268_p3 = scmp.lt.u32.totalorder %s21264_s25, %s23638_s1 }
 0x17a   :  { %p21270_p4 = pnand %p21268_p3, %p21265_p2 }
 0x17c   :  { %21273 = shalt.err (!%p21270_p4)
}
 0x17d   :  { %s21274_s24 = scalar_lea.vmem %s504_s30, 4096  ;;  %p21279_p6 = scmp.lt.s32.totalorder %s504_s30, %s504_s30 }
 0x17e   :  { %p21275_p5 = scmp.ne.s32.totalorder %s504_s30, %s21274_s24  ;;  %p21280_p7 = scmp.lt.s32.totalorder %s21274_s24, %s21274_s24 }
 0x180   :  { %p21281_p8 = por %p21280_p7, %p21279_p6 }
 0x182   :  { %p21282_p9 = pnand %p21281_p8, %p21275_p5 }
 0x184   :  { %21285 = shalt.err (!%p21282_p9)
}
 0x185   :  { %s23639_s6 = sld [smem:[#allocation110_spill]]  ;;  %s21971_s7 = smov [#allocation55]  }
 0x186   :  { %509 = dma.hbm_to_vmem [thread:$0]  %s23638_s1, 4096, %s504_s30, [#allocation53], %s21965_s2, %s21965_s2, %s21966_s19  }
 0x187   :  { %s527_s8 = sshll.u32 %s21971_s7, 4  ;;  %s21972_s9 = smov [#allocation58]   ;;  %s528_s8 = int_to_ptr.vmem [resolvable:$true] %s527_s8 }
 0x188   :  { %s551_s10 = sshll.u32 %s21972_s9, 4  ;;  %s552_s10 = int_to_ptr.vmem [resolvable:$true] %s551_s10 }
 0x18b   :  { %s21286_s11 = scalar_lea.hbm %s23639_s6, 4096 }
 0x18c   :  { %p21287_p10 = scmp.ne.s32.totalorder %s23639_s6, %s21286_s11  ;;  %p21290_p11 = scmp.lt.u32.totalorder %s21286_s11, %s23639_s6 }
 0x18e   :  { %p21292_p12 = pnand %p21290_p11, %p21287_p10 }
 0x190   :  { %21295 = shalt.err (!%p21292_p12)
}
 0x191   :  { %s21296_s3 = scalar_lea.vmem %s528_s8, 4096  ;;  %p21301_p0 = scmp.lt.s32.totalorder %s528_s8, %s528_s8 }
 0x192   :  { %p21297_p13 = scmp.ne.s32.totalorder %s528_s8, %s21296_s3  ;;  %p21302_p1 = scmp.lt.s32.totalorder %s21296_s3, %s21296_s3 }
 0x194   :  { %p21303_p2 = por %p21302_p1, %p21301_p0 }
 0x196   :  { %p21304_p3 = pnand %p21303_p2, %p21297_p13 }
 0x198   :  { %21307 = shalt.err (!%p21304_p3)
}
 0x199   :  { %s23640_s20 = sld [smem:[#allocation112_spill]] }
 0x19a   :  { %533 = dma.hbm_to_vmem [thread:$0]  %s23639_s6, 4096, %s528_s8, [#allocation56], %s21965_s2, %s21965_s2, %s21966_s19  }
 0x19f   :  { %s21308_s29 = scalar_lea.hbm %s23640_s20, 4096 }
 0x1a0   :  { %p21309_p4 = scmp.ne.s32.totalorder %s23640_s20, %s21308_s29  ;;  %p21312_p5 = scmp.lt.u32.totalorder %s21308_s29, %s23640_s20 }
 0x1a2   :  { %p21314_p6 = pnand %p21312_p5, %p21309_p4 }
 0x1a4   :  { %21317 = shalt.err (!%p21314_p6)
}
 0x1a5   :  { %s21318_s0 = scalar_lea.vmem %s552_s10, 4096  ;;  %p21323_p8 = scmp.lt.s32.totalorder %s552_s10, %s552_s10 }
 0x1a6   :  { %p21319_p7 = scmp.ne.s32.totalorder %s552_s10, %s21318_s0  ;;  %p21324_p9 = scmp.lt.s32.totalorder %s21318_s0, %s21318_s0 }
 0x1a8   :  { %p21325_p10 = por %p21324_p9, %p21323_p8 }
 0x1aa   :  { %p21326_p11 = pnand %p21325_p10, %p21319_p7 }
 0x1ac   :  { %21329 = shalt.err (!%p21326_p11)
}
 0x1ad   :  { %s23641_s4 = sld [smem:[#allocation114_spill]]  ;;  %s21973_s14 = smov [#allocation61]  }
 0x1ae   :  { %557 = dma.hbm_to_vmem [thread:$0]  %s23640_s20, 4096, %s552_s10, [#allocation59], %s21965_s2, %s21965_s2, %s21966_s19  }
 0x1af   :  { %s575_s21 = sshll.u32 %s21973_s14, 4  ;;  %s21974_s15 = smov [#allocation64]   ;;  %s576_s21 = int_to_ptr.vmem [resolvable:$true] %s575_s21 }
 0x1b0   :  { %s604_s16 = sshll.u32 %s21974_s15, 4  ;;  %s605_s16 = int_to_ptr.vmem [resolvable:$true] %s604_s16 }
 0x1b3   :  { %s21330_s30 = scalar_lea.hbm %s23641_s4, 512 }
 0x1b4   :  { %p21331_p12 = scmp.ne.s32.totalorder %s23641_s4, %s21330_s30  ;;  %p21334_p13 = scmp.lt.u32.totalorder %s21330_s30, %s23641_s4 }
 0x1b6   :  { %p21336_p0 = pnand %p21334_p13, %p21331_p12 }
 0x1b8   :  { %21339 = shalt.err (!%p21336_p0)
}
 0x1b9   :  { %s21340_s26 = scalar_lea.vmem %s576_s21, 512  ;;  %p21345_p2 = scmp.lt.s32.totalorder %s576_s21, %s576_s21 }
 0x1ba   :  { %p21341_p1 = scmp.ne.s32.totalorder %s576_s21, %s21340_s26  ;;  %p21346_p3 = scmp.lt.s32.totalorder %s21340_s26, %s21340_s26 }
 0x1bc   :  { %p21347_p4 = por %p21346_p3, %p21345_p2 }
 0x1be   :  { %p21348_p5 = pnand %p21347_p4, %p21341_p1 }
 0x1c0   :  { %21351 = shalt.err (!%p21348_p5)
}
 0x1c1   :  { %581 = dma.hbm_to_vmem [thread:$0]  %s23641_s4, 512, %s576_s21, [#allocation62], %s21965_s2, %s21965_s2, %s21966_s19  }
 0x1c2   :  { %s21352_s28 = scalar_lea.hbm %s22227_s5, 16 }
 0x1c3   :  { %p21353_p6 = scmp.ne.s32.totalorder %s22227_s5, %s21352_s28  ;;  %p21356_p7 = scmp.lt.u32.totalorder %s21352_s28, %s22227_s5 }
 0x1c5   :  { %p21358_p8 = pnand %p21356_p7, %p21353_p6 }
 0x1c7   :  { %21361 = shalt.err (!%p21358_p8)
}
 0x1c8   :  { %s21362_s1 = scalar_lea.vmem %s605_s16, 16  ;;  %s21366_s25 = scalar_lea.vmem %s605_s16, 32 }
 0x1c9   :  { %p21363_p9 = scmp.ne.s32.totalorder %s605_s16, %s21362_s1  ;;  %p21367_p10 = scmp.lt.s32.totalorder %s605_s16, %s605_s16 }
 0x1ca   :  { %p21368_p11 = scmp.lt.s32.totalorder %s21366_s25, %s21362_s1 }
 0x1cc   :  { %p21369_p12 = por %p21368_p11, %p21367_p10 }
 0x1ce   :  { %p21370_p13 = pnand %p21369_p12, %p21363_p9 }
 0x1d0   :  { %21373 = shalt.err (!%p21370_p13)
}
 0x1d1   :  { %s23642_s24 = sld [smem:[#allocation89_spill]]  ;;  %s21975_s6 = smov [#allocation2]  }
 0x1d2   :  { %607 = dma.hbm_to_vmem [thread:$0]  %s22227_s5, 16, %s605_s16, [#allocation65]  }
 0x1d3   :  { %s126_s7 = sshll.u32 %s21975_s6, 4  ;;  %s21976_s8 = smov [#allocation6]   ;;  %s127_s7 = int_to_ptr.vmem [resolvable:$true] %s126_s7 }
 0x1d4   :  { %s148_s9 = sshll.u32 %s21976_s8, 4  ;;  %s149_s9 = int_to_ptr.vmem [resolvable:$true] %s148_s9 }
 0x1d7   :  { %s21374_s10 = scalar_lea.hbm %s23642_s24, 96 }
 0x1d8   :  { %p21375_p0 = scmp.ne.s32.totalorder %s23642_s24, %s21374_s10  ;;  %p21378_p1 = scmp.lt.u32.totalorder %s21374_s10, %s23642_s24 }
 0x1da   :  { %p21380_p2 = pnand %p21378_p1, %p21375_p0 }
 0x1dc   :  { %21383 = shalt.err (!%p21380_p2)
}
 0x1dd   :  { %s21384_s11 = scalar_lea.vmem %s127_s7, 96  ;;  %p21389_p4 = scmp.lt.s32.totalorder %s127_s7, %s127_s7 }
 0x1de   :  { %p21385_p3 = scmp.ne.s32.totalorder %s127_s7, %s21384_s11  ;;  %p21390_p5 = scmp.lt.s32.totalorder %s21384_s11, %s21384_s11 }
 0x1e0   :  { %p21391_p6 = por %p21390_p5, %p21389_p4 }
 0x1e2   :  { %p21392_p7 = pnand %p21391_p6, %p21385_p3 }
 0x1e4   :  { %21395 = shalt.err (!%p21392_p7)
}
 0x1e5   :  { %s23643_s3 = sld [smem:[#allocation90_spill]] }
 0x1e6   :  { %129 = dma.hbm_to_vmem [thread:$0]  %s23642_s24, 96, %s127_s7, [#allocation3]  }
 0x1eb   :  { %s21396_s5 = scalar_lea.hbm %s23643_s3, 16 }
 0x1ec   :  { %p21397_p8 = scmp.ne.s32.totalorder %s23643_s3, %s21396_s5  ;;  %p21400_p9 = scmp.lt.u32.totalorder %s21396_s5, %s23643_s3 }
 0x1ee   :  { %p21402_p10 = pnand %p21400_p9, %p21397_p8 }
 0x1f0   :  { %21405 = shalt.err (!%p21402_p10)
}
 0x1f1   :  { %s21406_s20 = scalar_lea.vmem %s149_s9, 16  ;;  %s21410_s29 = scalar_lea.vmem %s149_s9, 32 }
 0x1f2   :  { %p21407_p11 = scmp.ne.s32.totalorder %s149_s9, %s21406_s20  ;;  %p21411_p12 = scmp.lt.s32.totalorder %s149_s9, %s149_s9 }
 0x1f3   :  { %p21412_p13 = scmp.lt.s32.totalorder %s21410_s29, %s21406_s20 }
 0x1f5   :  { %p21413_p0 = por %p21412_p13, %p21411_p12 }
 0x1f7   :  { %p21414_p1 = pnand %p21413_p0, %p21407_p11 }
 0x1f9   :  { %21417 = shalt.err (!%p21414_p1)
}
 0x1fa   :  { %s23644_s0 = sld [smem:[#allocation91_spill]]  ;;  %s21977_s4 = smov [#allocation9]  }
 0x1fb   :  { %151 = dma.hbm_to_vmem [thread:$0]  %s23643_s3, 16, %s149_s9, [#allocation5]  }
 0x1fc   :  { %s167_s14 = sshll.u32 %s21977_s4, 4  ;;  %s21978_s21 = smov [#allocation12]   ;;  %s168_s14 = int_to_ptr.vmem [resolvable:$true] %s167_s14 }
 0x1fd   :  { %s191_s15 = sshll.u32 %s21978_s21, 4  ;;  %s192_s15 = int_to_ptr.vmem [resolvable:$true] %s191_s15 }
 0x200   :  { %s21418_s16 = scalar_lea.hbm %s23644_s0, 1024 }
 0x201   :  { %p21419_p2 = scmp.ne.s32.totalorder %s23644_s0, %s21418_s16  ;;  %p21422_p3 = scmp.lt.u32.totalorder %s21418_s16, %s23644_s0 }
 0x203   :  { %p21424_p4 = pnand %p21422_p3, %p21419_p2 }
 0x205   :  { %21427 = shalt.err (!%p21424_p4)
}
 0x206   :  { %s21428_s30 = scalar_lea.vmem %s168_s14, 1024  ;;  %p21433_p6 = scmp.lt.s32.totalorder %s168_s14, %s168_s14 }
 0x207   :  { %p21429_p5 = scmp.ne.s32.totalorder %s168_s14, %s21428_s30  ;;  %p21434_p7 = scmp.lt.s32.totalorder %s21428_s30, %s21428_s30 }
 0x209   :  { %p21435_p8 = por %p21434_p7, %p21433_p6 }
 0x20b   :  { %p21436_p9 = pnand %p21435_p8, %p21429_p5 }
 0x20d   :  { %21439 = shalt.err (!%p21436_p9)
}
 0x20e   :  { %s23645_s26 = sld [smem:[#allocation92_spill]] }
 0x20f   :  { %173 = dma.hbm_to_vmem [thread:$0]  %s23644_s0, 1024, %s168_s14, [#allocation8], %s21954_s17, %s21954_s17, %s21955_s18  }
 0x214   :  { %s21440_s28 = scalar_lea.hbm %s23645_s26, 2048 }
 0x215   :  { %p21441_p10 = scmp.ne.s32.totalorder %s23645_s26, %s21440_s28  ;;  %p21444_p11 = scmp.lt.u32.totalorder %s21440_s28, %s23645_s26 }
 0x217   :  { %p21446_p12 = pnand %p21444_p11, %p21441_p10 }
 0x219   :  { %21449 = shalt.err (!%p21446_p12)
}
 0x21a   :  { %s21450_s1 = scalar_lea.vmem %s192_s15, 2048  ;;  %p21455_p0 = scmp.lt.s32.totalorder %s192_s15, %s192_s15 }
 0x21b   :  { %p21451_p13 = scmp.ne.s32.totalorder %s192_s15, %s21450_s1  ;;  %p21456_p1 = scmp.lt.s32.totalorder %s21450_s1, %s21450_s1 }
 0x21d   :  { %p21457_p2 = por %p21456_p1, %p21455_p0 }
 0x21f   :  { %p21458_p3 = pnand %p21457_p2, %p21451_p13 }
 0x221   :  { %21461 = shalt.err (!%p21458_p3)
}
 0x222   :  { %s23646_s25 = sld [smem:[#allocation93_spill]]  ;;  %s21979_s24 = smov [#allocation15]  }
 0x223   :  { %197 = dma.hbm_to_vmem [thread:$0]  %s23645_s26, 2048, %s192_s15, [#allocation11], %s21954_s17, %s21954_s17, %s21955_s18  }
 0x224   :  { %s214_s6 = sshll.u32 %s21979_s24, 4  ;;  %s21980_s7 = smov [#allocation18]   ;;  %s215_s6 = int_to_ptr.vmem [resolvable:$true] %s214_s6 }
 0x225   :  { %s235_s8 = sshll.u32 %s21980_s7, 4  ;;  %s236_s8 = int_to_ptr.vmem [resolvable:$true] %s235_s8 }
 0x228   :  { %s21462_s9 = scalar_lea.hbm %s23646_s25, 16 }
 0x229   :  { %p21463_p4 = scmp.ne.s32.totalorder %s23646_s25, %s21462_s9  ;;  %p21466_p5 = scmp.lt.u32.totalorder %s21462_s9, %s23646_s25 }
 0x22b   :  { %p21468_p6 = pnand %p21466_p5, %p21463_p4 }
 0x22d   :  { %21471 = shalt.err (!%p21468_p6)
}
 0x22e   :  { %s21472_s10 = scalar_lea.vmem %s215_s6, 16  ;;  %s21476_s11 = scalar_lea.vmem %s215_s6, 32 }
 0x22f   :  { %p21473_p7 = scmp.ne.s32.totalorder %s215_s6, %s21472_s10  ;;  %p21477_p8 = scmp.lt.s32.totalorder %s215_s6, %s215_s6 }
 0x230   :  { %p21478_p9 = scmp.lt.s32.totalorder %s21476_s11, %s21472_s10 }
 0x232   :  { %p21479_p10 = por %p21478_p9, %p21477_p8 }
 0x234   :  { %p21480_p11 = pnand %p21479_p10, %p21473_p7 }
 0x236   :  { %21483 = shalt.err (!%p21480_p11)
}
 0x237   :  { %s23647_s3 = sld [smem:[#allocation94_spill]] }
 0x238   :  { %217 = dma.hbm_to_vmem [thread:$0]  %s23646_s25, 16, %s215_s6, [#allocation14]  }
 0x23d   :  { %s21484_s5 = scalar_lea.hbm %s23647_s3, 1024 }
 0x23e   :  { %p21485_p12 = scmp.ne.s32.totalorder %s23647_s3, %s21484_s5  ;;  %p21488_p13 = scmp.lt.u32.totalorder %s21484_s5, %s23647_s3 }
 0x240   :  { %p21490_p0 = pnand %p21488_p13, %p21485_p12 }
 0x242   :  { %21493 = shalt.err (!%p21490_p0)
}
 0x243   :  { %s21494_s20 = scalar_lea.vmem %s236_s8, 1024  ;;  %p21499_p2 = scmp.lt.s32.totalorder %s236_s8, %s236_s8 }
 0x244   :  { %p21495_p1 = scmp.ne.s32.totalorder %s236_s8, %s21494_s20  ;;  %p21500_p3 = scmp.lt.s32.totalorder %s21494_s20, %s21494_s20 }
 0x246   :  { %p21501_p4 = por %p21500_p3, %p21499_p2 }
 0x248   :  { %p21502_p5 = pnand %p21501_p4, %p21495_p1 }
 0x24a   :  { %21505 = shalt.err (!%p21502_p5)
}
 0x24b   :  { %s23648_s29 = sld [smem:[#allocation95_spill]]  ;;  %s21981_s0 = smov [#allocation21]  }
 0x24c   :  { %241 = dma.hbm_to_vmem [thread:$0]  %s23647_s3, 1024, %s236_s8, [#allocation17], %s21954_s17, %s21954_s17, %s21955_s18  }
 0x24d   :  { %s260_s4 = sshll.u32 %s21981_s0, 4  ;;  %s21982_s14 = smov [#allocation24]   ;;  %s261_s4 = int_to_ptr.vmem [resolvable:$true] %s260_s4 }
 0x24e   :  { %s279_s21 = sshll.u32 %s21982_s14, 4  ;;  %s280_s21 = int_to_ptr.vmem [resolvable:$true] %s279_s21 }
 0x251   :  { %s21506_s15 = scalar_lea.hbm %s23648_s29, 16 }
 0x252   :  { %p21507_p6 = scmp.ne.s32.totalorder %s23648_s29, %s21506_s15  ;;  %p21510_p7 = scmp.lt.u32.totalorder %s21506_s15, %s23648_s29 }
 0x254   :  { %p21512_p8 = pnand %p21510_p7, %p21507_p6 }
 0x256   :  { %21515 = shalt.err (!%p21512_p8)
}
 0x257   :  { %s21516_s16 = scalar_lea.vmem %s261_s4, 16  ;;  %s21520_s30 = scalar_lea.vmem %s261_s4, 32 }
 0x258   :  { %p21517_p9 = scmp.ne.s32.totalorder %s261_s4, %s21516_s16  ;;  %p21521_p10 = scmp.lt.s32.totalorder %s261_s4, %s261_s4 }
 0x259   :  { %p21522_p11 = scmp.lt.s32.totalorder %s21520_s30, %s21516_s16 }
 0x25b   :  { %p21523_p12 = por %p21522_p11, %p21521_p10 }
 0x25d   :  { %p21524_p13 = pnand %p21523_p12, %p21517_p9 }
 0x25f   :  { %21527 = shalt.err (!%p21524_p13)
}
 0x260   :  { %s23649_s26 = sld [smem:[#allocation96_spill]] }
 0x261   :  { %263 = dma.hbm_to_vmem [thread:$0]  %s23648_s29, 16, %s261_s4, [#allocation20]  }
 0x266   :  { %s21528_s28 = scalar_lea.hbm %s23649_s26, 1024 }
 0x267   :  { %p21529_p0 = scmp.ne.s32.totalorder %s23649_s26, %s21528_s28  ;;  %p21532_p1 = scmp.lt.u32.totalorder %s21528_s28, %s23649_s26 }
 0x269   :  { %p21534_p2 = pnand %p21532_p1, %p21529_p0 }
 0x26b   :  { %21537 = shalt.err (!%p21534_p2)
}
 0x26c   :  { %s21538_s1 = scalar_lea.vmem %s280_s21, 1024  ;;  %p21543_p4 = scmp.lt.s32.totalorder %s280_s21, %s280_s21 }
 0x26d   :  { %p21539_p3 = scmp.ne.s32.totalorder %s280_s21, %s21538_s1  ;;  %p21544_p5 = scmp.lt.s32.totalorder %s21538_s1, %s21538_s1 }
 0x26f   :  { %p21545_p6 = por %p21544_p5, %p21543_p4 }
 0x271   :  { %p21546_p7 = pnand %p21545_p6, %p21539_p3 }
 0x273   :  { %21549 = shalt.err (!%p21546_p7)
}
 0x274   :  { %s23650_s25 = sld [smem:[#allocation97_spill]]  ;;  %s21983_s24 = smov [#allocation27]  }
 0x275   :  { %285 = dma.hbm_to_vmem [thread:$0]  %s23649_s26, 1024, %s280_s21, [#allocation23], %s21954_s17, %s21954_s17, %s21955_s18  }
 0x276   :  { %s303_s6 = sshll.u32 %s21983_s24, 4  ;;  %s21984_s7 = smov [#allocation30]   ;;  %s304_s6 = int_to_ptr.vmem [resolvable:$true] %s303_s6 }
 0x277   :  { %s326_s8 = sshll.u32 %s21984_s7, 4  ;;  %s327_s8 = int_to_ptr.vmem [resolvable:$true] %s326_s8 }
 0x27a   :  { %s21550_s9 = scalar_lea.hbm %s23650_s25, 2048 }
 0x27b   :  { %p21551_p8 = scmp.ne.s32.totalorder %s23650_s25, %s21550_s9  ;;  %p21554_p9 = scmp.lt.u32.totalorder %s21550_s9, %s23650_s25 }
 0x27d   :  { %p21556_p10 = pnand %p21554_p9, %p21551_p8 }
 0x27f   :  { %21559 = shalt.err (!%p21556_p10)
}
 0x280   :  { %s21560_s10 = scalar_lea.vmem %s304_s6, 2048  ;;  %p21565_p12 = scmp.lt.s32.totalorder %s304_s6, %s304_s6 }
 0x281   :  { %p21561_p11 = scmp.ne.s32.totalorder %s304_s6, %s21560_s10  ;;  %p21566_p13 = scmp.lt.s32.totalorder %s21560_s10, %s21560_s10 }
 0x283   :  { %p21567_p0 = por %p21566_p13, %p21565_p12 }
 0x285   :  { %p21568_p1 = pnand %p21567_p0, %p21561_p11 }
 0x287   :  { %21571 = shalt.err (!%p21568_p1)
}
 0x288   :  { %s23651_s11 = sld [smem:[#allocation98_spill]] }
 0x289   :  { %309 = dma.hbm_to_vmem [thread:$0]  %s23650_s25, 2048, %s304_s6, [#allocation26], %s21954_s17, %s21954_s17, %s21955_s18  }
 0x28e   :  { %s21572_s3 = scalar_lea.hbm %s23651_s11, 64 }
 0x28f   :  { %p21573_p2 = scmp.ne.s32.totalorder %s23651_s11, %s21572_s3  ;;  %p21576_p3 = scmp.lt.u32.totalorder %s21572_s3, %s23651_s11 }
 0x291   :  { %p21578_p4 = pnand %p21576_p3, %p21573_p2 }
 0x293   :  { %21581 = shalt.err (!%p21578_p4)
}
 0x294   :  { %s21582_s5 = scalar_lea.vmem %s327_s8, 64  ;;  %p21587_p6 = scmp.lt.s32.totalorder %s327_s8, %s327_s8 }
 0x295   :  { %p21583_p5 = scmp.ne.s32.totalorder %s327_s8, %s21582_s5  ;;  %p21588_p7 = scmp.lt.s32.totalorder %s21582_s5, %s21582_s5 }
 0x297   :  { %p21589_p8 = por %p21588_p7, %p21587_p6 }
 0x299   :  { %p21590_p9 = pnand %p21589_p8, %p21583_p5 }
 0x29b   :  { %21593 = shalt.err (!%p21590_p9)
}
 0x29c   :  { %s23652_s20 = sld [smem:[#allocation99_spill]]  ;;  %s21985_s29 = smov [#allocation33]  }
 0x29d   :  { %329 = dma.hbm_to_vmem [thread:$0]  %s23651_s11, 64, %s327_s8, [#allocation29]  }
 0x29e   :  { %s347_s0 = sshll.u32 %s21985_s29, 4  ;;  %s21986_s4 = smov [#allocation36]   ;;  %s348_s0 = int_to_ptr.vmem [resolvable:$true] %s347_s0 }
 0x29f   :  { %s371_s14 = sshll.u32 %s21986_s4, 4  ;;  %s372_s14 = int_to_ptr.vmem [resolvable:$true] %s371_s14 }
 0x2a2   :  { %s21594_s21 = scalar_lea.hbm %s23652_s20, 4096 }
 0x2a3   :  { %p21595_p10 = scmp.ne.s32.totalorder %s23652_s20, %s21594_s21  ;;  %p21598_p11 = scmp.lt.u32.totalorder %s21594_s21, %s23652_s20 }
 0x2a5   :  { %p21600_p12 = pnand %p21598_p11, %p21595_p10 }
 0x2a7   :  { %21603 = shalt.err (!%p21600_p12)
}
 0x2a8   :  { %s21604_s15 = scalar_lea.vmem %s348_s0, 4096  ;;  %p21609_p0 = scmp.lt.s32.totalorder %s348_s0, %s348_s0 }
 0x2a9   :  { %p21605_p13 = scmp.ne.s32.totalorder %s348_s0, %s21604_s15  ;;  %p21610_p1 = scmp.lt.s32.totalorder %s21604_s15, %s21604_s15 }
 0x2ab   :  { %p21611_p2 = por %p21610_p1, %p21609_p0 }
 0x2ad   :  { %p21612_p3 = pnand %p21611_p2, %p21605_p13 }
 0x2af   :  { %21615 = shalt.err (!%p21612_p3)
}
 0x2b0   :  { %s23653_s16 = sld [smem:[#allocation100_spill]] }
 0x2b1   :  { %353 = dma.hbm_to_vmem [thread:$0]  %s23652_s20, 4096, %s348_s0, [#allocation32], %s21949_s22, %s21949_s22, %s21950_s23  }
 0x2b6   :  { %s21616_s30 = scalar_lea.hbm %s23653_s16, 2048 }
 0x2b7   :  { %p21617_p4 = scmp.ne.s32.totalorder %s23653_s16, %s21616_s30  ;;  %p21620_p5 = scmp.lt.u32.totalorder %s21616_s30, %s23653_s16 }
 0x2b9   :  { %p21622_p6 = pnand %p21620_p5, %p21617_p4 }
 0x2bb   :  { %21625 = shalt.err (!%p21622_p6)
}
 0x2bc   :  { %s21626_s26 = scalar_lea.vmem %s372_s14, 2048  ;;  %p21631_p8 = scmp.lt.s32.totalorder %s372_s14, %s372_s14 }
 0x2bd   :  { %p21627_p7 = scmp.ne.s32.totalorder %s372_s14, %s21626_s26  ;;  %p21632_p9 = scmp.lt.s32.totalorder %s21626_s26, %s21626_s26 }
 0x2bf   :  { %p21633_p10 = por %p21632_p9, %p21631_p8 }
 0x2c1   :  { %p21634_p11 = pnand %p21633_p10, %p21627_p7 }
 0x2c3   :  { %21637 = shalt.err (!%p21634_p11)
}
 0x2c4   :  { %s23654_s28 = sld [smem:[#allocation101_spill]]  ;;  %s21987_s22 = smov [#allocation39]  }
 0x2c5   :  { %377 = dma.hbm_to_vmem [thread:$0]  %s23653_s16, 2048, %s372_s14, [#allocation35], %s21965_s2, %s21965_s2, %s21966_s19  }
 0x2c6   :  { %s395_s23 = sshll.u32 %s21987_s22, 4  ;;  %s21988_s1 = smov [#allocation42]   ;;  %s396_s23 = int_to_ptr.vmem [resolvable:$true] %s395_s23 }
 0x2c7   :  { %s419_s25 = sshll.u32 %s21988_s1, 4  ;;  %s420_s25 = int_to_ptr.vmem [resolvable:$true] %s419_s25 }
 0x2ca   :  { %s21638_s24 = scalar_lea.hbm %s23654_s28, 2048 }
 0x2cb   :  { %p21639_p12 = scmp.ne.s32.totalorder %s23654_s28, %s21638_s24  ;;  %p21642_p13 = scmp.lt.u32.totalorder %s21638_s24, %s23654_s28 }
 0x2cd   :  { %p21644_p0 = pnand %p21642_p13, %p21639_p12 }
 0x2cf   :  { %21647 = shalt.err (!%p21644_p0)
}
 0x2d0   :  { %s21648_s6 = scalar_lea.vmem %s396_s23, 2048  ;;  %p21653_p2 = scmp.lt.s32.totalorder %s396_s23, %s396_s23 }
 0x2d1   :  { %p21649_p1 = scmp.ne.s32.totalorder %s396_s23, %s21648_s6  ;;  %p21654_p3 = scmp.lt.s32.totalorder %s21648_s6, %s21648_s6 }
 0x2d3   :  { %p21655_p4 = por %p21654_p3, %p21653_p2 }
 0x2d5   :  { %p21656_p5 = pnand %p21655_p4, %p21649_p1 }
 0x2d7   :  { %21659 = shalt.err (!%p21656_p5)
}
 0x2d8   :  { %s23655_s7 = sld [smem:[#allocation102_spill]] }
 0x2d9   :  { %401 = dma.hbm_to_vmem [thread:$0]  %s23654_s28, 2048, %s396_s23, [#allocation38], %s21965_s2, %s21965_s2, %s21966_s19  }
 0x2de   :  { %s21660_s8 = scalar_lea.hbm %s23655_s7, 4096 }
 0x2df   :  { %p21661_p6 = scmp.ne.s32.totalorder %s23655_s7, %s21660_s8  ;;  %p21664_p7 = scmp.lt.u32.totalorder %s21660_s8, %s23655_s7 }
 0x2e1   :  { %p21666_p8 = pnand %p21664_p7, %p21661_p6 }
 0x2e3   :  { %21669 = shalt.err (!%p21666_p8)
}
 0x2e4   :  { %s21670_s9 = scalar_lea.vmem %s420_s25, 4096  ;;  %p21675_p10 = scmp.lt.s32.totalorder %s420_s25, %s420_s25 }
 0x2e5   :  { %p21671_p9 = scmp.ne.s32.totalorder %s420_s25, %s21670_s9  ;;  %p21676_p11 = scmp.lt.s32.totalorder %s21670_s9, %s21670_s9 }
 0x2e7   :  { %p21677_p12 = por %p21676_p11, %p21675_p10 }
 0x2e9   :  { %p21678_p13 = pnand %p21677_p12, %p21671_p9 }
 0x2eb   :  { %21681 = shalt.err (!%p21678_p13)
}
 0x2ec   :  { %s23656_s10 = sld [smem:[#allocation103_spill]]  ;;  %s21989_s11 = smov [#allocation45]  }
 0x2ed   :  { %425 = dma.hbm_to_vmem [thread:$0]  %s23655_s7, 4096, %s420_s25, [#allocation41], %s21965_s2, %s21965_s2, %s21966_s19  }
 0x2ee   :  { %s443_s3 = sshll.u32 %s21989_s11, 4  ;;  %s21990_s5 = smov [#allocation48]   ;;  %s444_s3 = int_to_ptr.vmem [resolvable:$true] %s443_s3 }
 0x2ef   :  { %s467_s20 = sshll.u32 %s21990_s5, 4  ;;  %s468_s20 = int_to_ptr.vmem [resolvable:$true] %s467_s20 }
 0x2f2   :  { %s21682_s29 = scalar_lea.hbm %s23656_s10, 4096 }
 0x2f3   :  { %p21683_p0 = scmp.ne.s32.totalorder %s23656_s10, %s21682_s29  ;;  %p21686_p1 = scmp.lt.u32.totalorder %s21682_s29, %s23656_s10 }
 0x2f5   :  { %p21688_p2 = pnand %p21686_p1, %p21683_p0 }
 0x2f7   :  { %21691 = shalt.err (!%p21688_p2)
}
 0x2f8   :  { %s21692_s0 = scalar_lea.vmem %s444_s3, 4096  ;;  %p21697_p4 = scmp.lt.s32.totalorder %s444_s3, %s444_s3 }
 0x2f9   :  { %p21693_p3 = scmp.ne.s32.totalorder %s444_s3, %s21692_s0  ;;  %p21698_p5 = scmp.lt.s32.totalorder %s21692_s0, %s21692_s0 }
 0x2fb   :  { %p21699_p6 = por %p21698_p5, %p21697_p4 }
 0x2fd   :  { %p21700_p7 = pnand %p21699_p6, %p21693_p3 }
 0x2ff   :  { %21703 = shalt.err (!%p21700_p7)
}
 0x300   :  { %s23657_s4 = sld [smem:[#allocation105_spill]] }
 0x301   :  { %449 = dma.hbm_to_vmem [thread:$0]  %s23656_s10, 4096, %s444_s3, [#allocation44], %s21965_s2, %s21965_s2, %s21966_s19  }
 0x306   :  { %s21704_s14 = scalar_lea.hbm %s23657_s4, 4096 }
 0x307   :  { %p21705_p8 = scmp.ne.s32.totalorder %s23657_s4, %s21704_s14  ;;  %p21708_p9 = scmp.lt.u32.totalorder %s21704_s14, %s23657_s4 }
 0x309   :  { %p21710_p10 = pnand %p21708_p9, %p21705_p8 }
 0x30b   :  { %21713 = shalt.err (!%p21710_p10)
}
 0x30c   :  { %s21714_s21 = scalar_lea.vmem %s468_s20, 4096  ;;  %p21719_p12 = scmp.lt.s32.totalorder %s468_s20, %s468_s20 }
 0x30d   :  { %p21715_p11 = scmp.ne.s32.totalorder %s468_s20, %s21714_s21  ;;  %p21720_p13 = scmp.lt.s32.totalorder %s21714_s21, %s21714_s21 }
 0x30f   :  { %p21721_p0 = por %p21720_p13, %p21719_p12 }
 0x311   :  { %p21722_p1 = pnand %p21721_p0, %p21715_p11 }
 0x313   :  { %21725 = shalt.err (!%p21722_p1)
}
 0x314   :  { %s23658_s15 = sld [smem:[#allocation107_spill]]  ;;  %s21991_s16 = smov [#allocation51]  }
 0x315   :  { %473 = dma.hbm_to_vmem [thread:$0]  %s23657_s4, 4096, %s468_s20, [#allocation47], %s21965_s2, %s21965_s2, %s21966_s19  }
 0x316   :  { %s491_s30 = sshll.u32 %s21991_s16, 4  ;;  %s21992_s26 = smov [#allocation54]   ;;  %s492_s30 = int_to_ptr.vmem [resolvable:$true] %s491_s30 }
 0x317   :  { %s515_s28 = sshll.u32 %s21992_s26, 4  ;;  %s516_s28 = int_to_ptr.vmem [resolvable:$true] %s515_s28 }
 0x31a   :  { %s21726_s22 = scalar_lea.hbm %s23658_s15, 4096 }
 0x31b   :  { %p21727_p2 = scmp.ne.s32.totalorder %s23658_s15, %s21726_s22  ;;  %p21730_p3 = scmp.lt.u32.totalorder %s21726_s22, %s23658_s15 }
 0x31d   :  { %p21732_p4 = pnand %p21730_p3, %p21727_p2 }
 0x31f   :  { %21735 = shalt.err (!%p21732_p4)
}
 0x320   :  { %s21736_s23 = scalar_lea.vmem %s492_s30, 4096  ;;  %p21741_p6 = scmp.lt.s32.totalorder %s492_s30, %s492_s30 }
 0x321   :  { %p21737_p5 = scmp.ne.s32.totalorder %s492_s30, %s21736_s23  ;;  %p21742_p7 = scmp.lt.s32.totalorder %s21736_s23, %s21736_s23 }
 0x323   :  { %p21743_p8 = por %p21742_p7, %p21741_p6 }
 0x325   :  { %p21744_p9 = pnand %p21743_p8, %p21737_p5 }
 0x327   :  { %21747 = shalt.err (!%p21744_p9)
}
 0x328   :  { %s23659_s1 = sld [smem:[#allocation109_spill]] }
 0x329   :  { %497 = dma.hbm_to_vmem [thread:$0]  %s23658_s15, 4096, %s492_s30, [#allocation50], %s21965_s2, %s21965_s2, %s21966_s19  }
 0x32e   :  { %s21748_s25 = scalar_lea.hbm %s23659_s1, 4096 }
 0x32f   :  { %p21749_p10 = scmp.ne.s32.totalorder %s23659_s1, %s21748_s25  ;;  %p21752_p11 = scmp.lt.u32.totalorder %s21748_s25, %s23659_s1 }
 0x331   :  { %p21754_p12 = pnand %p21752_p11, %p21749_p10 }
 0x333   :  { %21757 = shalt.err (!%p21754_p12)
}
 0x334   :  { %s21758_s24 = scalar_lea.vmem %s516_s28, 4096  ;;  %p21763_p0 = scmp.lt.s32.totalorder %s516_s28, %s516_s28 }
 0x335   :  { %p21759_p13 = scmp.ne.s32.totalorder %s516_s28, %s21758_s24  ;;  %p21764_p1 = scmp.lt.s32.totalorder %s21758_s24, %s21758_s24 }
 0x337   :  { %p21765_p2 = por %p21764_p1, %p21763_p0 }
 0x339   :  { %p21766_p3 = pnand %p21765_p2, %p21759_p13 }
 0x33b   :  { %21769 = shalt.err (!%p21766_p3)
}
 0x33c   :  { %s23660_s6 = sld [smem:[#allocation111_spill]]  ;;  %s21993_s7 = smov [#allocation57]  }
 0x33d   :  { %521 = dma.hbm_to_vmem [thread:$0]  %s23659_s1, 4096, %s516_s28, [#allocation53], %s21965_s2, %s21965_s2, %s21966_s19  }
 0x33e   :  { %s539_s8 = sshll.u32 %s21993_s7, 4  ;;  %s21994_s9 = smov [#allocation60]   ;;  %s540_s8 = int_to_ptr.vmem [resolvable:$true] %s539_s8 }
 0x33f   :  { %s563_s10 = sshll.u32 %s21994_s9, 4  ;;  %s564_s10 = int_to_ptr.vmem [resolvable:$true] %s563_s10 }
 0x342   :  { %s21770_s11 = scalar_lea.hbm %s23660_s6, 4096 }
 0x343   :  { %p21771_p4 = scmp.ne.s32.totalorder %s23660_s6, %s21770_s11  ;;  %p21774_p5 = scmp.lt.u32.totalorder %s21770_s11, %s23660_s6 }
 0x345   :  { %p21776_p6 = pnand %p21774_p5, %p21771_p4 }
 0x347   :  { %21779 = shalt.err (!%p21776_p6)
}
 0x348   :  { %s21780_s3 = scalar_lea.vmem %s540_s8, 4096  ;;  %p21785_p8 = scmp.lt.s32.totalorder %s540_s8, %s540_s8 }
 0x349   :  { %p21781_p7 = scmp.ne.s32.totalorder %s540_s8, %s21780_s3  ;;  %p21786_p9 = scmp.lt.s32.totalorder %s21780_s3, %s21780_s3 }
 0x34b   :  { %p21787_p10 = por %p21786_p9, %p21785_p8 }
 0x34d   :  { %p21788_p11 = pnand %p21787_p10, %p21781_p7 }
 0x34f   :  { %21791 = shalt.err (!%p21788_p11)
}
 0x350   :  { %s23661_s5 = sld [smem:[#allocation113_spill]] }
 0x351   :  { %545 = dma.hbm_to_vmem [thread:$0]  %s23660_s6, 4096, %s540_s8, [#allocation56], %s21965_s2, %s21965_s2, %s21966_s19  }
 0x356   :  { %s21792_s20 = scalar_lea.hbm %s23661_s5, 4096 }
 0x357   :  { %p21793_p12 = scmp.ne.s32.totalorder %s23661_s5, %s21792_s20  ;;  %p21796_p13 = scmp.lt.u32.totalorder %s21792_s20, %s23661_s5 }
 0x359   :  { %p21798_p0 = pnand %p21796_p13, %p21793_p12 }
 0x35b   :  { %21801 = shalt.err (!%p21798_p0)
}
 0x35c   :  { %s21802_s29 = scalar_lea.vmem %s564_s10, 4096  ;;  %p21807_p2 = scmp.lt.s32.totalorder %s564_s10, %s564_s10 }
 0x35d   :  { %p21803_p1 = scmp.ne.s32.totalorder %s564_s10, %s21802_s29  ;;  %p21808_p3 = scmp.lt.s32.totalorder %s21802_s29, %s21802_s29 }
 0x35f   :  { %p21809_p4 = por %p21808_p3, %p21807_p2 }
 0x361   :  { %p21810_p5 = pnand %p21809_p4, %p21803_p1 }
 0x363   :  { %21813 = shalt.err (!%p21810_p5)
}
 0x364   :  { %s23662_s0 = sld [smem:[#allocation116_spill]]  ;;  %s21995_s4 = smov [#allocation63]  }
 0x365   :  { %569 = dma.hbm_to_vmem [thread:$0]  %s23661_s5, 4096, %s564_s10, [#allocation59], %s21965_s2, %s21965_s2, %s21966_s19  }
 0x366   :  { %s589_s14 = sshll.u32 %s21995_s4, 4  ;;  %s590_s14 = int_to_ptr.vmem [resolvable:$true] %s589_s14 }
 0x36a   :  { %s21814_s21 = scalar_lea.hbm %s23662_s0, 2048 }
 0x36b   :  { %p21815_p6 = scmp.ne.s32.totalorder %s23662_s0, %s21814_s21  ;;  %p21818_p7 = scmp.lt.u32.totalorder %s21814_s21, %s23662_s0 }
 0x36d   :  { %p21820_p8 = pnand %p21818_p7, %p21815_p6 }
 0x36f   :  { %21823 = shalt.err (!%p21820_p8)
}
 0x370   :  { %s21824_s15 = scalar_lea.vmem %s590_s14, 2048  ;;  %p21829_p10 = scmp.lt.s32.totalorder %s590_s14, %s590_s14 }
 0x371   :  { %p21825_p9 = scmp.ne.s32.totalorder %s590_s14, %s21824_s15  ;;  %p21830_p11 = scmp.lt.s32.totalorder %s21824_s15, %s21824_s15 }
 0x373   :  { %p21831_p12 = por %p21830_p11, %p21829_p10 }
 0x375   :  { %p21832_p13 = pnand %p21831_p12, %p21825_p9 }
 0x377   :  { %21835 = shalt.err (!%p21832_p13)
}
 0x378   :  { %s21996_s16 = smov 512   ;;  %s21997_s2 = smov 32  }
 0x379   :  { %595 = dma.hbm_to_vmem [thread:$0]  %s23662_s0, 2048, %s590_s14, [#allocation62], %s21996_s16, %s21996_s16, %s21997_s2  }
 0x37a   :  { %s21998_s19 = smov [#allocation66]   ;;  %s21836_s26 = scalar_lea.hbm %s22237_s13, 36864 }
 0x37b   :  { %s615_s30 = sshll.u32 %s21998_s19, 4  ;;  %p21837_p0 = scmp.ne.s32.totalorder %s22237_s13, %s21836_s26  ;;  %s616_s30 = int_to_ptr.vmem [resolvable:$true] %s615_s30 }
 0x37c   :  { %p21840_p1 = scmp.lt.u32.totalorder %s21836_s26, %s22237_s13 }
 0x37e   :  { %p21842_p2 = pnand %p21840_p1, %p21837_p0 }
 0x380   :  { %21845 = shalt.err (!%p21842_p2)
}
 0x381   :  { %s21846_s28 = scalar_lea.vmem %s616_s30, 36864  ;;  %p21851_p4 = scmp.lt.s32.totalorder %s616_s30, %s616_s30 }
 0x382   :  { %p21847_p3 = scmp.ne.s32.totalorder %s616_s30, %s21846_s28  ;;  %p21852_p5 = scmp.lt.s32.totalorder %s21846_s28, %s21846_s28 }
 0x384   :  { %p21853_p6 = por %p21852_p5, %p21851_p4 }
 0x386   :  { %p21854_p7 = pnand %p21853_p6, %p21847_p3 }
 0x388   :  { %21857 = shalt.err (!%p21854_p7)
}
 0x389   :  { %621 = dma.hbm_to_vmem [thread:$0]  %s22237_s13, 36864, %s616_s30, [#allocation65], %s21954_s17, %s21954_s17, %s21955_s18  }
 0x38a   :  { %21858 = dma.done.wait [#allocation3], 96  }
 0x38b   :  { %21859 = vsyncadd [#allocation3], 4294967200 }
 0x38c   :  { %21860 = dma.done.wait [#allocation5], 10256  }
 0x38d   :  { %21861 = vsyncadd [#allocation5], 4294957040 }
 0x38e   :  { %21862 = dma.done.wait [#allocation8], 1040  }
 0x38f   :  { %21863 = vsyncadd [#allocation8], 4294966256 }
 0x390   :  { %21864 = dma.done.wait [#allocation11], 4096  }
 0x391   :  { %21865 = vsyncadd [#allocation11], 4294963200 }
 0x392   :  { %21866 = dma.done.wait [#allocation14], 32  }
 0x393   :  { %21867 = vsyncadd [#allocation14], 4294967264 }
 0x394   :  { %21868 = dma.done.wait [#allocation17], 2048  }
 0x395   :  { %21869 = vsyncadd [#allocation17], 4294965248 }
 0x396   :  { %21870 = dma.done.wait [#allocation20], 2064  }
 0x397   :  { %21871 = vsyncadd [#allocation20], 4294965232 }
 0x398   :  { %21872 = dma.done.wait [#allocation23], 1040  }
 0x399   :  { %21873 = vsyncadd [#allocation23], 4294966256 }
 0x39a   :  { %21874 = dma.done.wait [#allocation26], 3072  }
 0x39b   :  { %21875 = vsyncadd [#allocation26], 4294964224 }
 0x39c   :  { %21876 = dma.done.wait [#allocation29], 128  }
 0x39d   :  { %21877 = vsyncadd [#allocation29], 4294967168 }
 0x39e   :  { %21878 = dma.done.wait [#allocation32], 20480  }
 0x39f   :  { %21879 = vsyncadd [#allocation32], 4294946816 }
 0x3a0   :  { %21880 = dma.done.wait [#allocation35], 18432  }
 0x3a1   :  { %21881 = vsyncadd [#allocation35], 4294948864 }
 0x3a2   :  { %21882 = dma.done.wait [#allocation38], 6144  }
 0x3a3   :  { %21883 = vsyncadd [#allocation38], 4294961152 }
 0x3a4   :  { %21884 = dma.done.wait [#allocation41], 8192  }
 0x3a5   :  { %21885 = vsyncadd [#allocation41], 4294959104 }
 0x3a6   :  { %21886 = dma.done.wait [#allocation44], 8192  }
 0x3a7   :  { %21887 = vsyncadd [#allocation44], 4294959104 }
 0x3a8   :  { %21888 = dma.done.wait [#allocation47], 8192  }
 0x3a9   :  { %21889 = vsyncadd [#allocation47], 4294959104 }
 0x3aa   :  { %21890 = dma.done.wait [#allocation50], 8192  }
 0x3ab   :  { %21891 = vsyncadd [#allocation50], 4294959104 }
 0x3ac   :  { %21892 = dma.done.wait [#allocation53], 8192  }
 0x3ad   :  { %21893 = vsyncadd [#allocation53], 4294959104 }
 0x3ae   :  { %21894 = dma.done.wait [#allocation56], 8192  }
 0x3af   :  { %21895 = vsyncadd [#allocation56], 4294959104 }
 0x3b0   :  { %21896 = dma.done.wait [#allocation59], 8192  }
 0x3b1   :  { %21897 = vsyncadd [#allocation59], 4294959104 }
 0x3b2   :  { %21898 = dma.done.wait [#allocation62], 2560  }
 0x3b3   :  { %21899 = vsyncadd [#allocation62], 4294964736 }
 0x3b4   :  { %21900 = dma.done.wait [#allocation65], 36880  }
 0x3b5   :  { %21901 = vsyncadd [#allocation65], 4294930416  ;;  %v19139_v0 = vld [vmem:[#allocation4 + $0x4] ss:$16 sps:$4 sm:$0xff]   ;;  %v19141_v1 = vld [vmem:[#allocation4 + $0xc] ss:$16 sps:$4 sm:$0xff]   ;;  %v758_v38 = vlaneseq }
 0x3b6   :  { %1260 = vmatprep.subr.bf16.mxu0 %v19139_v0  ;;  %v19143_v2 = vld [vmem:[#allocation4] ss:$16 sps:$4 sm:$0xff]   ;;  %v19144_v3 = vld [vmem:[#allocation4 + $0x8] ss:$16 sps:$4 sm:$0xff]   ;;  %1342 = vmatprep.subr.bf16.mxu1 %v19141_v1  ;;  %v19145_v4 = vld [vmem:[#allocation4 + $0x24] ss:$16 sps:$4 sm:$0xff]  }
 0x3b7   :  { %1261 = vmatpush1.bf16.msra.mxu0 %v19143_v2  ;;  %1343 = vmatpush1.bf16.msra.mxu1 %v19144_v3  ;;  %v19147_v5 = vld [vmem:[#allocation4 + $0x2c] ss:$16 sps:$4 sm:$0xff]   ;;  %v19149_v6 = vld [vmem:[#allocation4 + $0x20] ss:$16 sps:$4 sm:$0xff]   ;;  %v19150_v7 = vld [vmem:[#allocation4 + $0x28] ss:$16 sps:$4 sm:$0xff]  }
 0x3b8   :  { %1262 = vmatprep.subr.bf16.mxu0 %v19145_v4  ;;  %1344 = vmatprep.subr.bf16.mxu1 %v19147_v5  ;;  %v19151_v8 = vld [vmem:[#allocation4 + $0x44] ss:$16 sps:$4 sm:$0xff]   ;;  %v19153_v9 = vld [vmem:[#allocation4 + $0x4c] ss:$16 sps:$4 sm:$0xff]   ;;  %v19155_v10 = vld [vmem:[#allocation4 + $0x40] ss:$16 sps:$4 sm:$0xff]  }
 0x3b9   :  { %v19156_v11 = vld [vmem:[#allocation4 + $0x48] ss:$16 sps:$4 sm:$0xff]   ;;  %v19157_v12 = vld [vmem:[#allocation4 + $0x64] ss:$16 sps:$4 sm:$0xff]   ;;  %v19159_v13 = vld [vmem:[#allocation4 + $0x6c] ss:$16 sps:$4 sm:$0xff]  }
 0x3ba   :  { %v19161_v14 = vld [vmem:[#allocation4 + $0x60] ss:$16 sps:$4 sm:$0xff]   ;;  %v19162_v15 = vld [vmem:[#allocation4 + $0x68] ss:$16 sps:$4 sm:$0xff]   ;;  %v19163_v16 = vld [vmem:[#allocation4 + $0x84] ss:$16 sps:$4 sm:$0xff]  }
 0x3bb   :  { %1263 = vmatpush1.bf16.msra.mxu0 %v19149_v6  ;;  %1345 = vmatpush1.bf16.msra.mxu1 %v19150_v7  ;;  %v19165_v17 = vld [vmem:[#allocation4 + $0x8c] ss:$16 sps:$4 sm:$0xff]   ;;  %v19167_v18 = vld [vmem:[#allocation4 + $0x80] ss:$16 sps:$4 sm:$0xff]   ;;  %v19168_v19 = vld [vmem:[#allocation4 + $0x88] ss:$16 sps:$4 sm:$0xff]  }
 0x3bc   :  { %1264 = vmatprep.subr.bf16.mxu0 %v19151_v8  ;;  %1346 = vmatprep.subr.bf16.mxu1 %v19153_v9  ;;  %v19169_v20 = vld [vmem:[#allocation4 + $0xa4] ss:$16 sps:$4 sm:$0xff]   ;;  %v19171_v21 = vld [vmem:[#allocation4 + $0xac] ss:$16 sps:$4 sm:$0xff]   ;;  %v19173_v22 = vld [vmem:[#allocation4 + $0xa0] ss:$16 sps:$4 sm:$0xff]  }
 0x3bd   :  { %v19174_v23 = vld [vmem:[#allocation4 + $0xa8] ss:$16 sps:$4 sm:$0xff]   ;;  %v19175_v24 = vld [vmem:[#allocation4 + $0xc4] ss:$16 sps:$4 sm:$0xff]   ;;  %v19177_v25 = vld [vmem:[#allocation4 + $0xcc] ss:$16 sps:$4 sm:$0xff]  }
 0x3be   :  { %v19179_v26 = vld [vmem:[#allocation4 + $0xc0] ss:$16 sps:$4 sm:$0xff]   ;;  %v19180_v27 = vld [vmem:[#allocation4 + $0xc8] ss:$16 sps:$4 sm:$0xff]   ;;  %v19181_v28 = vld [vmem:[#allocation4 + $0xe4] ss:$16 sps:$4 sm:$0xff]  }
 0x3bf   :  { %1265 = vmatpush1.bf16.msra.mxu0 %v19155_v10  ;;  %1347 = vmatpush1.bf16.msra.mxu1 %v19156_v11  ;;  %v19183_v29 = vld [vmem:[#allocation4 + $0xec] ss:$16 sps:$4 sm:$0xff]   ;;  %v19185_v30 = vld [vmem:[#allocation4 + $0xe0] ss:$16 sps:$4 sm:$0xff]   ;;  %v19186_v31 = vld [vmem:[#allocation4 + $0xe8] ss:$16 sps:$4 sm:$0xff]  }
 0x3c0   :  { %1266 = vmatprep.subr.bf16.mxu0 %v19157_v12  ;;  %1348 = vmatprep.subr.bf16.mxu1 %v19159_v13  ;;  %v19187_v32 = vld [vmem:[#allocation4 + $0x104] ss:$16 sps:$4 sm:$0xff]   ;;  %v19189_v33 = vld [vmem:[#allocation4 + $0x10c] ss:$16 sps:$4 sm:$0xff]   ;;  %v19191_v34 = vld [vmem:[#allocation4 + $0x100] ss:$16 sps:$4 sm:$0xff]  }
 0x3c1   :  { %v19192_v35 = vld [vmem:[#allocation4 + $0x108] ss:$16 sps:$4 sm:$0xff]   ;;  %v21999_v36 = vmov 1983009808   ;;  %v19193_v39 = vld [vmem:[#allocation4 + $0x124] ss:$16 sps:$4 sm:$0xff]  }
 0x3c2   :  { %v756_v37 = vunpack.c.l.s4 %v21999_v36  ;;  %v19195_v40 = vld [vmem:[#allocation4 + $0x12c] ss:$16 sps:$4 sm:$0xff]   ;;  %v19197_v41 = vld [vmem:[#allocation4 + $0x120] ss:$16 sps:$4 sm:$0xff]   ;;  %v22541_v43 = vshrl.u32 %v758_v38, 7  ;;  %vm1256_vm0 = vcmask 523264  }
 0x3c3   :  { %1267 = vmatpush1.bf16.msra.mxu0 %v19161_v14  ;;  %1349 = vmatpush1.bf16.msra.mxu1 %v19162_v15  ;;  %v19198_v44 = vld [vmem:[#allocation4 + $0x128] ss:$16 sps:$4 sm:$0xff]   ;;  %v19199_v45 = vld [vmem:[#allocation4 + $0x144] ss:$16 sps:$4 sm:$0xff]   ;;  %v19201_v46 = vld [vmem:[#allocation4 + $0x14c] ss:$16 sps:$4 sm:$0xff]  }
 0x3c4   :  { %1268 = vmatprep.subr.bf16.mxu0 %v19163_v16  ;;  %1350 = vmatprep.subr.bf16.mxu1 %v19165_v17  ;;  %v757_v42 = vunpack.c.0.s8 %v756_v37  ;;  %v19203_v47 = vld [vmem:[#allocation4 + $0x140] ss:$16 sps:$4 sm:$0xff]   ;;  %v19204_v48 = vld [vmem:[#allocation4 + $0x148] ss:$16 sps:$4 sm:$0xff]   ;;  %v19205_v50 = vld [vmem:[#allocation4 + $0x164] ss:$16 sps:$4 sm:$0xff]  }
 0x3c5   :  { %v19207_v51 = vld [vmem:[#allocation4 + $0x16c] ss:$16 sps:$4 sm:$0xff]   ;;  %v19209_v53 = vld [vmem:[#allocation4 + $0x160] ss:$16 sps:$4 sm:$0xff]   ;;  %v19210_v55 = vld [vmem:[#allocation4 + $0x168] ss:$16 sps:$4 sm:$0xff]  }
 0x3c6   :  { %v22544_v49 = vsub.s32 %v757_v42, %v22541_v43  ;;  %v22546_v52 = vld [vmem:[#allocation2] sm:$0x3f]  ;;  %v19211_v56 = vld [vmem:[#allocation4 + $0x184] ss:$16 sps:$4 sm:$0xff]   ;;  %v19215_v59 = vld [vmem:[#allocation4 + $0x180] ss:$16 sps:$4 sm:$0xff]  }
 0x3c7   :  { %1269 = vmatpush1.bf16.msra.mxu0 %v19167_v18  ;;  %1351 = vmatpush1.bf16.msra.mxu1 %v19168_v19  ;;  %v19213_v57 = vld [vmem:[#allocation4 + $0x18c] ss:$16 sps:$4 sm:$0xff]   ;;  %v19216_v61 = vld [vmem:[#allocation4 + $0x188] ss:$16 sps:$4 sm:$0xff]   ;;  %v19217_v62 = vld [vmem:[#allocation4 + $0x1a4] ss:$16 sps:$4 sm:$0xff]  }
 0x3c8   :  { %1270 = vmatprep.subr.bf16.mxu0 %v19169_v20  ;;  %1352 = vmatprep.subr.bf16.mxu1 %v19171_v21  ;;  %v761_v54 = vrot.slane %v22546_v52, %v22544_v49  ;;  %v19219_v63 = vld [vmem:[#allocation4 + $0x1ac] ss:$16 sps:$4 sm:$0xff]   ;;  %v19221_v0 = vld [vmem:[#allocation4 + $0x1a0] ss:$16 sps:$4 sm:$0xff]   ;;  %v19222_v1 = vld [vmem:[#allocation4 + $0x1a8] ss:$16 sps:$4 sm:$0xff]  }
 0x3c9   :  { %v19223_v2 = vld [vmem:[#allocation4 + $0x1c4] ss:$16 sps:$4 sm:$0xff]   ;;  %v19225_v3 = vld [vmem:[#allocation4 + $0x1cc] ss:$16 sps:$4 sm:$0xff]   ;;  %v19227_v4 = vld [vmem:[#allocation4 + $0x1c0] ss:$16 sps:$4 sm:$0xff]  }
 0x3ca   :  { %v769_v58 = vcombine.high %v761_v54, %v761_v54  ;;  %v19228_v5 = vld [vmem:[#allocation4 + $0x1c8] ss:$16 sps:$4 sm:$0xff]   ;;  %v19229_v6 = vld [vmem:[#allocation4 + $0x1e4] ss:$16 sps:$4 sm:$0xff]   ;;  %v19231_v7 = vld [vmem:[#allocation4 + $0x1ec] ss:$16 sps:$4 sm:$0xff]   ;;  %v773_v14 = vpack.c.bf16 %v761_v54, %v761_v54 }
 0x3cb   :  { %1271 = vmatpush1.bf16.msra.mxu0 %v19173_v22  ;;  %1353 = vmatpush1.bf16.msra.mxu1 %v19174_v23  ;;  %v19233_v8 = vld [vmem:[#allocation4 + $0x1e0] ss:$16 sps:$4 sm:$0xff]   ;;  %v19234_v9 = vld [vmem:[#allocation4 + $0x1e8] ss:$16 sps:$4 sm:$0xff]   ;;  %v19238_v10 = vld [vmem:[#allocation4 + $0x204] ss:$16 sps:$4 sm:$0xff]   ;;  %v754_v23 = vcombine.high %v22546_v52, %v22546_v52 }
 0x3cc   :  { %1272 = vmatprep.subr.bf16.mxu0 %v19175_v24  ;;  %1354 = vmatprep.subr.bf16.mxu1 %v19177_v25  ;;  %v774_v60 = vpack.c.bf16 %v769_v58, %v769_v58  ;;  %v19241_v11 = vld [vmem:[#allocation4 + $0x20c] ss:$16 sps:$4 sm:$0xff]   ;;  %v19236_v12 = vld [vmem:[#allocation4 + $0x200] ss:$16 sps:$4 sm:$0xff]   ;;  %v19239_v13 = vld [vmem:[#allocation4 + $0x208] ss:$16 sps:$4 sm:$0xff]  }
 0x3cd   :  { %v19244_v15 = vld [vmem:[#allocation4 + $0x224] ss:$16 sps:$4 sm:$0xff]   ;;  %v19247_v16 = vld [vmem:[#allocation4 + $0x22c] ss:$16 sps:$4 sm:$0xff]   ;;  %v19242_v17 = vld [vmem:[#allocation4 + $0x220] ss:$16 sps:$4 sm:$0xff]  }
 0x3ce   :  { %1292 = vmatprep.mubr.bf16.mxu0 %v774_v60  ;;  %1374 = vmatprep.mubr.bf16.mxu1 %v774_v60  ;;  %v19245_v18 = vld [vmem:[#allocation4 + $0x228] ss:$16 sps:$4 sm:$0xff]   ;;  %v19250_v19 = vld [vmem:[#allocation4 + $0x244] ss:$16 sps:$4 sm:$0xff]   ;;  %v19253_v20 = vld [vmem:[#allocation4 + $0x24c] ss:$16 sps:$4 sm:$0xff]  }
 0x3cf   :  { %1273 = vmatpush1.bf16.msra.mxu0 %v19179_v26  ;;  %1355 = vmatpush1.bf16.msra.mxu1 %v19180_v27  ;;  %v19248_v21 = vld [vmem:[#allocation4 + $0x240] ss:$16 sps:$4 sm:$0xff]   ;;  %v22000_v22 = vmov 0   ;;  %v19251_v24 = vld [vmem:[#allocation4 + $0x248] ss:$16 sps:$4 sm:$0xff]   ;;  %s23663_s13 = sld [smem:[#allocation115_spill]] }
 0x3d0   :  { %1274 = vmatprep.subr.bf16.mxu0 %v19181_v28  ;;  %1356 = vmatprep.subr.bf16.mxu1 %v19183_v29  ;;  %v19256_v25 = vld [vmem:[#allocation4 + $0x264] ss:$16 sps:$4 sm:$0xff]   ;;  %v19259_v26 = vld [vmem:[#allocation4 + $0x26c] ss:$16 sps:$4 sm:$0xff]   ;;  %v19254_v27 = vld [vmem:[#allocation4 + $0x260] ss:$16 sps:$4 sm:$0xff]   ;;  %v768_v28 = vrot.slane %v754_v23, %v22544_v49 }
 0x3d1   :  { %v19257_v29 = vld [vmem:[#allocation4 + $0x268] ss:$16 sps:$4 sm:$0xff]   ;;  %v19265_v36 = vld [vmem:[#allocation66 + $0xc8] sm:$0xff]   ;;  %v19288_v60 = vld [vmem:[#allocation66 + $0x78] sm:$0xff]   ;;  %vm22002_vm1 = vmmov 0   ;;  %vm8741_vm2 = vcmask 261120  }
 0x3d2   :  { %v19266_v37 = vld [vmem:[#allocation66 + $0x8] sm:$0xff]   ;;  %v19271_v42 = vld [vmem:[#allocation66 + $0x90] sm:$0xff]   ;;  %v19277_v49 = vld [vmem:[#allocation66 + $0xe0] sm:$0xff]   ;;  %s23664_s17 = sld [smem:[#allocation117_spill]] }
 0x3d3   :  { %1275 = vmatpush1.bf16.msra.mxu0 %v19185_v30  ;;  %1357 = vmatpush1.bf16.msra.mxu1 %v19186_v31  ;;  %v19260_v30 = vld [vmem:[#allocation66 + $0x40] sm:$0xff]   ;;  %v19267_v38 = vld [vmem:[#allocation66 + $0x88] sm:$0xff]   ;;  %v19286_v58 = vld [vmem:[#allocation66 + $0x30] sm:$0xff]  }
 0x3d4   :  { %1276 = vmatprep.subr.bf16.mxu0 %v19187_v32  ;;  %1358 = vmatprep.subr.bf16.mxu1 %v19189_v33  ;;  %v19261_v31 = vld [vmem:[#allocation66 + $0xc0] sm:$0xff]   ;;  %v775_v33 = vpack.c.bf16 %v768_v28, %v768_v28  ;;  %v19280_v52 = vld [vmem:[#allocation66 + $0x68] sm:$0xff]   ;;  %v19303_v28 = vld [vmem:[#allocation66 + $0x190] sm:$0xff]  }
 0x3d5   :  { %v19262_v32 = vld [vmem:[#allocation66] sm:$0xff]   ;;  %v19282_v54 = vld [vmem:[#allocation66 + $0x28] sm:$0xff]  }
 0x3d6   :  { %v19298_v23 = vld [vmem:[#allocation66 + $0x108] sm:$0xff]  }
 0x3d7   :  { %1277 = vmatpush1.bf16.msra.mxu0 %v19191_v34  ;;  %1359 = vmatpush1.bf16.msra.mxu1 %v19192_v35  ;;  %v19263_v34 = vld [vmem:[#allocation66 + $0x80] sm:$0xff]   ;;  %v19264_v35 = vld [vmem:[#allocation66 + $0x48] sm:$0xff]  }
 0x3d8   :  { %1278 = vmatprep.subr.bf16.mxu0 %v19193_v39  ;;  %1360 = vmatprep.subr.bf16.mxu1 %v19195_v40  ;;  %v19268_v39 = vld [vmem:[#allocation66 + $0x50] sm:$0xff]  }
 0x3d9   :  { %v19269_v40 = vld [vmem:[#allocation66 + $0xd0] sm:$0xff]  }
 0x3db   :  { %1279 = vmatpush1.bf16.msra.mxu0 %v19197_v41  ;;  %1361 = vmatpush1.bf16.msra.mxu1 %v19198_v44  ;;  %v19270_v41 = vld [vmem:[#allocation66 + $0x10] sm:$0xff]   ;;  %v19272_v44 = vld [vmem:[#allocation66 + $0x58] sm:$0xff]  }
 0x3dc   :  { %1280 = vmatprep.subr.bf16.mxu0 %v19199_v45  ;;  %1362 = vmatprep.subr.bf16.mxu1 %v19201_v46  ;;  %v19273_v45 = vld [vmem:[#allocation66 + $0xd8] sm:$0xff]  }
 0x3dd   :  { %v19274_v46 = vld [vmem:[#allocation66 + $0x18] sm:$0xff]  }
 0x3df   :  { %1281 = vmatpush1.bf16.msra.mxu0 %v19203_v47  ;;  %1363 = vmatpush1.bf16.msra.mxu1 %v19204_v48  ;;  %v19275_v47 = vld [vmem:[#allocation66 + $0x98] sm:$0xff]   ;;  %v19276_v48 = vld [vmem:[#allocation66 + $0x60] sm:$0xff]  }
 0x3e0   :  { %1282 = vmatprep.subr.bf16.mxu0 %v19205_v50  ;;  %1364 = vmatprep.subr.bf16.mxu1 %v19207_v51  ;;  %v19278_v50 = vld [vmem:[#allocation66 + $0x20] sm:$0xff]  }
 0x3e1   :  { %v19279_v51 = vld [vmem:[#allocation66 + $0xa0] sm:$0xff]  }
 0x3e3   :  { %1283 = vmatpush1.bf16.msra.mxu0 %v19209_v53  ;;  %1365 = vmatpush1.bf16.msra.mxu1 %v19210_v55  ;;  %v19281_v53 = vld [vmem:[#allocation66 + $0xe8] sm:$0xff]  }
 0x3e4   :  { %1284 = vmatprep.subr.bf16.mxu0 %v19211_v56  ;;  %1366 = vmatprep.subr.bf16.mxu1 %v19213_v57  ;;  %v19283_v55 = vld [vmem:[#allocation66 + $0xa8] sm:$0xff]   ;;  %v19284_v56 = vld [vmem:[#allocation66 + $0x70] sm:$0xff]  }
 0x3e5   :  { %v19285_v57 = vld [vmem:[#allocation66 + $0xf0] sm:$0xff]  }
 0x3e7   :  { %1285 = vmatpush1.bf16.msra.mxu0 %v19215_v59  ;;  %1367 = vmatpush1.bf16.msra.mxu1 %v19216_v61  ;;  %v19287_v59 = vld [vmem:[#allocation66 + $0xb0] sm:$0xff]   ;;  %v19289_v61 = vld [vmem:[#allocation66 + $0xf8] sm:$0xff]  }
 0x3e8   :  { %1286 = vmatprep.subr.bf16.mxu0 %v19217_v62  ;;  %1368 = vmatprep.subr.bf16.mxu1 %v19219_v63  ;;  %v19290_v62 = vld [vmem:[#allocation66 + $0x38] sm:$0xff]  }
 0x3e9   :  { %v19291_v63 = vld [vmem:[#allocation66 + $0xb8] sm:$0xff]  }
 0x3eb   :  { %1287 = vmatpush1.bf16.msra.mxu0 %v19221_v0  ;;  %1369 = vmatpush1.bf16.msra.mxu1 %v19222_v1  ;;  %v19292_v0 = vld [vmem:[#allocation66 + $0x140] sm:$0xff]  }
 0x3ec   :  { %1288 = vmatprep.subr.bf16.mxu0 %v19223_v2  ;;  %1370 = vmatprep.subr.bf16.mxu1 %v19225_v3  ;;  %v19293_v1 = vld [vmem:[#allocation66 + $0x1c0] sm:$0xff]  }
 0x3ef   :  { %1289 = vmatpush1.bf16.msra.mxu0 %v19227_v4  ;;  %1371 = vmatpush1.bf16.msra.mxu1 %v19228_v5 }
 0x3f0   :  { %1290 = vmatprep.subr.bf16.mxu0 %v19229_v6  ;;  %1372 = vmatprep.subr.bf16.mxu1 %v19231_v7 }
 0x3f3   :  { %1291 = vmatpush1.bf16.msra.mxu0 %v19233_v8  ;;  %1373 = vmatpush1.bf16.msra.mxu1 %v19234_v9 }
 0x3f4   :  { %1301 = vmatprep.subr.bf16.mxu0 %v19238_v10  ;;  %1383 = vmatprep.subr.bf16.mxu1 %v19241_v11 }
 0x3f6   :  { %1293 = vmatmul.mubr.bf16.vlgmr.msra.gmra.mrb[0].mxu0 %v773_v14  ;;  %1375 = vmatmul.mubr.bf16.vlgmr.msra.gmra.mrb[0].mxu1 %v773_v14 }
 0x3f7   :  { %1302 = vmatpush1.bf16.msra.mxu0 %v19236_v12  ;;  %1384 = vmatpush1.bf16.msra.mxu1 %v19239_v13  ;;  %v19294_v12 = vld [vmem:[#allocation66 + $0x100] sm:$0xff]  }
 0x3f8   :  { %1303 = vmatprep.subr.bf16.mxu0 %v19244_v15  ;;  %1385 = vmatprep.subr.bf16.mxu1 %v19247_v16  ;;  %v19295_v13 = vld [vmem:[#allocation66 + $0x180] sm:$0xff]  }
 0x3f9   :  { %1333 = vmatprep.mubr.bf16.mxu0 %v22000_v22  ;;  %1415 = vmatprep.mubr.bf16.mxu1 %v22000_v22 }
 0x3fb   :  { %1304 = vmatpush1.bf16.msra.mxu0 %v19242_v17  ;;  %1386 = vmatpush1.bf16.msra.mxu1 %v19245_v18  ;;  %v19296_v18 = vld [vmem:[#allocation66 + $0x148] sm:$0xff]  }
 0x3fc   :  { %1305 = vmatprep.subr.bf16.mxu0 %v19250_v19  ;;  %1387 = vmatprep.subr.bf16.mxu1 %v19253_v20  ;;  %v19297_v19 = vld [vmem:[#allocation66 + $0x1c8] sm:$0xff]  }
 0x3ff   :  { %1306 = vmatpush1.bf16.msra.mxu0 %v19248_v21  ;;  %1388 = vmatpush1.bf16.msra.mxu1 %v19251_v24  ;;  %v19299_v24 = vld [vmem:[#allocation66 + $0x188] sm:$0xff]  }
 0x400   :  { %1307 = vmatprep.subr.bf16.mxu0 %v19256_v25  ;;  %1389 = vmatprep.subr.bf16.mxu1 %v19259_v26  ;;  %v19300_v25 = vld [vmem:[#allocation66 + $0x150] sm:$0xff]  }
 0x401   :  { %v19301_v26 = vld [vmem:[#allocation66 + $0x1d0] sm:$0xff]  }
 0x403   :  { %1308 = vmatpush1.bf16.msra.mxu0 %v19254_v27  ;;  %1390 = vmatpush1.bf16.msra.mxu1 %v19257_v29  ;;  %v19302_v27 = vld [vmem:[#allocation66 + $0x110] sm:$0xff]   ;;  %v19304_v29 = vld [vmem:[#allocation66 + $0x158] sm:$0xff]  }
 0x404   :  { %16564 = vmatprep.subr.bf16.mxu0 %v19260_v30  ;;  %16586 = vmatprep.subr.bf16.mxu1 %v19261_v31  ;;  %v19305_v30 = vld [vmem:[#allocation66 + $0x1d8] sm:$0xff]  }
 0x405   :  { %v19306_v31 = vld [vmem:[#allocation66 + $0x118] sm:$0xff]  }
 0x406   :  { %15311 = vmatmul.mubr.msk.bf16.vlgmr.msra.gmra.mrb[0].mxu0 %vm1256_vm0, %v775_v33  ;;  %15312 = vmatmul.mubr.msk.bf16.vlgmr.msra.gmra.mrb[0].mxu1 %vm1256_vm0, %v775_v33  ;;  %v19308_v33 = vld [vmem:[#allocation66 + $0x160] sm:$0xff]  }
 0x407   :  { %16565 = vmatpush3.bf16.msra.mxu0 %v19262_v32  ;;  %16587 = vmatpush3.bf16.msra.mxu1 %v19263_v34  ;;  %v19307_v32 = vld [vmem:[#allocation66 + $0x198] sm:$0xff]   ;;  %v19309_v34 = vld [vmem:[#allocation66 + $0x1e0] sm:$0xff]  }
 0x408   :  { %16566 = vmatprep.subr.bf16.mxu0 %v19264_v35  ;;  %16588 = vmatprep.subr.bf16.mxu1 %v19265_v36  ;;  %v19310_v35 = vld [vmem:[#allocation66 + $0x120] sm:$0xff]  }
 0x409   :  { %v19311_v36 = vld [vmem:[#allocation66 + $0x1a0] sm:$0xff]  }
 0x40b   :  { %16567 = vmatpush3.bf16.msra.mxu0 %v19266_v37  ;;  %16589 = vmatpush3.bf16.msra.mxu1 %v19267_v38  ;;  %v19312_v37 = vld [vmem:[#allocation66 + $0x168] sm:$0xff]  }
 0x40c   :  { %16568 = vmatprep.subr.bf16.mxu0 %v19268_v39  ;;  %16590 = vmatprep.subr.bf16.mxu1 %v19269_v40  ;;  %v19313_v38 = vld [vmem:[#allocation66 + $0x1e8] sm:$0xff]  }
 0x40d   :  { %v19314_v39 = vld [vmem:[#allocation66 + $0x128] sm:$0xff]  }
 0x40e   :  { %v19315_v40 = vld [vmem:[#allocation66 + $0x1a8] sm:$0xff]  }
 0x40f   :  { %16569 = vmatpush3.bf16.msra.mxu0 %v19270_v41  ;;  %16591 = vmatpush3.bf16.msra.mxu1 %v19271_v42  ;;  %v19316_v41 = vld [vmem:[#allocation66 + $0x170] sm:$0xff]  }
 0x410   :  { %16570 = vmatprep.subr.bf16.mxu0 %v19272_v44  ;;  %16592 = vmatprep.subr.bf16.mxu1 %v19273_v45  ;;  %v19317_v42 = vld [vmem:[#allocation66 + $0x1f0] sm:$0xff]  }
 0x411   :  { %v19318_v44 = vld [vmem:[#allocation66 + $0x130] sm:$0xff]  }
 0x412   :  { %v19319_v45 = vld [vmem:[#allocation66 + $0x1b0] sm:$0xff]  }
 0x413   :  { %16571 = vmatpush3.bf16.msra.mxu0 %v19274_v46  ;;  %16593 = vmatpush3.bf16.msra.mxu1 %v19275_v47  ;;  %v19320_v46 = vld [vmem:[#allocation66 + $0x178] sm:$0xff]  }
 0x414   :  { %16572 = vmatprep.subr.bf16.mxu0 %v19276_v48  ;;  %16594 = vmatprep.subr.bf16.mxu1 %v19277_v49  ;;  %v19321_v47 = vld [vmem:[#allocation66 + $0x1f8] sm:$0xff]  }
 0x415   :  { %v19322_v48 = vld [vmem:[#allocation66 + $0x138] sm:$0xff]  }
 0x416   :  { %v19323_v49 = vld [vmem:[#allocation66 + $0x1b8] sm:$0xff]  }
 0x417   :  { %16573 = vmatpush3.bf16.msra.mxu0 %v19278_v50  ;;  %16595 = vmatpush3.bf16.msra.mxu1 %v19279_v51  ;;  %v19324_v50 = vld [vmem:[#allocation66 + $0x240] sm:$0xff]  }
 0x418   :  { %16574 = vmatprep.subr.bf16.mxu0 %v19280_v52  ;;  %16596 = vmatprep.subr.bf16.mxu1 %v19281_v53  ;;  %v19325_v51 = vld [vmem:[#allocation66 + $0x2c0] sm:$0xff]  }
 0x419   :  { %v19326_v52 = vld [vmem:[#allocation66 + $0x200] sm:$0xff]  }
 0x41a   :  { %v19327_v53 = vld [vmem:[#allocation66 + $0x280] sm:$0xff]  }
 0x41b   :  { %16575 = vmatpush3.bf16.msra.mxu0 %v19282_v54  ;;  %16597 = vmatpush3.bf16.msra.mxu1 %v19283_v55  ;;  %v19328_v54 = vld [vmem:[#allocation66 + $0x248] sm:$0xff]  }
 0x41c   :  { %16576 = vmatprep.subr.bf16.mxu0 %v19284_v56  ;;  %16598 = vmatprep.subr.bf16.mxu1 %v19285_v57  ;;  %v19329_v55 = vld [vmem:[#allocation66 + $0x2c8] sm:$0xff]  }
 0x41d   :  { %v19330_v56 = vld [vmem:[#allocation66 + $0x208] sm:$0xff]  }
 0x41e   :  { %v19331_v57 = vld [vmem:[#allocation66 + $0x288] sm:$0xff]  }
 0x41f   :  { %16577 = vmatpush3.bf16.msra.mxu0 %v19286_v58  ;;  %16599 = vmatpush3.bf16.msra.mxu1 %v19287_v59  ;;  %v19332_v58 = vld [vmem:[#allocation66 + $0x250] sm:$0xff]  }
 0x420   :  { %16578 = vmatprep.subr.bf16.mxu0 %v19288_v60  ;;  %16600 = vmatprep.subr.bf16.mxu1 %v19289_v61  ;;  %v19333_v59 = vld [vmem:[#allocation66 + $0x2d0] sm:$0xff]  }
 0x421   :  { %v19334_v60 = vld [vmem:[#allocation66 + $0x210] sm:$0xff]  }
 0x422   :  { %v19335_v61 = vld [vmem:[#allocation66 + $0x290] sm:$0xff]  }
 0x423   :  { %16579 = vmatpush3.bf16.msra.mxu0 %v19290_v62  ;;  %16601 = vmatpush3.bf16.msra.mxu1 %v19291_v63  ;;  %v19336_v62 = vld [vmem:[#allocation66 + $0x258] sm:$0xff]  }
 0x424   :  { %16608 = vmatprep.subr.bf16.mxu0 %v19292_v0  ;;  %16630 = vmatprep.subr.bf16.mxu1 %v19293_v1  ;;  %v19337_v63 = vld [vmem:[#allocation66 + $0x2d8] sm:$0xff]  }
 0x425   :  { %v19338_v0 = vld [vmem:[#allocation66 + $0x218] sm:$0xff]  }
 0x426   :  { %v19339_v1 = vld [vmem:[#allocation66 + $0x298] sm:$0xff]  }
 0x4d9   :  { %v1335_v2 = vpop.f32.mrb[0].mxu0  ;;  %v1417_v3 = vpop.f32.mrb[0].mxu1 }
 0x4da   :  { %v1424_v4 = vmax.f32 %v1335_v2, 0.0  ;;  %v1426_v5 = vmax.f32 %v1417_v3, 0.0  ;;  %v1337_v6 = vpop.f32.mrb[1].mxu0  ;;  %v1419_v7 = vpop.f32.mrb[1].mxu1  ;;  %v19340_v2 = vld [vmem:[#allocation66 + $0x260] sm:$0xff]  }
 0x4db   :  { %v1425_v8 = vmax.f32 %v1337_v6, 0.0  ;;  %v1427_v9 = vmax.f32 %v1419_v7, 0.0  ;;  %v1339_v10 = vpop.f32.mrb[2].mxu0  ;;  %v1421_v11 = vpop.f32.mrb[2].mxu1  ;;  %v19341_v3 = vld [vmem:[#allocation66 + $0x2e0] sm:$0xff]   ;;  %v19344_v6 = vld [vmem:[#allocation66 + $0x268] sm:$0xff]  }
 0x4dc   :  { %v1340_v14 = vpop.f32.mrb[3].mxu0  ;;  %v1422_v15 = vpop.f32.mrb[3].mxu1  ;;  %v22559_v20 = vpack.c.bf16 %v1424_v4, %v1424_v4  ;;  %v22561_v21 = vpack.c.bf16 %v1426_v5, %v1426_v5  ;;  %v19342_v4 = vld [vmem:[#allocation66 + $0x220] sm:$0xff]   ;;  %v19345_v7 = vld [vmem:[#allocation66 + $0x2e8] sm:$0xff]   ;;  %v19348_v10 = vld [vmem:[#allocation66 + $0x270] sm:$0xff]  }
 0x4dd   :  { %v22555_v16 = vpack.c.bf16 %v1425_v8, %v1425_v8  ;;  %v22557_v17 = vpack.c.bf16 %v1427_v9, %v1427_v9  ;;  %v19343_v5 = vld [vmem:[#allocation66 + $0x2a0] sm:$0xff]   ;;  %v19346_v8 = vld [vmem:[#allocation66 + $0x228] sm:$0xff]   ;;  %v19349_v11 = vld [vmem:[#allocation66 + $0x2f0] sm:$0xff]  }
 0x4de   :  { %v19347_v9 = vld [vmem:[#allocation66 + $0x2a8] sm:$0xff]   ;;  %v19352_v14 = vld [vmem:[#allocation66 + $0x278] sm:$0xff]  }
 0x4df   :  { %1720 = vmatprep.mubr.bf16.mxu0 %v22555_v16  ;;  %1760 = vmatprep.mubr.bf16.mxu1 %v22557_v17  ;;  %v19353_v15 = vld [vmem:[#allocation66 + $0x2f8] sm:$0xff]  }
 0x4e0   :  { %1721 = vmatmul.mubr.bf16.vlgmr.msra.gmra.mrb[4].mxu0 %v22559_v20  ;;  %1761 = vmatmul.mubr.bf16.vlgmr.msra.gmra.mrb[4].mxu1 %v22561_v21 }
 0x4e1   :  { %16609 = vmatpush3.bf16.msra.mxu0 %v19294_v12  ;;  %16631 = vmatpush3.bf16.msra.mxu1 %v19295_v13  ;;  %v19350_v12 = vld [vmem:[#allocation66 + $0x230] sm:$0xff]  }
 0x4e2   :  { %2057 = vmatprep.mubr.bf16.mxu0 %v22555_v16  ;;  %2097 = vmatprep.mubr.bf16.mxu1 %v22557_v17  ;;  %v19351_v13 = vld [vmem:[#allocation66 + $0x2b0] sm:$0xff]  }
 0x4e3   :  { %16610 = vmatprep.subr.bf16.mxu0 %v19296_v18  ;;  %16632 = vmatprep.subr.bf16.mxu1 %v19297_v19  ;;  %v19354_v18 = vld [vmem:[#allocation66 + $0x238] sm:$0xff]  }
 0x4e4   :  { %v19355_v19 = vld [vmem:[#allocation66 + $0x2b8] sm:$0xff]  }
 0x4e5   :  { %16611 = vmatpush3.bf16.msra.mxu0 %v19298_v23  ;;  %16633 = vmatpush3.bf16.msra.mxu1 %v19299_v24  ;;  %v19356_v23 = vld [vmem:[#allocation66 + $0x340] sm:$0xff]  }
 0x4e6   :  { %16612 = vmatprep.subr.bf16.mxu0 %v19300_v25  ;;  %16634 = vmatprep.subr.bf16.mxu1 %v19301_v26  ;;  %v19357_v24 = vld [vmem:[#allocation66 + $0x3c0] sm:$0xff]  }
 0x4e7   :  { %v19358_v25 = vld [vmem:[#allocation66 + $0x300] sm:$0xff]  }
 0x4e8   :  { %v19359_v26 = vld [vmem:[#allocation66 + $0x380] sm:$0xff]  }
 0x4e9   :  { %16613 = vmatpush3.bf16.msra.mxu0 %v19302_v27  ;;  %16635 = vmatpush3.bf16.msra.mxu1 %v19303_v28  ;;  %v19360_v27 = vld [vmem:[#allocation66 + $0x348] sm:$0xff]  }
 0x4ea   :  { %16614 = vmatprep.subr.bf16.mxu0 %v19304_v29  ;;  %16636 = vmatprep.subr.bf16.mxu1 %v19305_v30  ;;  %v19361_v28 = vld [vmem:[#allocation66 + $0x3c8] sm:$0xff]  }
 0x4eb   :  { %v19362_v29 = vld [vmem:[#allocation66 + $0x308] sm:$0xff]  }
 0x4ec   :  { %v19363_v30 = vld [vmem:[#allocation66 + $0x388] sm:$0xff]  }
 0x4ed   :  { %16615 = vmatpush3.bf16.msra.mxu0 %v19306_v31  ;;  %16637 = vmatpush3.bf16.msra.mxu1 %v19307_v32  ;;  %v19364_v31 = vld [vmem:[#allocation66 + $0x350] sm:$0xff]  }
 0x4ee   :  { %16616 = vmatprep.subr.bf16.mxu0 %v19308_v33  ;;  %16638 = vmatprep.subr.bf16.mxu1 %v19309_v34  ;;  %v19365_v32 = vld [vmem:[#allocation66 + $0x3d0] sm:$0xff]  }
 0x4ef   :  { %v19366_v33 = vld [vmem:[#allocation66 + $0x310] sm:$0xff]  }
 0x4f0   :  { %v19367_v34 = vld [vmem:[#allocation66 + $0x390] sm:$0xff]  }
 0x4f1   :  { %16617 = vmatpush3.bf16.msra.mxu0 %v19310_v35  ;;  %16639 = vmatpush3.bf16.msra.mxu1 %v19311_v36  ;;  %v19368_v35 = vld [vmem:[#allocation66 + $0x358] sm:$0xff]  }
 0x4f2   :  { %16618 = vmatprep.subr.bf16.mxu0 %v19312_v37  ;;  %16640 = vmatprep.subr.bf16.mxu1 %v19313_v38  ;;  %v19369_v36 = vld [vmem:[#allocation66 + $0x3d8] sm:$0xff]  }
 0x4f3   :  { %v19370_v37 = vld [vmem:[#allocation66 + $0x318] sm:$0xff]  }
 0x4f4   :  { %v19371_v38 = vld [vmem:[#allocation66 + $0x398] sm:$0xff]  }
 0x4f5   :  { %16619 = vmatpush3.bf16.msra.mxu0 %v19314_v39  ;;  %16641 = vmatpush3.bf16.msra.mxu1 %v19315_v40  ;;  %v19372_v39 = vld [vmem:[#allocation66 + $0x360] sm:$0xff]  }
 0x4f6   :  { %16620 = vmatprep.subr.bf16.mxu0 %v19316_v41  ;;  %16642 = vmatprep.subr.bf16.mxu1 %v19317_v42  ;;  %v19373_v40 = vld [vmem:[#allocation66 + $0x3e0] sm:$0xff]  }
 0x4f7   :  { %v19374_v41 = vld [vmem:[#allocation66 + $0x320] sm:$0xff]  }
 0x4f8   :  { %v19375_v42 = vld [vmem:[#allocation66 + $0x3a0] sm:$0xff]  }
 0x4f9   :  { %16621 = vmatpush3.bf16.msra.mxu0 %v19318_v44  ;;  %16643 = vmatpush3.bf16.msra.mxu1 %v19319_v45  ;;  %v19376_v44 = vld [vmem:[#allocation66 + $0x368] sm:$0xff]  }
 0x4fa   :  { %16622 = vmatprep.subr.bf16.mxu0 %v19320_v46  ;;  %16644 = vmatprep.subr.bf16.mxu1 %v19321_v47  ;;  %v19377_v45 = vld [vmem:[#allocation66 + $0x3e8] sm:$0xff]  }
 0x4fb   :  { %v19378_v46 = vld [vmem:[#allocation66 + $0x328] sm:$0xff]  }
 0x4fc   :  { %v19379_v47 = vld [vmem:[#allocation66 + $0x3a8] sm:$0xff]  }
 0x4fd   :  { %16623 = vmatpush3.bf16.msra.mxu0 %v19322_v48  ;;  %16645 = vmatpush3.bf16.msra.mxu1 %v19323_v49  ;;  %v19380_v48 = vld [vmem:[#allocation66 + $0x370] sm:$0xff]  }
 0x4fe   :  { %16652 = vmatprep.subr.bf16.mxu0 %v19324_v50  ;;  %16674 = vmatprep.subr.bf16.mxu1 %v19325_v51  ;;  %v19381_v49 = vld [vmem:[#allocation66 + $0x3f0] sm:$0xff]  }
 0x4ff   :  { %v19382_v50 = vld [vmem:[#allocation66 + $0x330] sm:$0xff]  }
 0x500   :  { %2058 = vmatmul.mubr.bf16.vlgmr.msra.gmra.mrb[8].mxu0 %v22559_v20  ;;  %2098 = vmatmul.mubr.bf16.vlgmr.msra.gmra.mrb[8].mxu1 %v22561_v21  ;;  %v19383_v51 = vld [vmem:[#allocation66 + $0x3b0] sm:$0xff]  }
 0x501   :  { %16653 = vmatpush3.bf16.msra.mxu0 %v19326_v52  ;;  %2395 = vmatprep.mubr.bf16.mxu0 %v22555_v16  ;;  %v19384_v52 = vld [vmem:[#allocation66 + $0x378] sm:$0xff]  }
 0x502   :  { %16675 = vmatpush3.bf16.msra.mxu1 %v19327_v53  ;;  %2435 = vmatprep.mubr.bf16.mxu1 %v22557_v17  ;;  %v19385_v53 = vld [vmem:[#allocation66 + $0x3f8] sm:$0xff]  }
 0x503   :  { %16654 = vmatprep.subr.bf16.mxu0 %v19328_v54  ;;  %16676 = vmatprep.subr.bf16.mxu1 %v19329_v55  ;;  %v19386_v54 = vld [vmem:[#allocation66 + $0x338] sm:$0xff]  }
 0x504   :  { %v19387_v55 = vld [vmem:[#allocation66 + $0x3b8] sm:$0xff]  }
 0x505   :  { %16655 = vmatpush3.bf16.msra.mxu0 %v19330_v56  ;;  %v19388_v56 = vld [vmem:[#allocation66 + $0x440] sm:$0xff]  }
 0x506   :  { %16677 = vmatpush3.bf16.msra.mxu1 %v19331_v57  ;;  %16656 = vmatprep.subr.bf16.mxu0 %v19332_v58  ;;  %v19389_v57 = vld [vmem:[#allocation66 + $0x4c0] sm:$0xff]  }
 0x507   :  { %16678 = vmatprep.subr.bf16.mxu1 %v19333_v59  ;;  %v19390_v58 = vld [vmem:[#allocation66 + $0x400] sm:$0xff]  }
 0x508   :  { %v19391_v59 = vld [vmem:[#allocation66 + $0x480] sm:$0xff]  }
 0x509   :  { %16657 = vmatpush3.bf16.msra.mxu0 %v19334_v60  ;;  %v19392_v60 = vld [vmem:[#allocation66 + $0x448] sm:$0xff]  }
 0x50a   :  { %16679 = vmatpush3.bf16.msra.mxu1 %v19335_v61  ;;  %16658 = vmatprep.subr.bf16.mxu0 %v19336_v62  ;;  %v19393_v61 = vld [vmem:[#allocation66 + $0x4c8] sm:$0xff]  }
 0x50b   :  { %16680 = vmatprep.subr.bf16.mxu1 %v19337_v63  ;;  %v19394_v62 = vld [vmem:[#allocation66 + $0x408] sm:$0xff]  }
 0x50c   :  { %v19395_v63 = vld [vmem:[#allocation66 + $0x488] sm:$0xff]  }
 0x50d   :  { %16659 = vmatpush3.bf16.msra.mxu0 %v19338_v0  ;;  %v19396_v0 = vld [vmem:[#allocation66 + $0x450] sm:$0xff]  }
 0x50e   :  { %16681 = vmatpush3.bf16.msra.mxu1 %v19339_v1  ;;  %16660 = vmatprep.subr.bf16.mxu0 %v19340_v2  ;;  %v19397_v1 = vld [vmem:[#allocation66 + $0x4d0] sm:$0xff]  }
 0x50f   :  { %16682 = vmatprep.subr.bf16.mxu1 %v19341_v3  ;;  %v19398_v2 = vld [vmem:[#allocation66 + $0x410] sm:$0xff]  }
 0x510   :  { %v19399_v3 = vld [vmem:[#allocation66 + $0x490] sm:$0xff]  }
 0x511   :  { %16661 = vmatpush3.bf16.msra.mxu0 %v19342_v4  ;;  %v19400_v4 = vld [vmem:[#allocation66 + $0x458] sm:$0xff]  }
 0x512   :  { %16683 = vmatpush3.bf16.msra.mxu1 %v19343_v5  ;;  %16662 = vmatprep.subr.bf16.mxu0 %v19344_v6  ;;  %v19401_v5 = vld [vmem:[#allocation66 + $0x4d8] sm:$0xff]  }
 0x513   :  { %16684 = vmatprep.subr.bf16.mxu1 %v19345_v7  ;;  %v19402_v6 = vld [vmem:[#allocation66 + $0x418] sm:$0xff]  }
 0x514   :  { %v19403_v7 = vld [vmem:[#allocation66 + $0x498] sm:$0xff]  }
 0x515   :  { %16663 = vmatpush3.bf16.msra.mxu0 %v19346_v8  ;;  %v19404_v8 = vld [vmem:[#allocation66 + $0x460] sm:$0xff]  }
 0x516   :  { %16685 = vmatpush3.bf16.msra.mxu1 %v19347_v9  ;;  %16664 = vmatprep.subr.bf16.mxu0 %v19348_v10  ;;  %v19405_v9 = vld [vmem:[#allocation66 + $0x4e0] sm:$0xff]  }
 0x517   :  { %16686 = vmatprep.subr.bf16.mxu1 %v19349_v11  ;;  %v19406_v10 = vld [vmem:[#allocation66 + $0x420] sm:$0xff]  }
 0x518   :  { %v19407_v11 = vld [vmem:[#allocation66 + $0x4a0] sm:$0xff]  }
 0x519   :  { %16665 = vmatpush3.bf16.msra.mxu0 %v19350_v12  ;;  %v19408_v12 = vld [vmem:[#allocation66 + $0x468] sm:$0xff]  }
 0x51a   :  { %16687 = vmatpush3.bf16.msra.mxu1 %v19351_v13  ;;  %16666 = vmatprep.subr.bf16.mxu0 %v19352_v14  ;;  %v19409_v13 = vld [vmem:[#allocation66 + $0x4e8] sm:$0xff]  }
 0x51b   :  { %16688 = vmatprep.subr.bf16.mxu1 %v19353_v15  ;;  %v19410_v14 = vld [vmem:[#allocation66 + $0x428] sm:$0xff]  }
 0x51c   :  { %v19411_v15 = vld [vmem:[#allocation66 + $0x4a8] sm:$0xff]  }
 0x51d   :  { %16667 = vmatpush3.bf16.msra.mxu0 %v19354_v18  ;;  %v19412_v18 = vld [vmem:[#allocation66 + $0x470] sm:$0xff]  }
 0x51e   :  { %16689 = vmatpush3.bf16.msra.mxu1 %v19355_v19  ;;  %16696 = vmatprep.subr.bf16.mxu0 %v19356_v23  ;;  %v19413_v19 = vld [vmem:[#allocation66 + $0x4f0] sm:$0xff]  }
 0x51f   :  { %16718 = vmatprep.subr.bf16.mxu1 %v19357_v24  ;;  %v19414_v23 = vld [vmem:[#allocation66 + $0x430] sm:$0xff]  }
 0x520   :  { %2396 = vmatmul.mubr.bf16.vlgmr.msra.gmra.mrb[12].mxu0 %v22559_v20  ;;  %v19415_v24 = vld [vmem:[#allocation66 + $0x4b0] sm:$0xff]  }
 0x521   :  { %2436 = vmatmul.mubr.bf16.vlgmr.msra.gmra.mrb[12].mxu1 %v22561_v21  ;;  %16697 = vmatpush3.bf16.msra.mxu0 %v19358_v25  ;;  %v19416_v25 = vld [vmem:[#allocation66 + $0x478] sm:$0xff]  }
 0x522   :  { %2733 = vmatprep.mubr.bf16.mxu0 %v22555_v16  ;;  %16719 = vmatpush3.bf16.msra.mxu1 %v19359_v26  ;;  %v19417_v26 = vld [vmem:[#allocation66 + $0x4f8] sm:$0xff]  }
 0x523   :  { %2773 = vmatprep.mubr.bf16.mxu1 %v22557_v17  ;;  %16698 = vmatprep.subr.bf16.mxu0 %v19360_v27  ;;  %v19418_v27 = vld [vmem:[#allocation66 + $0x438] sm:$0xff]  }
 0x524   :  { %16720 = vmatprep.subr.bf16.mxu1 %v19361_v28  ;;  %v19419_v28 = vld [vmem:[#allocation66 + $0x4b8] sm:$0xff]  }
 0x525   :  { %16699 = vmatpush3.bf16.msra.mxu0 %v19362_v29  ;;  %v19420_v29 = vld [vmem:[#allocation66 + $0x540] sm:$0xff]  }
 0x526   :  { %16721 = vmatpush3.bf16.msra.mxu1 %v19363_v30  ;;  %16700 = vmatprep.subr.bf16.mxu0 %v19364_v31  ;;  %v19421_v30 = vld [vmem:[#allocation66 + $0x5c0] sm:$0xff]  }
 0x527   :  { %16722 = vmatprep.subr.bf16.mxu1 %v19365_v32  ;;  %v19422_v31 = vld [vmem:[#allocation66 + $0x500] sm:$0xff]  }
 0x528   :  { %v19423_v32 = vld [vmem:[#allocation66 + $0x580] sm:$0xff]  }
 0x529   :  { %16701 = vmatpush3.bf16.msra.mxu0 %v19366_v33  ;;  %v19424_v33 = vld [vmem:[#allocation66 + $0x548] sm:$0xff]  }
 0x52a   :  { %16723 = vmatpush3.bf16.msra.mxu1 %v19367_v34  ;;  %16702 = vmatprep.subr.bf16.mxu0 %v19368_v35  ;;  %v19425_v34 = vld [vmem:[#allocation66 + $0x5c8] sm:$0xff]  }
 0x52b   :  { %16724 = vmatprep.subr.bf16.mxu1 %v19369_v36  ;;  %v19426_v35 = vld [vmem:[#allocation66 + $0x508] sm:$0xff]  }
 0x52c   :  { %v19427_v36 = vld [vmem:[#allocation66 + $0x588] sm:$0xff]  }
 0x52d   :  { %16703 = vmatpush3.bf16.msra.mxu0 %v19370_v37  ;;  %v19428_v37 = vld [vmem:[#allocation66 + $0x550] sm:$0xff]  }
 0x52e   :  { %16725 = vmatpush3.bf16.msra.mxu1 %v19371_v38  ;;  %16704 = vmatprep.subr.bf16.mxu0 %v19372_v39  ;;  %v19429_v38 = vld [vmem:[#allocation66 + $0x5d0] sm:$0xff]  }
 0x52f   :  { %16726 = vmatprep.subr.bf16.mxu1 %v19373_v40  ;;  %v19430_v39 = vld [vmem:[#allocation66 + $0x510] sm:$0xff]  }
 0x530   :  { %v19431_v40 = vld [vmem:[#allocation66 + $0x590] sm:$0xff]  }
 0x531   :  { %16705 = vmatpush3.bf16.msra.mxu0 %v19374_v41  ;;  %v19432_v41 = vld [vmem:[#allocation66 + $0x558] sm:$0xff]  }
 0x532   :  { %16727 = vmatpush3.bf16.msra.mxu1 %v19375_v42  ;;  %16706 = vmatprep.subr.bf16.mxu0 %v19376_v44  ;;  %v19433_v42 = vld [vmem:[#allocation66 + $0x5d8] sm:$0xff]  }
 0x533   :  { %16728 = vmatprep.subr.bf16.mxu1 %v19377_v45  ;;  %v19434_v44 = vld [vmem:[#allocation66 + $0x518] sm:$0xff]  }
 0x534   :  { %v19435_v45 = vld [vmem:[#allocation66 + $0x598] sm:$0xff]  }
 0x535   :  { %16707 = vmatpush3.bf16.msra.mxu0 %v19378_v46  ;;  %v19436_v46 = vld [vmem:[#allocation66 + $0x560] sm:$0xff]  }
 0x536   :  { %16729 = vmatpush3.bf16.msra.mxu1 %v19379_v47  ;;  %16708 = vmatprep.subr.bf16.mxu0 %v19380_v48  ;;  %v19437_v47 = vld [vmem:[#allocation66 + $0x5e0] sm:$0xff]  }
 0x537   :  { %16730 = vmatprep.subr.bf16.mxu1 %v19381_v49  ;;  %v19438_v48 = vld [vmem:[#allocation66 + $0x520] sm:$0xff]  }
 0x538   :  { %v19439_v49 = vld [vmem:[#allocation66 + $0x5a0] sm:$0xff]  }
 0x539   :  { %16709 = vmatpush3.bf16.msra.mxu0 %v19382_v50  ;;  %v19440_v50 = vld [vmem:[#allocation66 + $0x568] sm:$0xff]  }
 0x53a   :  { %16731 = vmatpush3.bf16.msra.mxu1 %v19383_v51  ;;  %16710 = vmatprep.subr.bf16.mxu0 %v19384_v52  ;;  %v19441_v51 = vld [vmem:[#allocation66 + $0x5e8] sm:$0xff]  }
 0x53b   :  { %16732 = vmatprep.subr.bf16.mxu1 %v19385_v53  ;;  %v19442_v52 = vld [vmem:[#allocation66 + $0x528] sm:$0xff]  }
 0x53c   :  { %v19443_v53 = vld [vmem:[#allocation66 + $0x5a8] sm:$0xff]  }
 0x53d   :  { %16711 = vmatpush3.bf16.msra.mxu0 %v19386_v54  ;;  %v19444_v54 = vld [vmem:[#allocation66 + $0x570] sm:$0xff]  }
 0x53e   :  { %16733 = vmatpush3.bf16.msra.mxu1 %v19387_v55  ;;  %16740 = vmatprep.subr.bf16.mxu0 %v19388_v56  ;;  %v19445_v55 = vld [vmem:[#allocation66 + $0x5f0] sm:$0xff]  }
 0x53f   :  { %16762 = vmatprep.subr.bf16.mxu1 %v19389_v57  ;;  %v19446_v56 = vld [vmem:[#allocation66 + $0x530] sm:$0xff]  }
 0x540   :  { %2734 = vmatmul.mubr.bf16.vlgmr.msra.gmra.mrb[16].mxu0 %v22559_v20  ;;  %v19447_v57 = vld [vmem:[#allocation66 + $0x5b0] sm:$0xff]  }
 0x541   :  { %2774 = vmatmul.mubr.bf16.vlgmr.msra.gmra.mrb[16].mxu1 %v22561_v21  ;;  %16741 = vmatpush3.bf16.msra.mxu0 %v19390_v58  ;;  %v19448_v58 = vld [vmem:[#allocation66 + $0x578] sm:$0xff]  }
 0x542   :  { %3071 = vmatprep.mubr.bf16.mxu0 %v22555_v16  ;;  %16763 = vmatpush3.bf16.msra.mxu1 %v19391_v59  ;;  %v19449_v59 = vld [vmem:[#allocation66 + $0x5f8] sm:$0xff]  }
 0x543   :  { %3111 = vmatprep.mubr.bf16.mxu1 %v22557_v17  ;;  %16742 = vmatprep.subr.bf16.mxu0 %v19392_v60  ;;  %v19450_v60 = vld [vmem:[#allocation66 + $0x538] sm:$0xff]  }
 0x544   :  { %16764 = vmatprep.subr.bf16.mxu1 %v19393_v61  ;;  %v19451_v61 = vld [vmem:[#allocation66 + $0x5b8] sm:$0xff]  }
 0x545   :  { %16743 = vmatpush3.bf16.msra.mxu0 %v19394_v62  ;;  %v19452_v62 = vld [vmem:[#allocation66 + $0x640] sm:$0xff]  }
 0x546   :  { %16765 = vmatpush3.bf16.msra.mxu1 %v19395_v63  ;;  %16744 = vmatprep.subr.bf16.mxu0 %v19396_v0  ;;  %v19453_v63 = vld [vmem:[#allocation66 + $0x6c0] sm:$0xff]  }
 0x547   :  { %16766 = vmatprep.subr.bf16.mxu1 %v19397_v1  ;;  %v19454_v0 = vld [vmem:[#allocation66 + $0x600] sm:$0xff]  }
 0x548   :  { %v19455_v1 = vld [vmem:[#allocation66 + $0x680] sm:$0xff]  }
 0x549   :  { %16745 = vmatpush3.bf16.msra.mxu0 %v19398_v2  ;;  %v19456_v2 = vld [vmem:[#allocation66 + $0x648] sm:$0xff]  }
 0x54a   :  { %16767 = vmatpush3.bf16.msra.mxu1 %v19399_v3  ;;  %16746 = vmatprep.subr.bf16.mxu0 %v19400_v4  ;;  %v19457_v3 = vld [vmem:[#allocation66 + $0x6c8] sm:$0xff]  }
 0x54b   :  { %16768 = vmatprep.subr.bf16.mxu1 %v19401_v5  ;;  %v19458_v4 = vld [vmem:[#allocation66 + $0x608] sm:$0xff]  }
 0x54c   :  { %v19459_v5 = vld [vmem:[#allocation66 + $0x688] sm:$0xff]  }
 0x54d   :  { %16747 = vmatpush3.bf16.msra.mxu0 %v19402_v6  ;;  %v19460_v6 = vld [vmem:[#allocation66 + $0x650] sm:$0xff]  }
 0x54e   :  { %16769 = vmatpush3.bf16.msra.mxu1 %v19403_v7  ;;  %16748 = vmatprep.subr.bf16.mxu0 %v19404_v8  ;;  %v19461_v7 = vld [vmem:[#allocation66 + $0x6d0] sm:$0xff]  }
 0x54f   :  { %16770 = vmatprep.subr.bf16.mxu1 %v19405_v9  ;;  %v19462_v8 = vld [vmem:[#allocation66 + $0x610] sm:$0xff]  }
 0x550   :  { %v19463_v9 = vld [vmem:[#allocation66 + $0x690] sm:$0xff]  }
 0x551   :  { %16749 = vmatpush3.bf16.msra.mxu0 %v19406_v10  ;;  %v19464_v10 = vld [vmem:[#allocation66 + $0x658] sm:$0xff]  }
 0x552   :  { %16771 = vmatpush3.bf16.msra.mxu1 %v19407_v11  ;;  %16750 = vmatprep.subr.bf16.mxu0 %v19408_v12  ;;  %v19465_v11 = vld [vmem:[#allocation66 + $0x6d8] sm:$0xff]  }
 0x553   :  { %16772 = vmatprep.subr.bf16.mxu1 %v19409_v13  ;;  %v19466_v12 = vld [vmem:[#allocation66 + $0x618] sm:$0xff]  }
 0x554   :  { %v19467_v13 = vld [vmem:[#allocation66 + $0x698] sm:$0xff]  }
 0x555   :  { %16751 = vmatpush3.bf16.msra.mxu0 %v19410_v14  ;;  %v19468_v14 = vld [vmem:[#allocation66 + $0x660] sm:$0xff]  }
 0x556   :  { %16773 = vmatpush3.bf16.msra.mxu1 %v19411_v15  ;;  %16752 = vmatprep.subr.bf16.mxu0 %v19412_v18  ;;  %v19469_v15 = vld [vmem:[#allocation66 + $0x6e0] sm:$0xff]  }
 0x557   :  { %16774 = vmatprep.subr.bf16.mxu1 %v19413_v19  ;;  %v19470_v18 = vld [vmem:[#allocation66 + $0x620] sm:$0xff]  }
 0x558   :  { %v19471_v19 = vld [vmem:[#allocation66 + $0x6a0] sm:$0xff]  }
 0x559   :  { %16753 = vmatpush3.bf16.msra.mxu0 %v19414_v23  ;;  %v19472_v23 = vld [vmem:[#allocation66 + $0x668] sm:$0xff]  }
 0x55a   :  { %16775 = vmatpush3.bf16.msra.mxu1 %v19415_v24  ;;  %16754 = vmatprep.subr.bf16.mxu0 %v19416_v25  ;;  %v19473_v24 = vld [vmem:[#allocation66 + $0x6e8] sm:$0xff]  }
 0x55b   :  { %16776 = vmatprep.subr.bf16.mxu1 %v19417_v26  ;;  %v19474_v25 = vld [vmem:[#allocation66 + $0x628] sm:$0xff]  }
 0x55c   :  { %v19475_v26 = vld [vmem:[#allocation66 + $0x6a8] sm:$0xff]  }
 0x55d   :  { %16755 = vmatpush3.bf16.msra.mxu0 %v19418_v27  ;;  %v19476_v27 = vld [vmem:[#allocation66 + $0x670] sm:$0xff]  }
 0x55e   :  { %16777 = vmatpush3.bf16.msra.mxu1 %v19419_v28  ;;  %16784 = vmatprep.subr.bf16.mxu0 %v19420_v29  ;;  %v19477_v28 = vld [vmem:[#allocation66 + $0x6f0] sm:$0xff]  }
 0x55f   :  { %16806 = vmatprep.subr.bf16.mxu1 %v19421_v30  ;;  %v19478_v29 = vld [vmem:[#allocation66 + $0x630] sm:$0xff]  }
 0x560   :  { %3072 = vmatmul.mubr.bf16.vlgmr.msra.gmra.mrb[20].mxu0 %v22559_v20  ;;  %v19479_v30 = vld [vmem:[#allocation66 + $0x6b0] sm:$0xff]  }
 0x561   :  { %3112 = vmatmul.mubr.bf16.vlgmr.msra.gmra.mrb[20].mxu1 %v22561_v21  ;;  %16785 = vmatpush3.bf16.msra.mxu0 %v19422_v31  ;;  %v19480_v31 = vld [vmem:[#allocation66 + $0x678] sm:$0xff]  }
 0x562   :  { %3409 = vmatprep.mubr.bf16.mxu0 %v22555_v16  ;;  %16807 = vmatpush3.bf16.msra.mxu1 %v19423_v32  ;;  %v19481_v32 = vld [vmem:[#allocation66 + $0x6f8] sm:$0xff]  }
 0x563   :  { %3449 = vmatprep.mubr.bf16.mxu1 %v22557_v17  ;;  %16786 = vmatprep.subr.bf16.mxu0 %v19424_v33  ;;  %v19482_v33 = vld [vmem:[#allocation66 + $0x638] sm:$0xff]  }
 0x564   :  { %16808 = vmatprep.subr.bf16.mxu1 %v19425_v34  ;;  %v19483_v34 = vld [vmem:[#allocation66 + $0x6b8] sm:$0xff]  }
 0x565   :  { %16787 = vmatpush3.bf16.msra.mxu0 %v19426_v35  ;;  %v19484_v35 = vld [vmem:[#allocation66 + $0x740] sm:$0xff]  }
 0x566   :  { %16809 = vmatpush3.bf16.msra.mxu1 %v19427_v36  ;;  %16788 = vmatprep.subr.bf16.mxu0 %v19428_v37  ;;  %v19485_v36 = vld [vmem:[#allocation66 + $0x7c0] sm:$0xff]  }
 0x567   :  { %16810 = vmatprep.subr.bf16.mxu1 %v19429_v38  ;;  %v19486_v37 = vld [vmem:[#allocation66 + $0x700] sm:$0xff]  }
 0x568   :  { %v19487_v38 = vld [vmem:[#allocation66 + $0x780] sm:$0xff]  }
 0x569   :  { %16789 = vmatpush3.bf16.msra.mxu0 %v19430_v39  ;;  %v19488_v39 = vld [vmem:[#allocation66 + $0x748] sm:$0xff]  }
 0x56a   :  { %16811 = vmatpush3.bf16.msra.mxu1 %v19431_v40  ;;  %16790 = vmatprep.subr.bf16.mxu0 %v19432_v41  ;;  %v19489_v40 = vld [vmem:[#allocation66 + $0x7c8] sm:$0xff]  }
 0x56b   :  { %16812 = vmatprep.subr.bf16.mxu1 %v19433_v42  ;;  %v19490_v41 = vld [vmem:[#allocation66 + $0x708] sm:$0xff]  }
 0x56c   :  { %v19491_v42 = vld [vmem:[#allocation66 + $0x788] sm:$0xff]  }
 0x56d   :  { %16791 = vmatpush3.bf16.msra.mxu0 %v19434_v44  ;;  %v19492_v44 = vld [vmem:[#allocation66 + $0x750] sm:$0xff]  }
 0x56e   :  { %16813 = vmatpush3.bf16.msra.mxu1 %v19435_v45  ;;  %16792 = vmatprep.subr.bf16.mxu0 %v19436_v46  ;;  %v19493_v45 = vld [vmem:[#allocation66 + $0x7d0] sm:$0xff]  }
 0x56f   :  { %16814 = vmatprep.subr.bf16.mxu1 %v19437_v47  ;;  %v19494_v46 = vld [vmem:[#allocation66 + $0x710] sm:$0xff]  }
 0x570   :  { %v19495_v47 = vld [vmem:[#allocation66 + $0x790] sm:$0xff]  }
 0x571   :  { %16793 = vmatpush3.bf16.msra.mxu0 %v19438_v48  ;;  %v19496_v48 = vld [vmem:[#allocation66 + $0x758] sm:$0xff]  }
 0x572   :  { %16815 = vmatpush3.bf16.msra.mxu1 %v19439_v49  ;;  %16794 = vmatprep.subr.bf16.mxu0 %v19440_v50  ;;  %v19497_v49 = vld [vmem:[#allocation66 + $0x7d8] sm:$0xff]  }
 0x573   :  { %16816 = vmatprep.subr.bf16.mxu1 %v19441_v51  ;;  %v19498_v50 = vld [vmem:[#allocation66 + $0x718] sm:$0xff]  }
 0x574   :  { %v19499_v51 = vld [vmem:[#allocation66 + $0x798] sm:$0xff]  }
 0x575   :  { %16795 = vmatpush3.bf16.msra.mxu0 %v19442_v52  ;;  %v19500_v52 = vld [vmem:[#allocation66 + $0x760] sm:$0xff]  }
 0x576   :  { %16817 = vmatpush3.bf16.msra.mxu1 %v19443_v53  ;;  %16796 = vmatprep.subr.bf16.mxu0 %v19444_v54  ;;  %v19501_v53 = vld [vmem:[#allocation66 + $0x7e0] sm:$0xff]  }
 0x577   :  { %16818 = vmatprep.subr.bf16.mxu1 %v19445_v55  ;;  %v19502_v54 = vld [vmem:[#allocation66 + $0x720] sm:$0xff]  }
 0x578   :  { %v19503_v55 = vld [vmem:[#allocation66 + $0x7a0] sm:$0xff]  }
 0x579   :  { %16797 = vmatpush3.bf16.msra.mxu0 %v19446_v56  ;;  %v19504_v56 = vld [vmem:[#allocation66 + $0x768] sm:$0xff]  }
 0x57a   :  { %16819 = vmatpush3.bf16.msra.mxu1 %v19447_v57  ;;  %16798 = vmatprep.subr.bf16.mxu0 %v19448_v58  ;;  %v19505_v57 = vld [vmem:[#allocation66 + $0x7e8] sm:$0xff]  }
 0x57b   :  { %16820 = vmatprep.subr.bf16.mxu1 %v19449_v59  ;;  %v19506_v58 = vld [vmem:[#allocation66 + $0x728] sm:$0xff]  }
 0x57c   :  { %v19507_v59 = vld [vmem:[#allocation66 + $0x7a8] sm:$0xff]  }
 0x57d   :  { %16799 = vmatpush3.bf16.msra.mxu0 %v19450_v60  ;;  %v19508_v60 = vld [vmem:[#allocation66 + $0x770] sm:$0xff]  }
 0x57e   :  { %16821 = vmatpush3.bf16.msra.mxu1 %v19451_v61  ;;  %16828 = vmatprep.subr.bf16.mxu0 %v19452_v62  ;;  %v19509_v61 = vld [vmem:[#allocation66 + $0x7f0] sm:$0xff]  }
 0x57f   :  { %16850 = vmatprep.subr.bf16.mxu1 %v19453_v63 }
 0x580   :  { %3410 = vmatmul.mubr.bf16.vlgmr.msra.gmra.mrb[24].mxu0 %v22559_v20 }
 0x581   :  { %3450 = vmatmul.mubr.bf16.vlgmr.msra.gmra.mrb[24].mxu1 %v22561_v21  ;;  %16829 = vmatpush3.bf16.msra.mxu0 %v19454_v0  ;;  %v19510_v0 = vld [vmem:[#allocation66 + $0x730] sm:$0xff]  }
 0x582   :  { %3747 = vmatprep.mubr.bf16.mxu0 %v22555_v16  ;;  %16851 = vmatpush3.bf16.msra.mxu1 %v19455_v1 }
 0x583   :  { %3787 = vmatprep.mubr.bf16.mxu1 %v22557_v17  ;;  %16830 = vmatprep.subr.bf16.mxu0 %v19456_v2 }
 0x584   :  { %16852 = vmatprep.subr.bf16.mxu1 %v19457_v3  ;;  %v19511_v3 = vld [vmem:[#allocation66 + $0x7b0] sm:$0xff]  }
 0x585   :  { %16831 = vmatpush3.bf16.msra.mxu0 %v19458_v4  ;;  %v19512_v4 = vld [vmem:[#allocation66 + $0x778] sm:$0xff]  }
 0x586   :  { %16853 = vmatpush3.bf16.msra.mxu1 %v19459_v5  ;;  %16832 = vmatprep.subr.bf16.mxu0 %v19460_v6 }
 0x587   :  { %16854 = vmatprep.subr.bf16.mxu1 %v19461_v7 }
 0x589   :  { %16833 = vmatpush3.bf16.msra.mxu0 %v19462_v8 }
 0x58a   :  { %16855 = vmatpush3.bf16.msra.mxu1 %v19463_v9  ;;  %16834 = vmatprep.subr.bf16.mxu0 %v19464_v10  ;;  %v19513_v9 = vld [vmem:[#allocation66 + $0x7f8] sm:$0xff]  }
 0x58b   :  { %16856 = vmatprep.subr.bf16.mxu1 %v19465_v11 }
 0x58d   :  { %16835 = vmatpush3.bf16.msra.mxu0 %v19466_v12 }
 0x58e   :  { %16857 = vmatpush3.bf16.msra.mxu1 %v19467_v13  ;;  %16836 = vmatprep.subr.bf16.mxu0 %v19468_v14  ;;  %v19514_v13 = vld [vmem:[#allocation66 + $0x738] sm:$0xff]  }
 0x58f   :  { %16858 = vmatprep.subr.bf16.mxu1 %v19469_v15  ;;  %v19515_v14 = vld [vmem:[#allocation66 + $0x7b8] sm:$0xff]   ;;  %v19516_v15 = vld [vmem:[#allocation66 + $0x840] sm:$0xff]  }
 0x591   :  { %16837 = vmatpush3.bf16.msra.mxu0 %v19470_v18  ;;  %v19517_v18 = vld [vmem:[#allocation66 + $0x8c0] sm:$0xff]  }
 0x592   :  { %16859 = vmatpush3.bf16.msra.mxu1 %v19471_v19  ;;  %16838 = vmatprep.subr.bf16.mxu0 %v19472_v23  ;;  %v19518_v19 = vld [vmem:[#allocation66 + $0x800] sm:$0xff]  }
 0x593   :  { %16860 = vmatprep.subr.bf16.mxu1 %v19473_v24  ;;  %v19519_v23 = vld [vmem:[#allocation66 + $0x880] sm:$0xff]   ;;  %v19520_v24 = vld [vmem:[#allocation66 + $0x848] sm:$0xff]  }
 0x595   :  { %16839 = vmatpush3.bf16.msra.mxu0 %v19474_v25  ;;  %v19521_v25 = vld [vmem:[#allocation66 + $0x8c8] sm:$0xff]  }
 0x596   :  { %16861 = vmatpush3.bf16.msra.mxu1 %v19475_v26  ;;  %16840 = vmatprep.subr.bf16.mxu0 %v19476_v27  ;;  %v19522_v26 = vld [vmem:[#allocation66 + $0x808] sm:$0xff]  }
 0x597   :  { %16862 = vmatprep.subr.bf16.mxu1 %v19477_v28  ;;  %v19523_v27 = vld [vmem:[#allocation66 + $0x888] sm:$0xff]   ;;  %v19524_v28 = vld [vmem:[#allocation66 + $0x850] sm:$0xff]  }
 0x599   :  { %16841 = vmatpush3.bf16.msra.mxu0 %v19478_v29  ;;  %v19525_v29 = vld [vmem:[#allocation66 + $0x8d0] sm:$0xff]  }
 0x59a   :  { %16863 = vmatpush3.bf16.msra.mxu1 %v19479_v30  ;;  %16842 = vmatprep.subr.bf16.mxu0 %v19480_v31  ;;  %v19526_v30 = vld [vmem:[#allocation66 + $0x810] sm:$0xff]  }
 0x59b   :  { %16864 = vmatprep.subr.bf16.mxu1 %v19481_v32  ;;  %v19527_v31 = vld [vmem:[#allocation66 + $0x890] sm:$0xff]   ;;  %v19528_v32 = vld [vmem:[#allocation66 + $0x858] sm:$0xff]  }
 0x59d   :  { %16843 = vmatpush3.bf16.msra.mxu0 %v19482_v33  ;;  %v19529_v33 = vld [vmem:[#allocation66 + $0x8d8] sm:$0xff]  }
 0x59e   :  { %16865 = vmatpush3.bf16.msra.mxu1 %v19483_v34  ;;  %16872 = vmatprep.subr.bf16.mxu0 %v19484_v35  ;;  %v19530_v34 = vld [vmem:[#allocation66 + $0x818] sm:$0xff]  }
 0x59f   :  { %16894 = vmatprep.subr.bf16.mxu1 %v19485_v36  ;;  %v19531_v35 = vld [vmem:[#allocation66 + $0x898] sm:$0xff]   ;;  %v19532_v36 = vld [vmem:[#allocation66 + $0x860] sm:$0xff]  }
 0x5a0   :  { %3748 = vmatmul.mubr.bf16.vlgmr.msra.gmra.mrb[28].mxu0 %v22559_v20 }
 0x5a1   :  { %3788 = vmatmul.mubr.bf16.vlgmr.msra.gmra.mrb[28].mxu1 %v22561_v21  ;;  %16873 = vmatpush3.bf16.msra.mxu0 %v19486_v37  ;;  %v19533_v37 = vld [vmem:[#allocation66 + $0x8e0] sm:$0xff]  }
 0x5a2   :  { %4085 = vmatprep.mubr.bf16.mxu0 %v22555_v16  ;;  %16895 = vmatpush3.bf16.msra.mxu1 %v19487_v38  ;;  %v19534_v38 = vld [vmem:[#allocation66 + $0x820] sm:$0xff]  }
 0x5a3   :  { %4125 = vmatprep.mubr.bf16.mxu1 %v22557_v17  ;;  %16874 = vmatprep.subr.bf16.mxu0 %v19488_v39  ;;  %v19535_v39 = vld [vmem:[#allocation66 + $0x8a0] sm:$0xff]  }
 0x5a4   :  { %16896 = vmatprep.subr.bf16.mxu1 %v19489_v40  ;;  %v19536_v40 = vld [vmem:[#allocation66 + $0x868] sm:$0xff]  }
 0x5a5   :  { %16875 = vmatpush3.bf16.msra.mxu0 %v19490_v41  ;;  %v19537_v41 = vld [vmem:[#allocation66 + $0x8e8] sm:$0xff]  }
 0x5a6   :  { %16897 = vmatpush3.bf16.msra.mxu1 %v19491_v42  ;;  %16876 = vmatprep.subr.bf16.mxu0 %v19492_v44  ;;  %v19538_v42 = vld [vmem:[#allocation66 + $0x828] sm:$0xff]  }
 0x5a7   :  { %16898 = vmatprep.subr.bf16.mxu1 %v19493_v45  ;;  %v19539_v44 = vld [vmem:[#allocation66 + $0x8a8] sm:$0xff]   ;;  %v19540_v45 = vld [vmem:[#allocation66 + $0x870] sm:$0xff]  }
 0x5a9   :  { %16877 = vmatpush3.bf16.msra.mxu0 %v19494_v46  ;;  %v19541_v46 = vld [vmem:[#allocation66 + $0x8f0] sm:$0xff]  }
 0x5aa   :  { %16899 = vmatpush3.bf16.msra.mxu1 %v19495_v47  ;;  %16878 = vmatprep.subr.bf16.mxu0 %v19496_v48 }
 0x5ab   :  { %16900 = vmatprep.subr.bf16.mxu1 %v19497_v49  ;;  %v19542_v49 = vld [vmem:[#allocation66 + $0x830] sm:$0xff]  }
 0x5ad   :  { %16879 = vmatpush3.bf16.msra.mxu0 %v19498_v50 }
 0x5ae   :  { %16901 = vmatpush3.bf16.msra.mxu1 %v19499_v51  ;;  %16880 = vmatprep.subr.bf16.mxu0 %v19500_v52  ;;  %v19543_v52 = vld [vmem:[#allocation66 + $0x8b0] sm:$0xff]  }
 0x5af   :  { %16902 = vmatprep.subr.bf16.mxu1 %v19501_v53  ;;  %v19544_v53 = vld [vmem:[#allocation66 + $0x878] sm:$0xff]  }
 0x5b1   :  { %16881 = vmatpush3.bf16.msra.mxu0 %v19502_v54 }
 0x5b2   :  { %16903 = vmatpush3.bf16.msra.mxu1 %v19503_v55  ;;  %16882 = vmatprep.subr.bf16.mxu0 %v19504_v56 }
 0x5b3   :  { %v16580_v62 = vpop.f32.mrb[4].mxu0  ;;  %v16602_v63 = vpop.f32.mrb[4].mxu1  ;;  %16904 = vmatprep.subr.bf16.mxu1 %v19505_v57 }
 0x5b4   :  { %v16581_v1 = vpop.f32.mrb[5].mxu0  ;;  %v16603_v2 = vpop.f32.mrb[5].mxu1 }
 0x5b5   :  { %v16582_v5 = vadd.f32 %v16581_v1, %v16580_v62  ;;  %v16604_v6 = vadd.f32 %v16603_v2, %v16602_v63  ;;  %16883 = vmatpush3.bf16.msra.mxu0 %v19506_v58  ;;  %v16583_v7 = vpop.f32.mrb[6].mxu0  ;;  %v16605_v8 = vpop.f32.mrb[6].mxu1  ;;  %v19545_v58 = vld [vmem:[#allocation66 + $0x8f8] sm:$0xff]  }
 0x5b6   :  { %16905 = vmatpush3.bf16.msra.mxu1 %v19507_v59  ;;  %v16584_v10 = vpop.f32.mrb[7].mxu0  ;;  %v16606_v11 = vpop.f32.mrb[7].mxu1  ;;  %16884 = vmatprep.subr.bf16.mxu0 %v19508_v60  ;;  %v19546_v62 = vld [vmem:[#allocation66 + $0x838] sm:$0xff]  }
 0x5b7   :  { %v22593_v12 = vadd.f32 %v16604_v6, %v16582_v5  ;;  %16906 = vmatprep.subr.bf16.mxu1 %v19509_v61  ;;  %v19547_v63 = vld [vmem:[#allocation66 + $0x8b8] sm:$0xff]  }
 0x5b9   :  { %16885 = vmatpush3.bf16.msra.mxu0 %v19510_v0 }
 0x5ba   :  { %16907 = vmatpush3.bf16.msra.mxu1 %v19511_v3  ;;  %16886 = vmatprep.subr.bf16.mxu0 %v19512_v4 }
 0x5bb   :  { %16908 = vmatprep.subr.bf16.mxu1 %v19513_v9 }
 0x5bd   :  { %16887 = vmatpush3.bf16.msra.mxu0 %v19514_v13 }
 0x5be   :  { %16909 = vmatpush3.bf16.msra.mxu1 %v19515_v14  ;;  %16916 = vmatprep.subr.bf16.mxu0 %v19516_v15 }
 0x5bf   :  { %16938 = vmatprep.subr.bf16.mxu1 %v19517_v18 }
 0x5c0   :  { %4086 = vmatmul.mubr.bf16.vlgmr.msra.gmra.mrb[32].mxu0 %v22559_v20 }
 0x5c1   :  { %4126 = vmatmul.mubr.bf16.vlgmr.msra.gmra.mrb[32].mxu1 %v22561_v21  ;;  %16917 = vmatpush3.bf16.msra.mxu0 %v19518_v19 }
 0x5c2   :  { %4423 = vmatprep.mubr.bf16.mxu0 %v22555_v16  ;;  %16939 = vmatpush3.bf16.msra.mxu1 %v19519_v23 }
 0x5c3   :  { %4463 = vmatprep.mubr.bf16.mxu1 %v22557_v17  ;;  %16918 = vmatprep.subr.bf16.mxu0 %v19520_v24 }
 0x5c4   :  { %16940 = vmatprep.subr.bf16.mxu1 %v19521_v25 }
 0x5c5   :  { %16919 = vmatpush3.bf16.msra.mxu0 %v19522_v26 }
 0x5c6   :  { %16941 = vmatpush3.bf16.msra.mxu1 %v19523_v27  ;;  %16920 = vmatprep.subr.bf16.mxu0 %v19524_v28 }
 0x5c7   :  { %16942 = vmatprep.subr.bf16.mxu1 %v19525_v29 }
 0x5c9   :  { %16921 = vmatpush3.bf16.msra.mxu0 %v19526_v30  ;;  %v19548_v30 = vld [vmem:[#allocation36] ss:$8 sps:$4 sm:$0xff]  }
 0x5ca   :  { %16943 = vmatpush3.bf16.msra.mxu1 %v19527_v31  ;;  %16922 = vmatprep.subr.bf16.mxu0 %v19528_v32  ;;  %v19550_v31 = vld [vmem:[#allocation36 + $0x4] ss:$8 sps:$4 sm:$0xff]   ;;  %v19551_v32 = vld [vmem:[#allocation39] ss:$8 sps:$4 sm:$0xff]  }
 0x5cb   :  { %16944 = vmatprep.subr.bf16.mxu1 %v19529_v33  ;;  %v19553_v33 = vld [vmem:[#allocation39 + $0x4] ss:$8 sps:$4 sm:$0xff]  }
 0x5cd   :  { %16923 = vmatpush3.bf16.msra.mxu0 %v19530_v34  ;;  %v19556_v34 = vld [vmem:[#allocation36 + $0x14] ss:$8 sps:$4 sm:$0xff]  }
 0x5ce   :  { %16945 = vmatpush3.bf16.msra.mxu1 %v19531_v35  ;;  %16924 = vmatprep.subr.bf16.mxu0 %v19532_v36  ;;  %v19559_v35 = vld [vmem:[#allocation39 + $0x14] ss:$8 sps:$4 sm:$0xff]   ;;  %v19554_v36 = vld [vmem:[#allocation36 + $0x10] ss:$8 sps:$4 sm:$0xff]  }
 0x5cf   :  { %16946 = vmatprep.subr.bf16.mxu1 %v19533_v37  ;;  %v19557_v37 = vld [vmem:[#allocation39 + $0x10] ss:$8 sps:$4 sm:$0xff]  }
 0x5d1   :  { %16925 = vmatpush3.bf16.msra.mxu0 %v19534_v38  ;;  %v19562_v38 = vld [vmem:[#allocation36 + $0x24] ss:$8 sps:$4 sm:$0xff]  }
 0x5d2   :  { %16947 = vmatpush3.bf16.msra.mxu1 %v19535_v39  ;;  %16926 = vmatprep.subr.bf16.mxu0 %v19536_v40  ;;  %v19565_v39 = vld [vmem:[#allocation39 + $0x24] ss:$8 sps:$4 sm:$0xff]   ;;  %v19560_v40 = vld [vmem:[#allocation36 + $0x20] ss:$8 sps:$4 sm:$0xff]  }
 0x5d3   :  { %v16624_v47 = vpop.f32.mrb[8].mxu0  ;;  %v16646_v48 = vpop.f32.mrb[8].mxu1  ;;  %16948 = vmatprep.subr.bf16.mxu1 %v19537_v41  ;;  %v19563_v41 = vld [vmem:[#allocation39 + $0x20] ss:$8 sps:$4 sm:$0xff]  }
 0x5d4   :  { %v16625_v50 = vpop.f32.mrb[9].mxu0  ;;  %v16647_v51 = vpop.f32.mrb[9].mxu1 }
 0x5d5   :  { %v16626_v54 = vadd.f32 %v16625_v50, %v16624_v47  ;;  %v16648_v55 = vadd.f32 %v16647_v51, %v16646_v48  ;;  %v16627_v56 = vpop.f32.mrb[10].mxu0  ;;  %v16649_v57 = vpop.f32.mrb[10].mxu1  ;;  %16927 = vmatpush3.bf16.msra.mxu0 %v19538_v42  ;;  %v19568_v42 = vld [vmem:[#allocation36 + $0x34] ss:$8 sps:$4 sm:$0xff]   ;;  %v19574_v47 = vld [vmem:[#allocation36 + $0x44] ss:$8 sps:$4 sm:$0xff]  }
 0x5d6   :  { %16949 = vmatpush3.bf16.msra.mxu1 %v19539_v44  ;;  %v16628_v59 = vpop.f32.mrb[11].mxu0  ;;  %v16650_v60 = vpop.f32.mrb[11].mxu1  ;;  %16928 = vmatprep.subr.bf16.mxu0 %v19540_v45  ;;  %v19571_v44 = vld [vmem:[#allocation39 + $0x34] ss:$8 sps:$4 sm:$0xff]   ;;  %v19566_v45 = vld [vmem:[#allocation36 + $0x30] ss:$8 sps:$4 sm:$0xff]  }
 0x5d7   :  { %v2100_v61 = vadd.f32 %v16648_v55, %v16626_v54  ;;  %16950 = vmatprep.subr.bf16.mxu1 %v19541_v46  ;;  %v19569_v46 = vld [vmem:[#allocation39 + $0x30] ss:$8 sps:$4 sm:$0xff]   ;;  %v19577_v48 = vld [vmem:[#allocation39 + $0x44] ss:$8 sps:$4 sm:$0xff]   ;;  %v19575_v50 = vld [vmem:[#allocation39 + $0x40] ss:$8 sps:$4 sm:$0xff]  }
 0x5d8   :  { %v19580_v51 = vld [vmem:[#allocation36 + $0x54] ss:$8 sps:$4 sm:$0xff]   ;;  %v19581_v54 = vld [vmem:[#allocation39 + $0x50] ss:$8 sps:$4 sm:$0xff]  }
 0x5d9   :  { %v2105_v0 = vmax.f32 %v22593_v12, %v2100_v61  ;;  %16929 = vmatpush3.bf16.msra.mxu0 %v19542_v49  ;;  %v19572_v49 = vld [vmem:[#allocation36 + $0x40] ss:$8 sps:$4 sm:$0xff]   ;;  %v19586_v61 = vld [vmem:[#allocation36 + $0x64] ss:$8 sps:$4 sm:$0xff]  }
 0x5da   :  { %16951 = vmatpush3.bf16.msra.mxu1 %v19543_v52  ;;  %16930 = vmatprep.subr.bf16.mxu0 %v19544_v53  ;;  %v19583_v52 = vld [vmem:[#allocation39 + $0x54] ss:$8 sps:$4 sm:$0xff]   ;;  %v19578_v53 = vld [vmem:[#allocation36 + $0x50] ss:$8 sps:$4 sm:$0xff]  }
 0x5db   :  { %16952 = vmatprep.subr.bf16.mxu1 %v19545_v58 }
 0x5dd   :  { %16931 = vmatpush3.bf16.msra.mxu0 %v19546_v62  ;;  %v19589_v62 = vld [vmem:[#allocation39 + $0x64] ss:$8 sps:$4 sm:$0xff]  }
 0x5de   :  { %16953 = vmatpush3.bf16.msra.mxu1 %v19547_v63  ;;  %4569 = vmatprep.subr.bf16.mxu0 %v19550_v31 }
 0x5df   :  { %4742 = vmatprep.subr.bf16.mxu1 %v19553_v33 }
 0x5e0   :  { %4424 = vmatmul.mubr.bf16.vlgmr.msra.gmra.mrb[36].mxu0 %v22559_v20 }
 0x5e1   :  { %4464 = vmatmul.mubr.bf16.vlgmr.msra.gmra.mrb[36].mxu1 %v22561_v21  ;;  %4601 = vmatprep.mubr.bf16.mxu0 %v22000_v22 }
 0x5e2   :  { %4774 = vmatprep.mubr.bf16.mxu1 %v22000_v22  ;;  %4570 = vmatpush1.bf16.msra.mxu0 %v19548_v30 }
 0x5e3   :  { %4743 = vmatpush1.bf16.msra.mxu1 %v19551_v32  ;;  %4571 = vmatprep.subr.bf16.mxu0 %v19556_v34 }
 0x5e4   :  { %4744 = vmatprep.subr.bf16.mxu1 %v19559_v35 }
 0x5e6   :  { %4572 = vmatpush1.bf16.msra.mxu0 %v19554_v36 }
 0x5e7   :  { %4745 = vmatpush1.bf16.msra.mxu1 %v19557_v37  ;;  %4573 = vmatprep.subr.bf16.mxu0 %v19562_v38 }
 0x5e8   :  { %4746 = vmatprep.subr.bf16.mxu1 %v19565_v39 }
 0x5ea   :  { %4574 = vmatpush1.bf16.msra.mxu0 %v19560_v40 }
 0x5eb   :  { %4747 = vmatpush1.bf16.msra.mxu1 %v19563_v41  ;;  %4575 = vmatprep.subr.bf16.mxu0 %v19568_v42 }
 0x5ec   :  { %4748 = vmatprep.subr.bf16.mxu1 %v19571_v44 }
 0x5ee   :  { %4576 = vmatpush1.bf16.msra.mxu0 %v19566_v45 }
 0x5ef   :  { %4749 = vmatpush1.bf16.msra.mxu1 %v19569_v46  ;;  %4577 = vmatprep.subr.bf16.mxu0 %v19574_v47 }
 0x5f0   :  { %4750 = vmatprep.subr.bf16.mxu1 %v19577_v48 }
 0x5f2   :  { %4578 = vmatpush1.bf16.msra.mxu0 %v19572_v49 }
 0x5f3   :  { %v16668_v1 = vpop.f32.mrb[12].mxu0  ;;  %4751 = vmatpush1.bf16.msra.mxu1 %v19575_v50  ;;  %4579 = vmatprep.subr.bf16.mxu0 %v19580_v51 }
 0x5f4   :  { %v16690_v2 = vpop.f32.mrb[12].mxu1  ;;  %v16669_v3 = vpop.f32.mrb[13].mxu0  ;;  %4752 = vmatprep.subr.bf16.mxu1 %v19583_v52 }
 0x5f5   :  { %v16670_v4 = vadd.f32 %v16669_v3, %v16668_v1  ;;  %v16691_v5 = vpop.f32.mrb[13].mxu1  ;;  %v16671_v6 = vpop.f32.mrb[14].mxu0  ;;  %v19587_v3 = vld [vmem:[#allocation39 + $0x60] ss:$8 sps:$4 sm:$0xff]  }
 0x5f6   :  { %v16692_v7 = vadd.f32 %v16691_v5, %v16690_v2  ;;  %v16693_v8 = vpop.f32.mrb[14].mxu1  ;;  %v16672_v9 = vpop.f32.mrb[15].mxu0  ;;  %4580 = vmatpush1.bf16.msra.mxu0 %v19578_v53  ;;  %v19584_v2 = vld [vmem:[#allocation36 + $0x60] ss:$8 sps:$4 sm:$0xff]   ;;  %v19592_v6 = vld [vmem:[#allocation36 + $0x74] ss:$8 sps:$4 sm:$0xff]  }
 0x5f7   :  { %v16694_v10 = vpop.f32.mrb[15].mxu1  ;;  %4753 = vmatpush1.bf16.msra.mxu1 %v19581_v54  ;;  %4581 = vmatprep.subr.bf16.mxu0 %v19586_v61  ;;  %v19590_v9 = vld [vmem:[#allocation36 + $0x70] ss:$8 sps:$4 sm:$0xff]  }
 0x5f8   :  { %v2438_v11 = vadd.f32 %v16692_v7, %v16670_v4  ;;  %4754 = vmatprep.subr.bf16.mxu1 %v19589_v62  ;;  %v19595_v7 = vld [vmem:[#allocation39 + $0x74] ss:$8 sps:$4 sm:$0xff]   ;;  %v19593_v10 = vld [vmem:[#allocation39 + $0x70] ss:$8 sps:$4 sm:$0xff]  }
 0x5fa   :  { %v22604_v12 = vmax.f32 %v2105_v0, %v2438_v11  ;;  %4582 = vmatpush1.bf16.msra.mxu0 %v19584_v2  ;;  %v19598_v11 = vld [vmem:[#allocation37 + $0x4] ss:$8 sps:$4 sm:$0xff]   ;;  %v19596_v2 = vld [vmem:[#allocation37] ss:$8 sps:$4 sm:$0xff]  }
 0x5fb   :  { %4755 = vmatpush1.bf16.msra.mxu1 %v19587_v3  ;;  %4583 = vmatprep.subr.bf16.mxu0 %v19592_v6  ;;  %v19604_v6 = vld [vmem:[#allocation37 + $0x24] ss:$8 sps:$4 sm:$0xff]  }
 0x5fc   :  { %4756 = vmatprep.subr.bf16.mxu1 %v19595_v7  ;;  %v19602_v7 = vld [vmem:[#allocation37 + $0x20] ss:$8 sps:$4 sm:$0xff]  }
 0x5fe   :  { %4584 = vmatpush1.bf16.msra.mxu0 %v19590_v9  ;;  %v19605_v9 = vld [vmem:[#allocation37 + $0x30] ss:$8 sps:$4 sm:$0xff]  }
 0x5ff   :  { %4757 = vmatpush1.bf16.msra.mxu1 %v19593_v10  ;;  %v19610_v10 = vld [vmem:[#allocation37 + $0x44] ss:$8 sps:$4 sm:$0xff]  }
 0x600   :  { %4943 = vmatprep.subr.bf16.mxu1 %v19598_v11  ;;  %v19608_v11 = vld [vmem:[#allocation37 + $0x40] ss:$8 sps:$4 sm:$0xff]  }
 0x613   :  { %v16712_v13 = vpop.f32.mrb[16].mxu0 }
 0x614   :  { %v16734_v14 = vpop.f32.mrb[16].mxu1  ;;  %v16713_v15 = vpop.f32.mrb[17].mxu0 }
 0x615   :  { %v16714_v18 = vadd.f32 %v16713_v15, %v16712_v13  ;;  %v16735_v19 = vpop.f32.mrb[17].mxu1  ;;  %v16715_v23 = vpop.f32.mrb[18].mxu0 }
 0x616   :  { %v16736_v24 = vadd.f32 %v16735_v19, %v16734_v14  ;;  %v16737_v25 = vpop.f32.mrb[18].mxu1  ;;  %v16716_v26 = vpop.f32.mrb[19].mxu0 }
 0x617   :  { %v16738_v27 = vpop.f32.mrb[19].mxu1 }
 0x618   :  { %v22606_v28 = vadd.f32 %v16736_v24, %v16714_v18 }
 0x61a   :  { %v2781_v29 = vmax.f32 %v22604_v12, %v22606_v28 }
 0x633   :  { %v16756_v55 = vpop.f32.mrb[20].mxu0 }
 0x634   :  { %v16778_v56 = vpop.f32.mrb[20].mxu1  ;;  %v16757_v57 = vpop.f32.mrb[21].mxu0 }
 0x635   :  { %v16758_v58 = vadd.f32 %v16757_v57, %v16756_v55  ;;  %v16779_v59 = vpop.f32.mrb[21].mxu1  ;;  %v16759_v60 = vpop.f32.mrb[22].mxu0 }
 0x636   :  { %v16780_v63 = vadd.f32 %v16779_v59, %v16778_v56  ;;  %v16781_v0 = vpop.f32.mrb[22].mxu1  ;;  %v16760_v1 = vpop.f32.mrb[23].mxu0 }
 0x637   :  { %v16782_v4 = vpop.f32.mrb[23].mxu1 }
 0x638   :  { %v3114_v5 = vadd.f32 %v16780_v63, %v16758_v58  ;;  %v19601_v4 = vld [vmem:[#allocation37 + $0x14] ss:$8 sps:$4 sm:$0xff]  }
 0x63a   :  { %v3119_v8 = vmax.f32 %v2781_v29, %v3114_v5  ;;  %v19599_v5 = vld [vmem:[#allocation37 + $0x10] ss:$8 sps:$4 sm:$0xff]  }
 0x653   :  { %v16800_v13 = vpop.f32.mrb[24].mxu0 }
 0x654   :  { %v16822_v14 = vpop.f32.mrb[24].mxu1  ;;  %v16801_v15 = vpop.f32.mrb[25].mxu0 }
 0x655   :  { %v16802_v18 = vadd.f32 %v16801_v15, %v16800_v13  ;;  %v16823_v19 = vpop.f32.mrb[25].mxu1  ;;  %v16803_v23 = vpop.f32.mrb[26].mxu0  ;;  %v19613_v13 = vld [vmem:[#allocation37 + $0x54] ss:$8 sps:$4 sm:$0xff]   ;;  %v19616_v15 = vld [vmem:[#allocation37 + $0x64] ss:$8 sps:$4 sm:$0xff]  }
 0x656   :  { %v16824_v24 = vadd.f32 %v16823_v19, %v16822_v14  ;;  %v16825_v25 = vpop.f32.mrb[26].mxu1  ;;  %v16804_v26 = vpop.f32.mrb[27].mxu0  ;;  %v19611_v14 = vld [vmem:[#allocation37 + $0x50] ss:$8 sps:$4 sm:$0xff]   ;;  %v19619_v19 = vld [vmem:[#allocation37 + $0x74] ss:$8 sps:$4 sm:$0xff]  }
 0x657   :  { %v16826_v27 = vpop.f32.mrb[27].mxu1  ;;  %v19617_v23 = vld [vmem:[#allocation37 + $0x70] ss:$8 sps:$4 sm:$0xff]   ;;  %v19620_v25 = vld [vmem:[#allocation37 + $0x80] ss:$8 sps:$4 sm:$0xff]  }
 0x658   :  { %v3452_v12 = vadd.f32 %v16824_v24, %v16802_v18  ;;  %v19614_v18 = vld [vmem:[#allocation37 + $0x60] ss:$8 sps:$4 sm:$0xff]   ;;  %v19622_v24 = vld [vmem:[#allocation37 + $0x84] ss:$8 sps:$4 sm:$0xff]   ;;  %v19625_v26 = vld [vmem:[#allocation37 + $0x94] ss:$8 sps:$4 sm:$0xff]  }
 0x659   :  { %v19623_v27 = vld [vmem:[#allocation37 + $0x90] ss:$8 sps:$4 sm:$0xff]  }
 0x65a   :  { %v3457_v28 = vmax.f32 %v3119_v8, %v3452_v12  ;;  %v19607_v8 = vld [vmem:[#allocation37 + $0x34] ss:$8 sps:$4 sm:$0xff]   ;;  %v19628_v12 = vld [vmem:[#allocation37 + $0xa4] ss:$8 sps:$4 sm:$0xff]  }
 0x673   :  { %v16844_v29 = vpop.f32.mrb[28].mxu0 }
 0x674   :  { %v16866_v30 = vpop.f32.mrb[28].mxu1  ;;  %v16845_v31 = vpop.f32.mrb[29].mxu0 }
 0x675   :  { %v16846_v32 = vadd.f32 %v16845_v31, %v16844_v29  ;;  %v16867_v33 = vpop.f32.mrb[29].mxu1  ;;  %v16847_v34 = vpop.f32.mrb[30].mxu0  ;;  %v19631_v29 = vld [vmem:[#allocation37 + $0xb4] ss:$8 sps:$4 sm:$0xff]   ;;  %v19634_v31 = vld [vmem:[#allocation37 + $0xc4] ss:$8 sps:$4 sm:$0xff]  }
 0x676   :  { %v16868_v35 = vadd.f32 %v16867_v33, %v16866_v30  ;;  %v16869_v36 = vpop.f32.mrb[30].mxu1  ;;  %v16848_v37 = vpop.f32.mrb[31].mxu0  ;;  %v19629_v30 = vld [vmem:[#allocation37 + $0xb0] ss:$8 sps:$4 sm:$0xff]   ;;  %v19637_v33 = vld [vmem:[#allocation37 + $0xd4] ss:$8 sps:$4 sm:$0xff]  }
 0x677   :  { %v16870_v38 = vpop.f32.mrb[31].mxu1  ;;  %v19635_v34 = vld [vmem:[#allocation37 + $0xd0] ss:$8 sps:$4 sm:$0xff]   ;;  %v19638_v36 = vld [vmem:[#allocation37 + $0xe0] ss:$8 sps:$4 sm:$0xff]  }
 0x678   :  { %v3790_v39 = vadd.f32 %v16868_v35, %v16846_v32  ;;  %v19632_v32 = vld [vmem:[#allocation37 + $0xc0] ss:$8 sps:$4 sm:$0xff]   ;;  %v19640_v35 = vld [vmem:[#allocation37 + $0xe4] ss:$8 sps:$4 sm:$0xff]   ;;  %v19643_v37 = vld [vmem:[#allocation37 + $0xf4] ss:$8 sps:$4 sm:$0xff]  }
 0x679   :  { %v19641_v38 = vld [vmem:[#allocation37 + $0xf0] ss:$8 sps:$4 sm:$0xff]  }
 0x67a   :  { %v3795_v40 = vmax.f32 %v3457_v28, %v3790_v39  ;;  %v19626_v28 = vld [vmem:[#allocation37 + $0xa0] ss:$8 sps:$4 sm:$0xff]  }
 0x67b   :  { %v19644_v39 = vld [vmem:[#allocation40] ss:$8 sps:$4 sm:$0xff]  }
 0x693   :  { %v16888_v41 = vpop.f32.mrb[32].mxu0 }
 0x694   :  { %v16910_v42 = vpop.f32.mrb[32].mxu1  ;;  %v16889_v44 = vpop.f32.mrb[33].mxu0 }
 0x695   :  { %v16890_v45 = vadd.f32 %v16889_v44, %v16888_v41  ;;  %v16911_v46 = vpop.f32.mrb[33].mxu1  ;;  %v16891_v47 = vpop.f32.mrb[34].mxu0  ;;  %v19649_v41 = vld [vmem:[#allocation40 + $0x14] ss:$8 sps:$4 sm:$0xff]   ;;  %v19652_v44 = vld [vmem:[#allocation40 + $0x24] ss:$8 sps:$4 sm:$0xff]  }
 0x696   :  { %v16912_v48 = vadd.f32 %v16911_v46, %v16910_v42  ;;  %v16913_v49 = vpop.f32.mrb[34].mxu1  ;;  %v16892_v50 = vpop.f32.mrb[35].mxu0  ;;  %v19647_v42 = vld [vmem:[#allocation40 + $0x10] ss:$8 sps:$4 sm:$0xff]   ;;  %v19655_v46 = vld [vmem:[#allocation40 + $0x34] ss:$8 sps:$4 sm:$0xff]  }
 0x697   :  { %v16914_v51 = vpop.f32.mrb[35].mxu1  ;;  %v19653_v47 = vld [vmem:[#allocation40 + $0x30] ss:$8 sps:$4 sm:$0xff]   ;;  %v19656_v49 = vld [vmem:[#allocation40 + $0x40] ss:$8 sps:$4 sm:$0xff]  }
 0x698   :  { %v4128_v52 = vadd.f32 %v16912_v48, %v16890_v45  ;;  %v19650_v45 = vld [vmem:[#allocation40 + $0x20] ss:$8 sps:$4 sm:$0xff]   ;;  %v19658_v48 = vld [vmem:[#allocation40 + $0x44] ss:$8 sps:$4 sm:$0xff]   ;;  %v19661_v50 = vld [vmem:[#allocation40 + $0x54] ss:$8 sps:$4 sm:$0xff]  }
 0x699   :  { %v19659_v51 = vld [vmem:[#allocation40 + $0x50] ss:$8 sps:$4 sm:$0xff]  }
 0x69a   :  { %v4133_v53 = vmax.f32 %v3795_v40, %v4128_v52  ;;  %v19646_v40 = vld [vmem:[#allocation40 + $0x4] ss:$8 sps:$4 sm:$0xff]  }
 0x69b   :  { %5180 = vmatprep.subr.bf16.mxu0 %v19646_v40  ;;  %v19664_v52 = vld [vmem:[#allocation40 + $0x64] ss:$8 sps:$4 sm:$0xff]   ;;  %v19707_v40 = vld [vmem:[#allocation42 + $0x50] ss:$8 sps:$4 sm:$0xff]  }
 0x6b3   :  { %v16932_v54 = vpop.f32.mrb[36].mxu0 }
 0x6b4   :  { %v16954_v55 = vpop.f32.mrb[36].mxu1  ;;  %v16933_v56 = vpop.f32.mrb[37].mxu0 }
 0x6b5   :  { %v16934_v57 = vadd.f32 %v16933_v56, %v16932_v54  ;;  %v16955_v58 = vpop.f32.mrb[37].mxu1  ;;  %v16935_v59 = vpop.f32.mrb[38].mxu0  ;;  %v19667_v54 = vld [vmem:[#allocation40 + $0x74] ss:$8 sps:$4 sm:$0xff]   ;;  %v19670_v56 = vld [vmem:[#allocation40 + $0x84] ss:$8 sps:$4 sm:$0xff]  }
 0x6b6   :  { %v16956_v60 = vadd.f32 %v16955_v58, %v16954_v55  ;;  %v16957_v61 = vpop.f32.mrb[38].mxu1  ;;  %v16936_v62 = vpop.f32.mrb[39].mxu0  ;;  %v19665_v55 = vld [vmem:[#allocation40 + $0x70] ss:$8 sps:$4 sm:$0xff]   ;;  %v19673_v58 = vld [vmem:[#allocation40 + $0x94] ss:$8 sps:$4 sm:$0xff]  }
 0x6b7   :  { %v16958_v63 = vpop.f32.mrb[39].mxu1  ;;  %v19671_v59 = vld [vmem:[#allocation40 + $0x90] ss:$8 sps:$4 sm:$0xff]   ;;  %v19674_v61 = vld [vmem:[#allocation40 + $0xa0] ss:$8 sps:$4 sm:$0xff]  }
 0x6b8   :  { %v4466_v0 = vadd.f32 %v16956_v60, %v16934_v57  ;;  %v19668_v57 = vld [vmem:[#allocation40 + $0x80] ss:$8 sps:$4 sm:$0xff]   ;;  %v19676_v60 = vld [vmem:[#allocation40 + $0xa4] ss:$8 sps:$4 sm:$0xff]   ;;  %v19679_v62 = vld [vmem:[#allocation40 + $0xb4] ss:$8 sps:$4 sm:$0xff]  }
 0x6b9   :  { %v19677_v63 = vld [vmem:[#allocation40 + $0xb0] ss:$8 sps:$4 sm:$0xff]  }
 0x6ba   :  { %v4471_v1 = vmax.f32 %v4133_v53, %v4466_v0  ;;  %v19662_v53 = vld [vmem:[#allocation40 + $0x60] ss:$8 sps:$4 sm:$0xff]   ;;  %v19682_v0 = vld [vmem:[#allocation40 + $0xc4] ss:$8 sps:$4 sm:$0xff]  }
 0x6bc   :  { %v4472_v3 = vpack.c.bf16 %v4471_v1, %v4471_v1  ;;  %v19680_v1 = vld [vmem:[#allocation40 + $0xc0] ss:$8 sps:$4 sm:$0xff]  }
 0x6be   :  { %4602 = vmatmul.mubr.bf16.vlgmr.msra.gmra.mrb[40].mxu0 %v4472_v3  ;;  %4775 = vmatmul.mubr.bf16.vlgmr.msra.gmra.mrb[40].mxu1 %v4472_v3  ;;  %v19683_v3 = vld [vmem:[#allocation40 + $0xd0] ss:$8 sps:$4 sm:$0xff]  }
 0x6bf   :  { %4944 = vmatpush1.bf16.msra.mxu1 %v19596_v2  ;;  %5181 = vmatpush1.bf16.msra.mxu0 %v19644_v39  ;;  %v19685_v2 = vld [vmem:[#allocation40 + $0xd4] ss:$8 sps:$4 sm:$0xff]  }
 0x6c0   :  { %4945 = vmatprep.subr.bf16.mxu1 %v19601_v4  ;;  %5182 = vmatprep.subr.bf16.mxu0 %v19649_v41  ;;  %v19688_v4 = vld [vmem:[#allocation40 + $0xe4] ss:$8 sps:$4 sm:$0xff]   ;;  %v19709_v39 = vld [vmem:[#allocation42 + $0x54] ss:$8 sps:$4 sm:$0xff]  }
 0x6c1   :  { %v19712_v41 = vld [vmem:[#allocation42 + $0x64] ss:$8 sps:$4 sm:$0xff]  }
 0x6c3   :  { %4946 = vmatpush1.bf16.msra.mxu1 %v19599_v5  ;;  %5183 = vmatpush1.bf16.msra.mxu0 %v19647_v42  ;;  %v19686_v5 = vld [vmem:[#allocation40 + $0xe0] ss:$8 sps:$4 sm:$0xff]  }
 0x6c4   :  { %4947 = vmatprep.subr.bf16.mxu1 %v19604_v6  ;;  %5184 = vmatprep.subr.bf16.mxu0 %v19652_v44  ;;  %v19710_v42 = vld [vmem:[#allocation42 + $0x60] ss:$8 sps:$4 sm:$0xff]   ;;  %v19715_v44 = vld [vmem:[#allocation42 + $0x74] ss:$8 sps:$4 sm:$0xff]  }
 0x6c7   :  { %4948 = vmatpush1.bf16.msra.mxu1 %v19602_v7  ;;  %5185 = vmatpush1.bf16.msra.mxu0 %v19650_v45  ;;  %v19713_v45 = vld [vmem:[#allocation42 + $0x70] ss:$8 sps:$4 sm:$0xff]  }
 0x6c8   :  { %4949 = vmatprep.subr.bf16.mxu1 %v19607_v8  ;;  %5186 = vmatprep.subr.bf16.mxu0 %v19655_v46  ;;  %v19718_v46 = vld [vmem:[#allocation42 + $0x84] ss:$8 sps:$4 sm:$0xff]  }
 0x6cb   :  { %4950 = vmatpush1.bf16.msra.mxu1 %v19605_v9  ;;  %5187 = vmatpush1.bf16.msra.mxu0 %v19653_v47  ;;  %v19716_v47 = vld [vmem:[#allocation42 + $0x80] ss:$8 sps:$4 sm:$0xff]  }
 0x6cc   :  { %4951 = vmatprep.subr.bf16.mxu1 %v19610_v10  ;;  %5188 = vmatprep.subr.bf16.mxu0 %v19658_v48  ;;  %v19721_v48 = vld [vmem:[#allocation42 + $0x94] ss:$8 sps:$4 sm:$0xff]  }
 0x6cf   :  { %4952 = vmatpush1.bf16.msra.mxu1 %v19608_v11  ;;  %5189 = vmatpush1.bf16.msra.mxu0 %v19656_v49  ;;  %v19719_v49 = vld [vmem:[#allocation42 + $0x90] ss:$8 sps:$4 sm:$0xff]  }
 0x6d0   :  { %4953 = vmatprep.subr.bf16.mxu1 %v19613_v13  ;;  %5190 = vmatprep.subr.bf16.mxu0 %v19661_v50  ;;  %v19724_v50 = vld [vmem:[#allocation42 + $0xa4] ss:$8 sps:$4 sm:$0xff]  }
 0x6d3   :  { %4954 = vmatpush1.bf16.msra.mxu1 %v19611_v14  ;;  %5191 = vmatpush1.bf16.msra.mxu0 %v19659_v51  ;;  %v19722_v51 = vld [vmem:[#allocation42 + $0xa0] ss:$8 sps:$4 sm:$0xff]  }
 0x6d4   :  { %4955 = vmatprep.subr.bf16.mxu1 %v19616_v15  ;;  %5192 = vmatprep.subr.bf16.mxu0 %v19664_v52  ;;  %v19691_v15 = vld [vmem:[#allocation40 + $0xf4] ss:$8 sps:$4 sm:$0xff]  }
 0x6d5   :  { %v19727_v52 = vld [vmem:[#allocation42 + $0xb4] ss:$8 sps:$4 sm:$0xff]  }
 0x6d7   :  { %4956 = vmatpush1.bf16.msra.mxu1 %v19614_v18  ;;  %5193 = vmatpush1.bf16.msra.mxu0 %v19662_v53  ;;  %v19689_v18 = vld [vmem:[#allocation40 + $0xf0] ss:$8 sps:$4 sm:$0xff]  }
 0x6d8   :  { %4957 = vmatprep.subr.bf16.mxu1 %v19619_v19  ;;  %5194 = vmatprep.subr.bf16.mxu0 %v19667_v54  ;;  %v19694_v19 = vld [vmem:[#allocation42 + $0x4] ss:$8 sps:$4 sm:$0xff]   ;;  %v19725_v53 = vld [vmem:[#allocation42 + $0xb0] ss:$8 sps:$4 sm:$0xff]  }
 0x6d9   :  { %v19730_v54 = vld [vmem:[#allocation42 + $0xc4] ss:$8 sps:$4 sm:$0xff]  }
 0x6db   :  { %4958 = vmatpush1.bf16.msra.mxu1 %v19617_v23  ;;  %5195 = vmatpush1.bf16.msra.mxu0 %v19665_v55  ;;  %v19728_v55 = vld [vmem:[#allocation42 + $0xc0] ss:$8 sps:$4 sm:$0xff]  }
 0x6dc   :  { %4959 = vmatprep.subr.bf16.mxu1 %v19622_v24  ;;  %5196 = vmatprep.subr.bf16.mxu0 %v19670_v56  ;;  %v19733_v56 = vld [vmem:[#allocation42 + $0xd4] ss:$8 sps:$4 sm:$0xff]  }
 0x6df   :  { %4960 = vmatpush1.bf16.msra.mxu1 %v19620_v25  ;;  %5197 = vmatpush1.bf16.msra.mxu0 %v19668_v57  ;;  %v19731_v57 = vld [vmem:[#allocation42 + $0xd0] ss:$8 sps:$4 sm:$0xff]  }
 0x6e0   :  { %4961 = vmatprep.subr.bf16.mxu1 %v19625_v26  ;;  %5198 = vmatprep.subr.bf16.mxu0 %v19673_v58  ;;  %v19736_v58 = vld [vmem:[#allocation42 + $0xe4] ss:$8 sps:$4 sm:$0xff]  }
 0x6e3   :  { %4962 = vmatpush1.bf16.msra.mxu1 %v19623_v27  ;;  %5199 = vmatpush1.bf16.msra.mxu0 %v19671_v59  ;;  %v19734_v59 = vld [vmem:[#allocation42 + $0xe0] ss:$8 sps:$4 sm:$0xff]  }
 0x6e4   :  { %4963 = vmatprep.subr.bf16.mxu1 %v19628_v12  ;;  %5200 = vmatprep.subr.bf16.mxu0 %v19676_v60  ;;  %v19739_v60 = vld [vmem:[#allocation42 + $0xf4] ss:$8 sps:$4 sm:$0xff]  }
 0x6e7   :  { %4964 = vmatpush1.bf16.msra.mxu1 %v19626_v28  ;;  %5201 = vmatpush1.bf16.msra.mxu0 %v19674_v61  ;;  %v19737_v61 = vld [vmem:[#allocation42 + $0xf0] ss:$8 sps:$4 sm:$0xff]  }
 0x6e8   :  { %4965 = vmatprep.subr.bf16.mxu1 %v19631_v29  ;;  %5202 = vmatprep.subr.bf16.mxu0 %v19679_v62  ;;  %v19692_v29 = vld [vmem:[#allocation42] ss:$8 sps:$4 sm:$0xff]  }
 0x6e9   :  { %v19740_v62 = vld [vmem:[#allocation43] ss:$8 sps:$4 sm:$0xff]  }
 0x6eb   :  { %4966 = vmatpush1.bf16.msra.mxu1 %v19629_v30  ;;  %5203 = vmatpush1.bf16.msra.mxu0 %v19677_v63  ;;  %v19742_v63 = vld [vmem:[#allocation43 + $0x4] ss:$8 sps:$4 sm:$0xff]  }
 0x6ec   :  { %4967 = vmatprep.subr.bf16.mxu1 %v19634_v31  ;;  %5204 = vmatprep.subr.bf16.mxu0 %v19682_v0  ;;  %v19697_v31 = vld [vmem:[#allocation42 + $0x14] ss:$8 sps:$4 sm:$0xff]  }
 0x6ed   :  { %v19745_v0 = vld [vmem:[#allocation43 + $0x14] ss:$8 sps:$4 sm:$0xff]  }
 0x6ef   :  { %4968 = vmatpush1.bf16.msra.mxu1 %v19632_v32  ;;  %5205 = vmatpush1.bf16.msra.mxu0 %v19680_v1  ;;  %v19695_v32 = vld [vmem:[#allocation42 + $0x10] ss:$8 sps:$4 sm:$0xff]  }
 0x6f0   :  { %4969 = vmatprep.subr.bf16.mxu1 %v19637_v33  ;;  %5206 = vmatprep.subr.bf16.mxu0 %v19685_v2  ;;  %v19700_v33 = vld [vmem:[#allocation42 + $0x24] ss:$8 sps:$4 sm:$0xff]   ;;  %v19743_v1 = vld [vmem:[#allocation43 + $0x10] ss:$8 sps:$4 sm:$0xff]  }
 0x6f1   :  { %v19748_v2 = vld [vmem:[#allocation43 + $0x24] ss:$8 sps:$4 sm:$0xff]  }
 0x6f3   :  { %4970 = vmatpush1.bf16.msra.mxu1 %v19635_v34  ;;  %5207 = vmatpush1.bf16.msra.mxu0 %v19683_v3  ;;  %v19698_v34 = vld [vmem:[#allocation42 + $0x20] ss:$8 sps:$4 sm:$0xff]  }
 0x6f4   :  { %4971 = vmatprep.subr.bf16.mxu1 %v19640_v35  ;;  %5208 = vmatprep.subr.bf16.mxu0 %v19688_v4  ;;  %v19703_v35 = vld [vmem:[#allocation42 + $0x34] ss:$8 sps:$4 sm:$0xff]   ;;  %v19746_v3 = vld [vmem:[#allocation43 + $0x20] ss:$8 sps:$4 sm:$0xff]  }
 0x6f5   :  { %v19751_v4 = vld [vmem:[#allocation43 + $0x34] ss:$8 sps:$4 sm:$0xff]  }
 0x6f7   :  { %4972 = vmatpush1.bf16.msra.mxu1 %v19638_v36  ;;  %5209 = vmatpush1.bf16.msra.mxu0 %v19686_v5  ;;  %v19701_v36 = vld [vmem:[#allocation42 + $0x30] ss:$8 sps:$4 sm:$0xff]  }
 0x6f8   :  { %4973 = vmatprep.subr.bf16.mxu1 %v19643_v37  ;;  %5210 = vmatprep.subr.bf16.mxu0 %v19691_v15  ;;  %v19706_v37 = vld [vmem:[#allocation42 + $0x44] ss:$8 sps:$4 sm:$0xff]   ;;  %v19749_v5 = vld [vmem:[#allocation43 + $0x30] ss:$8 sps:$4 sm:$0xff]  }
 0x6f9   :  { %v19766_v15 = vld [vmem:[#allocation43 + $0x84] ss:$8 sps:$4 sm:$0xff]  }
 0x6fb   :  { %4974 = vmatpush1.bf16.msra.mxu1 %v19641_v38  ;;  %5211 = vmatpush1.bf16.msra.mxu0 %v19689_v18  ;;  %v19704_v38 = vld [vmem:[#allocation42 + $0x40] ss:$8 sps:$4 sm:$0xff]  }
 0x6fc   :  { %5417 = vmatprep.subr.bf16.mxu0 %v19694_v19  ;;  %5654 = vmatprep.subr.bf16.mxu1 %v19742_v63  ;;  %v19764_v18 = vld [vmem:[#allocation43 + $0x80] ss:$8 sps:$4 sm:$0xff]   ;;  %v19769_v19 = vld [vmem:[#allocation43 + $0x94] ss:$8 sps:$4 sm:$0xff]  }
 0x6fd   :  { %v19812_v63 = vld [vmem:[#allocation45 + $0x80] ss:$8 sps:$4 sm:$0xff]  }
 0x791   :  { %v4603_v6 = vpop.f32.mrb[40].mxu0 }
 0x792   :  { %v4610_v7 = vmax.f32 %v4603_v6, 0.0  ;;  %v4605_v8 = vpop.f32.mrb[41].mxu0  ;;  %v19754_v6 = vld [vmem:[#allocation43 + $0x44] ss:$8 sps:$4 sm:$0xff]  }
 0x793   :  { %v4611_v9 = vmax.f32 %v4605_v8, 0.0  ;;  %v4607_v10 = vpop.f32.mrb[42].mxu0  ;;  %v19757_v8 = vld [vmem:[#allocation43 + $0x54] ss:$8 sps:$4 sm:$0xff]  }
 0x794   :  { %v4608_v11 = vpop.f32.mrb[43].mxu0  ;;  %v4612_v14 = vpack.c.bf16 %v4610_v7, %v4610_v7  ;;  %v19752_v7 = vld [vmem:[#allocation43 + $0x40] ss:$8 sps:$4 sm:$0xff]   ;;  %v19760_v10 = vld [vmem:[#allocation43 + $0x64] ss:$8 sps:$4 sm:$0xff]  }
 0x795   :  { %v4613_v13 = vpack.c.bf16 %v4611_v9, %v4611_v9  ;;  %v19755_v9 = vld [vmem:[#allocation43 + $0x50] ss:$8 sps:$4 sm:$0xff]   ;;  %v19758_v11 = vld [vmem:[#allocation43 + $0x60] ss:$8 sps:$4 sm:$0xff]  }
 0x797   :  { %4975 = vmatprep.mubr.bf16.mxu1 %v4613_v13  ;;  %v19763_v13 = vld [vmem:[#allocation43 + $0x74] ss:$8 sps:$4 sm:$0xff]  }
 0x798   :  { %4976 = vmatmul.mubr.bf16.vlgmr.msra.gmra.mrb[40].mxu1 %v4612_v14  ;;  %v19761_v14 = vld [vmem:[#allocation43 + $0x70] ss:$8 sps:$4 sm:$0xff]  }
 0x799   :  { %5655 = vmatpush1.bf16.msra.mxu1 %v19740_v62  ;;  %v19814_v62 = vld [vmem:[#allocation45 + $0x84] ss:$8 sps:$4 sm:$0xff]  }
 0x79a   :  { %5656 = vmatprep.subr.bf16.mxu1 %v19745_v0  ;;  %v19817_v0 = vld [vmem:[#allocation45 + $0x94] ss:$8 sps:$4 sm:$0xff]  }
 0x79d   :  { %5657 = vmatpush1.bf16.msra.mxu1 %v19743_v1  ;;  %v19815_v1 = vld [vmem:[#allocation45 + $0x90] ss:$8 sps:$4 sm:$0xff]  }
 0x79e   :  { %5658 = vmatprep.subr.bf16.mxu1 %v19748_v2  ;;  %v19820_v2 = vld [vmem:[#allocation45 + $0xa4] ss:$8 sps:$4 sm:$0xff]  }
 0x7a1   :  { %5659 = vmatpush1.bf16.msra.mxu1 %v19746_v3  ;;  %v19818_v3 = vld [vmem:[#allocation45 + $0xa0] ss:$8 sps:$4 sm:$0xff]  }
 0x7a2   :  { %5660 = vmatprep.subr.bf16.mxu1 %v19751_v4  ;;  %v19823_v4 = vld [vmem:[#allocation45 + $0xb4] ss:$8 sps:$4 sm:$0xff]  }
 0x7a5   :  { %5661 = vmatpush1.bf16.msra.mxu1 %v19749_v5  ;;  %v19821_v5 = vld [vmem:[#allocation45 + $0xb0] ss:$8 sps:$4 sm:$0xff]  }
 0x7a6   :  { %5662 = vmatprep.subr.bf16.mxu1 %v19754_v6  ;;  %v19826_v6 = vld [vmem:[#allocation45 + $0xc4] ss:$8 sps:$4 sm:$0xff]  }
 0x7a9   :  { %5663 = vmatpush1.bf16.msra.mxu1 %v19752_v7  ;;  %v19824_v7 = vld [vmem:[#allocation45 + $0xc0] ss:$8 sps:$4 sm:$0xff]  }
 0x7aa   :  { %5664 = vmatprep.subr.bf16.mxu1 %v19757_v8  ;;  %v19829_v8 = vld [vmem:[#allocation45 + $0xd4] ss:$8 sps:$4 sm:$0xff]  }
 0x7ad   :  { %5665 = vmatpush1.bf16.msra.mxu1 %v19755_v9  ;;  %v19827_v9 = vld [vmem:[#allocation45 + $0xd0] ss:$8 sps:$4 sm:$0xff]  }
 0x7ae   :  { %5666 = vmatprep.subr.bf16.mxu1 %v19760_v10  ;;  %v19832_v10 = vld [vmem:[#allocation45 + $0xe4] ss:$8 sps:$4 sm:$0xff]  }
 0x7b1   :  { %5667 = vmatpush1.bf16.msra.mxu1 %v19758_v11  ;;  %v19830_v11 = vld [vmem:[#allocation45 + $0xe0] ss:$8 sps:$4 sm:$0xff]  }
 0x7b2   :  { %5668 = vmatprep.subr.bf16.mxu1 %v19763_v13 }
 0x7b5   :  { %5669 = vmatpush1.bf16.msra.mxu1 %v19761_v14 }
 0x7b6   :  { %5670 = vmatprep.subr.bf16.mxu1 %v19766_v15 }
 0x7b9   :  { %5671 = vmatpush1.bf16.msra.mxu1 %v19764_v18 }
 0x7ba   :  { %5672 = vmatprep.subr.bf16.mxu1 %v19769_v19 }
 0x86b   :  { %v4977_v23 = vpop.f32.mrb[40].mxu1 }
 0x86c   :  { %v22613_v24 = vmax.f32 %v4977_v23, 0.0  ;;  %v4979_v25 = vpop.f32.mrb[41].mxu1  ;;  %v19767_v23 = vld [vmem:[#allocation43 + $0x90] ss:$8 sps:$4 sm:$0xff]  }
 0x86d   :  { %v22615_v26 = vmax.f32 %v4979_v25, 0.0  ;;  %v4981_v27 = vpop.f32.mrb[42].mxu1  ;;  %v19772_v25 = vld [vmem:[#allocation43 + $0xa4] ss:$8 sps:$4 sm:$0xff]   ;;  %5673 = vmatpush1.bf16.msra.mxu1 %v19767_v23 }
 0x86e   :  { %v4982_v12 = vpop.f32.mrb[43].mxu1  ;;  %v4986_v30 = vpack.c.bf16 %v22613_v24, %v22613_v24  ;;  %v19770_v27 = vld [vmem:[#allocation43 + $0xa0] ss:$8 sps:$4 sm:$0xff]   ;;  %5674 = vmatprep.subr.bf16.mxu1 %v19772_v25 }
 0x86f   :  { %v4987_v28 = vpack.c.bf16 %v22615_v26, %v22615_v26  ;;  %v19775_v12 = vld [vmem:[#allocation43 + $0xb4] ss:$8 sps:$4 sm:$0xff]  }
 0x871   :  { %5212 = vmatprep.mubr.bf16.mxu0 %v4987_v28  ;;  %5675 = vmatpush1.bf16.msra.mxu1 %v19770_v27  ;;  %v19773_v28 = vld [vmem:[#allocation43 + $0xb0] ss:$8 sps:$4 sm:$0xff]  }
 0x872   :  { %5213 = vmatmul.mubr.bf16.vlgmr.msra.gmra.mrb[44].mxu0 %v4986_v30  ;;  %5676 = vmatprep.subr.bf16.mxu1 %v19775_v12  ;;  %v19776_v30 = vld [vmem:[#allocation43 + $0xc0] ss:$8 sps:$4 sm:$0xff]  }
 0x873   :  { %5418 = vmatpush1.bf16.msra.mxu0 %v19692_v29  ;;  %v19778_v29 = vld [vmem:[#allocation43 + $0xc4] ss:$8 sps:$4 sm:$0xff]  }
 0x874   :  { %5419 = vmatprep.subr.bf16.mxu0 %v19697_v31  ;;  %v19781_v31 = vld [vmem:[#allocation43 + $0xd4] ss:$8 sps:$4 sm:$0xff]  }
 0x875   :  { %5677 = vmatpush1.bf16.msra.mxu1 %v19773_v28 }
 0x876   :  { %5678 = vmatprep.subr.bf16.mxu1 %v19778_v29  ;;  %v19836_v29 = vld [vmem:[#allocation46] ss:$8 sps:$4 sm:$0xff]  }
 0x877   :  { %5420 = vmatpush1.bf16.msra.mxu0 %v19695_v32  ;;  %v19779_v32 = vld [vmem:[#allocation43 + $0xd0] ss:$8 sps:$4 sm:$0xff]  }
 0x878   :  { %5421 = vmatprep.subr.bf16.mxu0 %v19700_v33 }
 0x879   :  { %5679 = vmatpush1.bf16.msra.mxu1 %v19776_v30  ;;  %v19838_v30 = vld [vmem:[#allocation46 + $0x4] ss:$8 sps:$4 sm:$0xff]  }
 0x87a   :  { %5680 = vmatprep.subr.bf16.mxu1 %v19781_v31  ;;  %v19841_v31 = vld [vmem:[#allocation46 + $0x14] ss:$8 sps:$4 sm:$0xff]  }
 0x87b   :  { %5422 = vmatpush1.bf16.msra.mxu0 %v19698_v34 }
 0x87c   :  { %5423 = vmatprep.subr.bf16.mxu0 %v19703_v35 }
 0x87d   :  { %5681 = vmatpush1.bf16.msra.mxu1 %v19779_v32  ;;  %v19839_v32 = vld [vmem:[#allocation46 + $0x10] ss:$8 sps:$4 sm:$0xff]  }
 0x87f   :  { %5424 = vmatpush1.bf16.msra.mxu0 %v19701_v36 }
 0x880   :  { %5425 = vmatprep.subr.bf16.mxu0 %v19706_v37 }
 0x883   :  { %5426 = vmatpush1.bf16.msra.mxu0 %v19704_v38 }
 0x884   :  { %5427 = vmatprep.subr.bf16.mxu0 %v19709_v39 }
 0x887   :  { %5428 = vmatpush1.bf16.msra.mxu0 %v19707_v40 }
 0x888   :  { %5429 = vmatprep.subr.bf16.mxu0 %v19712_v41  ;;  %v19784_v41 = vld [vmem:[#allocation43 + $0xe4] ss:$8 sps:$4 sm:$0xff]  }
 0x889   :  { %5682 = vmatprep.subr.bf16.mxu1 %v19784_v41  ;;  %v19856_v41 = vld [vmem:[#allocation46 + $0x64] ss:$8 sps:$4 sm:$0xff]  }
 0x88b   :  { %5430 = vmatpush1.bf16.msra.mxu0 %v19710_v42  ;;  %v19782_v42 = vld [vmem:[#allocation43 + $0xe0] ss:$8 sps:$4 sm:$0xff]  }
 0x88c   :  { %5431 = vmatprep.subr.bf16.mxu0 %v19715_v44  ;;  %5683 = vmatpush1.bf16.msra.mxu1 %v19782_v42  ;;  %v19787_v44 = vld [vmem:[#allocation43 + $0xf4] ss:$8 sps:$4 sm:$0xff]   ;;  %v19854_v42 = vld [vmem:[#allocation46 + $0x60] ss:$8 sps:$4 sm:$0xff]  }
 0x88d   :  { %5684 = vmatprep.subr.bf16.mxu1 %v19787_v44  ;;  %v19859_v44 = vld [vmem:[#allocation46 + $0x74] ss:$8 sps:$4 sm:$0xff]  }
 0x88f   :  { %5432 = vmatpush1.bf16.msra.mxu0 %v19713_v45  ;;  %v19785_v45 = vld [vmem:[#allocation43 + $0xf0] ss:$8 sps:$4 sm:$0xff]  }
 0x890   :  { %5433 = vmatprep.subr.bf16.mxu0 %v19718_v46  ;;  %5685 = vmatpush1.bf16.msra.mxu1 %v19785_v45  ;;  %v19788_v46 = vld [vmem:[#allocation45] ss:$8 sps:$4 sm:$0xff]   ;;  %v19857_v45 = vld [vmem:[#allocation46 + $0x70] ss:$8 sps:$4 sm:$0xff]  }
 0x891   :  { %6128 = vmatprep.subr.bf16.mxu1 %v19838_v30  ;;  %v19905_v30 = vld [vmem:[#allocation48 + $0x70] ss:$8 sps:$4 sm:$0xff]  }
 0x893   :  { %5434 = vmatpush1.bf16.msra.mxu0 %v19716_v47  ;;  %v19790_v47 = vld [vmem:[#allocation45 + $0x4] ss:$8 sps:$4 sm:$0xff]  }
 0x894   :  { %5435 = vmatprep.subr.bf16.mxu0 %v19721_v48  ;;  %v19793_v48 = vld [vmem:[#allocation45 + $0x14] ss:$8 sps:$4 sm:$0xff]  }
 0x897   :  { %5436 = vmatpush1.bf16.msra.mxu0 %v19719_v49  ;;  %v19791_v49 = vld [vmem:[#allocation45 + $0x10] ss:$8 sps:$4 sm:$0xff]  }
 0x898   :  { %5437 = vmatprep.subr.bf16.mxu0 %v19724_v50  ;;  %v19796_v50 = vld [vmem:[#allocation45 + $0x24] ss:$8 sps:$4 sm:$0xff]  }
 0x89b   :  { %5438 = vmatpush1.bf16.msra.mxu0 %v19722_v51  ;;  %v19794_v51 = vld [vmem:[#allocation45 + $0x20] ss:$8 sps:$4 sm:$0xff]  }
 0x89c   :  { %5439 = vmatprep.subr.bf16.mxu0 %v19727_v52  ;;  %v19799_v52 = vld [vmem:[#allocation45 + $0x34] ss:$8 sps:$4 sm:$0xff]  }
 0x89f   :  { %5440 = vmatpush1.bf16.msra.mxu0 %v19725_v53  ;;  %v19797_v53 = vld [vmem:[#allocation45 + $0x30] ss:$8 sps:$4 sm:$0xff]  }
 0x8a0   :  { %5441 = vmatprep.subr.bf16.mxu0 %v19730_v54  ;;  %v19802_v54 = vld [vmem:[#allocation45 + $0x44] ss:$8 sps:$4 sm:$0xff]  }
 0x8a3   :  { %5442 = vmatpush1.bf16.msra.mxu0 %v19728_v55  ;;  %v19800_v55 = vld [vmem:[#allocation45 + $0x40] ss:$8 sps:$4 sm:$0xff]  }
 0x8a4   :  { %5443 = vmatprep.subr.bf16.mxu0 %v19733_v56  ;;  %v19805_v56 = vld [vmem:[#allocation45 + $0x54] ss:$8 sps:$4 sm:$0xff]  }
 0x8a7   :  { %5444 = vmatpush1.bf16.msra.mxu0 %v19731_v57  ;;  %v19803_v57 = vld [vmem:[#allocation45 + $0x50] ss:$8 sps:$4 sm:$0xff]  }
 0x8a8   :  { %5445 = vmatprep.subr.bf16.mxu0 %v19736_v58  ;;  %v19808_v58 = vld [vmem:[#allocation45 + $0x64] ss:$8 sps:$4 sm:$0xff]  }
 0x8ab   :  { %5446 = vmatpush1.bf16.msra.mxu0 %v19734_v59  ;;  %v19806_v59 = vld [vmem:[#allocation45 + $0x60] ss:$8 sps:$4 sm:$0xff]  }
 0x8ac   :  { %5447 = vmatprep.subr.bf16.mxu0 %v19739_v60  ;;  %v19811_v60 = vld [vmem:[#allocation45 + $0x74] ss:$8 sps:$4 sm:$0xff]  }
 0x8af   :  { %5448 = vmatpush1.bf16.msra.mxu0 %v19737_v61  ;;  %v19809_v61 = vld [vmem:[#allocation45 + $0x70] ss:$8 sps:$4 sm:$0xff]  }
 0x8b0   :  { %5891 = vmatprep.subr.bf16.mxu0 %v19790_v47  ;;  %v19860_v47 = vld [vmem:[#allocation46 + $0x80] ss:$8 sps:$4 sm:$0xff]  }
 0x945   :  { %v5214_v33 = vpop.f32.mrb[44].mxu0 }
 0x946   :  { %v5221_v34 = vmax.f32 %v5214_v33, 0.0  ;;  %v5216_v35 = vpop.f32.mrb[45].mxu0  ;;  %v19844_v33 = vld [vmem:[#allocation46 + $0x24] ss:$8 sps:$4 sm:$0xff]  }
 0x947   :  { %v5222_v36 = vmax.f32 %v5216_v35, 0.0  ;;  %v5218_v37 = vpop.f32.mrb[46].mxu0  ;;  %v19847_v35 = vld [vmem:[#allocation46 + $0x34] ss:$8 sps:$4 sm:$0xff]  }
 0x948   :  { %v5219_v38 = vpop.f32.mrb[47].mxu0  ;;  %v5223_v40 = vpack.c.bf16 %v5221_v34, %v5221_v34  ;;  %v19842_v34 = vld [vmem:[#allocation46 + $0x20] ss:$8 sps:$4 sm:$0xff]   ;;  %v19850_v37 = vld [vmem:[#allocation46 + $0x44] ss:$8 sps:$4 sm:$0xff]  }
 0x949   :  { %v5224_v39 = vpack.c.bf16 %v5222_v36, %v5222_v36  ;;  %v19845_v36 = vld [vmem:[#allocation46 + $0x30] ss:$8 sps:$4 sm:$0xff]   ;;  %v19848_v38 = vld [vmem:[#allocation46 + $0x40] ss:$8 sps:$4 sm:$0xff]  }
 0x94b   :  { %5449 = vmatprep.mubr.bf16.mxu0 %v5224_v39  ;;  %v19853_v39 = vld [vmem:[#allocation46 + $0x54] ss:$8 sps:$4 sm:$0xff]  }
 0x94c   :  { %5450 = vmatmul.mubr.bf16.vlgmr.msra.gmra.mrb[48].mxu0 %v5223_v40  ;;  %v19851_v40 = vld [vmem:[#allocation46 + $0x50] ss:$8 sps:$4 sm:$0xff]  }
 0x94d   :  { %5892 = vmatpush1.bf16.msra.mxu0 %v19788_v46  ;;  %v19862_v46 = vld [vmem:[#allocation46 + $0x84] ss:$8 sps:$4 sm:$0xff]  }
 0x94e   :  { %5893 = vmatprep.subr.bf16.mxu0 %v19793_v48  ;;  %v19865_v48 = vld [vmem:[#allocation46 + $0x94] ss:$8 sps:$4 sm:$0xff]  }
 0x951   :  { %5894 = vmatpush1.bf16.msra.mxu0 %v19791_v49  ;;  %v19863_v49 = vld [vmem:[#allocation46 + $0x90] ss:$8 sps:$4 sm:$0xff]  }
 0x952   :  { %5895 = vmatprep.subr.bf16.mxu0 %v19796_v50  ;;  %v19868_v50 = vld [vmem:[#allocation46 + $0xa4] ss:$8 sps:$4 sm:$0xff]  }
 0x955   :  { %5896 = vmatpush1.bf16.msra.mxu0 %v19794_v51  ;;  %v19866_v51 = vld [vmem:[#allocation46 + $0xa0] ss:$8 sps:$4 sm:$0xff]  }
 0x956   :  { %5897 = vmatprep.subr.bf16.mxu0 %v19799_v52  ;;  %v19871_v52 = vld [vmem:[#allocation46 + $0xb4] ss:$8 sps:$4 sm:$0xff]  }
 0x959   :  { %5898 = vmatpush1.bf16.msra.mxu0 %v19797_v53  ;;  %v19869_v53 = vld [vmem:[#allocation46 + $0xb0] ss:$8 sps:$4 sm:$0xff]  }
 0x95a   :  { %5899 = vmatprep.subr.bf16.mxu0 %v19802_v54  ;;  %v19874_v54 = vld [vmem:[#allocation46 + $0xc4] ss:$8 sps:$4 sm:$0xff]  }
 0x95d   :  { %5900 = vmatpush1.bf16.msra.mxu0 %v19800_v55  ;;  %v19872_v55 = vld [vmem:[#allocation46 + $0xc0] ss:$8 sps:$4 sm:$0xff]  }
 0x95e   :  { %5901 = vmatprep.subr.bf16.mxu0 %v19805_v56  ;;  %v19877_v56 = vld [vmem:[#allocation46 + $0xd4] ss:$8 sps:$4 sm:$0xff]  }
 0x961   :  { %5902 = vmatpush1.bf16.msra.mxu0 %v19803_v57  ;;  %v19875_v57 = vld [vmem:[#allocation46 + $0xd0] ss:$8 sps:$4 sm:$0xff]  }
 0x962   :  { %5903 = vmatprep.subr.bf16.mxu0 %v19808_v58 }
 0x965   :  { %5904 = vmatpush1.bf16.msra.mxu0 %v19806_v59 }
 0x966   :  { %5905 = vmatprep.subr.bf16.mxu0 %v19811_v60 }
 0x969   :  { %5906 = vmatpush1.bf16.msra.mxu0 %v19809_v61 }
 0x96a   :  { %5907 = vmatprep.subr.bf16.mxu0 %v19814_v62 }
 0x96d   :  { %5908 = vmatpush1.bf16.msra.mxu0 %v19812_v63 }
 0x96e   :  { %5909 = vmatprep.subr.bf16.mxu0 %v19817_v0 }
 0x971   :  { %5910 = vmatpush1.bf16.msra.mxu0 %v19815_v1 }
 0x972   :  { %5911 = vmatprep.subr.bf16.mxu0 %v19820_v2  ;;  %v19880_v2 = vld [vmem:[#allocation46 + $0xe4] ss:$8 sps:$4 sm:$0xff]  }
 0x975   :  { %5912 = vmatpush1.bf16.msra.mxu0 %v19818_v3  ;;  %v19878_v3 = vld [vmem:[#allocation46 + $0xe0] ss:$8 sps:$4 sm:$0xff]  }
 0x976   :  { %5913 = vmatprep.subr.bf16.mxu0 %v19823_v4  ;;  %v19883_v4 = vld [vmem:[#allocation46 + $0xf4] ss:$8 sps:$4 sm:$0xff]  }
 0x979   :  { %5914 = vmatpush1.bf16.msra.mxu0 %v19821_v5  ;;  %v19881_v5 = vld [vmem:[#allocation46 + $0xf0] ss:$8 sps:$4 sm:$0xff]  }
 0x97a   :  { %5915 = vmatprep.subr.bf16.mxu0 %v19826_v6  ;;  %v19884_v6 = vld [vmem:[#allocation48] ss:$8 sps:$4 sm:$0xff]  }
 0x97d   :  { %5916 = vmatpush1.bf16.msra.mxu0 %v19824_v7  ;;  %v19886_v7 = vld [vmem:[#allocation48 + $0x4] ss:$8 sps:$4 sm:$0xff]  }
 0x97e   :  { %5917 = vmatprep.subr.bf16.mxu0 %v19829_v8  ;;  %v19889_v8 = vld [vmem:[#allocation48 + $0x14] ss:$8 sps:$4 sm:$0xff]  }
 0x981   :  { %5918 = vmatpush1.bf16.msra.mxu0 %v19827_v9  ;;  %v19887_v9 = vld [vmem:[#allocation48 + $0x10] ss:$8 sps:$4 sm:$0xff]  }
 0x982   :  { %5919 = vmatprep.subr.bf16.mxu0 %v19832_v10  ;;  %v19892_v10 = vld [vmem:[#allocation48 + $0x24] ss:$8 sps:$4 sm:$0xff]  }
 0x985   :  { %5920 = vmatpush1.bf16.msra.mxu0 %v19830_v11  ;;  %v19890_v11 = vld [vmem:[#allocation48 + $0x20] ss:$8 sps:$4 sm:$0xff]  }
 0xa1f   :  { %v5451_v13 = vpop.f32.mrb[48].mxu0 }
 0xa20   :  { %v5452_v14 = vadd.f32 %v5451_v13, %v22613_v24  ;;  %v5453_v15 = vpop.f32.mrb[49].mxu0  ;;  %v19835_v24 = vld [vmem:[#allocation45 + $0xf4] ss:$8 sps:$4 sm:$0xff]  }
 0xa21   :  { %v5454_v18 = vadd.f32 %v5453_v15, %v22615_v26  ;;  %v5455_v19 = vpop.f32.mrb[50].mxu0  ;;  %v19833_v26 = vld [vmem:[#allocation45 + $0xf0] ss:$8 sps:$4 sm:$0xff]   ;;  %5921 = vmatprep.subr.bf16.mxu0 %v19835_v24  ;;  %v19895_v13 = vld [vmem:[#allocation48 + $0x34] ss:$8 sps:$4 sm:$0xff]  }
 0xa22   :  { %v22623_v23 = vmax.f32 %v5452_v14, 0.0  ;;  %v5456_v25 = vpop.f32.mrb[51].mxu0  ;;  %5922 = vmatpush1.bf16.msra.mxu0 %v19833_v26  ;;  %v19893_v14 = vld [vmem:[#allocation48 + $0x30] ss:$8 sps:$4 sm:$0xff]   ;;  %v19898_v15 = vld [vmem:[#allocation48 + $0x44] ss:$8 sps:$4 sm:$0xff]  }
 0xa23   :  { %v22625_v27 = vmax.f32 %v5454_v18, 0.0  ;;  %6365 = vmatprep.subr.bf16.mxu0 %v19886_v7  ;;  %v19896_v18 = vld [vmem:[#allocation48 + $0x40] ss:$8 sps:$4 sm:$0xff]   ;;  %v19901_v19 = vld [vmem:[#allocation48 + $0x54] ss:$8 sps:$4 sm:$0xff]  }
 0xa24   :  { %v22633_v28 = vpack.c.bf16 %v22623_v23, %v22623_v23  ;;  %v19899_v25 = vld [vmem:[#allocation48 + $0x50] ss:$8 sps:$4 sm:$0xff]   ;;  %v19904_v24 = vld [vmem:[#allocation48 + $0x64] ss:$8 sps:$4 sm:$0xff]   ;;  %v19902_v26 = vld [vmem:[#allocation48 + $0x60] ss:$8 sps:$4 sm:$0xff]  }
 0xa25   :  { %v22629_v12 = vpack.c.bf16 %v22625_v27, %v22625_v27  ;;  %v19953_v7 = vld [vmem:[#allocation49 + $0x70] ss:$8 sps:$4 sm:$0xff]  }
 0xa27   :  { %5686 = vmatprep.mubr.bf16.mxu1 %v22629_v12 }
 0xa28   :  { %5687 = vmatmul.mubr.bf16.vlgmr.msra.gmra.mrb[44].mxu1 %v22633_v28 }
 0xa29   :  { %6129 = vmatpush1.bf16.msra.mxu1 %v19836_v29  ;;  %v19907_v29 = vld [vmem:[#allocation48 + $0x74] ss:$8 sps:$4 sm:$0xff]  }
 0xa2a   :  { %6130 = vmatprep.subr.bf16.mxu1 %v19841_v31  ;;  %v19910_v31 = vld [vmem:[#allocation48 + $0x84] ss:$8 sps:$4 sm:$0xff]  }
 0xa2d   :  { %6131 = vmatpush1.bf16.msra.mxu1 %v19839_v32  ;;  %v19908_v32 = vld [vmem:[#allocation48 + $0x80] ss:$8 sps:$4 sm:$0xff]  }
 0xa2e   :  { %6132 = vmatprep.subr.bf16.mxu1 %v19844_v33  ;;  %v19913_v33 = vld [vmem:[#allocation48 + $0x94] ss:$8 sps:$4 sm:$0xff]  }
 0xa31   :  { %6133 = vmatpush1.bf16.msra.mxu1 %v19842_v34  ;;  %v19911_v34 = vld [vmem:[#allocation48 + $0x90] ss:$8 sps:$4 sm:$0xff]  }
 0xa32   :  { %6134 = vmatprep.subr.bf16.mxu1 %v19847_v35  ;;  %v19916_v35 = vld [vmem:[#allocation48 + $0xa4] ss:$8 sps:$4 sm:$0xff]  }
 0xa35   :  { %6135 = vmatpush1.bf16.msra.mxu1 %v19845_v36  ;;  %v19914_v36 = vld [vmem:[#allocation48 + $0xa0] ss:$8 sps:$4 sm:$0xff]  }
 0xa36   :  { %6136 = vmatprep.subr.bf16.mxu1 %v19850_v37  ;;  %v19919_v37 = vld [vmem:[#allocation48 + $0xb4] ss:$8 sps:$4 sm:$0xff]  }
 0xa39   :  { %6137 = vmatpush1.bf16.msra.mxu1 %v19848_v38  ;;  %v19917_v38 = vld [vmem:[#allocation48 + $0xb0] ss:$8 sps:$4 sm:$0xff]  }
 0xa3a   :  { %6138 = vmatprep.subr.bf16.mxu1 %v19853_v39  ;;  %v19922_v39 = vld [vmem:[#allocation48 + $0xc4] ss:$8 sps:$4 sm:$0xff]  }
 0xa3d   :  { %6139 = vmatpush1.bf16.msra.mxu1 %v19851_v40  ;;  %v19920_v40 = vld [vmem:[#allocation48 + $0xc0] ss:$8 sps:$4 sm:$0xff]  }
 0xa3e   :  { %6140 = vmatprep.subr.bf16.mxu1 %v19856_v41  ;;  %v19925_v41 = vld [vmem:[#allocation48 + $0xd4] ss:$8 sps:$4 sm:$0xff]  }
 0xa41   :  { %6141 = vmatpush1.bf16.msra.mxu1 %v19854_v42  ;;  %v19923_v42 = vld [vmem:[#allocation48 + $0xd0] ss:$8 sps:$4 sm:$0xff]  }
 0xa42   :  { %6142 = vmatprep.subr.bf16.mxu1 %v19859_v44  ;;  %v19928_v44 = vld [vmem:[#allocation48 + $0xe4] ss:$8 sps:$4 sm:$0xff]  }
 0xa45   :  { %6143 = vmatpush1.bf16.msra.mxu1 %v19857_v45  ;;  %v19926_v45 = vld [vmem:[#allocation48 + $0xe0] ss:$8 sps:$4 sm:$0xff]  }
 0xa46   :  { %6144 = vmatprep.subr.bf16.mxu1 %v19862_v46 }
 0xa49   :  { %6145 = vmatpush1.bf16.msra.mxu1 %v19860_v47 }
 0xa4a   :  { %6146 = vmatprep.subr.bf16.mxu1 %v19865_v48 }
 0xa4d   :  { %6147 = vmatpush1.bf16.msra.mxu1 %v19863_v49 }
 0xa4e   :  { %6148 = vmatprep.subr.bf16.mxu1 %v19868_v50 }
 0xa51   :  { %6149 = vmatpush1.bf16.msra.mxu1 %v19866_v51 }
 0xa52   :  { %6150 = vmatprep.subr.bf16.mxu1 %v19871_v52 }
 0xa55   :  { %6151 = vmatpush1.bf16.msra.mxu1 %v19869_v53 }
 0xa56   :  { %6152 = vmatprep.subr.bf16.mxu1 %v19874_v54 }
 0xa59   :  { %6153 = vmatpush1.bf16.msra.mxu1 %v19872_v55 }
 0xa5a   :  { %6154 = vmatprep.subr.bf16.mxu1 %v19877_v56  ;;  %v19931_v56 = vld [vmem:[#allocation48 + $0xf4] ss:$8 sps:$4 sm:$0xff]  }
 0xa5d   :  { %6155 = vmatpush1.bf16.msra.mxu1 %v19875_v57  ;;  %v19929_v57 = vld [vmem:[#allocation48 + $0xf0] ss:$8 sps:$4 sm:$0xff]  }
 0xa5e   :  { %6156 = vmatprep.subr.bf16.mxu1 %v19880_v2  ;;  %v19949_v2 = vld [vmem:[#allocation49 + $0x54] ss:$8 sps:$4 sm:$0xff]  }
 0xa61   :  { %6157 = vmatpush1.bf16.msra.mxu1 %v19878_v3  ;;  %v19947_v3 = vld [vmem:[#allocation49 + $0x50] ss:$8 sps:$4 sm:$0xff]  }
 0xa62   :  { %6158 = vmatprep.subr.bf16.mxu1 %v19883_v4  ;;  %v19952_v4 = vld [vmem:[#allocation49 + $0x64] ss:$8 sps:$4 sm:$0xff]  }
 0xa65   :  { %6159 = vmatpush1.bf16.msra.mxu1 %v19881_v5  ;;  %v19950_v5 = vld [vmem:[#allocation49 + $0x60] ss:$8 sps:$4 sm:$0xff]  }
 0xafb   :  { %v5688_v58 = vpop.f32.mrb[44].mxu1 }
 0xafc   :  { %v5695_v59 = vmax.f32 %v5688_v58, 0.0  ;;  %v5690_v60 = vpop.f32.mrb[45].mxu1  ;;  %v19937_v58 = vld [vmem:[#allocation49 + $0x14] ss:$8 sps:$4 sm:$0xff]  }
 0xafd   :  { %v5696_v61 = vmax.f32 %v5690_v60, 0.0  ;;  %v5692_v62 = vpop.f32.mrb[46].mxu1  ;;  %v19940_v60 = vld [vmem:[#allocation49 + $0x24] ss:$8 sps:$4 sm:$0xff]  }
 0xafe   :  { %v5693_v63 = vpop.f32.mrb[47].mxu1  ;;  %v5697_v1 = vpack.c.bf16 %v5695_v59, %v5695_v59  ;;  %v19935_v59 = vld [vmem:[#allocation49 + $0x10] ss:$8 sps:$4 sm:$0xff]   ;;  %v19943_v62 = vld [vmem:[#allocation49 + $0x34] ss:$8 sps:$4 sm:$0xff]  }
 0xaff   :  { %v5698_v0 = vpack.c.bf16 %v5696_v61, %v5696_v61  ;;  %v19938_v61 = vld [vmem:[#allocation49 + $0x20] ss:$8 sps:$4 sm:$0xff]   ;;  %v19941_v63 = vld [vmem:[#allocation49 + $0x30] ss:$8 sps:$4 sm:$0xff]  }
 0xb01   :  { %5923 = vmatprep.mubr.bf16.mxu0 %v5698_v0  ;;  %v19946_v0 = vld [vmem:[#allocation49 + $0x44] ss:$8 sps:$4 sm:$0xff]  }
 0xb02   :  { %5924 = vmatmul.mubr.bf16.vlgmr.msra.gmra.mrb[52].mxu0 %v5697_v1  ;;  %v19944_v1 = vld [vmem:[#allocation49 + $0x40] ss:$8 sps:$4 sm:$0xff]  }
 0xb03   :  { %6366 = vmatpush1.bf16.msra.mxu0 %v19884_v6  ;;  %v19955_v6 = vld [vmem:[#allocation49 + $0x74] ss:$8 sps:$4 sm:$0xff]  }
 0xb04   :  { %6367 = vmatprep.subr.bf16.mxu0 %v19889_v8  ;;  %v19958_v8 = vld [vmem:[#allocation49 + $0x84] ss:$8 sps:$4 sm:$0xff]  }
 0xb07   :  { %6368 = vmatpush1.bf16.msra.mxu0 %v19887_v9  ;;  %v19956_v9 = vld [vmem:[#allocation49 + $0x80] ss:$8 sps:$4 sm:$0xff]  }
 0xb08   :  { %6369 = vmatprep.subr.bf16.mxu0 %v19892_v10  ;;  %v19961_v10 = vld [vmem:[#allocation49 + $0x94] ss:$8 sps:$4 sm:$0xff]  }
 0xb0b   :  { %6370 = vmatpush1.bf16.msra.mxu0 %v19890_v11  ;;  %v19959_v11 = vld [vmem:[#allocation49 + $0x90] ss:$8 sps:$4 sm:$0xff]  }
 0xb0c   :  { %6371 = vmatprep.subr.bf16.mxu0 %v19895_v13  ;;  %v19964_v13 = vld [vmem:[#allocation49 + $0xa4] ss:$8 sps:$4 sm:$0xff]  }
 0xb0f   :  { %6372 = vmatpush1.bf16.msra.mxu0 %v19893_v14  ;;  %v19962_v14 = vld [vmem:[#allocation49 + $0xa0] ss:$8 sps:$4 sm:$0xff]  }
 0xb10   :  { %6373 = vmatprep.subr.bf16.mxu0 %v19898_v15  ;;  %v19967_v15 = vld [vmem:[#allocation49 + $0xb4] ss:$8 sps:$4 sm:$0xff]  }
 0xb13   :  { %6374 = vmatpush1.bf16.msra.mxu0 %v19896_v18  ;;  %v19965_v18 = vld [vmem:[#allocation49 + $0xb0] ss:$8 sps:$4 sm:$0xff]  }
 0xb14   :  { %6375 = vmatprep.subr.bf16.mxu0 %v19901_v19  ;;  %v19970_v19 = vld [vmem:[#allocation49 + $0xc4] ss:$8 sps:$4 sm:$0xff]  }
 0xb17   :  { %6376 = vmatpush1.bf16.msra.mxu0 %v19899_v25  ;;  %v19968_v25 = vld [vmem:[#allocation49 + $0xc0] ss:$8 sps:$4 sm:$0xff]  }
 0xb18   :  { %6377 = vmatprep.subr.bf16.mxu0 %v19904_v24  ;;  %v19973_v24 = vld [vmem:[#allocation49 + $0xd4] ss:$8 sps:$4 sm:$0xff]  }
 0xb1b   :  { %6378 = vmatpush1.bf16.msra.mxu0 %v19902_v26  ;;  %v19971_v26 = vld [vmem:[#allocation49 + $0xd0] ss:$8 sps:$4 sm:$0xff]  }
 0xb1c   :  { %6379 = vmatprep.subr.bf16.mxu0 %v19907_v29 }
 0xb1f   :  { %6380 = vmatpush1.bf16.msra.mxu0 %v19905_v30 }
 0xb20   :  { %6381 = vmatprep.subr.bf16.mxu0 %v19910_v31 }
 0xb23   :  { %6382 = vmatpush1.bf16.msra.mxu0 %v19908_v32 }
 0xb24   :  { %6383 = vmatprep.subr.bf16.mxu0 %v19913_v33 }
 0xb27   :  { %6384 = vmatpush1.bf16.msra.mxu0 %v19911_v34 }
 0xb28   :  { %6385 = vmatprep.subr.bf16.mxu0 %v19916_v35 }
 0xb2b   :  { %6386 = vmatpush1.bf16.msra.mxu0 %v19914_v36 }
 0xb2c   :  { %6387 = vmatprep.subr.bf16.mxu0 %v19919_v37  ;;  %v19976_v37 = vld [vmem:[#allocation49 + $0xe4] ss:$8 sps:$4 sm:$0xff]  }
 0xb2f   :  { %6388 = vmatpush1.bf16.msra.mxu0 %v19917_v38  ;;  %v19974_v38 = vld [vmem:[#allocation49 + $0xe0] ss:$8 sps:$4 sm:$0xff]  }
 0xb30   :  { %6389 = vmatprep.subr.bf16.mxu0 %v19922_v39  ;;  %v19979_v39 = vld [vmem:[#allocation49 + $0xf4] ss:$8 sps:$4 sm:$0xff]  }
 0xb33   :  { %6390 = vmatpush1.bf16.msra.mxu0 %v19920_v40  ;;  %v19977_v40 = vld [vmem:[#allocation49 + $0xf0] ss:$8 sps:$4 sm:$0xff]  }
 0xb34   :  { %6391 = vmatprep.subr.bf16.mxu0 %v19925_v41  ;;  %v19980_v41 = vld [vmem:[#allocation51] ss:$8 sps:$4 sm:$0xff]  }
 0xb37   :  { %6392 = vmatpush1.bf16.msra.mxu0 %v19923_v42  ;;  %v19982_v42 = vld [vmem:[#allocation51 + $0x4] ss:$8 sps:$4 sm:$0xff]  }
 0xb38   :  { %6393 = vmatprep.subr.bf16.mxu0 %v19928_v44  ;;  %v19985_v44 = vld [vmem:[#allocation51 + $0x14] ss:$8 sps:$4 sm:$0xff]  }
 0xb3b   :  { %6394 = vmatpush1.bf16.msra.mxu0 %v19926_v45  ;;  %v19983_v45 = vld [vmem:[#allocation51 + $0x10] ss:$8 sps:$4 sm:$0xff]  }
 0xb3c   :  { %6395 = vmatprep.subr.bf16.mxu0 %v19931_v56  ;;  %v20000_v56 = vld [vmem:[#allocation51 + $0x64] ss:$8 sps:$4 sm:$0xff]  }
 0xb3f   :  { %6396 = vmatpush1.bf16.msra.mxu0 %v19929_v57  ;;  %v19998_v57 = vld [vmem:[#allocation51 + $0x60] ss:$8 sps:$4 sm:$0xff]  }
 0xb40   :  { %6839 = vmatprep.subr.bf16.mxu0 %v19982_v42  ;;  %v20049_v42 = vld [vmem:[#allocation52 + $0x70] ss:$8 sps:$4 sm:$0xff]  }
 0xbd5   :  { %v5925_v46 = vpop.f32.mrb[52].mxu0 }
 0xbd6   :  { %v5926_v47 = vadd.f32 %v5925_v46, %v22623_v23  ;;  %v5927_v48 = vpop.f32.mrb[53].mxu0  ;;  %v19932_v23 = vld [vmem:[#allocation49] ss:$8 sps:$4 sm:$0xff]   ;;  %v19988_v46 = vld [vmem:[#allocation51 + $0x24] ss:$8 sps:$4 sm:$0xff]  }
 0xbd7   :  { %v5928_v49 = vadd.f32 %v5927_v48, %v22625_v27  ;;  %v5929_v50 = vpop.f32.mrb[54].mxu0  ;;  %v19934_v27 = vld [vmem:[#allocation49 + $0x4] ss:$8 sps:$4 sm:$0xff]   ;;  %v19991_v48 = vld [vmem:[#allocation51 + $0x34] ss:$8 sps:$4 sm:$0xff]  }
 0xbd8   :  { %v22639_v51 = vmax.f32 %v5926_v47, 0.0  ;;  %v5930_v52 = vpop.f32.mrb[55].mxu0  ;;  %6602 = vmatprep.subr.bf16.mxu1 %v19934_v27  ;;  %v19986_v47 = vld [vmem:[#allocation51 + $0x20] ss:$8 sps:$4 sm:$0xff]   ;;  %v19994_v50 = vld [vmem:[#allocation51 + $0x44] ss:$8 sps:$4 sm:$0xff]  }
 0xbd9   :  { %v22641_v53 = vmax.f32 %v5928_v49, 0.0  ;;  %v19989_v49 = vld [vmem:[#allocation51 + $0x30] ss:$8 sps:$4 sm:$0xff]   ;;  %v19992_v52 = vld [vmem:[#allocation51 + $0x40] ss:$8 sps:$4 sm:$0xff]  }
 0xbda   :  { %v5934_v55 = vpack.c.bf16 %v22639_v51, %v22639_v51  ;;  %v20001_v27 = vld [vmem:[#allocation51 + $0x70] ss:$8 sps:$4 sm:$0xff]  }
 0xbdb   :  { %v5935_v54 = vpack.c.bf16 %v22641_v53, %v22641_v53 }
 0xbdd   :  { %6160 = vmatprep.mubr.bf16.mxu1 %v5935_v54  ;;  %v19997_v54 = vld [vmem:[#allocation51 + $0x54] ss:$8 sps:$4 sm:$0xff]  }
 0xbde   :  { %6161 = vmatmul.mubr.bf16.vlgmr.msra.gmra.mrb[48].mxu1 %v5934_v55  ;;  %v19995_v55 = vld [vmem:[#allocation51 + $0x50] ss:$8 sps:$4 sm:$0xff]  }
 0xbdf   :  { %6603 = vmatpush1.bf16.msra.mxu1 %v19932_v23  ;;  %v20003_v23 = vld [vmem:[#allocation51 + $0x74] ss:$8 sps:$4 sm:$0xff]  }
 0xbe0   :  { %6604 = vmatprep.subr.bf16.mxu1 %v19937_v58  ;;  %v20006_v58 = vld [vmem:[#allocation51 + $0x84] ss:$8 sps:$4 sm:$0xff]  }
 0xbe3   :  { %6605 = vmatpush1.bf16.msra.mxu1 %v19935_v59  ;;  %v20004_v59 = vld [vmem:[#allocation51 + $0x80] ss:$8 sps:$4 sm:$0xff]  }
 0xbe4   :  { %6606 = vmatprep.subr.bf16.mxu1 %v19940_v60  ;;  %v20009_v60 = vld [vmem:[#allocation51 + $0x94] ss:$8 sps:$4 sm:$0xff]  }
 0xbe7   :  { %6607 = vmatpush1.bf16.msra.mxu1 %v19938_v61  ;;  %v20007_v61 = vld [vmem:[#allocation51 + $0x90] ss:$8 sps:$4 sm:$0xff]  }
 0xbe8   :  { %6608 = vmatprep.subr.bf16.mxu1 %v19943_v62  ;;  %v20012_v62 = vld [vmem:[#allocation51 + $0xa4] ss:$8 sps:$4 sm:$0xff]  }
 0xbeb   :  { %6609 = vmatpush1.bf16.msra.mxu1 %v19941_v63  ;;  %v20010_v63 = vld [vmem:[#allocation51 + $0xa0] ss:$8 sps:$4 sm:$0xff]  }
 0xbec   :  { %6610 = vmatprep.subr.bf16.mxu1 %v19946_v0  ;;  %v20015_v0 = vld [vmem:[#allocation51 + $0xb4] ss:$8 sps:$4 sm:$0xff]  }
 0xbef   :  { %6611 = vmatpush1.bf16.msra.mxu1 %v19944_v1  ;;  %v20013_v1 = vld [vmem:[#allocation51 + $0xb0] ss:$8 sps:$4 sm:$0xff]  }
 0xbf0   :  { %6612 = vmatprep.subr.bf16.mxu1 %v19949_v2  ;;  %v20018_v2 = vld [vmem:[#allocation51 + $0xc4] ss:$8 sps:$4 sm:$0xff]  }
 0xbf3   :  { %6613 = vmatpush1.bf16.msra.mxu1 %v19947_v3  ;;  %v20016_v3 = vld [vmem:[#allocation51 + $0xc0] ss:$8 sps:$4 sm:$0xff]  }
 0xbf4   :  { %6614 = vmatprep.subr.bf16.mxu1 %v19952_v4  ;;  %v20021_v4 = vld [vmem:[#allocation51 + $0xd4] ss:$8 sps:$4 sm:$0xff]  }
 0xbf7   :  { %6615 = vmatpush1.bf16.msra.mxu1 %v19950_v5  ;;  %v20019_v5 = vld [vmem:[#allocation51 + $0xd0] ss:$8 sps:$4 sm:$0xff]  }
 0xbf8   :  { %6616 = vmatprep.subr.bf16.mxu1 %v19955_v6  ;;  %v20024_v6 = vld [vmem:[#allocation51 + $0xe4] ss:$8 sps:$4 sm:$0xff]  }
 0xbfb   :  { %6617 = vmatpush1.bf16.msra.mxu1 %v19953_v7  ;;  %v20022_v7 = vld [vmem:[#allocation51 + $0xe0] ss:$8 sps:$4 sm:$0xff]  }
 0xbfc   :  { %6618 = vmatprep.subr.bf16.mxu1 %v19958_v8 }
 0xbff   :  { %6619 = vmatpush1.bf16.msra.mxu1 %v19956_v9 }
 0xc00   :  { %6620 = vmatprep.subr.bf16.mxu1 %v19961_v10 }
 0xc03   :  { %6621 = vmatpush1.bf16.msra.mxu1 %v19959_v11 }
 0xc04   :  { %6622 = vmatprep.subr.bf16.mxu1 %v19964_v13 }
 0xc07   :  { %6623 = vmatpush1.bf16.msra.mxu1 %v19962_v14 }
 0xc08   :  { %6624 = vmatprep.subr.bf16.mxu1 %v19967_v15 }
 0xc0b   :  { %6625 = vmatpush1.bf16.msra.mxu1 %v19965_v18 }
 0xc0c   :  { %6626 = vmatprep.subr.bf16.mxu1 %v19970_v19 }
 0xc0f   :  { %6627 = vmatpush1.bf16.msra.mxu1 %v19968_v25 }
 0xc10   :  { %6628 = vmatprep.subr.bf16.mxu1 %v19973_v24  ;;  %v20028_v24 = vld [vmem:[#allocation52] ss:$8 sps:$4 sm:$0xff]  }
 0xc13   :  { %6629 = vmatpush1.bf16.msra.mxu1 %v19971_v26  ;;  %v20030_v26 = vld [vmem:[#allocation52 + $0x4] ss:$8 sps:$4 sm:$0xff]  }
 0xc14   :  { %6630 = vmatprep.subr.bf16.mxu1 %v19976_v37  ;;  %v20045_v37 = vld [vmem:[#allocation52 + $0x54] ss:$8 sps:$4 sm:$0xff]  }
 0xc17   :  { %6631 = vmatpush1.bf16.msra.mxu1 %v19974_v38  ;;  %v20043_v38 = vld [vmem:[#allocation52 + $0x50] ss:$8 sps:$4 sm:$0xff]  }
 0xc18   :  { %6632 = vmatprep.subr.bf16.mxu1 %v19979_v39  ;;  %v20048_v39 = vld [vmem:[#allocation52 + $0x64] ss:$8 sps:$4 sm:$0xff]  }
 0xc1b   :  { %6633 = vmatpush1.bf16.msra.mxu1 %v19977_v40  ;;  %v20046_v40 = vld [vmem:[#allocation52 + $0x60] ss:$8 sps:$4 sm:$0xff]  }
 0xc1c   :  { %7076 = vmatprep.subr.bf16.mxu1 %v20030_v26  ;;  %v20094_v26 = vld [vmem:[#allocation54 + $0x60] ss:$8 sps:$4 sm:$0xff]  }
 0xcb1   :  { %v6162_v29 = vpop.f32.mrb[48].mxu1 }
 0xcb2   :  { %v6169_v30 = vmax.f32 %v6162_v29, 0.0  ;;  %v6164_v31 = vpop.f32.mrb[49].mxu1  ;;  %v20033_v29 = vld [vmem:[#allocation52 + $0x14] ss:$8 sps:$4 sm:$0xff]  }
 0xcb3   :  { %v6170_v32 = vmax.f32 %v6164_v31, 0.0  ;;  %v6166_v33 = vpop.f32.mrb[50].mxu1  ;;  %v20036_v31 = vld [vmem:[#allocation52 + $0x24] ss:$8 sps:$4 sm:$0xff]  }
 0xcb4   :  { %v6167_v34 = vpop.f32.mrb[51].mxu1  ;;  %v6171_v36 = vpack.c.bf16 %v6169_v30, %v6169_v30  ;;  %v20031_v30 = vld [vmem:[#allocation52 + $0x10] ss:$8 sps:$4 sm:$0xff]   ;;  %v20039_v33 = vld [vmem:[#allocation52 + $0x34] ss:$8 sps:$4 sm:$0xff]  }
 0xcb5   :  { %v6172_v35 = vpack.c.bf16 %v6170_v32, %v6170_v32  ;;  %v20034_v32 = vld [vmem:[#allocation52 + $0x20] ss:$8 sps:$4 sm:$0xff]   ;;  %v20037_v34 = vld [vmem:[#allocation52 + $0x30] ss:$8 sps:$4 sm:$0xff]  }
 0xcb7   :  { %6397 = vmatprep.mubr.bf16.mxu0 %v6172_v35  ;;  %v20042_v35 = vld [vmem:[#allocation52 + $0x44] ss:$8 sps:$4 sm:$0xff]  }
 0xcb8   :  { %6398 = vmatmul.mubr.bf16.vlgmr.msra.gmra.mrb[56].mxu0 %v6171_v36  ;;  %v20040_v36 = vld [vmem:[#allocation52 + $0x40] ss:$8 sps:$4 sm:$0xff]  }
 0xcb9   :  { %6840 = vmatpush1.bf16.msra.mxu0 %v19980_v41  ;;  %v20051_v41 = vld [vmem:[#allocation52 + $0x74] ss:$8 sps:$4 sm:$0xff]  }
 0xcba   :  { %6841 = vmatprep.subr.bf16.mxu0 %v19985_v44  ;;  %v20054_v44 = vld [vmem:[#allocation52 + $0x84] ss:$8 sps:$4 sm:$0xff]  }
 0xcbd   :  { %6842 = vmatpush1.bf16.msra.mxu0 %v19983_v45  ;;  %v20052_v45 = vld [vmem:[#allocation52 + $0x80] ss:$8 sps:$4 sm:$0xff]  }
 0xcbe   :  { %6843 = vmatprep.subr.bf16.mxu0 %v19988_v46  ;;  %v20057_v46 = vld [vmem:[#allocation52 + $0x94] ss:$8 sps:$4 sm:$0xff]  }
 0xcc1   :  { %6844 = vmatpush1.bf16.msra.mxu0 %v19986_v47  ;;  %v20055_v47 = vld [vmem:[#allocation52 + $0x90] ss:$8 sps:$4 sm:$0xff]  }
 0xcc2   :  { %6845 = vmatprep.subr.bf16.mxu0 %v19991_v48  ;;  %v20060_v48 = vld [vmem:[#allocation52 + $0xa4] ss:$8 sps:$4 sm:$0xff]  }
 0xcc5   :  { %6846 = vmatpush1.bf16.msra.mxu0 %v19989_v49  ;;  %v20058_v49 = vld [vmem:[#allocation52 + $0xa0] ss:$8 sps:$4 sm:$0xff]  }
 0xcc6   :  { %6847 = vmatprep.subr.bf16.mxu0 %v19994_v50  ;;  %v20063_v50 = vld [vmem:[#allocation52 + $0xb4] ss:$8 sps:$4 sm:$0xff]  }
 0xcc9   :  { %6848 = vmatpush1.bf16.msra.mxu0 %v19992_v52  ;;  %v20061_v52 = vld [vmem:[#allocation52 + $0xb0] ss:$8 sps:$4 sm:$0xff]  }
 0xcca   :  { %6849 = vmatprep.subr.bf16.mxu0 %v19997_v54  ;;  %v20066_v54 = vld [vmem:[#allocation52 + $0xc4] ss:$8 sps:$4 sm:$0xff]  }
 0xccd   :  { %6850 = vmatpush1.bf16.msra.mxu0 %v19995_v55  ;;  %v20064_v55 = vld [vmem:[#allocation52 + $0xc0] ss:$8 sps:$4 sm:$0xff]  }
 0xcce   :  { %6851 = vmatprep.subr.bf16.mxu0 %v20000_v56  ;;  %v20069_v56 = vld [vmem:[#allocation52 + $0xd4] ss:$8 sps:$4 sm:$0xff]  }
 0xcd1   :  { %6852 = vmatpush1.bf16.msra.mxu0 %v19998_v57  ;;  %v20067_v57 = vld [vmem:[#allocation52 + $0xd0] ss:$8 sps:$4 sm:$0xff]  }
 0xcd2   :  { %6853 = vmatprep.subr.bf16.mxu0 %v20003_v23 }
 0xcd5   :  { %6854 = vmatpush1.bf16.msra.mxu0 %v20001_v27 }
 0xcd6   :  { %6855 = vmatprep.subr.bf16.mxu0 %v20006_v58 }
 0xcd9   :  { %6856 = vmatpush1.bf16.msra.mxu0 %v20004_v59 }
 0xcda   :  { %6857 = vmatprep.subr.bf16.mxu0 %v20009_v60 }
 0xcdd   :  { %6858 = vmatpush1.bf16.msra.mxu0 %v20007_v61 }
 0xcde   :  { %6859 = vmatprep.subr.bf16.mxu0 %v20012_v62 }
 0xce1   :  { %6860 = vmatpush1.bf16.msra.mxu0 %v20010_v63 }
 0xce2   :  { %6861 = vmatprep.subr.bf16.mxu0 %v20015_v0  ;;  %v20072_v0 = vld [vmem:[#allocation52 + $0xe4] ss:$8 sps:$4 sm:$0xff]  }
 0xce5   :  { %6862 = vmatpush1.bf16.msra.mxu0 %v20013_v1  ;;  %v20070_v1 = vld [vmem:[#allocation52 + $0xe0] ss:$8 sps:$4 sm:$0xff]  }
 0xce6   :  { %6863 = vmatprep.subr.bf16.mxu0 %v20018_v2  ;;  %v20075_v2 = vld [vmem:[#allocation52 + $0xf4] ss:$8 sps:$4 sm:$0xff]  }
 0xce9   :  { %6864 = vmatpush1.bf16.msra.mxu0 %v20016_v3  ;;  %v20073_v3 = vld [vmem:[#allocation52 + $0xf0] ss:$8 sps:$4 sm:$0xff]  }
 0xcea   :  { %6865 = vmatprep.subr.bf16.mxu0 %v20021_v4  ;;  %v20076_v4 = vld [vmem:[#allocation54] ss:$8 sps:$4 sm:$0xff]  }
 0xced   :  { %6866 = vmatpush1.bf16.msra.mxu0 %v20019_v5  ;;  %v20078_v5 = vld [vmem:[#allocation54 + $0x4] ss:$8 sps:$4 sm:$0xff]  }
 0xcee   :  { %6867 = vmatprep.subr.bf16.mxu0 %v20024_v6  ;;  %v20081_v6 = vld [vmem:[#allocation54 + $0x14] ss:$8 sps:$4 sm:$0xff]  }
 0xcf1   :  { %6868 = vmatpush1.bf16.msra.mxu0 %v20022_v7  ;;  %v20079_v7 = vld [vmem:[#allocation54 + $0x10] ss:$8 sps:$4 sm:$0xff]  }
 0xd8b   :  { %v6399_v8 = vpop.f32.mrb[56].mxu0 }
 0xd8c   :  { %v6400_v9 = vadd.f32 %v6399_v8, %v22639_v51  ;;  %v6401_v10 = vpop.f32.mrb[57].mxu0  ;;  %v20027_v51 = vld [vmem:[#allocation51 + $0xf4] ss:$8 sps:$4 sm:$0xff]   ;;  %v20084_v8 = vld [vmem:[#allocation54 + $0x24] ss:$8 sps:$4 sm:$0xff]  }
 0xd8d   :  { %v6402_v11 = vadd.f32 %v6401_v10, %v22641_v53  ;;  %v6403_v13 = vpop.f32.mrb[58].mxu0  ;;  %v20025_v53 = vld [vmem:[#allocation51 + $0xf0] ss:$8 sps:$4 sm:$0xff]   ;;  %6869 = vmatprep.subr.bf16.mxu0 %v20027_v51  ;;  %v20087_v10 = vld [vmem:[#allocation54 + $0x34] ss:$8 sps:$4 sm:$0xff]  }
 0xd8e   :  { %v22649_v14 = vmax.f32 %v6400_v9, 0.0  ;;  %v6404_v15 = vpop.f32.mrb[59].mxu0  ;;  %6870 = vmatpush1.bf16.msra.mxu0 %v20025_v53  ;;  %v20082_v9 = vld [vmem:[#allocation54 + $0x20] ss:$8 sps:$4 sm:$0xff]   ;;  %v20090_v13 = vld [vmem:[#allocation54 + $0x44] ss:$8 sps:$4 sm:$0xff]  }
 0xd8f   :  { %v22651_v18 = vmax.f32 %v6402_v11, 0.0  ;;  %7313 = vmatprep.subr.bf16.mxu0 %v20078_v5  ;;  %v20085_v11 = vld [vmem:[#allocation54 + $0x30] ss:$8 sps:$4 sm:$0xff]   ;;  %v20088_v15 = vld [vmem:[#allocation54 + $0x40] ss:$8 sps:$4 sm:$0xff]  }
 0xd90   :  { %v22659_v25 = vpack.c.bf16 %v22649_v14, %v22649_v14  ;;  %v20093_v51 = vld [vmem:[#allocation54 + $0x54] ss:$8 sps:$4 sm:$0xff]   ;;  %v20091_v53 = vld [vmem:[#allocation54 + $0x50] ss:$8 sps:$4 sm:$0xff]   ;;  %v20142_v5 = vld [vmem:[#allocation55 + $0x60] ss:$8 sps:$4 sm:$0xff]  }
 0xd91   :  { %v22655_v19 = vpack.c.bf16 %v22651_v18, %v22651_v18 }
 0xd93   :  { %6634 = vmatprep.mubr.bf16.mxu1 %v22655_v19 }
 0xd94   :  { %6635 = vmatmul.mubr.bf16.vlgmr.msra.gmra.mrb[52].mxu1 %v22659_v25 }
 0xd95   :  { %7077 = vmatpush1.bf16.msra.mxu1 %v20028_v24  ;;  %v20096_v24 = vld [vmem:[#allocation54 + $0x64] ss:$8 sps:$4 sm:$0xff]  }
 0xd96   :  { %7078 = vmatprep.subr.bf16.mxu1 %v20033_v29  ;;  %v20099_v29 = vld [vmem:[#allocation54 + $0x74] ss:$8 sps:$4 sm:$0xff]  }
 0xd99   :  { %7079 = vmatpush1.bf16.msra.mxu1 %v20031_v30  ;;  %v20097_v30 = vld [vmem:[#allocation54 + $0x70] ss:$8 sps:$4 sm:$0xff]  }
 0xd9a   :  { %7080 = vmatprep.subr.bf16.mxu1 %v20036_v31  ;;  %v20102_v31 = vld [vmem:[#allocation54 + $0x84] ss:$8 sps:$4 sm:$0xff]  }
 0xd9d   :  { %7081 = vmatpush1.bf16.msra.mxu1 %v20034_v32  ;;  %v20100_v32 = vld [vmem:[#allocation54 + $0x80] ss:$8 sps:$4 sm:$0xff]  }
 0xd9e   :  { %7082 = vmatprep.subr.bf16.mxu1 %v20039_v33  ;;  %v20105_v33 = vld [vmem:[#allocation54 + $0x94] ss:$8 sps:$4 sm:$0xff]  }
 0xda1   :  { %7083 = vmatpush1.bf16.msra.mxu1 %v20037_v34  ;;  %v20103_v34 = vld [vmem:[#allocation54 + $0x90] ss:$8 sps:$4 sm:$0xff]  }
 0xda2   :  { %7084 = vmatprep.subr.bf16.mxu1 %v20042_v35  ;;  %v20108_v35 = vld [vmem:[#allocation54 + $0xa4] ss:$8 sps:$4 sm:$0xff]  }
 0xda5   :  { %7085 = vmatpush1.bf16.msra.mxu1 %v20040_v36  ;;  %v20106_v36 = vld [vmem:[#allocation54 + $0xa0] ss:$8 sps:$4 sm:$0xff]  }
 0xda6   :  { %7086 = vmatprep.subr.bf16.mxu1 %v20045_v37  ;;  %v20111_v37 = vld [vmem:[#allocation54 + $0xb4] ss:$8 sps:$4 sm:$0xff]  }
 0xda9   :  { %7087 = vmatpush1.bf16.msra.mxu1 %v20043_v38  ;;  %v20109_v38 = vld [vmem:[#allocation54 + $0xb0] ss:$8 sps:$4 sm:$0xff]  }
 0xdaa   :  { %7088 = vmatprep.subr.bf16.mxu1 %v20048_v39  ;;  %v20114_v39 = vld [vmem:[#allocation54 + $0xc4] ss:$8 sps:$4 sm:$0xff]  }
 0xdad   :  { %7089 = vmatpush1.bf16.msra.mxu1 %v20046_v40  ;;  %v20112_v40 = vld [vmem:[#allocation54 + $0xc0] ss:$8 sps:$4 sm:$0xff]  }
 0xdae   :  { %7090 = vmatprep.subr.bf16.mxu1 %v20051_v41  ;;  %v20117_v41 = vld [vmem:[#allocation54 + $0xd4] ss:$8 sps:$4 sm:$0xff]  }
 0xdb1   :  { %7091 = vmatpush1.bf16.msra.mxu1 %v20049_v42  ;;  %v20115_v42 = vld [vmem:[#allocation54 + $0xd0] ss:$8 sps:$4 sm:$0xff]  }
 0xdb2   :  { %7092 = vmatprep.subr.bf16.mxu1 %v20054_v44  ;;  %v20120_v44 = vld [vmem:[#allocation54 + $0xe4] ss:$8 sps:$4 sm:$0xff]  }
 0xdb5   :  { %7093 = vmatpush1.bf16.msra.mxu1 %v20052_v45  ;;  %v20118_v45 = vld [vmem:[#allocation54 + $0xe0] ss:$8 sps:$4 sm:$0xff]  }
 0xdb6   :  { %7094 = vmatprep.subr.bf16.mxu1 %v20057_v46 }
 0xdb9   :  { %7095 = vmatpush1.bf16.msra.mxu1 %v20055_v47 }
 0xdba   :  { %7096 = vmatprep.subr.bf16.mxu1 %v20060_v48 }
 0xdbd   :  { %7097 = vmatpush1.bf16.msra.mxu1 %v20058_v49 }
 0xdbe   :  { %7098 = vmatprep.subr.bf16.mxu1 %v20063_v50 }
 0xdc1   :  { %7099 = vmatpush1.bf16.msra.mxu1 %v20061_v52 }
 0xdc2   :  { %7100 = vmatprep.subr.bf16.mxu1 %v20066_v54 }
 0xdc5   :  { %7101 = vmatpush1.bf16.msra.mxu1 %v20064_v55 }
 0xdc6   :  { %7102 = vmatprep.subr.bf16.mxu1 %v20069_v56 }
 0xdc9   :  { %7103 = vmatpush1.bf16.msra.mxu1 %v20067_v57 }
 0xdca   :  { %7104 = vmatprep.subr.bf16.mxu1 %v20072_v0  ;;  %v20138_v0 = vld [vmem:[#allocation55 + $0x44] ss:$8 sps:$4 sm:$0xff]  }
 0xdcd   :  { %7105 = vmatpush1.bf16.msra.mxu1 %v20070_v1  ;;  %v20136_v1 = vld [vmem:[#allocation55 + $0x40] ss:$8 sps:$4 sm:$0xff]  }
 0xdce   :  { %7106 = vmatprep.subr.bf16.mxu1 %v20075_v2  ;;  %v20141_v2 = vld [vmem:[#allocation55 + $0x54] ss:$8 sps:$4 sm:$0xff]  }
 0xdd1   :  { %7107 = vmatpush1.bf16.msra.mxu1 %v20073_v3  ;;  %v20139_v3 = vld [vmem:[#allocation55 + $0x50] ss:$8 sps:$4 sm:$0xff]  }
 0xe67   :  { %v6636_v23 = vpop.f32.mrb[52].mxu1 }
 0xe68   :  { %v6643_v27 = vmax.f32 %v6636_v23, 0.0  ;;  %v6638_v58 = vpop.f32.mrb[53].mxu1  ;;  %v20123_v23 = vld [vmem:[#allocation54 + $0xf4] ss:$8 sps:$4 sm:$0xff]  }
 0xe69   :  { %v6644_v59 = vmax.f32 %v6638_v58, 0.0  ;;  %v6640_v60 = vpop.f32.mrb[54].mxu1  ;;  %v20129_v58 = vld [vmem:[#allocation55 + $0x14] ss:$8 sps:$4 sm:$0xff]  }
 0xe6a   :  { %v6641_v61 = vpop.f32.mrb[55].mxu1  ;;  %v6645_v63 = vpack.c.bf16 %v6643_v27, %v6643_v27  ;;  %v20121_v27 = vld [vmem:[#allocation54 + $0xf0] ss:$8 sps:$4 sm:$0xff]   ;;  %v20132_v60 = vld [vmem:[#allocation55 + $0x24] ss:$8 sps:$4 sm:$0xff]  }
 0xe6b   :  { %v6646_v62 = vpack.c.bf16 %v6644_v59, %v6644_v59  ;;  %v20127_v59 = vld [vmem:[#allocation55 + $0x10] ss:$8 sps:$4 sm:$0xff]   ;;  %v20130_v61 = vld [vmem:[#allocation55 + $0x20] ss:$8 sps:$4 sm:$0xff]  }
 0xe6d   :  { %6871 = vmatprep.mubr.bf16.mxu0 %v6646_v62  ;;  %v20135_v62 = vld [vmem:[#allocation55 + $0x34] ss:$8 sps:$4 sm:$0xff]  }
 0xe6e   :  { %6872 = vmatmul.mubr.bf16.vlgmr.msra.gmra.mrb[60].mxu0 %v6645_v63  ;;  %v20133_v63 = vld [vmem:[#allocation55 + $0x30] ss:$8 sps:$4 sm:$0xff]  }
 0xe6f   :  { %7314 = vmatpush1.bf16.msra.mxu0 %v20076_v4  ;;  %v20144_v4 = vld [vmem:[#allocation55 + $0x64] ss:$8 sps:$4 sm:$0xff]  }
 0xe70   :  { %7315 = vmatprep.subr.bf16.mxu0 %v20081_v6  ;;  %v20147_v6 = vld [vmem:[#allocation55 + $0x74] ss:$8 sps:$4 sm:$0xff]  }
 0xe73   :  { %7316 = vmatpush1.bf16.msra.mxu0 %v20079_v7  ;;  %v20145_v7 = vld [vmem:[#allocation55 + $0x70] ss:$8 sps:$4 sm:$0xff]  }
 0xe74   :  { %7317 = vmatprep.subr.bf16.mxu0 %v20084_v8  ;;  %v20150_v8 = vld [vmem:[#allocation55 + $0x84] ss:$8 sps:$4 sm:$0xff]  }
 0xe77   :  { %7318 = vmatpush1.bf16.msra.mxu0 %v20082_v9  ;;  %v20148_v9 = vld [vmem:[#allocation55 + $0x80] ss:$8 sps:$4 sm:$0xff]  }
 0xe78   :  { %7319 = vmatprep.subr.bf16.mxu0 %v20087_v10  ;;  %v20153_v10 = vld [vmem:[#allocation55 + $0x94] ss:$8 sps:$4 sm:$0xff]  }
 0xe7b   :  { %7320 = vmatpush1.bf16.msra.mxu0 %v20085_v11  ;;  %v20151_v11 = vld [vmem:[#allocation55 + $0x90] ss:$8 sps:$4 sm:$0xff]  }
 0xe7c   :  { %7321 = vmatprep.subr.bf16.mxu0 %v20090_v13  ;;  %v20156_v13 = vld [vmem:[#allocation55 + $0xa4] ss:$8 sps:$4 sm:$0xff]  }
 0xe7f   :  { %7322 = vmatpush1.bf16.msra.mxu0 %v20088_v15  ;;  %v20154_v15 = vld [vmem:[#allocation55 + $0xa0] ss:$8 sps:$4 sm:$0xff]  }
 0xe80   :  { %7323 = vmatprep.subr.bf16.mxu0 %v20093_v51  ;;  %v20159_v51 = vld [vmem:[#allocation55 + $0xb4] ss:$8 sps:$4 sm:$0xff]  }
 0xe83   :  { %7324 = vmatpush1.bf16.msra.mxu0 %v20091_v53  ;;  %v20157_v53 = vld [vmem:[#allocation55 + $0xb0] ss:$8 sps:$4 sm:$0xff]  }
 0xe84   :  { %7325 = vmatprep.subr.bf16.mxu0 %v20096_v24  ;;  %v20162_v24 = vld [vmem:[#allocation55 + $0xc4] ss:$8 sps:$4 sm:$0xff]  }
 0xe87   :  { %7326 = vmatpush1.bf16.msra.mxu0 %v20094_v26  ;;  %v20160_v26 = vld [vmem:[#allocation55 + $0xc0] ss:$8 sps:$4 sm:$0xff]  }
 0xe88   :  { %7327 = vmatprep.subr.bf16.mxu0 %v20099_v29  ;;  %v20165_v29 = vld [vmem:[#allocation55 + $0xd4] ss:$8 sps:$4 sm:$0xff]  }
 0xe8b   :  { %7328 = vmatpush1.bf16.msra.mxu0 %v20097_v30  ;;  %v20163_v30 = vld [vmem:[#allocation55 + $0xd0] ss:$8 sps:$4 sm:$0xff]  }
 0xe8c   :  { %7329 = vmatprep.subr.bf16.mxu0 %v20102_v31 }
 0xe8f   :  { %7330 = vmatpush1.bf16.msra.mxu0 %v20100_v32 }
 0xe90   :  { %7331 = vmatprep.subr.bf16.mxu0 %v20105_v33 }
 0xe93   :  { %7332 = vmatpush1.bf16.msra.mxu0 %v20103_v34 }
 0xe94   :  { %7333 = vmatprep.subr.bf16.mxu0 %v20108_v35 }
 0xe97   :  { %7334 = vmatpush1.bf16.msra.mxu0 %v20106_v36 }
 0xe98   :  { %7335 = vmatprep.subr.bf16.mxu0 %v20111_v37 }
 0xe9b   :  { %7336 = vmatpush1.bf16.msra.mxu0 %v20109_v38 }
 0xe9c   :  { %7337 = vmatprep.subr.bf16.mxu0 %v20114_v39  ;;  %v20168_v39 = vld [vmem:[#allocation55 + $0xe4] ss:$8 sps:$4 sm:$0xff]  }
 0xe9f   :  { %7338 = vmatpush1.bf16.msra.mxu0 %v20112_v40  ;;  %v20166_v40 = vld [vmem:[#allocation55 + $0xe0] ss:$8 sps:$4 sm:$0xff]  }
 0xea0   :  { %7339 = vmatprep.subr.bf16.mxu0 %v20117_v41  ;;  %v20171_v41 = vld [vmem:[#allocation55 + $0xf4] ss:$8 sps:$4 sm:$0xff]  }
 0xea3   :  { %7340 = vmatpush1.bf16.msra.mxu0 %v20115_v42  ;;  %v20169_v42 = vld [vmem:[#allocation55 + $0xf0] ss:$8 sps:$4 sm:$0xff]  }
 0xea4   :  { %7341 = vmatprep.subr.bf16.mxu0 %v20120_v44  ;;  %v20172_v44 = vld [vmem:[#allocation57] ss:$8 sps:$4 sm:$0xff]  }
 0xea7   :  { %7342 = vmatpush1.bf16.msra.mxu0 %v20118_v45  ;;  %v20174_v45 = vld [vmem:[#allocation57 + $0x4] ss:$8 sps:$4 sm:$0xff]  }
 0xea8   :  { %7343 = vmatprep.subr.bf16.mxu0 %v20123_v23  ;;  %v20189_v23 = vld [vmem:[#allocation57 + $0x54] ss:$8 sps:$4 sm:$0xff]  }
 0xeab   :  { %7344 = vmatpush1.bf16.msra.mxu0 %v20121_v27  ;;  %v20187_v27 = vld [vmem:[#allocation57 + $0x50] ss:$8 sps:$4 sm:$0xff]  }
 0xeac   :  { %7787 = vmatprep.subr.bf16.mxu0 %v20174_v45  ;;  %v20238_v45 = vld [vmem:[#allocation58 + $0x60] ss:$8 sps:$4 sm:$0xff]  }
 0xf41   :  { %v6873_v46 = vpop.f32.mrb[60].mxu0 }
 0xf42   :  { %v6874_v47 = vadd.f32 %v6873_v46, %v22649_v14  ;;  %v6875_v48 = vpop.f32.mrb[61].mxu0  ;;  %v20124_v14 = vld [vmem:[#allocation55] ss:$8 sps:$4 sm:$0xff]   ;;  %v20177_v46 = vld [vmem:[#allocation57 + $0x14] ss:$8 sps:$4 sm:$0xff]  }
 0xf43   :  { %v6876_v49 = vadd.f32 %v6875_v48, %v22651_v18  ;;  %v6877_v50 = vpop.f32.mrb[62].mxu0  ;;  %v20126_v18 = vld [vmem:[#allocation55 + $0x4] ss:$8 sps:$4 sm:$0xff]  }
 0xf44   :  { %v22665_v52 = vmax.f32 %v6874_v47, 0.0  ;;  %v6878_v54 = vpop.f32.mrb[63].mxu0  ;;  %7550 = vmatprep.subr.bf16.mxu1 %v20126_v18  ;;  %v20175_v47 = vld [vmem:[#allocation57 + $0x10] ss:$8 sps:$4 sm:$0xff]   ;;  %v20180_v48 = vld [vmem:[#allocation57 + $0x24] ss:$8 sps:$4 sm:$0xff]  }
 0xf45   :  { %v22667_v55 = vmax.f32 %v6876_v49, 0.0  ;;  %v20178_v49 = vld [vmem:[#allocation57 + $0x20] ss:$8 sps:$4 sm:$0xff]   ;;  %v20183_v50 = vld [vmem:[#allocation57 + $0x34] ss:$8 sps:$4 sm:$0xff]  }
 0xf46   :  { %v6882_v57 = vpack.c.bf16 %v22665_v52, %v22665_v52  ;;  %v20181_v54 = vld [vmem:[#allocation57 + $0x30] ss:$8 sps:$4 sm:$0xff]   ;;  %v20190_v18 = vld [vmem:[#allocation57 + $0x60] ss:$8 sps:$4 sm:$0xff]  }
 0xf47   :  { %v6883_v56 = vpack.c.bf16 %v22667_v55, %v22667_v55 }
 0xf49   :  { %7108 = vmatprep.mubr.bf16.mxu1 %v6883_v56  ;;  %v20186_v56 = vld [vmem:[#allocation57 + $0x44] ss:$8 sps:$4 sm:$0xff]  }
 0xf4a   :  { %7109 = vmatmul.mubr.bf16.vlgmr.msra.gmra.mrb[56].mxu1 %v6882_v57  ;;  %v20184_v57 = vld [vmem:[#allocation57 + $0x40] ss:$8 sps:$4 sm:$0xff]  }
 0xf4b   :  { %7551 = vmatpush1.bf16.msra.mxu1 %v20124_v14  ;;  %v20192_v14 = vld [vmem:[#allocation57 + $0x64] ss:$8 sps:$4 sm:$0xff]  }
 0xf4c   :  { %7552 = vmatprep.subr.bf16.mxu1 %v20129_v58  ;;  %v20195_v58 = vld [vmem:[#allocation57 + $0x74] ss:$8 sps:$4 sm:$0xff]  }
 0xf4f   :  { %7553 = vmatpush1.bf16.msra.mxu1 %v20127_v59  ;;  %v20193_v59 = vld [vmem:[#allocation57 + $0x70] ss:$8 sps:$4 sm:$0xff]  }
 0xf50   :  { %7554 = vmatprep.subr.bf16.mxu1 %v20132_v60  ;;  %v20198_v60 = vld [vmem:[#allocation57 + $0x84] ss:$8 sps:$4 sm:$0xff]  }
 0xf53   :  { %7555 = vmatpush1.bf16.msra.mxu1 %v20130_v61  ;;  %v20196_v61 = vld [vmem:[#allocation57 + $0x80] ss:$8 sps:$4 sm:$0xff]  }
 0xf54   :  { %7556 = vmatprep.subr.bf16.mxu1 %v20135_v62  ;;  %v20201_v62 = vld [vmem:[#allocation57 + $0x94] ss:$8 sps:$4 sm:$0xff]  }
 0xf57   :  { %7557 = vmatpush1.bf16.msra.mxu1 %v20133_v63  ;;  %v20199_v63 = vld [vmem:[#allocation57 + $0x90] ss:$8 sps:$4 sm:$0xff]  }
 0xf58   :  { %7558 = vmatprep.subr.bf16.mxu1 %v20138_v0  ;;  %v20204_v0 = vld [vmem:[#allocation57 + $0xa4] ss:$8 sps:$4 sm:$0xff]  }
 0xf5b   :  { %7559 = vmatpush1.bf16.msra.mxu1 %v20136_v1  ;;  %v20202_v1 = vld [vmem:[#allocation57 + $0xa0] ss:$8 sps:$4 sm:$0xff]  }
 0xf5c   :  { %7560 = vmatprep.subr.bf16.mxu1 %v20141_v2  ;;  %v20207_v2 = vld [vmem:[#allocation57 + $0xb4] ss:$8 sps:$4 sm:$0xff]  }
 0xf5f   :  { %7561 = vmatpush1.bf16.msra.mxu1 %v20139_v3  ;;  %v20205_v3 = vld [vmem:[#allocation57 + $0xb0] ss:$8 sps:$4 sm:$0xff]  }
 0xf60   :  { %7562 = vmatprep.subr.bf16.mxu1 %v20144_v4  ;;  %v20210_v4 = vld [vmem:[#allocation57 + $0xc4] ss:$8 sps:$4 sm:$0xff]  }
 0xf63   :  { %7563 = vmatpush1.bf16.msra.mxu1 %v20142_v5  ;;  %v20208_v5 = vld [vmem:[#allocation57 + $0xc0] ss:$8 sps:$4 sm:$0xff]  }
 0xf64   :  { %7564 = vmatprep.subr.bf16.mxu1 %v20147_v6  ;;  %v20213_v6 = vld [vmem:[#allocation57 + $0xd4] ss:$8 sps:$4 sm:$0xff]  }
 0xf67   :  { %7565 = vmatpush1.bf16.msra.mxu1 %v20145_v7  ;;  %v20211_v7 = vld [vmem:[#allocation57 + $0xd0] ss:$8 sps:$4 sm:$0xff]  }
 0xf68   :  { %7566 = vmatprep.subr.bf16.mxu1 %v20150_v8  ;;  %v20216_v8 = vld [vmem:[#allocation57 + $0xe4] ss:$8 sps:$4 sm:$0xff]  }
 0xf6b   :  { %7567 = vmatpush1.bf16.msra.mxu1 %v20148_v9  ;;  %v20214_v9 = vld [vmem:[#allocation57 + $0xe0] ss:$8 sps:$4 sm:$0xff]  }
 0xf6c   :  { %7568 = vmatprep.subr.bf16.mxu1 %v20153_v10 }
 0xf6f   :  { %7569 = vmatpush1.bf16.msra.mxu1 %v20151_v11 }
 0xf70   :  { %7570 = vmatprep.subr.bf16.mxu1 %v20156_v13 }
 0xf73   :  { %7571 = vmatpush1.bf16.msra.mxu1 %v20154_v15 }
 0xf74   :  { %7572 = vmatprep.subr.bf16.mxu1 %v20159_v51 }
 0xf77   :  { %7573 = vmatpush1.bf16.msra.mxu1 %v20157_v53 }
 0xf78   :  { %7574 = vmatprep.subr.bf16.mxu1 %v20162_v24 }
 0xf7b   :  { %7575 = vmatpush1.bf16.msra.mxu1 %v20160_v26 }
 0xf7c   :  { %7576 = vmatprep.subr.bf16.mxu1 %v20165_v29 }
 0xf7f   :  { %7577 = vmatpush1.bf16.msra.mxu1 %v20163_v30 }
 0xf80   :  { %7578 = vmatprep.subr.bf16.mxu1 %v20168_v39  ;;  %v20234_v39 = vld [vmem:[#allocation58 + $0x44] ss:$8 sps:$4 sm:$0xff]  }
 0xf83   :  { %7579 = vmatpush1.bf16.msra.mxu1 %v20166_v40  ;;  %v20232_v40 = vld [vmem:[#allocation58 + $0x40] ss:$8 sps:$4 sm:$0xff]  }
 0xf84   :  { %7580 = vmatprep.subr.bf16.mxu1 %v20171_v41  ;;  %v20237_v41 = vld [vmem:[#allocation58 + $0x54] ss:$8 sps:$4 sm:$0xff]  }
 0xf87   :  { %7581 = vmatpush1.bf16.msra.mxu1 %v20169_v42  ;;  %v20235_v42 = vld [vmem:[#allocation58 + $0x50] ss:$8 sps:$4 sm:$0xff]  }
0x101d   :  { %v7110_v31 = vpop.f32.mrb[56].mxu1 }
0x101e   :  { %v7117_v32 = vmax.f32 %v7110_v31, 0.0  ;;  %v7112_v33 = vpop.f32.mrb[57].mxu1  ;;  %v20220_v31 = vld [vmem:[#allocation58] ss:$8 sps:$4 sm:$0xff]  }
0x101f   :  { %v7118_v34 = vmax.f32 %v7112_v33, 0.0  ;;  %v7114_v35 = vpop.f32.mrb[58].mxu1  ;;  %v20225_v33 = vld [vmem:[#allocation58 + $0x14] ss:$8 sps:$4 sm:$0xff]  }
0x1020   :  { %v7115_v36 = vpop.f32.mrb[59].mxu1  ;;  %v7119_v38 = vpack.c.bf16 %v7117_v32, %v7117_v32  ;;  %v20222_v32 = vld [vmem:[#allocation58 + $0x4] ss:$8 sps:$4 sm:$0xff]  }
0x1021   :  { %v7120_v37 = vpack.c.bf16 %v7118_v34, %v7118_v34  ;;  %8024 = vmatprep.subr.bf16.mxu1 %v20222_v32  ;;  %v20223_v34 = vld [vmem:[#allocation58 + $0x10] ss:$8 sps:$4 sm:$0xff]   ;;  %v20228_v35 = vld [vmem:[#allocation58 + $0x24] ss:$8 sps:$4 sm:$0xff]   ;;  %v20226_v36 = vld [vmem:[#allocation58 + $0x20] ss:$8 sps:$4 sm:$0xff]  }
0x1022   :  { %v20301_v32 = vld [vmem:[#allocation60 + $0x54] ss:$8 sps:$4 sm:$0xff]  }
0x1023   :  { %7345 = vmatprep.mubr.bf16.mxu0 %v7120_v37  ;;  %v20231_v37 = vld [vmem:[#allocation58 + $0x34] ss:$8 sps:$4 sm:$0xff]  }
0x1024   :  { %7346 = vmatmul.mubr.bf16.vlgmr.msra.gmra.mrb[64].mxu0 %v7119_v38  ;;  %v20229_v38 = vld [vmem:[#allocation58 + $0x30] ss:$8 sps:$4 sm:$0xff]  }
0x1025   :  { %7788 = vmatpush1.bf16.msra.mxu0 %v20172_v44  ;;  %v20240_v44 = vld [vmem:[#allocation58 + $0x64] ss:$8 sps:$4 sm:$0xff]  }
0x1026   :  { %7789 = vmatprep.subr.bf16.mxu0 %v20177_v46  ;;  %v20243_v46 = vld [vmem:[#allocation58 + $0x74] ss:$8 sps:$4 sm:$0xff]  }
0x1029   :  { %7790 = vmatpush1.bf16.msra.mxu0 %v20175_v47  ;;  %v20241_v47 = vld [vmem:[#allocation58 + $0x70] ss:$8 sps:$4 sm:$0xff]  }
0x102a   :  { %7791 = vmatprep.subr.bf16.mxu0 %v20180_v48  ;;  %v20246_v48 = vld [vmem:[#allocation58 + $0x84] ss:$8 sps:$4 sm:$0xff]  }
0x102d   :  { %7792 = vmatpush1.bf16.msra.mxu0 %v20178_v49  ;;  %v20244_v49 = vld [vmem:[#allocation58 + $0x80] ss:$8 sps:$4 sm:$0xff]  }
0x102e   :  { %7793 = vmatprep.subr.bf16.mxu0 %v20183_v50  ;;  %v20249_v50 = vld [vmem:[#allocation58 + $0x94] ss:$8 sps:$4 sm:$0xff]  }
0x1031   :  { %7794 = vmatpush1.bf16.msra.mxu0 %v20181_v54  ;;  %v20247_v54 = vld [vmem:[#allocation58 + $0x90] ss:$8 sps:$4 sm:$0xff]  }
0x1032   :  { %7795 = vmatprep.subr.bf16.mxu0 %v20186_v56  ;;  %v20252_v56 = vld [vmem:[#allocation58 + $0xa4] ss:$8 sps:$4 sm:$0xff]  }
0x1035   :  { %7796 = vmatpush1.bf16.msra.mxu0 %v20184_v57  ;;  %v20250_v57 = vld [vmem:[#allocation58 + $0xa0] ss:$8 sps:$4 sm:$0xff]  }
0x1036   :  { %7797 = vmatprep.subr.bf16.mxu0 %v20189_v23  ;;  %v20255_v23 = vld [vmem:[#allocation58 + $0xb4] ss:$8 sps:$4 sm:$0xff]  }
0x1039   :  { %7798 = vmatpush1.bf16.msra.mxu0 %v20187_v27  ;;  %v20253_v27 = vld [vmem:[#allocation58 + $0xb0] ss:$8 sps:$4 sm:$0xff]  }
0x103a   :  { %7799 = vmatprep.subr.bf16.mxu0 %v20192_v14  ;;  %v20258_v14 = vld [vmem:[#allocation58 + $0xc4] ss:$8 sps:$4 sm:$0xff]  }
0x103d   :  { %7800 = vmatpush1.bf16.msra.mxu0 %v20190_v18  ;;  %v20256_v18 = vld [vmem:[#allocation58 + $0xc0] ss:$8 sps:$4 sm:$0xff]  }
0x103e   :  { %7801 = vmatprep.subr.bf16.mxu0 %v20195_v58  ;;  %v20261_v58 = vld [vmem:[#allocation58 + $0xd4] ss:$8 sps:$4 sm:$0xff]  }
0x1041   :  { %7802 = vmatpush1.bf16.msra.mxu0 %v20193_v59  ;;  %v20259_v59 = vld [vmem:[#allocation58 + $0xd0] ss:$8 sps:$4 sm:$0xff]  }
0x1042   :  { %7803 = vmatprep.subr.bf16.mxu0 %v20198_v60 }
0x1045   :  { %7804 = vmatpush1.bf16.msra.mxu0 %v20196_v61 }
0x1046   :  { %7805 = vmatprep.subr.bf16.mxu0 %v20201_v62 }
0x1049   :  { %7806 = vmatpush1.bf16.msra.mxu0 %v20199_v63 }
0x104a   :  { %7807 = vmatprep.subr.bf16.mxu0 %v20204_v0 }
0x104d   :  { %7808 = vmatpush1.bf16.msra.mxu0 %v20202_v1 }
0x104e   :  { %7809 = vmatprep.subr.bf16.mxu0 %v20207_v2 }
0x1051   :  { %7810 = vmatpush1.bf16.msra.mxu0 %v20205_v3 }
0x1052   :  { %7811 = vmatprep.subr.bf16.mxu0 %v20210_v4  ;;  %v20264_v4 = vld [vmem:[#allocation58 + $0xe4] ss:$8 sps:$4 sm:$0xff]  }
0x1055   :  { %7812 = vmatpush1.bf16.msra.mxu0 %v20208_v5  ;;  %v20262_v5 = vld [vmem:[#allocation58 + $0xe0] ss:$8 sps:$4 sm:$0xff]  }
0x1056   :  { %7813 = vmatprep.subr.bf16.mxu0 %v20213_v6  ;;  %v20267_v6 = vld [vmem:[#allocation58 + $0xf4] ss:$8 sps:$4 sm:$0xff]  }
0x1059   :  { %7814 = vmatpush1.bf16.msra.mxu0 %v20211_v7  ;;  %v20265_v7 = vld [vmem:[#allocation58 + $0xf0] ss:$8 sps:$4 sm:$0xff]  }
0x105a   :  { %7815 = vmatprep.subr.bf16.mxu0 %v20216_v8  ;;  %v20268_v8 = vld [vmem:[#allocation12 + $0x40] sm:$0xff]  }
0x105d   :  { %7816 = vmatpush1.bf16.msra.mxu0 %v20214_v9  ;;  %v20284_v9 = vld [vmem:[#allocation60] ss:$8 sps:$4 sm:$0xff]  }
0x10f7   :  { %v7347_v10 = vpop.f32.mrb[64].mxu0 }
0x10f8   :  { %v7348_v11 = vadd.f32 %v7347_v10, %v22665_v52  ;;  %v7349_v13 = vpop.f32.mrb[65].mxu0  ;;  %v20219_v52 = vld [vmem:[#allocation57 + $0xf4] ss:$8 sps:$4 sm:$0xff]   ;;  %v20286_v10 = vld [vmem:[#allocation60 + $0x4] ss:$8 sps:$4 sm:$0xff]  }
0x10f9   :  { %v7350_v15 = vadd.f32 %v7349_v13, %v22667_v55  ;;  %v7351_v51 = vpop.f32.mrb[66].mxu0  ;;  %v20217_v55 = vld [vmem:[#allocation57 + $0xf0] ss:$8 sps:$4 sm:$0xff]   ;;  %7817 = vmatprep.subr.bf16.mxu0 %v20219_v52 }
0x10fa   :  { %v22675_v53 = vmax.f32 %v7348_v11, 0.0  ;;  %v7352_v24 = vpop.f32.mrb[67].mxu0  ;;  %7818 = vmatpush1.bf16.msra.mxu0 %v20217_v55  ;;  %v20289_v11 = vld [vmem:[#allocation60 + $0x14] ss:$8 sps:$4 sm:$0xff]   ;;  %v20287_v13 = vld [vmem:[#allocation60 + $0x10] ss:$8 sps:$4 sm:$0xff]  }
0x10fb   :  { %v22677_v26 = vmax.f32 %v7350_v15, 0.0  ;;  %8261 = vmatprep.subr.bf16.mxu0 %v20286_v10  ;;  %v20292_v15 = vld [vmem:[#allocation60 + $0x24] ss:$8 sps:$4 sm:$0xff]   ;;  %v20290_v51 = vld [vmem:[#allocation60 + $0x20] ss:$8 sps:$4 sm:$0xff]  }
0x10fc   :  { %v22685_v30 = vpack.c.bf16 %v22675_v53, %v22675_v53  ;;  %v20295_v24 = vld [vmem:[#allocation60 + $0x34] ss:$8 sps:$4 sm:$0xff]   ;;  %v20293_v52 = vld [vmem:[#allocation60 + $0x30] ss:$8 sps:$4 sm:$0xff]   ;;  %v20298_v55 = vld [vmem:[#allocation60 + $0x44] ss:$8 sps:$4 sm:$0xff]  }
0x10fd   :  { %v22681_v29 = vpack.c.bf16 %v22677_v26, %v22677_v26  ;;  %v20283_v10 = vld [vmem:[#allocation12 + $0x38] sm:$0xff]  }
0x10ff   :  { %7582 = vmatprep.mubr.bf16.mxu1 %v22681_v29 }
0x1100   :  { %7583 = vmatmul.mubr.bf16.vlgmr.msra.gmra.mrb[60].mxu1 %v22685_v30 }
0x1101   :  { %8025 = vmatpush1.bf16.msra.mxu1 %v20220_v31  ;;  %v20296_v31 = vld [vmem:[#allocation60 + $0x40] ss:$8 sps:$4 sm:$0xff]  }
0x1102   :  { %8026 = vmatprep.subr.bf16.mxu1 %v20225_v33  ;;  %v20299_v33 = vld [vmem:[#allocation60 + $0x50] ss:$8 sps:$4 sm:$0xff]  }
0x1105   :  { %8027 = vmatpush1.bf16.msra.mxu1 %v20223_v34  ;;  %v20304_v34 = vld [vmem:[#allocation60 + $0x64] ss:$8 sps:$4 sm:$0xff]  }
0x1106   :  { %8028 = vmatprep.subr.bf16.mxu1 %v20228_v35  ;;  %v20302_v35 = vld [vmem:[#allocation60 + $0x60] ss:$8 sps:$4 sm:$0xff]  }
0x1109   :  { %8029 = vmatpush1.bf16.msra.mxu1 %v20226_v36  ;;  %v20307_v36 = vld [vmem:[#allocation60 + $0x74] ss:$8 sps:$4 sm:$0xff]  }
0x110a   :  { %8030 = vmatprep.subr.bf16.mxu1 %v20231_v37  ;;  %v20305_v37 = vld [vmem:[#allocation60 + $0x70] ss:$8 sps:$4 sm:$0xff]  }
0x110d   :  { %8031 = vmatpush1.bf16.msra.mxu1 %v20229_v38  ;;  %v20310_v38 = vld [vmem:[#allocation60 + $0x84] ss:$8 sps:$4 sm:$0xff]  }
0x110e   :  { %8032 = vmatprep.subr.bf16.mxu1 %v20234_v39  ;;  %v20308_v39 = vld [vmem:[#allocation60 + $0x80] ss:$8 sps:$4 sm:$0xff]  }
0x1111   :  { %8033 = vmatpush1.bf16.msra.mxu1 %v20232_v40  ;;  %v20313_v40 = vld [vmem:[#allocation60 + $0x94] ss:$8 sps:$4 sm:$0xff]  }
0x1112   :  { %8034 = vmatprep.subr.bf16.mxu1 %v20237_v41  ;;  %v20311_v41 = vld [vmem:[#allocation60 + $0x90] ss:$8 sps:$4 sm:$0xff]  }
0x1115   :  { %8035 = vmatpush1.bf16.msra.mxu1 %v20235_v42  ;;  %v20316_v42 = vld [vmem:[#allocation60 + $0xa4] ss:$8 sps:$4 sm:$0xff]  }
0x1116   :  { %8036 = vmatprep.subr.bf16.mxu1 %v20240_v44  ;;  %v20314_v44 = vld [vmem:[#allocation60 + $0xa0] ss:$8 sps:$4 sm:$0xff]  }
0x1119   :  { %8037 = vmatpush1.bf16.msra.mxu1 %v20238_v45  ;;  %v20319_v45 = vld [vmem:[#allocation60 + $0xb4] ss:$8 sps:$4 sm:$0xff]  }
0x111a   :  { %8038 = vmatprep.subr.bf16.mxu1 %v20243_v46  ;;  %v20317_v46 = vld [vmem:[#allocation60 + $0xb0] ss:$8 sps:$4 sm:$0xff]  }
0x111d   :  { %8039 = vmatpush1.bf16.msra.mxu1 %v20241_v47  ;;  %v20322_v47 = vld [vmem:[#allocation60 + $0xc4] ss:$8 sps:$4 sm:$0xff]  }
0x111e   :  { %8040 = vmatprep.subr.bf16.mxu1 %v20246_v48  ;;  %v20320_v48 = vld [vmem:[#allocation60 + $0xc0] ss:$8 sps:$4 sm:$0xff]  }
0x1121   :  { %8041 = vmatpush1.bf16.msra.mxu1 %v20244_v49  ;;  %v20325_v49 = vld [vmem:[#allocation60 + $0xd4] ss:$8 sps:$4 sm:$0xff]  }
0x1122   :  { %8042 = vmatprep.subr.bf16.mxu1 %v20249_v50  ;;  %v20323_v50 = vld [vmem:[#allocation60 + $0xd0] ss:$8 sps:$4 sm:$0xff]  }
0x1125   :  { %8043 = vmatpush1.bf16.msra.mxu1 %v20247_v54  ;;  %v20328_v54 = vld [vmem:[#allocation60 + $0xe4] ss:$8 sps:$4 sm:$0xff]  }
0x1126   :  { %8044 = vmatprep.subr.bf16.mxu1 %v20252_v56  ;;  %v20326_v56 = vld [vmem:[#allocation60 + $0xe0] ss:$8 sps:$4 sm:$0xff]  }
0x1129   :  { %8045 = vmatpush1.bf16.msra.mxu1 %v20250_v57 }
0x112a   :  { %8046 = vmatprep.subr.bf16.mxu1 %v20255_v23 }
0x112d   :  { %8047 = vmatpush1.bf16.msra.mxu1 %v20253_v27 }
0x112e   :  { %8048 = vmatprep.subr.bf16.mxu1 %v20258_v14 }
0x1131   :  { %8049 = vmatpush1.bf16.msra.mxu1 %v20256_v18 }
0x1132   :  { %8050 = vmatprep.subr.bf16.mxu1 %v20261_v58 }
0x1135   :  { %8051 = vmatpush1.bf16.msra.mxu1 %v20259_v59 }
0x1136   :  { %8052 = vmatprep.subr.bf16.mxu1 %v20264_v4  ;;  %v20276_v4 = vld [vmem:[#allocation12 + $0x60] sm:$0xff]  }
0x1139   :  { %8053 = vmatpush1.bf16.msra.mxu1 %v20262_v5  ;;  %v20277_v5 = vld [vmem:[#allocation12 + $0x20] sm:$0xff]  }
0x113a   :  { %8054 = vmatprep.subr.bf16.mxu1 %v20267_v6  ;;  %v20278_v6 = vld [vmem:[#allocation12 + $0x68] sm:$0xff]  }
0x113d   :  { %8055 = vmatpush1.bf16.msra.mxu1 %v20265_v7  ;;  %v20279_v7 = vld [vmem:[#allocation12 + $0x28] sm:$0xff]  }
0x113e   :  { %16960 = vmatprep.subr.bf16.mxu1 %v20268_v8  ;;  %v20280_v8 = vld [vmem:[#allocation12 + $0x70] sm:$0xff]  }
0x11d3   :  { %v7584_v60 = vpop.f32.mrb[60].mxu1 }
0x11d4   :  { %v7591_v61 = vmax.f32 %v7584_v60, 0.0  ;;  %v7586_v62 = vpop.f32.mrb[61].mxu1 }
0x11d5   :  { %v7592_v63 = vmax.f32 %v7586_v62, 0.0  ;;  %v7588_v0 = vpop.f32.mrb[62].mxu1  ;;  %v20269_v62 = vld [vmem:[#allocation12] sm:$0xff]  }
0x11d6   :  { %v7589_v1 = vpop.f32.mrb[63].mxu1  ;;  %v7593_v3 = vpack.c.bf16 %v7591_v61, %v7591_v61  ;;  %v20270_v0 = vld [vmem:[#allocation12 + $0x48] sm:$0xff]  }
0x11d7   :  { %v7594_v2 = vpack.c.bf16 %v7592_v63, %v7592_v63  ;;  %v20273_v1 = vld [vmem:[#allocation12 + $0x10] sm:$0xff]  }
0x11d9   :  { %7819 = vmatprep.mubr.bf16.mxu0 %v7594_v2  ;;  %v20274_v2 = vld [vmem:[#allocation12 + $0x58] sm:$0xff]  }
0x11da   :  { %7820 = vmatmul.mubr.bf16.vlgmr.msra.gmra.mrb[68].mxu0 %v7593_v3  ;;  %v20275_v3 = vld [vmem:[#allocation12 + $0x18] sm:$0xff]  }
0x11db   :  { %8262 = vmatpush1.bf16.msra.mxu0 %v20284_v9  ;;  %v20282_v9 = vld [vmem:[#allocation12 + $0x78] sm:$0xff]  }
0x11dc   :  { %8263 = vmatprep.subr.bf16.mxu0 %v20289_v11  ;;  %v20331_v11 = vld [vmem:[#allocation60 + $0xf4] ss:$8 sps:$4 sm:$0xff]  }
0x11df   :  { %8264 = vmatpush1.bf16.msra.mxu0 %v20287_v13  ;;  %v20329_v13 = vld [vmem:[#allocation60 + $0xf0] ss:$8 sps:$4 sm:$0xff]  }
0x11e0   :  { %8265 = vmatprep.subr.bf16.mxu0 %v20292_v15  ;;  %v20332_v15 = vld [vmem:[#allocation10 + $0x40] sm:$0xff]  }
0x11e3   :  { %8266 = vmatpush1.bf16.msra.mxu0 %v20290_v51  ;;  %v20333_v51 = vld [vmem:[#allocation10] sm:$0xff]  }
0x11e4   :  { %8267 = vmatprep.subr.bf16.mxu0 %v20295_v24  ;;  %v20334_v24 = vld [vmem:[#allocation10 + $0x48] sm:$0xff]  }
0x11e7   :  { %8268 = vmatpush1.bf16.msra.mxu0 %v20293_v52  ;;  %v20335_v52 = vld [vmem:[#allocation10 + $0x8] sm:$0xff]  }
0x11e8   :  { %8269 = vmatprep.subr.bf16.mxu0 %v20298_v55  ;;  %v20336_v55 = vld [vmem:[#allocation10 + $0x50] sm:$0xff]  }
0x11eb   :  { %8270 = vmatpush1.bf16.msra.mxu0 %v20296_v31  ;;  %v20337_v31 = vld [vmem:[#allocation10 + $0x10] sm:$0xff]  }
0x11ec   :  { %8271 = vmatprep.subr.bf16.mxu0 %v20301_v32  ;;  %v20338_v32 = vld [vmem:[#allocation10 + $0x58] sm:$0xff]  }
0x11ef   :  { %8272 = vmatpush1.bf16.msra.mxu0 %v20299_v33  ;;  %v20339_v33 = vld [vmem:[#allocation10 + $0x18] sm:$0xff]  }
0x11f0   :  { %8273 = vmatprep.subr.bf16.mxu0 %v20304_v34  ;;  %v20341_v34 = vld [vmem:[#allocation10 + $0x20] sm:$0xff]  }
0x11f3   :  { %8274 = vmatpush1.bf16.msra.mxu0 %v20302_v35  ;;  %v20342_v35 = vld [vmem:[#allocation10 + $0x68] sm:$0xff]  }
0x11f4   :  { %8275 = vmatprep.subr.bf16.mxu0 %v20307_v36  ;;  %v20343_v36 = vld [vmem:[#allocation10 + $0x28] sm:$0xff]  }
0x11f7   :  { %8276 = vmatpush1.bf16.msra.mxu0 %v20305_v37 }
0x11f8   :  { %8277 = vmatprep.subr.bf16.mxu0 %v20310_v38 }
0x11fb   :  { %8278 = vmatpush1.bf16.msra.mxu0 %v20308_v39 }
0x11fc   :  { %8279 = vmatprep.subr.bf16.mxu0 %v20313_v40 }
0x11ff   :  { %8280 = vmatpush1.bf16.msra.mxu0 %v20311_v41 }
0x1200   :  { %8281 = vmatprep.subr.bf16.mxu0 %v20316_v42 }
0x1203   :  { %8282 = vmatpush1.bf16.msra.mxu0 %v20314_v44 }
0x1204   :  { %8283 = vmatprep.subr.bf16.mxu0 %v20319_v45 }
0x1207   :  { %8284 = vmatpush1.bf16.msra.mxu0 %v20317_v46 }
0x1208   :  { %8285 = vmatprep.subr.bf16.mxu0 %v20322_v47 }
0x120b   :  { %8286 = vmatpush1.bf16.msra.mxu0 %v20320_v48 }
0x120c   :  { %8287 = vmatprep.subr.bf16.mxu0 %v20325_v49 }
0x120f   :  { %8288 = vmatpush1.bf16.msra.mxu0 %v20323_v50 }
0x1210   :  { %8289 = vmatprep.subr.bf16.mxu0 %v20328_v54  ;;  %v20344_v54 = vld [vmem:[#allocation10 + $0x70] sm:$0xff]  }
0x1213   :  { %8290 = vmatpush1.bf16.msra.mxu0 %v20326_v56  ;;  %v20345_v56 = vld [vmem:[#allocation10 + $0x30] sm:$0xff]  }
0x1214   :  { %8291 = vmatprep.subr.bf16.mxu0 %v20331_v11 }
0x1217   :  { %8292 = vmatpush1.bf16.msra.mxu0 %v20329_v13 }
0x12ad   :  { %v7821_v57 = vpop.f32.mrb[68].mxu0 }
0x12ae   :  { %v7822_v23 = vadd.f32 %v7821_v57, %v22675_v53  ;;  %v7823_v27 = vpop.f32.mrb[69].mxu0  ;;  %v20271_v53 = vld [vmem:[#allocation12 + $0x8] sm:$0xff]   ;;  %v20346_v57 = vld [vmem:[#allocation10 + $0x78] sm:$0xff]  }
0x12af   :  { %v7824_v14 = vadd.f32 %v7823_v27, %v22677_v26  ;;  %v7825_v18 = vpop.f32.mrb[70].mxu0  ;;  %v20272_v26 = vld [vmem:[#allocation12 + $0x50] sm:$0xff]  }
0x12b0   :  { %v22691_v58 = vmax.f32 %v7822_v23, 0.0  ;;  %v7826_v59 = vpop.f32.mrb[71].mxu0  ;;  %v20347_v23 = vld [vmem:[#allocation10 + $0x38] sm:$0xff]   ;;  %v8652_v18 = vld [vmem:[%s23663_s13 + $0x10] sm:$0xff] }
0x12b1   :  { %v22693_v60 = vmax.f32 %v7824_v14, 0.0  ;;  %v8650_v27 = vld [vmem:[%s23663_s13] sm:$0xff]  ;;  %v8651_v14 = vld [vmem:[%s23663_s13 + $0x8] sm:$0xff]  ;;  %v22001_v59 = vmov 0.0|0.0  }
0x12b2   :  { %v7830_v63 = vpack.c.bf16 %v22691_v58, %v22691_v58  ;;  %18333 = vmatprep.subr.bf16.mxu0 %v22001_v59 }
0x12b3   :  { %v7831_v61 = vpack.c.bf16 %v22693_v60, %v22693_v60 }
0x12b5   :  { %8056 = vmatprep.mubr.bf16.mxu1 %v7831_v61  ;;  %v22707_v61 = vpack.c.bf16 %v8651_v14, %v8650_v27 }
0x12b6   :  { %8057 = vmatmul.mubr.bf16.vlgmr.msra.gmra.mrb[64].mxu1 %v7830_v63 }
0x12b7   :  { %16961 = vmatpush3.bf16.msra.mxu1 %v20269_v62  ;;  %8498 = vmatprep.mubr.bf16.mxu1 %v22681_v29  ;;  %v20281_v29 = vld [vmem:[#allocation12 + $0x30] sm:$0xff]  }
0x12b8   :  { %16962 = vmatprep.subr.bf16.mxu1 %v20270_v0  ;;  %v8653_v62 = vld [vmem:[%s23663_s13 + $0x18] sm:$0xff]  ;;  %v8654_v0 = vld [vmem:[%s23663_s13 + $0x20] sm:$0xff] }
0x12b9   :  { %v22712_v63 = vpack.c.bf16 %v8653_v62, %v8652_v18 }
0x12bb   :  { %16963 = vmatpush3.bf16.msra.mxu1 %v20271_v53  ;;  %v8655_v53 = vld [vmem:[%s23663_s13 + $0x28] sm:$0xff] }
0x12bc   :  { %16964 = vmatprep.subr.bf16.mxu1 %v20272_v26  ;;  %v22718_v26 = vpack.c.bf16 %v8655_v53, %v8654_v0  ;;  %v20348_v0 = vld [vmem:[#allocation9] sm:$0xff]  }
0x12bf   :  { %16965 = vmatpush3.bf16.msra.mxu1 %v20273_v1  ;;  %v8656_v1 = vld [vmem:[%s23663_s13 + $0x30] sm:$0xff] }
0x12c0   :  { %16966 = vmatprep.subr.bf16.mxu1 %v20274_v2  ;;  %v8657_v2 = vld [vmem:[%s23663_s13 + $0x38] sm:$0xff] }
0x12c3   :  { %16967 = vmatpush3.bf16.msra.mxu1 %v20275_v3  ;;  %v22724_v3 = vpack.c.bf16 %v8657_v2, %v8656_v1  ;;  %v20349_v2 = vld [vmem:[#allocation9 + $0x8] sm:$0xff]  }
0x12c4   :  { %16968 = vmatprep.subr.bf16.mxu1 %v20276_v4  ;;  %v8658_v4 = vld [vmem:[%s23663_s13 + $0x40] sm:$0xff] }
0x12c7   :  { %16969 = vmatpush3.bf16.msra.mxu1 %v20277_v5  ;;  %v8659_v5 = vld [vmem:[%s23663_s13 + $0x48] sm:$0xff] }
0x12c8   :  { %16970 = vmatprep.subr.bf16.mxu1 %v20278_v6  ;;  %v22730_v6 = vpack.c.bf16 %v8659_v5, %v8658_v4  ;;  %v20350_v4 = vld [vmem:[#allocation9 + $0x10] sm:$0xff]   ;;  %v20351_v5 = vld [vmem:[#allocation9 + $0x18] sm:$0xff]  }
0x12cb   :  { %16971 = vmatpush3.bf16.msra.mxu1 %v20279_v7  ;;  %v8660_v7 = vld [vmem:[%s23663_s13 + $0x50] sm:$0xff] }
0x12cc   :  { %16972 = vmatprep.subr.bf16.mxu1 %v20280_v8  ;;  %v8661_v8 = vld [vmem:[%s23663_s13 + $0x58] sm:$0xff] }
0x12cf   :  { %16973 = vmatpush3.bf16.msra.mxu1 %v20281_v29  ;;  %v22736_v29 = vpack.c.bf16 %v8661_v8, %v8660_v7  ;;  %v20352_v7 = vld [vmem:[#allocation9 + $0x20] sm:$0xff]   ;;  %v20353_v8 = vld [vmem:[#allocation9 + $0x28] sm:$0xff]  }
0x12d0   :  { %16974 = vmatprep.subr.bf16.mxu1 %v20282_v9 }
0x12d3   :  { %16975 = vmatpush3.bf16.msra.mxu1 %v20283_v10 }
0x12d4   :  { %16982 = vmatprep.subr.bf16.mxu1 %v20332_v15 }
0x12d6   :  { %8499 = vmatmul.mubr.bf16.vlgmr.msra.gmra.mrb[68].mxu1 %v22685_v30  ;;  %v20340_v30 = vld [vmem:[#allocation10 + $0x60] sm:$0xff]  }
0x12d7   :  { %16983 = vmatpush3.bf16.msra.mxu1 %v20333_v51 }
0x12d8   :  { %16984 = vmatprep.subr.bf16.mxu1 %v20334_v24 }
0x12db   :  { %16985 = vmatpush3.bf16.msra.mxu1 %v20335_v52 }
0x12dc   :  { %16986 = vmatprep.subr.bf16.mxu1 %v20336_v55 }
0x12df   :  { %16987 = vmatpush3.bf16.msra.mxu1 %v20337_v31 }
0x12e0   :  { %16988 = vmatprep.subr.bf16.mxu1 %v20338_v32  ;;  %v8662_v32 = vld [vmem:[%s23663_s13 + $0x60] sm:$0xff] }
0x12e3   :  { %16989 = vmatpush3.bf16.msra.mxu1 %v20339_v33  ;;  %v8663_v33 = vld [vmem:[%s23663_s13 + $0x68] sm:$0xff] }
0x12e4   :  { %16990 = vmatprep.subr.bf16.mxu1 %v20340_v30  ;;  %v22745_v30 = vpack.c.bf16 %v8663_v33, %v8662_v32  ;;  %v16148_v32 = vld [vmem:[#allocation7] ss:$0 sm:$0xff] }
0x12e7   :  { %16991 = vmatpush3.bf16.msra.mxu1 %v20341_v34  ;;  %v8665_v34 = vld [vmem:[%s23663_s13 + $0x78] sm:$0xff] }
0x12e8   :  { %16992 = vmatprep.subr.bf16.mxu1 %v20342_v35 }
0x12eb   :  { %16993 = vmatpush3.bf16.msra.mxu1 %v20343_v36  ;;  %v8737_v36 = vld [vmem:[#allocation61] sm:$0xff] }
0x12ec   :  { %16994 = vmatprep.subr.bf16.mxu1 %v20344_v54 }
0x12ef   :  { %16995 = vmatpush3.bf16.msra.mxu1 %v20345_v56 }
0x12f0   :  { %16996 = vmatprep.subr.bf16.mxu1 %v20346_v57 }
0x12f3   :  { %16997 = vmatpush3.bf16.msra.mxu1 %v20347_v23 }
0x12f4   :  { %18357 = vmatprep.subr.bf16.mxu1 %v22001_v59 }
0x1389   :  { %v8058_v37 = vpop.f32.mrb[64].mxu1 }
0x138a   :  { %v8065_v38 = vmax.f32 %v8058_v37, 0.0  ;;  %v8060_v39 = vpop.f32.mrb[65].mxu1  ;;  %v8738_v37 = vld [vmem:[#allocation61 + $0x8] sm:$0xff] }
0x138b   :  { %v8066_v40 = vmax.f32 %v8060_v39, 0.0  ;;  %v8062_v41 = vpop.f32.mrb[66].mxu1  ;;  %v22759_v39 = vpack.c.bf16 %v8738_v37, %v8737_v36 }
0x138c   :  { %v8063_v42 = vpop.f32.mrb[67].mxu1  ;;  %v8067_v45 = vpack.c.bf16 %v8065_v38, %v8065_v38  ;;  %v8739_v38 = vld [vmem:[#allocation61 + $0x10] sm:$0xff] }
0x138d   :  { %v8068_v44 = vpack.c.bf16 %v8066_v40, %v8066_v40  ;;  %v8740_v40 = vld [vmem:[#allocation61 + $0x18] sm:$0xff] }
0x138e   :  { %v22762_v41 = vpack.c.bf16 %v8740_v40, %v8739_v38 }
0x138f   :  { %8293 = vmatprep.mubr.bf16.mxu0 %v8068_v44 }
0x1390   :  { %8294 = vmatmul.mubr.bf16.vlgmr.msra.gmra.mrb[72].mxu0 %v8067_v45 }
0x1391   :  { %18335 = vmatpush3.bf16.msra.mxu0 %v22707_v61 }
0x1392   :  { %18336 = vmatprep.subr.bf16.mxu0 %v22001_v59 }
0x1395   :  { %18338 = vmatpush3.bf16.msra.mxu0 %v22712_v63 }
0x1396   :  { %18339 = vmatprep.subr.bf16.mxu0 %v22001_v59 }
0x1399   :  { %18341 = vmatpush3.bf16.msra.mxu0 %v22718_v26 }
0x139a   :  { %18342 = vmatprep.subr.bf16.mxu0 %v22001_v59 }
0x139d   :  { %18344 = vmatpush3.bf16.msra.mxu0 %v22724_v3 }
0x139e   :  { %18345 = vmatprep.subr.bf16.mxu0 %v22001_v59 }
0x13a1   :  { %18347 = vmatpush3.bf16.msra.mxu0 %v22730_v6 }
0x13a2   :  { %18348 = vmatprep.subr.bf16.mxu0 %v22001_v59 }
0x13a5   :  { %18350 = vmatpush3.bf16.msra.mxu0 %v22736_v29 }
0x13a6   :  { %18351 = vmatprep.subr.bf16.mxu0 %v22001_v59 }
0x13a9   :  { %v16976_v46 = vpop.f32.mrb[68].mxu1  ;;  %18353 = vmatpush3.bf16.msra.mxu0 %v22745_v30 }
0x13aa   :  { %v16977_v47 = vpop.f32.mrb[69].mxu1  ;;  %18354 = vmatprep.subr.bf16.mxu0 %v22001_v59 }
0x13ab   :  { %v22701_v48 = vadd.f32 %v16977_v47, %v16976_v46  ;;  %v16979_v49 = vpop.f32.mrb[70].mxu1  ;;  %v16145_v47 = vld [vmem:[#allocation6] ss:$0 sm:$0xff] }
0x13ac   :  { %v16980_v50 = vpop.f32.mrb[71].mxu1 }
0x1463   :  { %v8295_v9 = vpop.f32.mrb[72].mxu0 }
0x1464   :  { %v8296_v10 = vadd.f32 %v8295_v9, %v22691_v58  ;;  %v8297_v11 = vpop.f32.mrb[73].mxu0  ;;  %v8664_v58 = vld [vmem:[%s23663_s13 + $0x70] sm:$0xff]  ;;  %v20354_v9 = vld [vmem:[#allocation9 + $0x30] sm:$0xff]  }
0x1465   :  { %v8298_v13 = vadd.f32 %v8297_v11, %v22693_v60  ;;  %v8299_v15 = vpop.f32.mrb[74].mxu0  ;;  %v22751_v35 = vpack.c.bf16 %v8665_v34, %v8664_v58  ;;  %v23603_v60 = vmov 0.0  }
0x1466   :  { %v8302_v51 = vmax.f32 %v8296_v10, 0.0  ;;  %v8300_v24 = vpop.f32.mrb[75].mxu0  ;;  %17713 = vmatprep.mubr.msk.f32.mxu0 %vm22002_vm1, %v23603_v60  ;;  %v20355_v10 = vld [vmem:[#allocation9 + $0x38] sm:$0xff]  }
0x1467   :  { %v8303_v52 = vmax.f32 %v8298_v13, 0.0  ;;  %18356 = vmatpush3.bf16.msra.mxu0 %v22751_v35 }
0x1468   :  { %v8304_v31 = vpack.c.bf16 %v8302_v51, %v8302_v51  ;;  %18387 = vmatprep.subr.bf16.mxu0 %v22001_v59 }
0x1469   :  { %v8305_v55 = vpack.c.bf16 %v8303_v52, %v8303_v52 }
0x146b   :  { %8634 = vmatprep.mubr.bf16.mxu1 %v8305_v55 }
0x146c   :  { %8635 = vmatmul.mubr.bf16.vlgmr.msra.gmra.mrb[72].mxu1 %v8304_v31 }
0x146d   :  { %17724 = vmatprep.mubr.msk.f32.mxu1 %vm22002_vm1, %v23603_v60  ;;  %18359 = vmatpush3.bf16.msra.mxu1 %v22759_v39 }
0x146e   :  { %18360 = vmatprep.subr.bf16.mxu1 %v22001_v59 }
0x1471   :  { %18362 = vmatpush3.bf16.msra.mxu1 %v22762_v41 }
0x1472   :  { %18363 = vmatprep.subr.bf16.mxu1 %v22001_v59 }
0x153f   :  { %v16998_v42 = vpop.f32.mrb[72].mxu1 }
0x1540   :  { %v16999_v44 = vpop.f32.mrb[73].mxu1 }
0x1541   :  { %v17000_v45 = vadd.f32 %v16999_v44, %v16998_v42  ;;  %v17001_v46 = vpop.f32.mrb[74].mxu1 }
0x1542   :  { %v17002_v49 = vpop.f32.mrb[75].mxu1 }
0x1543   :  { %v8637_v50 = vadd.f32 %v17000_v45, %v22701_v48  ;;  %v20356_v49 = vld [vmem:[#allocation19 + $0x40] sm:$0xff]  }
0x1545   :  { %v8649_v54 = vadd.f32 %v16145_v47, %v8637_v50  ;;  %v20372_v50 = vld [vmem:[#allocation18] sm:$0xff]  }
0x1547   :  { %17714 = vmatmul.mubr.f32.vlgmr.msra.gmra.mrb[76].mxu0 %v8649_v54 }
0x1548   :  { %18389 = vmatpush3.bf16.msra.mxu0 %v22759_v39  ;;  %17770 = vmatprep.mubr.msk.f32.mxu0 %vm22002_vm1, %v23603_v60 }
0x1549   :  { %18390 = vmatprep.subr.bf16.mxu0 %v22001_v59 }
0x154c   :  { %18392 = vmatpush3.bf16.msra.mxu0 %v22762_v41 }
0x154d   :  { %17773 = vmatprep.subr.bf16.mxu0 %v23603_v60 }
0x161a   :  { %v8732_v56 = vpop.f32.mrb[76].mxu0 }
0x161b   :  { %v8736_v57 = vmul.f32 0.25, %v8732_v56  ;;  %v17715_v23 = vpop.f32.mrb[77].mxu0  ;;  %v20374_v56 = vld [vmem:[#allocation18 + $0x10] sm:$0xff]  }
0x161c   :  { %v20357_v23 = vld [vmem:[#allocation19] sm:$0xff]  }
0x161d   :  { %17725 = vmatmul.mubr.msk.f32.vlgmr.msra.gmra.mrb[76].mxu1 %vm8741_vm2, %v8736_v57 }
0x161e   :  { %18365 = vmatpush3.bf16.msra.mxu1 %v22707_v61  ;;  %17759 = vmatprep.mubr.msk.f32.mxu1 %vm22002_vm1, %v23603_v60 }
0x161f   :  { %18366 = vmatprep.subr.bf16.mxu1 %v22001_v59 }
0x1622   :  { %18368 = vmatpush3.bf16.msra.mxu1 %v22712_v63 }
0x1623   :  { %18369 = vmatprep.subr.bf16.mxu1 %v22001_v59 }
0x1626   :  { %18371 = vmatpush3.bf16.msra.mxu1 %v22718_v26 }
0x1627   :  { %18372 = vmatprep.subr.bf16.mxu1 %v22001_v59 }
0x162a   :  { %18374 = vmatpush3.bf16.msra.mxu1 %v22724_v3 }
0x162b   :  { %18375 = vmatprep.subr.bf16.mxu1 %v22001_v59 }
0x162e   :  { %18377 = vmatpush3.bf16.msra.mxu1 %v22730_v6 }
0x162f   :  { %18378 = vmatprep.subr.bf16.mxu1 %v22001_v59 }
0x1632   :  { %18380 = vmatpush3.bf16.msra.mxu1 %v22736_v29 }
0x1633   :  { %18381 = vmatprep.subr.bf16.mxu1 %v22001_v59 }
0x1636   :  { %18383 = vmatpush3.bf16.msra.mxu1 %v22745_v30 }
0x1637   :  { %18384 = vmatprep.subr.bf16.mxu1 %v22001_v59 }
0x163a   :  { %18386 = vmatpush3.bf16.msra.mxu1 %v22751_v35 }
0x163b   :  { %18393 = vmatprep.subr.bf16.mxu1 %v22001_v59 }
0x16f0   :  { %v8811_v48 = vpop.f32.mrb[76].mxu1 }
0x16f1   :  { %v8815_v27 = vsub.f32 %v8649_v54, %v8811_v48  ;;  %v17726_v14 = vpop.f32.mrb[77].mxu1  ;;  %v20373_v54 = vld [vmem:[#allocation18 + $0x8] sm:$0xff]  }
0x16f2   :  { %v20358_v14 = vld [vmem:[#allocation19 + $0x48] sm:$0xff]  }
0x16f3   :  { %v8816_v18 = vmul.f32 %v8815_v27, %v8815_v27 }
0x16f5   :  { %17760 = vmatmul.mubr.f32.vlgmr.msra.gmra.mrb[78].mxu1 %v8816_v18  ;;  %v20359_v18 = vld [vmem:[#allocation19 + $0x8] sm:$0xff]  }
0x16f6   :  { %18395 = vmatpush3.bf16.msra.mxu1 %v22707_v61  ;;  %17825 = vmatprep.mubr.msk.f32.mxu1 %vm22002_vm1, %v23603_v60 }
0x16f7   :  { %18396 = vmatprep.subr.bf16.mxu1 %v22001_v59 }
0x16fa   :  { %18398 = vmatpush3.bf16.msra.mxu1 %v22712_v63 }
0x16fb   :  { %18399 = vmatprep.subr.bf16.mxu1 %v22001_v59 }
0x16fe   :  { %18401 = vmatpush3.bf16.msra.mxu1 %v22718_v26 }
0x16ff   :  { %18402 = vmatprep.subr.bf16.mxu1 %v22001_v59 }
0x1702   :  { %18404 = vmatpush3.bf16.msra.mxu1 %v22724_v3 }
0x1703   :  { %18405 = vmatprep.subr.bf16.mxu1 %v22001_v59 }
0x1706   :  { %18407 = vmatpush3.bf16.msra.mxu1 %v22730_v6 }
0x1707   :  { %18408 = vmatprep.subr.bf16.mxu1 %v22001_v59 }
0x170a   :  { %18410 = vmatpush3.bf16.msra.mxu1 %v22736_v29 }
0x170b   :  { %18411 = vmatprep.subr.bf16.mxu1 %v22001_v59 }
0x170e   :  { %18413 = vmatpush3.bf16.msra.mxu1 %v22745_v30 }
0x170f   :  { %18414 = vmatprep.subr.bf16.mxu1 %v22001_v59 }
0x1712   :  { %18416 = vmatpush3.bf16.msra.mxu1 %v22751_v35 }
0x1713   :  { %18423 = vmatprep.subr.bf16.mxu1 %v22001_v59 }
0x17c8   :  { %v8883_v62 = vpop.f32.mrb[78].mxu1 }
0x17c9   :  { %v8887_v53 = vmul.f32 0.25, %v8883_v62  ;;  %v17761_v1 = vpop.f32.mrb[79].mxu1  ;;  %v20360_v62 = vld [vmem:[#allocation19 + $0x50] sm:$0xff]  }
0x17ca   :  { %v20363_v1 = vld [vmem:[#allocation19 + $0x18] sm:$0xff]  }
0x17cb   :  { %17771 = vmatmul.mubr.msk.f32.vlgmr.msra.gmra.mrb[78].mxu0 %vm8741_vm2, %v8887_v53  ;;  %v20362_v53 = vld [vmem:[#allocation19 + $0x58] sm:$0xff]  }
0x17cc   :  { %17774 = vmatpush3.bf16.msra.mxu0 %v20348_v0  ;;  %17789 = vmatprep.mubr.msk.bf16.mxu0 %vm22002_vm1, %v23603_v60  ;;  %v20361_v0 = vld [vmem:[#allocation19 + $0x10] sm:$0xff]  }
0x17cd   :  { %17775 = vmatprep.subr.bf16.mxu0 %v23603_v60 }
0x17d0   :  { %17776 = vmatpush3.bf16.msra.mxu0 %v20349_v2  ;;  %v20364_v2 = vld [vmem:[#allocation19 + $0x60] sm:$0xff]  }
0x17d1   :  { %17777 = vmatprep.subr.bf16.mxu0 %v23603_v60 }
0x17d4   :  { %17778 = vmatpush3.bf16.msra.mxu0 %v20350_v4  ;;  %v20365_v4 = vld [vmem:[#allocation19 + $0x20] sm:$0xff]  }
0x17d5   :  { %17779 = vmatprep.subr.bf16.mxu0 %v23603_v60 }
0x17d8   :  { %17780 = vmatpush3.bf16.msra.mxu0 %v20351_v5  ;;  %v20366_v5 = vld [vmem:[#allocation19 + $0x68] sm:$0xff]  }
0x17d9   :  { %17781 = vmatprep.subr.bf16.mxu0 %v23603_v60 }
0x17dc   :  { %17782 = vmatpush3.bf16.msra.mxu0 %v20352_v7  ;;  %v20367_v7 = vld [vmem:[#allocation19 + $0x28] sm:$0xff]  }
0x17dd   :  { %17783 = vmatprep.subr.bf16.mxu0 %v23603_v60 }
0x17e0   :  { %17784 = vmatpush3.bf16.msra.mxu0 %v20353_v8  ;;  %v20368_v8 = vld [vmem:[#allocation19 + $0x70] sm:$0xff]  }
0x17e1   :  { %17785 = vmatprep.subr.bf16.mxu0 %v23603_v60 }
0x17e4   :  { %17786 = vmatpush3.bf16.msra.mxu0 %v20354_v9  ;;  %v20370_v9 = vld [vmem:[#allocation19 + $0x78] sm:$0xff]  }
0x17e5   :  { %17787 = vmatprep.subr.bf16.mxu0 %v23603_v60 }
0x17e8   :  { %17788 = vmatpush3.bf16.msra.mxu0 %v20355_v10  ;;  %v20371_v10 = vld [vmem:[#allocation19 + $0x38] sm:$0xff]  }
0x17e9   :  { %18417 = vmatprep.subr.bf16.mxu0 %v22001_v59 }
0x189e   :  { %v8957_v11 = vpop.f32.mrb[78].mxu0 }
0x189f   :  { %v8958_v13 = vadd.f32 1e-05, %v8957_v11  ;;  %v17772_v15 = vpop.f32.mrb[79].mxu0  ;;  %v20376_v11 = vld [vmem:[#allocation18 + $0x20] sm:$0xff]  }
0x18a0   :  { %v20378_v15 = vld [vmem:[#allocation18 + $0x30] sm:$0xff]  }
0x18a1   :  { %20884 = vrsqrt.f32 %v8958_v13  ;;  %v20377_v13 = vld [vmem:[#allocation18 + $0x28] sm:$0xff]  }
0x18ab   :  { %v20885_v51 = vpop.eup %20884 }
0x18ac   :  { %v8962_v24 = vmul.f32 %v20885_v51, %v8815_v27  ;;  %v20379_v51 = vld [vmem:[#allocation18 + $0x38] sm:$0xff]  }
0x18ae   :  { %vm8963_vm3 = vcmp.ge.f32.partialorder %v8962_v24, 0.0  ;;  %v8964_v52 = vmul.f32 0.2, %v8962_v24 }
0x18b0   :  { %v8965_v55 = vsel %vm8963_vm3, %v8962_v24, %v8964_v52 }
0x18b1   :  { %v8966_v31 = vpack.c.bf16 %v8965_v55, %v8965_v55 }
0x18b3   :  { %17790 = vmatmul.mubr.bf16.vlgmr.msra.gmra.mrb[80].mxu0 %v8966_v31 }
0x18b4   :  { %18419 = vmatpush3.bf16.msra.mxu0 %v22759_v39  ;;  %17836 = vmatprep.mubr.msk.f32.mxu0 %vm22002_vm1, %v23603_v60 }
0x18b5   :  { %18420 = vmatprep.subr.bf16.mxu0 %v22001_v59 }
0x18b8   :  { %18422 = vmatpush3.bf16.msra.mxu0 %v22762_v41 }
0x18b9   :  { %18447 = vmatprep.subr.bf16.mxu0 %v22001_v59 }
0x1986   :  { %v9072_v33 = vpop.f32.mrb[80].mxu0 }
0x1987   :  { %v9073_v58 = vadd.f32 %v16148_v32, %v9072_v33  ;;  %v17791_v34 = vpop.f32.mrb[81].mxu0 }
0x1988   :  { %v9075_v36 = vpop.f32.mrb[82].mxu0 }
0x1989   :  { %v17792_v37 = vpop.f32.mrb[83].mxu0  ;;  %17826 = vmatmul.mubr.f32.vlgmr.msra.gmra.mrb[80].mxu1 %v9073_v58 }
0x198a   :  { %18425 = vmatpush3.bf16.msra.mxu1 %v22707_v61  ;;  %17871 = vmatprep.mubr.msk.f32.mxu1 %vm22002_vm1, %v23603_v60 }
0x198b   :  { %18426 = vmatprep.subr.bf16.mxu1 %v22001_v59 }
0x198e   :  { %18428 = vmatpush3.bf16.msra.mxu1 %v22712_v63 }
0x198f   :  { %18429 = vmatprep.subr.bf16.mxu1 %v22001_v59 }
0x1992   :  { %18431 = vmatpush3.bf16.msra.mxu1 %v22718_v26 }
0x1993   :  { %18432 = vmatprep.subr.bf16.mxu1 %v22001_v59 }
0x1996   :  { %18434 = vmatpush3.bf16.msra.mxu1 %v22724_v3 }
0x1997   :  { %18435 = vmatprep.subr.bf16.mxu1 %v22001_v59 }
0x199a   :  { %18437 = vmatpush3.bf16.msra.mxu1 %v22730_v6 }
0x199b   :  { %18438 = vmatprep.subr.bf16.mxu1 %v22001_v59 }
0x199e   :  { %18440 = vmatpush3.bf16.msra.mxu1 %v22736_v29 }
0x199f   :  { %18441 = vmatprep.subr.bf16.mxu1 %v22001_v59 }
0x19a2   :  { %18443 = vmatpush3.bf16.msra.mxu1 %v22745_v30 }
0x19a3   :  { %18444 = vmatprep.subr.bf16.mxu1 %v22001_v59 }
0x19a6   :  { %18446 = vmatpush3.bf16.msra.mxu1 %v22751_v35 }
0x19a7   :  { %17885 = vmatprep.subr.bf16.mxu1 %v23603_v60 }
0x1a5c   :  { %v9144_v38 = vpop.f32.mrb[80].mxu1 }
0x1a5d   :  { %v9148_v40 = vmul.f32 0.25, %v9144_v38  ;;  %v17827_v42 = vpop.f32.mrb[81].mxu1 }
0x1a5f   :  { %17837 = vmatmul.mubr.msk.f32.vlgmr.msra.gmra.mrb[84].mxu0 %vm8741_vm2, %v9148_v40 }
0x1a60   :  { %18449 = vmatpush3.bf16.msra.mxu0 %v22759_v39  ;;  %17882 = vmatprep.mubr.msk.f32.mxu0 %vm22002_vm1, %v23603_v60 }
0x1a61   :  { %18450 = vmatprep.subr.bf16.mxu0 %v22001_v59 }
0x1a64   :  { %18452 = vmatpush3.bf16.msra.mxu0 %v22762_v41 }
0x1a65   :  { %17101 = vmatprep.subr.bf16.mxu0 %v20356_v49 }
0x1b32   :  { %v9218_v44 = vpop.f32.mrb[84].mxu0 }
0x1b33   :  { %v22852_v45 = vsub.f32 %v9073_v58, %v9218_v44  ;;  %v17838_v46 = vpop.f32.mrb[85].mxu0 }
0x1b35   :  { %v9223_v47 = vmul.f32 %v22852_v45, %v22852_v45 }
0x1b37   :  { %17872 = vmatmul.mubr.f32.vlgmr.msra.gmra.mrb[82].mxu1 %v9223_v47 }
0x1b38   :  { %17901 = vmatprep.mubr.msk.bf16.mxu1 %vm22002_vm1, %v23603_v60  ;;  %17886 = vmatpush3.bf16.msra.mxu1 %v20372_v50 }
0x1b39   :  { %17887 = vmatprep.subr.bf16.mxu1 %v23603_v60 }
0x1b3c   :  { %17888 = vmatpush3.bf16.msra.mxu1 %v20373_v54 }
0x1b3d   :  { %17889 = vmatprep.subr.bf16.mxu1 %v23603_v60 }
0x1b40   :  { %17890 = vmatpush3.bf16.msra.mxu1 %v20374_v56 }
0x1b41   :  { %17891 = vmatprep.subr.bf16.mxu1 %v23603_v60 }
0x1c0a   :  { %v9290_v57 = vpop.f32.mrb[82].mxu1 }
0x1c0b   :  { %v9294_v48 = vmul.f32 0.25, %v9290_v57  ;;  %v17873_v27 = vpop.f32.mrb[83].mxu1 }
0x1c0d   :  { %17883 = vmatmul.mubr.msk.f32.vlgmr.msra.gmra.mrb[86].mxu0 %vm8741_vm2, %v9294_v48 }
0x1c0e   :  { %17102 = vmatpush3.bf16.msra.mxu0 %v20357_v23  ;;  %9550 = vmatprep.mubr.bf16.mxu0 %v22655_v19  ;;  %v20369_v19 = vld [vmem:[#allocation19 + $0x30] sm:$0xff]  }
0x1c0f   :  { %17103 = vmatprep.subr.bf16.mxu0 %v20358_v14 }
0x1c12   :  { %17104 = vmatpush3.bf16.msra.mxu0 %v20359_v18 }
0x1c13   :  { %17105 = vmatprep.subr.bf16.mxu0 %v20360_v62 }
0x1c16   :  { %17106 = vmatpush3.bf16.msra.mxu0 %v20361_v0  ;;  %v20380_v0 = vld [vmem:[#allocation16] sm:$0xff]  }
0x1c17   :  { %17107 = vmatprep.subr.bf16.mxu0 %v20362_v53 }
0x1c1a   :  { %17108 = vmatpush3.bf16.msra.mxu0 %v20363_v1 }
0x1c1b   :  { %17109 = vmatprep.subr.bf16.mxu0 %v20364_v2  ;;  %v20381_v2 = vld [vmem:[#allocation16 + $0x8] sm:$0xff]  }
0x1c1e   :  { %17110 = vmatpush3.bf16.msra.mxu0 %v20365_v4  ;;  %v20382_v4 = vld [vmem:[#allocation16 + $0x10] sm:$0xff]  }
0x1c1f   :  { %17111 = vmatprep.subr.bf16.mxu0 %v20366_v5  ;;  %v20383_v5 = vld [vmem:[#allocation16 + $0x18] sm:$0xff]  }
0x1c22   :  { %17112 = vmatpush3.bf16.msra.mxu0 %v20367_v7  ;;  %v20384_v7 = vld [vmem:[#allocation16 + $0x20] sm:$0xff]  }
0x1c23   :  { %17113 = vmatprep.subr.bf16.mxu0 %v20368_v8  ;;  %v20385_v8 = vld [vmem:[#allocation16 + $0x28] sm:$0xff]  }
0x1c26   :  { %17114 = vmatpush3.bf16.msra.mxu0 %v20369_v19  ;;  %v20386_v19 = vld [vmem:[#allocation16 + $0x30] sm:$0xff]  }
0x1c27   :  { %17115 = vmatprep.subr.bf16.mxu0 %v20370_v9  ;;  %v20387_v9 = vld [vmem:[#allocation16 + $0x38] sm:$0xff]  }
0x1c2a   :  { %17116 = vmatpush3.bf16.msra.mxu0 %v20371_v10 }
0x1c2b   :  { %18453 = vmatprep.subr.bf16.mxu0 %v22001_v59 }
0x1c2d   :  { %9551 = vmatmul.mubr.bf16.vlgmr.msra.gmra.mrb[88].mxu0 %v22659_v25  ;;  %v20375_v25 = vld [vmem:[#allocation18 + $0x18] sm:$0xff]  }
0x1c2e   :  { %18455 = vmatpush3.bf16.msra.mxu0 %v22707_v61  ;;  %17937 = vmatprep.mubr.msk.f32.mxu0 %vm22002_vm1, %v23603_v60 }
0x1c2f   :  { %18456 = vmatprep.subr.bf16.mxu0 %v22001_v59  ;;  %17892 = vmatpush3.bf16.msra.mxu1 %v20375_v25 }
0x1c30   :  { %17893 = vmatprep.subr.bf16.mxu1 %v23603_v60 }
0x1c32   :  { %18458 = vmatpush3.bf16.msra.mxu0 %v22712_v63 }
0x1c33   :  { %18459 = vmatprep.subr.bf16.mxu0 %v22001_v59  ;;  %17894 = vmatpush3.bf16.msra.mxu1 %v20376_v11 }
0x1c34   :  { %17895 = vmatprep.subr.bf16.mxu1 %v23603_v60 }
0x1c36   :  { %18461 = vmatpush3.bf16.msra.mxu0 %v22718_v26 }
0x1c37   :  { %18462 = vmatprep.subr.bf16.mxu0 %v22001_v59  ;;  %17896 = vmatpush3.bf16.msra.mxu1 %v20377_v13 }
0x1c38   :  { %17897 = vmatprep.subr.bf16.mxu1 %v23603_v60 }
0x1c3a   :  { %18464 = vmatpush3.bf16.msra.mxu0 %v22724_v3 }
0x1c3b   :  { %18465 = vmatprep.subr.bf16.mxu0 %v22001_v59  ;;  %17898 = vmatpush3.bf16.msra.mxu1 %v20378_v15 }
0x1c3c   :  { %17899 = vmatprep.subr.bf16.mxu1 %v23603_v60 }
0x1c3e   :  { %18467 = vmatpush3.bf16.msra.mxu0 %v22730_v6 }
0x1c3f   :  { %18468 = vmatprep.subr.bf16.mxu0 %v22001_v59  ;;  %17900 = vmatpush3.bf16.msra.mxu1 %v20379_v51 }
0x1c40   :  { %18477 = vmatprep.subr.bf16.mxu1 %v22001_v59 }
0x1c42   :  { %18470 = vmatpush3.bf16.msra.mxu0 %v22736_v29 }
0x1c43   :  { %18471 = vmatprep.subr.bf16.mxu0 %v22001_v59 }
0x1c46   :  { %18473 = vmatpush3.bf16.msra.mxu0 %v22745_v30 }
0x1c47   :  { %18474 = vmatprep.subr.bf16.mxu0 %v22001_v59 }
0x1c4a   :  { %18476 = vmatpush3.bf16.msra.mxu0 %v22751_v35 }
0x1c4b   :  { %18507 = vmatprep.subr.bf16.mxu0 %v22001_v59 }
0x1ce0   :  { %v9364_v24 = vpop.f32.mrb[86].mxu0 }
0x1ce1   :  { %v9365_v52 = vadd.f32 1e-05, %v9364_v24  ;;  %v17884_v55 = vpop.f32.mrb[87].mxu0 }
0x1ce2   :  { %v16186_v55 = vld [vmem:[#allocation15] ss:$0 sm:$0xff] }
0x1ce3   :  { %20886 = vrsqrt.f32 %v9365_v52 }
0x1ced   :  { %v20887_v31 = vpop.eup %20886 }
0x1cee   :  { %v9369_v32 = vmul.f32 %v20887_v31, %v22852_v45  ;;  %v16183_v45 = vld [vmem:[#allocation13] ss:$0 sm:$0xff] }
0x1cf0   :  { %vm9370_vm4 = vcmp.ge.f32.partialorder %v9369_v32, 0.0  ;;  %v9371_v33 = vmul.f32 0.2, %v9369_v32 }
0x1cf2   :  { %v9372_v58 = vsel %vm9370_vm4, %v9369_v32, %v9371_v33 }
0x1cf3   :  { %v9373_v34 = vpack.c.bf16 %v9372_v58, %v9372_v58 }
0x1cf5   :  { %17902 = vmatmul.mubr.bf16.vlgmr.msra.gmra.mrb[84].mxu1 %v9373_v34 }
0x1cf6   :  { %18479 = vmatpush3.bf16.msra.mxu1 %v22759_v39  ;;  %17948 = vmatprep.mubr.msk.f32.mxu1 %vm22002_vm1, %v23603_v60 }
0x1cf7   :  { %18480 = vmatprep.subr.bf16.mxu1 %v22001_v59 }
0x1cfa   :  { %18482 = vmatpush3.bf16.msra.mxu1 %v22762_v41 }
0x1cfb   :  { %18483 = vmatprep.subr.bf16.mxu1 %v22001_v59 }
0x1d00   :  { %v17117_v36 = vpop.f32.mrb[88].mxu0 }
0x1d01   :  { %v17118_v37 = vpop.f32.mrb[89].mxu0 }
0x1d02   :  { %v17119_v38 = vadd.f32 %v17118_v37, %v17117_v36  ;;  %v17120_v40 = vpop.f32.mrb[90].mxu0 }
0x1d03   :  { %v17121_v42 = vpop.f32.mrb[91].mxu0 }
0x1dc8   :  { %v9640_v44 = vpop.f32.mrb[84].mxu1 }
0x1dc9   :  { %v9641_v46 = vadd.f32 %v17119_v38, %v9640_v44  ;;  %v17903_v47 = vpop.f32.mrb[85].mxu1 }
0x1dca   :  { %v9643_v49 = vpop.f32.mrb[86].mxu1  ;;  %v20404_v47 = vld [vmem:[#allocation25] sm:$0xff]  }
0x1dcb   :  { %v9653_v50 = vadd.f32 %v16183_v45, %v9641_v46  ;;  %v17904_v54 = vpop.f32.mrb[87].mxu1  ;;  %v20388_v46 = vld [vmem:[#allocation27 + $0x40] sm:$0xff]   ;;  %v20405_v49 = vld [vmem:[#allocation25 + $0x8] sm:$0xff]  }
0x1dcd   :  { %17938 = vmatmul.mubr.f32.vlgmr.msra.gmra.mrb[92].mxu0 %v9653_v50 }
0x1dce   :  { %18509 = vmatpush3.bf16.msra.mxu0 %v22759_v39  ;;  %17994 = vmatprep.mubr.msk.f32.mxu0 %vm22002_vm1, %v23603_v60 }
0x1dcf   :  { %18510 = vmatprep.subr.bf16.mxu0 %v22001_v59 }
0x1dd2   :  { %18512 = vmatpush3.bf16.msra.mxu0 %v22762_v41 }
0x1dd3   :  { %17997 = vmatprep.subr.bf16.mxu0 %v23603_v60 }
0x1ea0   :  { %v9720_v56 = vpop.f32.mrb[92].mxu0 }
0x1ea1   :  { %v9724_v57 = vmul.f32 0.25, %v9720_v56  ;;  %v17939_v23 = vpop.f32.mrb[93].mxu0  ;;  %v20389_v56 = vld [vmem:[#allocation27] sm:$0xff]  }
0x1ea3   :  { %17949 = vmatmul.mubr.msk.f32.vlgmr.msra.gmra.mrb[88].mxu1 %vm8741_vm2, %v9724_v57 }
0x1ea4   :  { %18485 = vmatpush3.bf16.msra.mxu1 %v22707_v61  ;;  %17983 = vmatprep.mubr.msk.f32.mxu1 %vm22002_vm1, %v23603_v60 }
0x1ea5   :  { %18486 = vmatprep.subr.bf16.mxu1 %v22001_v59 }
0x1ea8   :  { %18488 = vmatpush3.bf16.msra.mxu1 %v22712_v63 }
0x1ea9   :  { %18489 = vmatprep.subr.bf16.mxu1 %v22001_v59 }
0x1eac   :  { %18491 = vmatpush3.bf16.msra.mxu1 %v22718_v26 }
0x1ead   :  { %18492 = vmatprep.subr.bf16.mxu1 %v22001_v59 }
0x1eb0   :  { %18494 = vmatpush3.bf16.msra.mxu1 %v22724_v3 }
0x1eb1   :  { %18495 = vmatprep.subr.bf16.mxu1 %v22001_v59 }
0x1eb4   :  { %18497 = vmatpush3.bf16.msra.mxu1 %v22730_v6 }
0x1eb5   :  { %18498 = vmatprep.subr.bf16.mxu1 %v22001_v59 }
0x1eb8   :  { %18500 = vmatpush3.bf16.msra.mxu1 %v22736_v29 }
0x1eb9   :  { %18501 = vmatprep.subr.bf16.mxu1 %v22001_v59 }
0x1ebc   :  { %18503 = vmatpush3.bf16.msra.mxu1 %v22745_v30 }
0x1ebd   :  { %18504 = vmatprep.subr.bf16.mxu1 %v22001_v59 }
0x1ec0   :  { %18506 = vmatpush3.bf16.msra.mxu1 %v22751_v35 }
0x1ec1   :  { %18513 = vmatprep.subr.bf16.mxu1 %v22001_v59 }
0x1f76   :  { %v9794_v48 = vpop.f32.mrb[88].mxu1 }
0x1f77   :  { %v9798_v27 = vsub.f32 %v9653_v50, %v9794_v48  ;;  %v17950_v14 = vpop.f32.mrb[89].mxu1  ;;  %v20406_v50 = vld [vmem:[#allocation25 + $0x10] sm:$0xff]   ;;  %v20390_v48 = vld [vmem:[#allocation27 + $0x48] sm:$0xff]  }
0x1f78   :  { %v20392_v14 = vld [vmem:[#allocation27 + $0x50] sm:$0xff]  }
0x1f79   :  { %v9799_v18 = vmul.f32 %v9798_v27, %v9798_v27 }
0x1f7b   :  { %17984 = vmatmul.mubr.f32.vlgmr.msra.gmra.mrb[90].mxu1 %v9799_v18  ;;  %v20393_v18 = vld [vmem:[#allocation27 + $0x10] sm:$0xff]  }
0x1f7c   :  { %18515 = vmatpush3.bf16.msra.mxu1 %v22707_v61  ;;  %18049 = vmatprep.mubr.msk.f32.mxu1 %vm22002_vm1, %v23603_v60 }
0x1f7d   :  { %18516 = vmatprep.subr.bf16.mxu1 %v22001_v59 }
0x1f80   :  { %18518 = vmatpush3.bf16.msra.mxu1 %v22712_v63 }
0x1f81   :  { %18519 = vmatprep.subr.bf16.mxu1 %v22001_v59 }
0x1f84   :  { %18521 = vmatpush3.bf16.msra.mxu1 %v22718_v26 }
0x1f85   :  { %18522 = vmatprep.subr.bf16.mxu1 %v22001_v59 }
0x1f88   :  { %18524 = vmatpush3.bf16.msra.mxu1 %v22724_v3 }
0x1f89   :  { %18525 = vmatprep.subr.bf16.mxu1 %v22001_v59 }
0x1f8c   :  { %18527 = vmatpush3.bf16.msra.mxu1 %v22730_v6 }
0x1f8d   :  { %18528 = vmatprep.subr.bf16.mxu1 %v22001_v59 }
0x1f90   :  { %18530 = vmatpush3.bf16.msra.mxu1 %v22736_v29 }
0x1f91   :  { %18531 = vmatprep.subr.bf16.mxu1 %v22001_v59 }
0x1f94   :  { %18533 = vmatpush3.bf16.msra.mxu1 %v22745_v30 }
0x1f95   :  { %18534 = vmatprep.subr.bf16.mxu1 %v22001_v59 }
0x1f98   :  { %18536 = vmatpush3.bf16.msra.mxu1 %v22751_v35 }
0x1f99   :  { %18567 = vmatprep.subr.bf16.mxu1 %v22001_v59 }
0x204e   :  { %v9866_v62 = vpop.f32.mrb[90].mxu1 }
0x204f   :  { %v9870_v53 = vmul.f32 0.25, %v9866_v62  ;;  %v17985_v1 = vpop.f32.mrb[91].mxu1  ;;  %v20394_v62 = vld [vmem:[#allocation27 + $0x58] sm:$0xff]  }
0x2050   :  { %v20397_v1 = vld [vmem:[#allocation27 + $0x20] sm:$0xff]  }
0x2051   :  { %17995 = vmatmul.mubr.msk.f32.vlgmr.msra.gmra.mrb[94].mxu0 %vm8741_vm2, %v9870_v53  ;;  %v20396_v53 = vld [vmem:[#allocation27 + $0x60] sm:$0xff]  }
0x2052   :  { %17998 = vmatpush3.bf16.msra.mxu0 %v20380_v0  ;;  %18013 = vmatprep.mubr.msk.bf16.mxu0 %vm22002_vm1, %v23603_v60  ;;  %v20395_v0 = vld [vmem:[#allocation27 + $0x18] sm:$0xff]  }
0x2053   :  { %17999 = vmatprep.subr.bf16.mxu0 %v23603_v60 }
0x2056   :  { %18000 = vmatpush3.bf16.msra.mxu0 %v20381_v2  ;;  %v20398_v2 = vld [vmem:[#allocation27 + $0x68] sm:$0xff]  }
0x2057   :  { %18001 = vmatprep.subr.bf16.mxu0 %v23603_v60 }
0x205a   :  { %18002 = vmatpush3.bf16.msra.mxu0 %v20382_v4  ;;  %v20399_v4 = vld [vmem:[#allocation27 + $0x28] sm:$0xff]  }
0x205b   :  { %18003 = vmatprep.subr.bf16.mxu0 %v23603_v60 }
0x205e   :  { %18004 = vmatpush3.bf16.msra.mxu0 %v20383_v5  ;;  %v20400_v5 = vld [vmem:[#allocation27 + $0x70] sm:$0xff]  }
0x205f   :  { %18005 = vmatprep.subr.bf16.mxu0 %v23603_v60 }
0x2062   :  { %18006 = vmatpush3.bf16.msra.mxu0 %v20384_v7  ;;  %v20402_v7 = vld [vmem:[#allocation27 + $0x78] sm:$0xff]  }
0x2063   :  { %18007 = vmatprep.subr.bf16.mxu0 %v23603_v60 }
0x2066   :  { %18008 = vmatpush3.bf16.msra.mxu0 %v20385_v8  ;;  %v20403_v8 = vld [vmem:[#allocation27 + $0x38] sm:$0xff]  }
0x2067   :  { %18009 = vmatprep.subr.bf16.mxu0 %v23603_v60 }
0x206a   :  { %18010 = vmatpush3.bf16.msra.mxu0 %v20386_v19  ;;  %v20408_v19 = vld [vmem:[#allocation25 + $0x20] sm:$0xff]  }
0x206b   :  { %18011 = vmatprep.subr.bf16.mxu0 %v23603_v60 }
0x206e   :  { %18012 = vmatpush3.bf16.msra.mxu0 %v20387_v9  ;;  %v20409_v9 = vld [vmem:[#allocation25 + $0x28] sm:$0xff]  }
0x206f   :  { %18537 = vmatprep.subr.bf16.mxu0 %v22001_v59 }
0x2124   :  { %v9940_v10 = vpop.f32.mrb[94].mxu0 }
0x2125   :  { %v9941_v25 = vadd.f32 1e-05, %v9940_v10  ;;  %v17996_v11 = vpop.f32.mrb[95].mxu0  ;;  %v20410_v10 = vld [vmem:[#allocation25 + $0x30] sm:$0xff]  }
0x2127   :  { %20888 = vrsqrt.f32 %v9941_v25  ;;  %v20411_v25 = vld [vmem:[#allocation25 + $0x38] sm:$0xff]  }
0x2131   :  { %v20889_v13 = vpop.eup %20888 }
0x2132   :  { %v9945_v15 = vmul.f32 %v20889_v13, %v9798_v27  ;;  %v20391_v27 = vld [vmem:[#allocation27 + $0x8] sm:$0xff]  }
0x2134   :  { %vm9946_vm5 = vcmp.ge.f32.partialorder %v9945_v15, 0.0  ;;  %v9947_v51 = vmul.f32 0.2, %v9945_v15 }
0x2136   :  { %v9948_v24 = vsel %vm9946_vm5, %v9945_v15, %v9947_v51 }
0x2137   :  { %v9949_v52 = vpack.c.bf16 %v9948_v24, %v9948_v24 }
0x2139   :  { %18014 = vmatmul.mubr.bf16.vlgmr.msra.gmra.mrb[96].mxu0 %v9949_v52 }
0x213a   :  { %18539 = vmatpush3.bf16.msra.mxu0 %v22759_v39  ;;  %18060 = vmatprep.mubr.msk.f32.mxu0 %vm22002_vm1, %v23603_v60 }
0x213b   :  { %18540 = vmatprep.subr.bf16.mxu0 %v22001_v59 }
0x213e   :  { %18542 = vmatpush3.bf16.msra.mxu0 %v22762_v41 }
0x213f   :  { %18543 = vmatprep.subr.bf16.mxu0 %v22001_v59 }
0x220c   :  { %v10055_v31 = vpop.f32.mrb[96].mxu0 }
0x220d   :  { %v10056_v32 = vadd.f32 %v16186_v55, %v10055_v31  ;;  %v18015_v33 = vpop.f32.mrb[97].mxu0 }
0x220e   :  { %v10058_v58 = vpop.f32.mrb[98].mxu0 }
0x220f   :  { %v18016_v34 = vpop.f32.mrb[99].mxu0  ;;  %18050 = vmatmul.mubr.f32.vlgmr.msra.gmra.mrb[92].mxu1 %v10056_v32 }
0x2210   :  { %18569 = vmatpush3.bf16.msra.mxu1 %v22759_v39  ;;  %18106 = vmatprep.mubr.msk.f32.mxu1 %vm22002_vm1, %v23603_v60 }
0x2211   :  { %18570 = vmatprep.subr.bf16.mxu1 %v22001_v59 }
0x2214   :  { %18572 = vmatpush3.bf16.msra.mxu1 %v22762_v41 }
0x2215   :  { %17229 = vmatprep.subr.bf16.mxu1 %v20388_v46 }
0x22e2   :  { %v10127_v36 = vpop.f32.mrb[92].mxu1 }
0x22e3   :  { %v10131_v37 = vmul.f32 0.25, %v10127_v36  ;;  %v18051_v38 = vpop.f32.mrb[93].mxu1 }
0x22e4   :  { %v16221_v38 = vld [vmem:[#allocation21] ss:$0 sm:$0xff] }
0x22e5   :  { %18061 = vmatmul.mubr.msk.f32.vlgmr.msra.gmra.mrb[100].mxu0 %vm8741_vm2, %v10131_v37 }
0x22e6   :  { %18545 = vmatpush3.bf16.msra.mxu0 %v22707_v61  ;;  %18095 = vmatprep.mubr.msk.f32.mxu0 %vm22002_vm1, %v23603_v60 }
0x22e7   :  { %18546 = vmatprep.subr.bf16.mxu0 %v22001_v59 }
0x22ea   :  { %18548 = vmatpush3.bf16.msra.mxu0 %v22712_v63 }
0x22eb   :  { %18549 = vmatprep.subr.bf16.mxu0 %v22001_v59 }
0x22ee   :  { %18551 = vmatpush3.bf16.msra.mxu0 %v22718_v26 }
0x22ef   :  { %18552 = vmatprep.subr.bf16.mxu0 %v22001_v59 }
0x22f2   :  { %18554 = vmatpush3.bf16.msra.mxu0 %v22724_v3 }
0x22f3   :  { %18555 = vmatprep.subr.bf16.mxu0 %v22001_v59 }
0x22f6   :  { %18557 = vmatpush3.bf16.msra.mxu0 %v22730_v6 }
0x22f7   :  { %18558 = vmatprep.subr.bf16.mxu0 %v22001_v59 }
0x22fa   :  { %18560 = vmatpush3.bf16.msra.mxu0 %v22736_v29 }
0x22fb   :  { %18561 = vmatprep.subr.bf16.mxu0 %v22001_v59 }
0x22fe   :  { %18563 = vmatpush3.bf16.msra.mxu0 %v22745_v30 }
0x22ff   :  { %18564 = vmatprep.subr.bf16.mxu0 %v22001_v59 }
0x2302   :  { %18566 = vmatpush3.bf16.msra.mxu0 %v22751_v35 }
0x2303   :  { %18109 = vmatprep.subr.bf16.mxu0 %v23603_v60 }
0x23b8   :  { %v10201_v40 = vpop.f32.mrb[100].mxu0 }
0x23b9   :  { %v22979_v42 = vsub.f32 %v10056_v32, %v10201_v40  ;;  %v18062_v44 = vpop.f32.mrb[101].mxu0 }
0x23bb   :  { %v10206_v45 = vmul.f32 %v22979_v42, %v22979_v42 }
0x23bd   :  { %18096 = vmatmul.mubr.f32.vlgmr.msra.gmra.mrb[102].mxu0 %v10206_v45 }
0x23be   :  { %18125 = vmatprep.mubr.msk.bf16.mxu0 %vm22002_vm1, %v23603_v60  ;;  %18110 = vmatpush3.bf16.msra.mxu0 %v20404_v47 }
0x23bf   :  { %18111 = vmatprep.subr.bf16.mxu0 %v23603_v60 }
0x23c2   :  { %18112 = vmatpush3.bf16.msra.mxu0 %v20405_v49 }
0x23c3   :  { %18113 = vmatprep.subr.bf16.mxu0 %v23603_v60 }
0x23c6   :  { %18114 = vmatpush3.bf16.msra.mxu0 %v20406_v50 }
0x23c7   :  { %18115 = vmatprep.subr.bf16.mxu0 %v23603_v60 }
0x2490   :  { %v10273_v54 = vpop.f32.mrb[102].mxu0 }
0x2491   :  { %v10277_v57 = vmul.f32 0.25, %v10273_v54  ;;  %v18097_v23 = vpop.f32.mrb[103].mxu0 }
0x2493   :  { %18107 = vmatmul.mubr.msk.f32.vlgmr.msra.gmra.mrb[94].mxu1 %vm8741_vm2, %v10277_v57 }
0x2494   :  { %17230 = vmatpush3.bf16.msra.mxu1 %v20389_v56  ;;  %10533 = vmatprep.mubr.bf16.mxu1 %v22629_v12  ;;  %v20401_v12 = vld [vmem:[#allocation27 + $0x30] sm:$0xff]  }
0x2495   :  { %17231 = vmatprep.subr.bf16.mxu1 %v20390_v48 }
0x2498   :  { %17232 = vmatpush3.bf16.msra.mxu1 %v20391_v27  ;;  %v20412_v27 = vld [vmem:[#allocation24] sm:$0xff]  }
0x2499   :  { %17233 = vmatprep.subr.bf16.mxu1 %v20392_v14 }
0x249c   :  { %17234 = vmatpush3.bf16.msra.mxu1 %v20393_v18 }
0x249d   :  { %17235 = vmatprep.subr.bf16.mxu1 %v20394_v62  ;;  %v20413_v62 = vld [vmem:[#allocation24 + $0x8] sm:$0xff]  }
0x24a0   :  { %17236 = vmatpush3.bf16.msra.mxu1 %v20395_v0  ;;  %v20414_v0 = vld [vmem:[#allocation24 + $0x10] sm:$0xff]  }
0x24a1   :  { %17237 = vmatprep.subr.bf16.mxu1 %v20396_v53  ;;  %v20415_v53 = vld [vmem:[#allocation24 + $0x18] sm:$0xff]  }
0x24a4   :  { %17238 = vmatpush3.bf16.msra.mxu1 %v20397_v1  ;;  %v20416_v1 = vld [vmem:[#allocation24 + $0x20] sm:$0xff]  }
0x24a5   :  { %17239 = vmatprep.subr.bf16.mxu1 %v20398_v2  ;;  %v20417_v2 = vld [vmem:[#allocation24 + $0x28] sm:$0xff]  }
0x24a8   :  { %17240 = vmatpush3.bf16.msra.mxu1 %v20399_v4  ;;  %v20418_v4 = vld [vmem:[#allocation24 + $0x30] sm:$0xff]  }
0x24a9   :  { %17241 = vmatprep.subr.bf16.mxu1 %v20400_v5  ;;  %v20419_v5 = vld [vmem:[#allocation24 + $0x38] sm:$0xff]  }
0x24ac   :  { %17242 = vmatpush3.bf16.msra.mxu1 %v20401_v12 }
0x24ad   :  { %17243 = vmatprep.subr.bf16.mxu1 %v20402_v7 }
0x24b0   :  { %17244 = vmatpush3.bf16.msra.mxu1 %v20403_v8 }
0x24b1   :  { %18573 = vmatprep.subr.bf16.mxu1 %v22001_v59 }
0x24b3   :  { %10534 = vmatmul.mubr.bf16.vlgmr.msra.gmra.mrb[96].mxu1 %v22633_v28  ;;  %v20407_v28 = vld [vmem:[#allocation25 + $0x18] sm:$0xff]  }
0x24b4   :  { %18575 = vmatpush3.bf16.msra.mxu1 %v22707_v61  ;;  %18161 = vmatprep.mubr.msk.f32.mxu1 %vm22002_vm1, %v23603_v60 }
0x24b5   :  { %18576 = vmatprep.subr.bf16.mxu1 %v22001_v59  ;;  %18116 = vmatpush3.bf16.msra.mxu0 %v20407_v28 }
0x24b6   :  { %18117 = vmatprep.subr.bf16.mxu0 %v23603_v60 }
0x24b8   :  { %18578 = vmatpush3.bf16.msra.mxu1 %v22712_v63 }
0x24b9   :  { %18579 = vmatprep.subr.bf16.mxu1 %v22001_v59  ;;  %18118 = vmatpush3.bf16.msra.mxu0 %v20408_v19 }
0x24ba   :  { %18119 = vmatprep.subr.bf16.mxu0 %v23603_v60 }
0x24bc   :  { %18581 = vmatpush3.bf16.msra.mxu1 %v22718_v26 }
0x24bd   :  { %18582 = vmatprep.subr.bf16.mxu1 %v22001_v59  ;;  %18120 = vmatpush3.bf16.msra.mxu0 %v20409_v9 }
0x24be   :  { %18121 = vmatprep.subr.bf16.mxu0 %v23603_v60 }
0x24c0   :  { %18584 = vmatpush3.bf16.msra.mxu1 %v22724_v3 }
0x24c1   :  { %18585 = vmatprep.subr.bf16.mxu1 %v22001_v59  ;;  %18122 = vmatpush3.bf16.msra.mxu0 %v20410_v10 }
0x24c2   :  { %18123 = vmatprep.subr.bf16.mxu0 %v23603_v60 }
0x24c4   :  { %18587 = vmatpush3.bf16.msra.mxu1 %v22730_v6 }
0x24c5   :  { %18588 = vmatprep.subr.bf16.mxu1 %v22001_v59  ;;  %18124 = vmatpush3.bf16.msra.mxu0 %v20411_v25 }
0x24c6   :  { %18597 = vmatprep.subr.bf16.mxu0 %v22001_v59 }
0x24c8   :  { %18590 = vmatpush3.bf16.msra.mxu1 %v22736_v29 }
0x24c9   :  { %18591 = vmatprep.subr.bf16.mxu1 %v22001_v59 }
0x24cc   :  { %18593 = vmatpush3.bf16.msra.mxu1 %v22745_v30 }
0x24cd   :  { %18594 = vmatprep.subr.bf16.mxu1 %v22001_v59 }
0x24d0   :  { %18596 = vmatpush3.bf16.msra.mxu1 %v22751_v35 }
0x24d1   :  { %18627 = vmatprep.subr.bf16.mxu1 %v22001_v59 }
0x2566   :  { %v10347_v11 = vpop.f32.mrb[94].mxu1 }
0x2567   :  { %v10348_v13 = vadd.f32 1e-05, %v10347_v11  ;;  %v18108_v15 = vpop.f32.mrb[95].mxu1  ;;  %v16224_v11 = vld [vmem:[#allocation22] ss:$0 sm:$0xff] }
0x2569   :  { %20890 = vrsqrt.f32 %v10348_v13 }
0x2573   :  { %v20891_v51 = vpop.eup %20890 }
0x2574   :  { %v10352_v24 = vmul.f32 %v20891_v51, %v22979_v42 }
0x2576   :  { %vm10353_vm6 = vcmp.ge.f32.partialorder %v10352_v24, 0.0  ;;  %v10354_v52 = vmul.f32 0.2, %v10352_v24 }
0x2578   :  { %v10355_v55 = vsel %vm10353_vm6, %v10352_v24, %v10354_v52 }
0x2579   :  { %v10356_v31 = vpack.c.bf16 %v10355_v55, %v10355_v55 }
0x257b   :  { %18126 = vmatmul.mubr.bf16.vlgmr.msra.gmra.mrb[104].mxu0 %v10356_v31 }
0x257c   :  { %18599 = vmatpush3.bf16.msra.mxu0 %v22759_v39  ;;  %18172 = vmatprep.mubr.msk.f32.mxu0 %vm22002_vm1, %v23603_v60 }
0x257d   :  { %18600 = vmatprep.subr.bf16.mxu0 %v22001_v59 }
0x2580   :  { %18602 = vmatpush3.bf16.msra.mxu0 %v22762_v41 }
0x2581   :  { %18603 = vmatprep.subr.bf16.mxu0 %v22001_v59 }
0x2586   :  { %v17245_v32 = vpop.f32.mrb[96].mxu1 }
0x2587   :  { %v17246_v33 = vpop.f32.mrb[97].mxu1 }
0x2588   :  { %v17247_v58 = vadd.f32 %v17246_v33, %v17245_v32  ;;  %v17248_v34 = vpop.f32.mrb[98].mxu1  ;;  %v20429_v33 = vld [vmem:[#allocation34 + $0x260] ss:$16 sps:$4 sm:$0xff]  }
0x2589   :  { %v17249_v36 = vpop.f32.mrb[99].mxu1  ;;  %v20432_v34 = vld [vmem:[#allocation34 + $0x280] ss:$16 sps:$4 sm:$0xff]  }
0x258a   :  { %v20437_v36 = vld [vmem:[#allocation34 + $0x2a4] ss:$16 sps:$4 sm:$0xff]  }
0x264e   :  { %v10623_v37 = vpop.f32.mrb[104].mxu0 }
0x264f   :  { %v10624_v40 = vadd.f32 %v17247_v58, %v10623_v37  ;;  %v18127_v42 = vpop.f32.mrb[105].mxu0  ;;  %v20434_v58 = vld [vmem:[#allocation34 + $0x284] ss:$16 sps:$4 sm:$0xff]   ;;  %v20435_v37 = vld [vmem:[#allocation34 + $0x2a0] ss:$16 sps:$4 sm:$0xff]  }
0x2650   :  { %v10626_v44 = vpop.f32.mrb[106].mxu0  ;;  %v20443_v42 = vld [vmem:[#allocation34 + $0x2e4] ss:$16 sps:$4 sm:$0xff]  }
0x2651   :  { %v10636_v45 = vadd.f32 %v16221_v38, %v10624_v40  ;;  %v18128_v46 = vpop.f32.mrb[107].mxu0  ;;  %v20440_v38 = vld [vmem:[#allocation34 + $0x2c4] ss:$16 sps:$4 sm:$0xff]   ;;  %v20438_v40 = vld [vmem:[#allocation34 + $0x2c0] ss:$16 sps:$4 sm:$0xff]  }
0x2652   :  { %v20441_v44 = vld [vmem:[#allocation34 + $0x2e0] ss:$16 sps:$4 sm:$0xff]  }
0x2653   :  { %18162 = vmatmul.mubr.f32.vlgmr.msra.gmra.mrb[100].mxu1 %v10636_v45  ;;  %v20444_v46 = vld [vmem:[#allocation34 + $0x300] ss:$16 sps:$4 sm:$0xff]  }
0x2654   :  { %18629 = vmatpush3.bf16.msra.mxu1 %v22759_v39  ;;  %18218 = vmatprep.mubr.msk.f32.mxu1 %vm22002_vm1, %v23603_v60 }
0x2655   :  { %18630 = vmatprep.subr.bf16.mxu1 %v22001_v59 }
0x2658   :  { %18632 = vmatpush3.bf16.msra.mxu1 %v22762_v41 }
0x2659   :  { %18221 = vmatprep.subr.bf16.mxu1 %v23603_v60 }
0x2726   :  { %v10703_v47 = vpop.f32.mrb[100].mxu1 }
0x2727   :  { %v10707_v49 = vmul.f32 0.25, %v10703_v47  ;;  %v18163_v50 = vpop.f32.mrb[101].mxu1  ;;  %v20449_v47 = vld [vmem:[#allocation34 + $0x324] ss:$16 sps:$4 sm:$0xff]  }
0x2728   :  { %v20452_v50 = vld [vmem:[#allocation34 + $0x344] ss:$16 sps:$4 sm:$0xff]  }
0x2729   :  { %18173 = vmatmul.mubr.msk.f32.vlgmr.msra.gmra.mrb[108].mxu0 %vm8741_vm2, %v10707_v49  ;;  %v20447_v49 = vld [vmem:[#allocation34 + $0x320] ss:$16 sps:$4 sm:$0xff]  }
0x272a   :  { %18605 = vmatpush3.bf16.msra.mxu0 %v22707_v61  ;;  %18207 = vmatprep.mubr.msk.f32.mxu0 %vm22002_vm1, %v23603_v60 }
0x272b   :  { %18606 = vmatprep.subr.bf16.mxu0 %v22001_v59 }
0x272e   :  { %18608 = vmatpush3.bf16.msra.mxu0 %v22712_v63 }
0x272f   :  { %18609 = vmatprep.subr.bf16.mxu0 %v22001_v59 }
0x2732   :  { %18611 = vmatpush3.bf16.msra.mxu0 %v22718_v26 }
0x2733   :  { %18612 = vmatprep.subr.bf16.mxu0 %v22001_v59 }
0x2736   :  { %18614 = vmatpush3.bf16.msra.mxu0 %v22724_v3 }
0x2737   :  { %18615 = vmatprep.subr.bf16.mxu0 %v22001_v59 }
0x273a   :  { %18617 = vmatpush3.bf16.msra.mxu0 %v22730_v6 }
0x273b   :  { %18618 = vmatprep.subr.bf16.mxu0 %v22001_v59 }
0x273e   :  { %18620 = vmatpush3.bf16.msra.mxu0 %v22736_v29 }
0x273f   :  { %18621 = vmatprep.subr.bf16.mxu0 %v22001_v59 }
0x2742   :  { %18623 = vmatpush3.bf16.msra.mxu0 %v22745_v30 }
0x2743   :  { %18624 = vmatprep.subr.bf16.mxu0 %v22001_v59 }
0x2746   :  { %18626 = vmatpush3.bf16.msra.mxu0 %v22751_v35 }
0x2747   :  { %18633 = vmatprep.subr.bf16.mxu0 %v22001_v59 }
0x27fc   :  { %v10777_v54 = vpop.f32.mrb[108].mxu0 }
0x27fd   :  { %v10781_v56 = vsub.f32 %v10636_v45, %v10777_v54  ;;  %v18174_v57 = vpop.f32.mrb[109].mxu0  ;;  %v20446_v45 = vld [vmem:[#allocation34 + $0x304] ss:$16 sps:$4 sm:$0xff]   ;;  %v20450_v54 = vld [vmem:[#allocation34 + $0x340] ss:$16 sps:$4 sm:$0xff]  }
0x27fe   :  { %v20453_v57 = vld [vmem:[#allocation34 + $0x360] ss:$16 sps:$4 sm:$0xff]  }
0x27ff   :  { %v10782_v23 = vmul.f32 %v10781_v56, %v10781_v56 }
0x2801   :  { %18208 = vmatmul.mubr.f32.vlgmr.msra.gmra.mrb[110].mxu0 %v10782_v23  ;;  %v20458_v23 = vld [vmem:[#allocation34 + $0x384] ss:$16 sps:$4 sm:$0xff]  }
0x2802   :  { %18635 = vmatpush3.bf16.msra.mxu0 %v22707_v61  ;;  %18273 = vmatprep.mubr.msk.f32.mxu0 %vm22002_vm1, %v23603_v60 }
0x2803   :  { %18636 = vmatprep.subr.bf16.mxu0 %v22001_v59 }
0x2806   :  { %18638 = vmatpush3.bf16.msra.mxu0 %v22712_v63 }
0x2807   :  { %18639 = vmatprep.subr.bf16.mxu0 %v22001_v59 }
0x280a   :  { %18641 = vmatpush3.bf16.msra.mxu0 %v22718_v26 }
0x280b   :  { %18642 = vmatprep.subr.bf16.mxu0 %v22001_v59 }
0x280e   :  { %18644 = vmatpush3.bf16.msra.mxu0 %v22724_v3 }
0x280f   :  { %18645 = vmatprep.subr.bf16.mxu0 %v22001_v59 }
0x2812   :  { %18647 = vmatpush3.bf16.msra.mxu0 %v22730_v6 }
0x2813   :  { %18648 = vmatprep.subr.bf16.mxu0 %v22001_v59 }
0x2816   :  { %18650 = vmatpush3.bf16.msra.mxu0 %v22736_v29 }
0x2817   :  { %18651 = vmatprep.subr.bf16.mxu0 %v22001_v59 }
0x281a   :  { %18653 = vmatpush3.bf16.msra.mxu0 %v22745_v30 }
0x281b   :  { %18654 = vmatprep.subr.bf16.mxu0 %v22001_v59 }
0x281e   :  { %18656 = vmatpush3.bf16.msra.mxu0 %v22751_v35 }
0x281f   :  { %18687 = vmatprep.subr.bf16.mxu0 %v22001_v59 }
0x28d4   :  { %v10849_v48 = vpop.f32.mrb[110].mxu0 }
0x28d5   :  { %v10853_v14 = vmul.f32 0.25, %v10849_v48  ;;  %v18209_v18 = vpop.f32.mrb[111].mxu0  ;;  %v20456_v48 = vld [vmem:[#allocation34 + $0x380] ss:$16 sps:$4 sm:$0xff]  }
0x28d6   :  { %v20464_v18 = vld [vmem:[#allocation34 + $0x3c4] ss:$16 sps:$4 sm:$0xff]  }
0x28d7   :  { %18219 = vmatmul.mubr.msk.f32.vlgmr.msra.gmra.mrb[102].mxu1 %vm8741_vm2, %v10853_v14  ;;  %v20459_v14 = vld [vmem:[#allocation34 + $0x3a0] ss:$16 sps:$4 sm:$0xff]  }
0x28d8   :  { %18222 = vmatpush3.bf16.msra.mxu1 %v20412_v27  ;;  %18237 = vmatprep.mubr.msk.bf16.mxu1 %vm22002_vm1, %v23603_v60  ;;  %v20461_v27 = vld [vmem:[#allocation34 + $0x3a4] ss:$16 sps:$4 sm:$0xff]  }
0x28d9   :  { %18223 = vmatprep.subr.bf16.mxu1 %v23603_v60 }
0x28dc   :  { %18224 = vmatpush3.bf16.msra.mxu1 %v20413_v62  ;;  %v20462_v62 = vld [vmem:[#allocation34 + $0x3c0] ss:$16 sps:$4 sm:$0xff]  }
0x28dd   :  { %18225 = vmatprep.subr.bf16.mxu1 %v23603_v60 }
0x28e0   :  { %18226 = vmatpush3.bf16.msra.mxu1 %v20414_v0  ;;  %v20467_v0 = vld [vmem:[#allocation34 + $0x3e4] ss:$16 sps:$4 sm:$0xff]  }
0x28e1   :  { %18227 = vmatprep.subr.bf16.mxu1 %v23603_v60 }
0x28e4   :  { %18228 = vmatpush3.bf16.msra.mxu1 %v20415_v53  ;;  %v20465_v53 = vld [vmem:[#allocation34 + $0x3e0] ss:$16 sps:$4 sm:$0xff]  }
0x28e5   :  { %18229 = vmatprep.subr.bf16.mxu1 %v23603_v60 }
0x28e8   :  { %18230 = vmatpush3.bf16.msra.mxu1 %v20416_v1  ;;  %v20470_v1 = vld [vmem:[#allocation34 + $0x20c] ss:$16 sps:$4 sm:$0xff]  }
0x28e9   :  { %18231 = vmatprep.subr.bf16.mxu1 %v23603_v60 }
0x28ec   :  { %18232 = vmatpush3.bf16.msra.mxu1 %v20417_v2  ;;  %v20468_v2 = vld [vmem:[#allocation34 + $0x208] ss:$16 sps:$4 sm:$0xff]  }
0x28ed   :  { %18233 = vmatprep.subr.bf16.mxu1 %v23603_v60 }
0x28f0   :  { %18234 = vmatpush3.bf16.msra.mxu1 %v20418_v4  ;;  %v20473_v4 = vld [vmem:[#allocation34 + $0x22c] ss:$16 sps:$4 sm:$0xff]  }
0x28f1   :  { %18235 = vmatprep.subr.bf16.mxu1 %v23603_v60 }
0x28f4   :  { %18236 = vmatpush3.bf16.msra.mxu1 %v20419_v5  ;;  %v20471_v5 = vld [vmem:[#allocation34 + $0x228] ss:$16 sps:$4 sm:$0xff]  }
0x28f5   :  { %18657 = vmatprep.subr.bf16.mxu1 %v22001_v59 }
0x29aa   :  { %v10923_v12 = vpop.f32.mrb[102].mxu1 }
0x29ab   :  { %v10924_v7 = vadd.f32 1e-05, %v10923_v12  ;;  %v18220_v8 = vpop.f32.mrb[103].mxu1  ;;  %v20476_v12 = vld [vmem:[#allocation34 + $0x24c] ss:$16 sps:$4 sm:$0xff]  }
0x29ac   :  { %v20479_v8 = vld [vmem:[#allocation34 + $0x26c] ss:$16 sps:$4 sm:$0xff]  }
0x29ad   :  { %20892 = vrsqrt.f32 %v10924_v7  ;;  %v20474_v7 = vld [vmem:[#allocation34 + $0x248] ss:$16 sps:$4 sm:$0xff]  }
0x29b7   :  { %v20893_v28 = vpop.eup %20892 }
0x29b8   :  { %v10928_v19 = vmul.f32 %v20893_v28, %v10781_v56  ;;  %v20455_v56 = vld [vmem:[#allocation34 + $0x364] ss:$16 sps:$4 sm:$0xff]   ;;  %v20477_v28 = vld [vmem:[#allocation34 + $0x268] ss:$16 sps:$4 sm:$0xff]  }
0x29ba   :  { %vm10929_vm7 = vcmp.ge.f32.partialorder %v10928_v19, 0.0  ;;  %v10930_v9 = vmul.f32 0.2, %v10928_v19 }
0x29bc   :  { %v10931_v10 = vsel %vm10929_vm7, %v10928_v19, %v10930_v9  ;;  %v20482_v19 = vld [vmem:[#allocation34 + $0x28c] ss:$16 sps:$4 sm:$0xff]   ;;  %v20480_v9 = vld [vmem:[#allocation34 + $0x288] ss:$16 sps:$4 sm:$0xff]  }
0x29bd   :  { %v10932_v25 = vpack.c.bf16 %v10931_v10, %v10931_v10  ;;  %v20485_v10 = vld [vmem:[#allocation34 + $0x2ac] ss:$16 sps:$4 sm:$0xff]  }
0x29bf   :  { %18238 = vmatmul.mubr.bf16.vlgmr.msra.gmra.mrb[104].mxu1 %v10932_v25  ;;  %v20483_v25 = vld [vmem:[#allocation34 + $0x2a8] ss:$16 sps:$4 sm:$0xff]  }
0x29c0   :  { %18659 = vmatpush3.bf16.msra.mxu1 %v22759_v39  ;;  %18284 = vmatprep.mubr.msk.f32.mxu1 %vm22002_vm1, %v23603_v60 }
0x29c1   :  { %18660 = vmatprep.subr.bf16.mxu1 %v22001_v59 }
0x29c4   :  { %18662 = vmatpush3.bf16.msra.mxu1 %v22762_v41 }
0x29c5   :  { %18663 = vmatprep.subr.bf16.mxu1 %v22001_v59 }
0x2a92   :  { %v11038_v13 = vpop.f32.mrb[104].mxu1 }
0x2a93   :  { %v11039_v15 = vadd.f32 %v16224_v11, %v11038_v13  ;;  %v18239_v51 = vpop.f32.mrb[105].mxu1  ;;  %v20488_v11 = vld [vmem:[#allocation34 + $0x2cc] ss:$16 sps:$4 sm:$0xff]   ;;  %v20486_v13 = vld [vmem:[#allocation34 + $0x2c8] ss:$16 sps:$4 sm:$0xff]  }
0x2a94   :  { %v11041_v24 = vpop.f32.mrb[106].mxu1  ;;  %v20489_v51 = vld [vmem:[#allocation34 + $0x2e8] ss:$16 sps:$4 sm:$0xff]  }
0x2a95   :  { %v18240_v52 = vpop.f32.mrb[107].mxu1  ;;  %18274 = vmatmul.mubr.f32.vlgmr.msra.gmra.mrb[112].mxu0 %v11039_v15  ;;  %v20494_v24 = vld [vmem:[#allocation34 + $0x30c] ss:$16 sps:$4 sm:$0xff]  }
0x2a96   :  { %18689 = vmatpush3.bf16.msra.mxu0 %v22759_v39  ;;  %18330 = vmatprep.mubr.msk.f32.mxu0 %vm22002_vm1, %v23603_v60  ;;  %v20420_v39 = vld [vmem:[#allocation34 + $0x200] ss:$16 sps:$4 sm:$0xff]   ;;  %v20492_v52 = vld [vmem:[#allocation34 + $0x308] ss:$16 sps:$4 sm:$0xff]  }
0x2a97   :  { %18690 = vmatprep.subr.bf16.mxu0 %v22001_v59 }
0x2a9a   :  { %18692 = vmatpush3.bf16.msra.mxu0 %v22762_v41  ;;  %v20425_v41 = vld [vmem:[#allocation34 + $0x224] ss:$16 sps:$4 sm:$0xff]  }
0x2b68   :  { %v11110_v55 = vpop.f32.mrb[112].mxu0 }
0x2b69   :  { %v11114_v31 = vmul.f32 0.25, %v11110_v55  ;;  %v18275_v32 = vpop.f32.mrb[113].mxu0  ;;  %v20497_v55 = vld [vmem:[#allocation34 + $0x32c] ss:$16 sps:$4 sm:$0xff]  }
0x2b6a   :  { %v20500_v32 = vld [vmem:[#allocation34 + $0x34c] ss:$16 sps:$4 sm:$0xff]  }
0x2b6b   :  { %18285 = vmatmul.mubr.msk.f32.vlgmr.msra.gmra.mrb[108].mxu1 %vm8741_vm2, %v11114_v31  ;;  %v20495_v31 = vld [vmem:[#allocation34 + $0x328] ss:$16 sps:$4 sm:$0xff]  }
0x2b6c   :  { %18665 = vmatpush3.bf16.msra.mxu1 %v22707_v61  ;;  %18319 = vmatprep.mubr.msk.f32.mxu1 %vm22002_vm1, %v23603_v60  ;;  %v20422_v61 = vld [vmem:[#allocation34 + $0x204] ss:$16 sps:$4 sm:$0xff]   ;;  %vm15157_vm1 = vcmask 517120  }
0x2b6d   :  { %18666 = vmatprep.subr.bf16.mxu1 %v22001_v59 }
0x2b70   :  { %18668 = vmatpush3.bf16.msra.mxu1 %v22712_v63 }
0x2b71   :  { %18669 = vmatprep.subr.bf16.mxu1 %v22001_v59 }
0x2b74   :  { %18671 = vmatpush3.bf16.msra.mxu1 %v22718_v26 }
0x2b75   :  { %18672 = vmatprep.subr.bf16.mxu1 %v22001_v59 }
0x2b78   :  { %18674 = vmatpush3.bf16.msra.mxu1 %v22724_v3 }
0x2b79   :  { %18675 = vmatprep.subr.bf16.mxu1 %v22001_v59 }
0x2b7c   :  { %18677 = vmatpush3.bf16.msra.mxu1 %v22730_v6 }
0x2b7d   :  { %18678 = vmatprep.subr.bf16.mxu1 %v22001_v59 }
0x2b80   :  { %18680 = vmatpush3.bf16.msra.mxu1 %v22736_v29  ;;  %v20423_v29 = vld [vmem:[#allocation34 + $0x220] ss:$16 sps:$4 sm:$0xff]  }
0x2b81   :  { %18681 = vmatprep.subr.bf16.mxu1 %v22001_v59 }
0x2b84   :  { %18683 = vmatpush3.bf16.msra.mxu1 %v22745_v30  ;;  %v20426_v30 = vld [vmem:[#allocation34 + $0x240] ss:$16 sps:$4 sm:$0xff]  }
0x2b85   :  { %18684 = vmatprep.subr.bf16.mxu1 %v22001_v59  ;;  %v20428_v59 = vld [vmem:[#allocation34 + $0x244] ss:$16 sps:$4 sm:$0xff]  }
0x2b88   :  { %18686 = vmatpush3.bf16.msra.mxu1 %v22751_v35  ;;  %v20431_v35 = vld [vmem:[#allocation34 + $0x264] ss:$16 sps:$4 sm:$0xff]  }
0x2b89   :  { %12181 = vmatprep.subr.bf16.mxu1 %v20422_v61  ;;  %v20498_v61 = vld [vmem:[#allocation34 + $0x348] ss:$16 sps:$4 sm:$0xff]  }
0x2c3e   :  { %v11184_v63 = vpop.f32.mrb[108].mxu1 }
0x2c3f   :  { %v23105_v26 = vsub.f32 %v11039_v15, %v11184_v63  ;;  %v18286_v3 = vpop.f32.mrb[109].mxu1  ;;  %v20491_v15 = vld [vmem:[#allocation34 + $0x2ec] ss:$16 sps:$4 sm:$0xff]  }
0x2c40   :  { %v20503_v63 = vld [vmem:[#allocation34 + $0x36c] ss:$16 sps:$4 sm:$0xff]   ;;  %v20501_v3 = vld [vmem:[#allocation34 + $0x368] ss:$16 sps:$4 sm:$0xff]  }
0x2c41   :  { %v11189_v6 = vmul.f32 %v23105_v26, %v23105_v26 }
0x2c43   :  { %18320 = vmatmul.mubr.f32.vlgmr.msra.gmra.mrb[110].mxu1 %v11189_v6  ;;  %v20504_v6 = vld [vmem:[#allocation34 + $0x388] ss:$16 sps:$4 sm:$0xff]  }
0x2c44   :  { %12182 = vmatpush1.bf16.msra.mxu1 %v20420_v39  ;;  %12213 = vmatprep.mubr.bf16.mxu1 %v22557_v17  ;;  %v20506_v39 = vld [vmem:[#allocation34 + $0x38c] ss:$16 sps:$4 sm:$0xff]  }
0x2c45   :  { %12183 = vmatprep.subr.bf16.mxu1 %v20425_v41  ;;  %v20509_v41 = vld [vmem:[#allocation34 + $0x3ac] ss:$16 sps:$4 sm:$0xff]  }
0x2c48   :  { %12184 = vmatpush1.bf16.msra.mxu1 %v20423_v29  ;;  %v20507_v29 = vld [vmem:[#allocation34 + $0x3a8] ss:$16 sps:$4 sm:$0xff]  }
0x2c49   :  { %12185 = vmatprep.subr.bf16.mxu1 %v20428_v59  ;;  %v20512_v59 = vld [vmem:[#allocation34 + $0x3cc] ss:$16 sps:$4 sm:$0xff]  }
0x2c4c   :  { %12186 = vmatpush1.bf16.msra.mxu1 %v20426_v30  ;;  %v20510_v30 = vld [vmem:[#allocation34 + $0x3c8] ss:$16 sps:$4 sm:$0xff]  }
0x2c4d   :  { %12187 = vmatprep.subr.bf16.mxu1 %v20431_v35  ;;  %v20515_v35 = vld [vmem:[#allocation34 + $0x3ec] ss:$16 sps:$4 sm:$0xff]  }
0x2c50   :  { %12188 = vmatpush1.bf16.msra.mxu1 %v20429_v33  ;;  %v20513_v33 = vld [vmem:[#allocation34 + $0x3e8] ss:$16 sps:$4 sm:$0xff]  }
0x2c51   :  { %12189 = vmatprep.subr.bf16.mxu1 %v20434_v58 }
0x2c54   :  { %12190 = vmatpush1.bf16.msra.mxu1 %v20432_v34  ;;  %v20516_v34 = vld [vmem:[#allocation34] ss:$16 sps:$4 sm:$0xff]  }
0x2c55   :  { %12191 = vmatprep.subr.bf16.mxu1 %v20437_v36 }
0x2c58   :  { %12192 = vmatpush1.bf16.msra.mxu1 %v20435_v37 }
0x2c59   :  { %12193 = vmatprep.subr.bf16.mxu1 %v20440_v38  ;;  %v20521_v38 = vld [vmem:[#allocation34 + $0x24] ss:$16 sps:$4 sm:$0xff]  }
0x2c5c   :  { %12194 = vmatpush1.bf16.msra.mxu1 %v20438_v40  ;;  %v20615_v40 = vld [vmem:[#allocation33 + $0x8] ss:$16 sps:$4 sm:$0xff]  }
0x2c5d   :  { %12195 = vmatprep.subr.bf16.mxu1 %v20443_v42  ;;  %v20519_v42 = vld [vmem:[#allocation34 + $0x20] ss:$16 sps:$4 sm:$0xff]  }
0x2c60   :  { %12196 = vmatpush1.bf16.msra.mxu1 %v20441_v44  ;;  %v20617_v44 = vld [vmem:[#allocation33 + $0xc] ss:$16 sps:$4 sm:$0xff]  }
0x2c61   :  { %12197 = vmatprep.subr.bf16.mxu1 %v20446_v45  ;;  %v20524_v45 = vld [vmem:[#allocation34 + $0x44] ss:$16 sps:$4 sm:$0xff]  }
0x2c64   :  { %12198 = vmatpush1.bf16.msra.mxu1 %v20444_v46  ;;  %v20623_v46 = vld [vmem:[#allocation33 + $0x2c] ss:$16 sps:$4 sm:$0xff]  }
0x2c65   :  { %12199 = vmatprep.subr.bf16.mxu1 %v20449_v47  ;;  %v20522_v47 = vld [vmem:[#allocation34 + $0x40] ss:$16 sps:$4 sm:$0xff]  }
0x2c68   :  { %12200 = vmatpush1.bf16.msra.mxu1 %v20447_v49  ;;  %v20527_v49 = vld [vmem:[#allocation34 + $0x64] ss:$16 sps:$4 sm:$0xff]  }
0x2c69   :  { %12201 = vmatprep.subr.bf16.mxu1 %v20452_v50  ;;  %v20629_v50 = vld [vmem:[#allocation33 + $0x4c] ss:$16 sps:$4 sm:$0xff]  }
0x2c6c   :  { %12202 = vmatpush1.bf16.msra.mxu1 %v20450_v54  ;;  %v20627_v54 = vld [vmem:[#allocation33 + $0x48] ss:$16 sps:$4 sm:$0xff]  }
0x2c6d   :  { %12203 = vmatprep.subr.bf16.mxu1 %v20455_v56  ;;  %v20525_v56 = vld [vmem:[#allocation34 + $0x60] ss:$16 sps:$4 sm:$0xff]  }
0x2c70   :  { %12204 = vmatpush1.bf16.msra.mxu1 %v20453_v57  ;;  %v20530_v57 = vld [vmem:[#allocation34 + $0x84] ss:$16 sps:$4 sm:$0xff]  }
0x2c71   :  { %12205 = vmatprep.subr.bf16.mxu1 %v20458_v23  ;;  %v20528_v23 = vld [vmem:[#allocation34 + $0x80] ss:$16 sps:$4 sm:$0xff]  }
0x2c74   :  { %12206 = vmatpush1.bf16.msra.mxu1 %v20456_v48  ;;  %v20533_v48 = vld [vmem:[#allocation34 + $0xa4] ss:$16 sps:$4 sm:$0xff]  }
0x2c75   :  { %12207 = vmatprep.subr.bf16.mxu1 %v20461_v27  ;;  %v20531_v27 = vld [vmem:[#allocation34 + $0xa0] ss:$16 sps:$4 sm:$0xff]  }
0x2c78   :  { %12208 = vmatpush1.bf16.msra.mxu1 %v20459_v14  ;;  %v20536_v14 = vld [vmem:[#allocation34 + $0xc4] ss:$16 sps:$4 sm:$0xff]  }
0x2c79   :  { %12209 = vmatprep.subr.bf16.mxu1 %v20464_v18  ;;  %v20534_v18 = vld [vmem:[#allocation34 + $0xc0] ss:$16 sps:$4 sm:$0xff]  }
0x2c7c   :  { %12210 = vmatpush1.bf16.msra.mxu1 %v20462_v62  ;;  %v20539_v62 = vld [vmem:[#allocation34 + $0xe4] ss:$16 sps:$4 sm:$0xff]  }
0x2c7d   :  { %12211 = vmatprep.subr.bf16.mxu1 %v20467_v0  ;;  %v20537_v0 = vld [vmem:[#allocation34 + $0xe0] ss:$16 sps:$4 sm:$0xff]  }
0x2c80   :  { %12212 = vmatpush1.bf16.msra.mxu1 %v20465_v53  ;;  %v20542_v53 = vld [vmem:[#allocation34 + $0x104] ss:$16 sps:$4 sm:$0xff]  }
0x2c81   :  { %12263 = vmatprep.subr.bf16.mxu1 %v20470_v1  ;;  %v20540_v1 = vld [vmem:[#allocation34 + $0x100] ss:$16 sps:$4 sm:$0xff]  }
0x2c83   :  { %12214 = vmatmul.mubr.bf16.vlgmr.msra.gmra.mrb[112].mxu1 %v22561_v21 }
0x2c84   :  { %12264 = vmatpush1.bf16.msra.mxu1 %v20468_v2  ;;  %12295 = vmatprep.mubr.bf16.mxu1 %v22557_v17  ;;  %v20518_v17 = vld [vmem:[#allocation34 + $0x4] ss:$16 sps:$4 sm:$0xff]  }
0x2c85   :  { %12265 = vmatprep.subr.bf16.mxu1 %v20473_v4  ;;  %12140 = vmatprep.subr.bf16.mxu0 %v20518_v17  ;;  %v20545_v2 = vld [vmem:[#allocation34 + $0x124] ss:$16 sps:$4 sm:$0xff]   ;;  %v20543_v4 = vld [vmem:[#allocation34 + $0x120] ss:$16 sps:$4 sm:$0xff]  }
0x2c86   :  { %v20563_v17 = vld [vmem:[#allocation34 + $0x1e4] ss:$16 sps:$4 sm:$0xff]  }
0x2c88   :  { %12266 = vmatpush1.bf16.msra.mxu1 %v20471_v5  ;;  %v20548_v5 = vld [vmem:[#allocation34 + $0x144] ss:$16 sps:$4 sm:$0xff]  }
0x2c89   :  { %12267 = vmatprep.subr.bf16.mxu1 %v20476_v12  ;;  %v20546_v12 = vld [vmem:[#allocation34 + $0x140] ss:$16 sps:$4 sm:$0xff]  }
0x2c8c   :  { %12268 = vmatpush1.bf16.msra.mxu1 %v20474_v7  ;;  %v20551_v7 = vld [vmem:[#allocation34 + $0x164] ss:$16 sps:$4 sm:$0xff]  }
0x2c8d   :  { %12269 = vmatprep.subr.bf16.mxu1 %v20479_v8  ;;  %v20549_v8 = vld [vmem:[#allocation34 + $0x160] ss:$16 sps:$4 sm:$0xff]  }
0x2c90   :  { %12270 = vmatpush1.bf16.msra.mxu1 %v20477_v28  ;;  %v20554_v28 = vld [vmem:[#allocation34 + $0x184] ss:$16 sps:$4 sm:$0xff]  }
0x2c91   :  { %12271 = vmatprep.subr.bf16.mxu1 %v20482_v19  ;;  %v20552_v19 = vld [vmem:[#allocation34 + $0x180] ss:$16 sps:$4 sm:$0xff]  }
0x2c94   :  { %12272 = vmatpush1.bf16.msra.mxu1 %v20480_v9  ;;  %v20557_v9 = vld [vmem:[#allocation34 + $0x1a4] ss:$16 sps:$4 sm:$0xff]  }
0x2c95   :  { %12273 = vmatprep.subr.bf16.mxu1 %v20485_v10  ;;  %v20555_v10 = vld [vmem:[#allocation34 + $0x1a0] ss:$16 sps:$4 sm:$0xff]  }
0x2c98   :  { %12274 = vmatpush1.bf16.msra.mxu1 %v20483_v25  ;;  %v20560_v25 = vld [vmem:[#allocation34 + $0x1c4] ss:$16 sps:$4 sm:$0xff]  }
0x2c99   :  { %12275 = vmatprep.subr.bf16.mxu1 %v20488_v11  ;;  %v20558_v11 = vld [vmem:[#allocation34 + $0x1c0] ss:$16 sps:$4 sm:$0xff]  }
0x2c9c   :  { %12276 = vmatpush1.bf16.msra.mxu1 %v20486_v13  ;;  %v20561_v13 = vld [vmem:[#allocation34 + $0x1e0] ss:$16 sps:$4 sm:$0xff]  }
0x2c9d   :  { %12277 = vmatprep.subr.bf16.mxu1 %v20491_v15  ;;  %v20566_v15 = vld [vmem:[#allocation34 + $0xc] ss:$16 sps:$4 sm:$0xff]  }
0x2ca0   :  { %12278 = vmatpush1.bf16.msra.mxu1 %v20489_v51 }
0x2ca1   :  { %12279 = vmatprep.subr.bf16.mxu1 %v20494_v24  ;;  %v20564_v24 = vld [vmem:[#allocation34 + $0x8] ss:$16 sps:$4 sm:$0xff]  }
0x2ca4   :  { %12280 = vmatpush1.bf16.msra.mxu1 %v20492_v52 }
0x2ca5   :  { %12281 = vmatprep.subr.bf16.mxu1 %v20497_v55  ;;  %v20569_v55 = vld [vmem:[#allocation34 + $0x2c] ss:$16 sps:$4 sm:$0xff]  }
0x2ca8   :  { %12282 = vmatpush1.bf16.msra.mxu1 %v20495_v31 }
0x2ca9   :  { %12283 = vmatprep.subr.bf16.mxu1 %v20500_v32 }
0x2cac   :  { %12284 = vmatpush1.bf16.msra.mxu1 %v20498_v61  ;;  %v20567_v61 = vld [vmem:[#allocation34 + $0x28] ss:$16 sps:$4 sm:$0xff]  }
0x2cad   :  { %12285 = vmatprep.subr.bf16.mxu1 %v20503_v63  ;;  %v20572_v63 = vld [vmem:[#allocation34 + $0x4c] ss:$16 sps:$4 sm:$0xff]  }
0x2cb0   :  { %12286 = vmatpush1.bf16.msra.mxu1 %v20501_v3  ;;  %v20570_v3 = vld [vmem:[#allocation34 + $0x48] ss:$16 sps:$4 sm:$0xff]  }
0x2cb1   :  { %12287 = vmatprep.subr.bf16.mxu1 %v20506_v39  ;;  %v20575_v39 = vld [vmem:[#allocation34 + $0x6c] ss:$16 sps:$4 sm:$0xff]  }
0x2cb4   :  { %12288 = vmatpush1.bf16.msra.mxu1 %v20504_v6  ;;  %v20573_v6 = vld [vmem:[#allocation34 + $0x68] ss:$16 sps:$4 sm:$0xff]  }
0x2cb5   :  { %12289 = vmatprep.subr.bf16.mxu1 %v20509_v41  ;;  %v20578_v41 = vld [vmem:[#allocation34 + $0x8c] ss:$16 sps:$4 sm:$0xff]  }
0x2cb8   :  { %12290 = vmatpush1.bf16.msra.mxu1 %v20507_v29  ;;  %v20576_v29 = vld [vmem:[#allocation34 + $0x88] ss:$16 sps:$4 sm:$0xff]  }
0x2cb9   :  { %12291 = vmatprep.subr.bf16.mxu1 %v20512_v59  ;;  %v20581_v59 = vld [vmem:[#allocation34 + $0xac] ss:$16 sps:$4 sm:$0xff]  }
0x2cbc   :  { %12292 = vmatpush1.bf16.msra.mxu1 %v20510_v30  ;;  %v20579_v30 = vld [vmem:[#allocation34 + $0xa8] ss:$16 sps:$4 sm:$0xff]  }
0x2cbd   :  { %12293 = vmatprep.subr.bf16.mxu1 %v20515_v35  ;;  %v20584_v35 = vld [vmem:[#allocation34 + $0xcc] ss:$16 sps:$4 sm:$0xff]  }
0x2cc0   :  { %12294 = vmatpush1.bf16.msra.mxu1 %v20513_v33  ;;  %v20633_v33 = vld [vmem:[#allocation33 + $0x68] ss:$16 sps:$4 sm:$0xff]  }
0x2cc1   :  { %12505 = vmatprep.subr.bf16.mxu1 %v20617_v44  ;;  %v20645_v44 = vld [vmem:[#allocation33 + $0xa8] ss:$16 sps:$4 sm:$0xff]  }
0x2cc3   :  { %12296 = vmatmul.mubr.bf16.vlgmr.msra.gmra.mrb[116].mxu1 %v22561_v21  ;;  %v20621_v21 = vld [vmem:[#allocation33 + $0x28] ss:$16 sps:$4 sm:$0xff]  }
0x2cc4   :  { %12537 = vmatprep.mubr.bf16.mxu1 %v22000_v22  ;;  %12506 = vmatpush1.bf16.msra.mxu1 %v20615_v40  ;;  %v20590_v40 = vld [vmem:[#allocation34 + $0x10c] ss:$16 sps:$4 sm:$0xff]  }
0x2cc5   :  { %12507 = vmatprep.subr.bf16.mxu1 %v20623_v46  ;;  %v20593_v46 = vld [vmem:[#allocation34 + $0x12c] ss:$16 sps:$4 sm:$0xff]  }
0x2cc8   :  { %12508 = vmatpush1.bf16.msra.mxu1 %v20621_v21  ;;  %v20653_v21 = vld [vmem:[#allocation33 + $0xcc] ss:$16 sps:$4 sm:$0xff]  }
0x2cc9   :  { %12509 = vmatprep.subr.bf16.mxu1 %v20629_v50  ;;  %v20596_v50 = vld [vmem:[#allocation34 + $0x14c] ss:$16 sps:$4 sm:$0xff]  }
0x2ccc   :  { %12510 = vmatpush1.bf16.msra.mxu1 %v20627_v54  ;;  %v20657_v54 = vld [vmem:[#allocation33 + $0xe8] ss:$16 sps:$4 sm:$0xff]  }
0x2d16   :  { %v11256_v58 = vpop.f32.mrb[110].mxu1 }
0x2d17   :  { %v11260_v36 = vmul.f32 0.25, %v11256_v58  ;;  %v18321_v37 = vpop.f32.mrb[111].mxu1  ;;  %v20582_v58 = vld [vmem:[#allocation34 + $0xc8] ss:$16 sps:$4 sm:$0xff]  }
0x2d18   :  { %v20639_v37 = vld [vmem:[#allocation33 + $0x88] ss:$16 sps:$4 sm:$0xff]  }
0x2d19   :  { %18331 = vmatmul.mubr.msk.f32.vlgmr.msra.gmra.mrb[114].mxu0 %vm8741_vm2, %v11260_v36  ;;  %v20641_v36 = vld [vmem:[#allocation33 + $0x8c] ss:$16 sps:$4 sm:$0xff]  }
0x2d1a   :  { %12141 = vmatpush1.bf16.msra.mxu0 %v20516_v34  ;;  %12172 = vmatprep.mubr.bf16.mxu0 %v22555_v16  ;;  %v20587_v34 = vld [vmem:[#allocation34 + $0xec] ss:$16 sps:$4 sm:$0xff]  }
0x2d1b   :  { %12142 = vmatprep.subr.bf16.mxu0 %v20521_v38  ;;  %v20585_v38 = vld [vmem:[#allocation34 + $0xe8] ss:$16 sps:$4 sm:$0xff]  }
0x2d1e   :  { %12143 = vmatpush1.bf16.msra.mxu0 %v20519_v42  ;;  %v20647_v42 = vld [vmem:[#allocation33 + $0xac] ss:$16 sps:$4 sm:$0xff]  }
0x2d1f   :  { %12144 = vmatprep.subr.bf16.mxu0 %v20524_v45  ;;  %v20588_v45 = vld [vmem:[#allocation34 + $0x108] ss:$16 sps:$4 sm:$0xff]  }
0x2d22   :  { %12145 = vmatpush1.bf16.msra.mxu0 %v20522_v47  ;;  %v20651_v47 = vld [vmem:[#allocation33 + $0xc8] ss:$16 sps:$4 sm:$0xff]  }
0x2d23   :  { %12146 = vmatprep.subr.bf16.mxu0 %v20527_v49  ;;  %v20591_v49 = vld [vmem:[#allocation34 + $0x128] ss:$16 sps:$4 sm:$0xff]  }
0x2d26   :  { %12147 = vmatpush1.bf16.msra.mxu0 %v20525_v56  ;;  %v20659_v56 = vld [vmem:[#allocation33 + $0xec] ss:$16 sps:$4 sm:$0xff]  }
0x2d27   :  { %12148 = vmatprep.subr.bf16.mxu0 %v20530_v57  ;;  %v20594_v57 = vld [vmem:[#allocation34 + $0x148] ss:$16 sps:$4 sm:$0xff]  }
0x2d2a   :  { %12149 = vmatpush1.bf16.msra.mxu0 %v20528_v23  ;;  %v20599_v23 = vld [vmem:[#allocation34 + $0x16c] ss:$16 sps:$4 sm:$0xff]  }
0x2d2b   :  { %12150 = vmatprep.subr.bf16.mxu0 %v20533_v48  ;;  %v20597_v48 = vld [vmem:[#allocation34 + $0x168] ss:$16 sps:$4 sm:$0xff]  }
0x2d2e   :  { %12151 = vmatpush1.bf16.msra.mxu0 %v20531_v27  ;;  %v20602_v27 = vld [vmem:[#allocation34 + $0x18c] ss:$16 sps:$4 sm:$0xff]  }
0x2d2f   :  { %12152 = vmatprep.subr.bf16.mxu0 %v20536_v14  ;;  %v20600_v14 = vld [vmem:[#allocation34 + $0x188] ss:$16 sps:$4 sm:$0xff]  }
0x2d32   :  { %12153 = vmatpush1.bf16.msra.mxu0 %v20534_v18  ;;  %v20605_v18 = vld [vmem:[#allocation34 + $0x1ac] ss:$16 sps:$4 sm:$0xff]  }
0x2d33   :  { %12154 = vmatprep.subr.bf16.mxu0 %v20539_v62  ;;  %v20603_v62 = vld [vmem:[#allocation34 + $0x1a8] ss:$16 sps:$4 sm:$0xff]  }
0x2d36   :  { %12155 = vmatpush1.bf16.msra.mxu0 %v20537_v0  ;;  %v20608_v0 = vld [vmem:[#allocation34 + $0x1cc] ss:$16 sps:$4 sm:$0xff]  }
0x2d37   :  { %12156 = vmatprep.subr.bf16.mxu0 %v20542_v53  ;;  %v20606_v53 = vld [vmem:[#allocation34 + $0x1c8] ss:$16 sps:$4 sm:$0xff]  }
0x2d3a   :  { %12157 = vmatpush1.bf16.msra.mxu0 %v20540_v1  ;;  %v20611_v1 = vld [vmem:[#allocation34 + $0x1ec] ss:$16 sps:$4 sm:$0xff]  }
0x2d3b   :  { %12158 = vmatprep.subr.bf16.mxu0 %v20545_v2  ;;  %v20609_v2 = vld [vmem:[#allocation34 + $0x1e8] ss:$16 sps:$4 sm:$0xff]  }
0x2d3e   :  { %12159 = vmatpush1.bf16.msra.mxu0 %v20543_v4  ;;  %v20614_v4 = vld [vmem:[#allocation33 + $0x4] ss:$16 sps:$4 sm:$0xff]  }
0x2d3f   :  { %12160 = vmatprep.subr.bf16.mxu0 %v20548_v5 }
0x2d42   :  { %12161 = vmatpush1.bf16.msra.mxu0 %v20546_v12  ;;  %v20612_v12 = vld [vmem:[#allocation33] ss:$16 sps:$4 sm:$0xff]  }
0x2d43   :  { %12162 = vmatprep.subr.bf16.mxu0 %v20551_v7 }
0x2d46   :  { %12163 = vmatpush1.bf16.msra.mxu0 %v20549_v8  ;;  %v20620_v8 = vld [vmem:[#allocation33 + $0x24] ss:$16 sps:$4 sm:$0xff]  }
0x2d47   :  { %12164 = vmatprep.subr.bf16.mxu0 %v20554_v28 }
0x2d4a   :  { %12165 = vmatpush1.bf16.msra.mxu0 %v20552_v19 }
0x2d4b   :  { %12166 = vmatprep.subr.bf16.mxu0 %v20557_v9  ;;  %v20618_v9 = vld [vmem:[#allocation33 + $0x20] ss:$16 sps:$4 sm:$0xff]  }
0x2d4e   :  { %12167 = vmatpush1.bf16.msra.mxu0 %v20555_v10  ;;  %v20626_v10 = vld [vmem:[#allocation33 + $0x44] ss:$16 sps:$4 sm:$0xff]  }
0x2d4f   :  { %12168 = vmatprep.subr.bf16.mxu0 %v20560_v25  ;;  %v20624_v25 = vld [vmem:[#allocation33 + $0x40] ss:$16 sps:$4 sm:$0xff]  }
0x2d52   :  { %12169 = vmatpush1.bf16.msra.mxu0 %v20558_v11  ;;  %v20632_v11 = vld [vmem:[#allocation33 + $0x64] ss:$16 sps:$4 sm:$0xff]  }
0x2d53   :  { %12170 = vmatprep.subr.bf16.mxu0 %v20563_v17  ;;  %v20630_v17 = vld [vmem:[#allocation33 + $0x60] ss:$16 sps:$4 sm:$0xff]  }
0x2d56   :  { %12171 = vmatpush1.bf16.msra.mxu0 %v20561_v13  ;;  %v23116_v51 = vpop.f32.mrb[112].mxu1  ;;  %v20638_v13 = vld [vmem:[#allocation33 + $0x84] ss:$16 sps:$4 sm:$0xff]  }
0x2d57   :  { %v23118_v52 = vpop.f32.mrb[113].mxu1  ;;  %12222 = vmatprep.subr.bf16.mxu0 %v20566_v15  ;;  %v20636_v15 = vld [vmem:[#allocation33 + $0x80] ss:$16 sps:$4 sm:$0xff]  }
0x2d58   :  { %v12219_v31 = vpop.f32.mrb[114].mxu1 }
0x2d59   :  { %12173 = vmatmul.mubr.bf16.vlgmr.msra.gmra.mrb[116].mxu0 %v22559_v20  ;;  %v12220_v32 = vpop.f32.mrb[115].mxu1  ;;  %v20656_v31 = vld [vmem:[#allocation33 + $0xe4] ss:$16 sps:$4 sm:$0xff]  }
0x2d5a   :  { %12223 = vmatpush1.bf16.msra.mxu0 %v20564_v24  ;;  %12254 = vmatprep.mubr.bf16.mxu0 %v22555_v16  ;;  %v20635_v16 = vld [vmem:[#allocation33 + $0x6c] ss:$16 sps:$4 sm:$0xff]   ;;  %v20644_v24 = vld [vmem:[#allocation33 + $0xa4] ss:$16 sps:$4 sm:$0xff]   ;;  %v20654_v32 = vld [vmem:[#allocation33 + $0xe0] ss:$16 sps:$4 sm:$0xff]  }
0x2d5b   :  { %12224 = vmatprep.subr.bf16.mxu0 %v20569_v55  ;;  %12511 = vmatprep.subr.bf16.mxu1 %v20635_v16  ;;  %v20648_v55 = vld [vmem:[#allocation33 + $0xc0] ss:$16 sps:$4 sm:$0xff]  }
0x2d5c   :  { %12512 = vmatpush1.bf16.msra.mxu1 %v20633_v33  ;;  %v12572_v33 = vld [vmem:[%s23664_s17] sm:$0xff] }
0x2d5d   :  { %12513 = vmatprep.subr.bf16.mxu1 %v20641_v36  ;;  %v12605_v36 = vld [vmem:[%s23664_s17 + $0x108] sm:$0xff] }
0x2d5e   :  { %12225 = vmatpush1.bf16.msra.mxu0 %v20567_v61 }
0x2d5f   :  { %12226 = vmatprep.subr.bf16.mxu0 %v20572_v63 }
0x2d60   :  { %12514 = vmatpush1.bf16.msra.mxu1 %v20639_v37  ;;  %v12590_v37 = vld [vmem:[%s23664_s17 + $0x90] sm:$0xff] }
0x2d61   :  { %12515 = vmatprep.subr.bf16.mxu1 %v20647_v42  ;;  %v12622_v42 = vld [vmem:[%s23664_s17 + $0x190] sm:$0xff] }
0x2d62   :  { %12227 = vmatpush1.bf16.msra.mxu0 %v20570_v3 }
0x2d63   :  { %12228 = vmatprep.subr.bf16.mxu0 %v20575_v39  ;;  %v12588_v39 = vld [vmem:[%s23664_s17 + $0x80] sm:$0xff] }
0x2d64   :  { %12516 = vmatpush1.bf16.msra.mxu1 %v20645_v44  ;;  %v12623_v44 = vld [vmem:[%s23664_s17 + $0x198] sm:$0xff] }
0x2d65   :  { %12517 = vmatprep.subr.bf16.mxu1 %v20653_v21  ;;  %v12574_v21 = vld [vmem:[%s23664_s17 + $0x10] sm:$0xff] }
0x2d66   :  { %12229 = vmatpush1.bf16.msra.mxu0 %v20573_v6  ;;  %v12589_v6 = vld [vmem:[%s23664_s17 + $0x88] sm:$0xff] }
0x2d67   :  { %12230 = vmatprep.subr.bf16.mxu0 %v20578_v41  ;;  %v12620_v41 = vld [vmem:[%s23664_s17 + $0x180] sm:$0xff] }
0x2d68   :  { %12518 = vmatpush1.bf16.msra.mxu1 %v20651_v47  ;;  %v12575_v47 = vld [vmem:[%s23664_s17 + $0x18] sm:$0xff] }
0x2d69   :  { %12519 = vmatprep.subr.bf16.mxu1 %v20659_v56  ;;  %v12606_v56 = vld [vmem:[%s23664_s17 + $0x110] sm:$0xff] }
0x2d6a   :  { %12231 = vmatpush1.bf16.msra.mxu0 %v20576_v29  ;;  %v23131_v29 = vpack.c.bf16 %v12589_v6, %v12588_v39  ;;  %v12581_v39 = vld [vmem:[%s23664_s17 + $0x48] sm:$0xff] }
0x2d6b   :  { %12232 = vmatprep.subr.bf16.mxu0 %v20581_v59  ;;  %v12621_v59 = vld [vmem:[%s23664_s17 + $0x188] sm:$0xff] }
0x2d6c   :  { %12520 = vmatpush1.bf16.msra.mxu1 %v20657_v54  ;;  %v23155_v54 = vpack.c.bf16 %v12623_v44, %v12622_v42 }
0x2d6e   :  { %12233 = vmatpush1.bf16.msra.mxu0 %v20579_v30  ;;  %v23134_v30 = vpack.c.bf16 %v12621_v59, %v12620_v41  ;;  %v12612_v59 = vld [vmem:[%s23664_s17 + $0x140] sm:$0xff] }
0x2d6f   :  { %12234 = vmatprep.subr.bf16.mxu0 %v20584_v35 }
0x2d70   :  { %18726 = vmatprep.subr.bf16.mxu1 %v23134_v30 }
0x2d72   :  { %12235 = vmatpush1.bf16.msra.mxu0 %v20582_v58  ;;  %v12573_v58 = vld [vmem:[%s23664_s17 + $0x8] sm:$0xff] }
0x2d73   :  { %12236 = vmatprep.subr.bf16.mxu0 %v20587_v34  ;;  %v12604_v34 = vld [vmem:[%s23664_s17 + $0x100] sm:$0xff] }
0x2d76   :  { %12237 = vmatpush1.bf16.msra.mxu0 %v20585_v38 }
0x2d77   :  { %12238 = vmatprep.subr.bf16.mxu0 %v20590_v40  ;;  %v12591_v40 = vld [vmem:[%s23664_s17 + $0x98] sm:$0xff] }
0x2d7a   :  { %12239 = vmatpush1.bf16.msra.mxu0 %v20588_v45 }
0x2d7b   :  { %12240 = vmatprep.subr.bf16.mxu0 %v20593_v46  ;;  %v23147_v46 = vpack.c.bf16 %v12573_v58, %v12572_v33  ;;  %v12599_v33 = vld [vmem:[%s23664_s17 + $0xd8] sm:$0xff]  ;;  %v12630_v58 = vld [vmem:[%s23664_s17 + $0x1d0] sm:$0xff] }
0x2d7e   :  { %12241 = vmatpush1.bf16.msra.mxu0 %v20591_v49 }
0x2d7f   :  { %12242 = vmatprep.subr.bf16.mxu0 %v20596_v50  ;;  %v23153_v50 = vpack.c.bf16 %v12591_v40, %v12590_v37  ;;  %v12583_v40 = vld [vmem:[%s23664_s17 + $0x58] sm:$0xff] }
0x2d82   :  { %12243 = vmatpush1.bf16.msra.mxu0 %v20594_v57  ;;  %v12607_v57 = vld [vmem:[%s23664_s17 + $0x118] sm:$0xff] }
0x2d83   :  { %12244 = vmatprep.subr.bf16.mxu0 %v20599_v23  ;;  %v12592_v23 = vld [vmem:[%s23664_s17 + $0xa0] sm:$0xff] }
0x2d86   :  { %12245 = vmatpush1.bf16.msra.mxu0 %v20597_v48  ;;  %v12593_v48 = vld [vmem:[%s23664_s17 + $0xa8] sm:$0xff] }
0x2d87   :  { %12246 = vmatprep.subr.bf16.mxu0 %v20602_v27  ;;  %v12624_v27 = vld [vmem:[%s23664_s17 + $0x1a0] sm:$0xff] }
0x2d8a   :  { %12247 = vmatpush1.bf16.msra.mxu0 %v20600_v14  ;;  %v12625_v14 = vld [vmem:[%s23664_s17 + $0x1a8] sm:$0xff] }
0x2d8b   :  { %12248 = vmatprep.subr.bf16.mxu0 %v20605_v18  ;;  %v23165_v18 = vpack.c.bf16 %v12575_v47, %v12574_v21  ;;  %v12615_v21 = vld [vmem:[%s23664_s17 + $0x158] sm:$0xff]  ;;  %v12600_v47 = vld [vmem:[%s23664_s17 + $0xe0] sm:$0xff] }
0x2d8e   :  { %12249 = vmatpush1.bf16.msra.mxu0 %v20603_v62  ;;  %v23167_v62 = vpack.c.bf16 %v12607_v57, %v12606_v56  ;;  %v12632_v56 = vld [vmem:[%s23664_s17 + $0x1e0] sm:$0xff]  ;;  %v12633_v57 = vld [vmem:[%s23664_s17 + $0x1e8] sm:$0xff] }
0x2d8f   :  { %12250 = vmatprep.subr.bf16.mxu0 %v20608_v0  ;;  %v12576_v0 = vld [vmem:[%s23664_s17 + $0x20] sm:$0xff] }
0x2d92   :  { %12251 = vmatpush1.bf16.msra.mxu0 %v20606_v53  ;;  %v12577_v53 = vld [vmem:[%s23664_s17 + $0x28] sm:$0xff] }
0x2d93   :  { %12252 = vmatprep.subr.bf16.mxu0 %v20611_v1  ;;  %v23173_v1 = vpack.c.bf16 %v12593_v48, %v12592_v23 }
0x2d96   :  { %12253 = vmatpush1.bf16.msra.mxu0 %v20609_v2  ;;  %v23122_v5 = vpop.f32.mrb[116].mxu1  ;;  %v23175_v2 = vpack.c.bf16 %v12625_v14, %v12624_v27  ;;  %v23253_v14 = vpack.c.bf16 %v12633_v57, %v12632_v56  ;;  %v12554_v57 = vsub.s32 1, %v22541_v43 }
0x2d97   :  { %v23124_v7 = vpop.f32.mrb[117].mxu1  ;;  %12464 = vmatprep.subr.bf16.mxu0 %v20614_v4  ;;  %v12608_v4 = vld [vmem:[%s23664_s17 + $0x120] sm:$0xff] }
0x2d98   :  { %v12301_v28 = vpop.f32.mrb[118].mxu1 }
0x2d99   :  { %12255 = vmatmul.mubr.bf16.vlgmr.msra.gmra.mrb[120].mxu0 %v22559_v20  ;;  %v12302_v19 = vpop.f32.mrb[119].mxu1  ;;  %v20642_v20 = vld [vmem:[#allocation33 + $0xa0] ss:$16 sps:$4 sm:$0xff]  }
0x2d9a   :  { %12465 = vmatpush1.bf16.msra.mxu0 %v20612_v12  ;;  %12496 = vmatprep.mubr.bf16.mxu0 %v22000_v22  ;;  %v20650_v22 = vld [vmem:[#allocation33 + $0xc4] ss:$16 sps:$4 sm:$0xff]  }
0x2d9b   :  { %12466 = vmatprep.subr.bf16.mxu0 %v20620_v8  ;;  %v12609_v12 = vld [vmem:[%s23664_s17 + $0x128] sm:$0xff]  ;;  %v12594_v8 = vld [vmem:[%s23664_s17 + $0xb0] sm:$0xff]  ;;  %v12595_v28 = vld [vmem:[%s23664_s17 + $0xb8] sm:$0xff] }
0x2d9c   :  { %v12626_v19 = vld [vmem:[%s23664_s17 + $0x1b0] sm:$0xff] }
0x2d9e   :  { %12467 = vmatpush1.bf16.msra.mxu0 %v20618_v9  ;;  %v12627_v9 = vld [vmem:[%s23664_s17 + $0x1b8] sm:$0xff] }
0x2d9f   :  { %12468 = vmatprep.subr.bf16.mxu0 %v20626_v10  ;;  %v23185_v10 = vpack.c.bf16 %v12577_v53, %v12576_v0 }
0x2da2   :  { %12469 = vmatpush1.bf16.msra.mxu0 %v20624_v25  ;;  %v23187_v25 = vpack.c.bf16 %v12609_v12, %v12608_v4 }
0x2da3   :  { %12470 = vmatprep.subr.bf16.mxu0 %v20632_v11  ;;  %v12578_v11 = vld [vmem:[%s23664_s17 + $0x30] sm:$0xff] }
0x2da6   :  { %12471 = vmatpush1.bf16.msra.mxu0 %v20630_v17  ;;  %v12579_v17 = vld [vmem:[%s23664_s17 + $0x38] sm:$0xff] }
0x2da7   :  { %12472 = vmatprep.subr.bf16.mxu0 %v20638_v13  ;;  %v23193_v13 = vpack.c.bf16 %v12595_v28, %v12594_v8 }
0x2daa   :  { %12473 = vmatpush1.bf16.msra.mxu0 %v20636_v15  ;;  %v23195_v15 = vpack.c.bf16 %v12627_v9, %v12626_v19  ;;  %v12584_v19 = vld [vmem:[%s23664_s17 + $0x60] sm:$0xff]  ;;  %v12585_v9 = vld [vmem:[%s23664_s17 + $0x68] sm:$0xff] }
0x2dab   :  { %12474 = vmatprep.subr.bf16.mxu0 %v20644_v24  ;;  %v12610_v24 = vld [vmem:[%s23664_s17 + $0x130] sm:$0xff] }
0x2dae   :  { %12475 = vmatpush1.bf16.msra.mxu0 %v20642_v20  ;;  %v12611_v20 = vld [vmem:[%s23664_s17 + $0x138] sm:$0xff] }
0x2daf   :  { %12476 = vmatprep.subr.bf16.mxu0 %v20650_v22  ;;  %v12596_v22 = vld [vmem:[%s23664_s17 + $0xc0] sm:$0xff] }
0x2db2   :  { %12477 = vmatpush1.bf16.msra.mxu0 %v20648_v55  ;;  %v12597_v55 = vld [vmem:[%s23664_s17 + $0xc8] sm:$0xff] }
0x2db3   :  { %12478 = vmatprep.subr.bf16.mxu0 %v20656_v31  ;;  %v12628_v31 = vld [vmem:[%s23664_s17 + $0x1c0] sm:$0xff]  ;;  %v23213_v6 = vpack.c.bf16 %v12597_v55, %v12596_v22  ;;  %v12603_v22 = vld [vmem:[%s23664_s17 + $0xf8] sm:$0xff]  ;;  %v12634_v55 = vld [vmem:[%s23664_s17 + $0x1f0] sm:$0xff] }
0x2db6   :  { %12479 = vmatpush1.bf16.msra.mxu0 %v20654_v32  ;;  %v12629_v32 = vld [vmem:[%s23664_s17 + $0x1c8] sm:$0xff] }
0x2db7   :  { %18694 = vmatprep.subr.bf16.mxu0 %v23131_v29  ;;  %v23215_v41 = vpack.c.bf16 %v12629_v32, %v12628_v31  ;;  %v12635_v31 = vld [vmem:[%s23664_s17 + $0x1f8] sm:$0xff]  ;;  %v12586_v32 = vld [vmem:[%s23664_s17 + $0x70] sm:$0xff] }
0x2dec   :  { %v11330_v61 = vpop.f32.mrb[114].mxu0 }
0x2ded   :  { %v11331_v63 = vadd.f32 1e-05, %v11330_v61  ;;  %v18332_v3 = vpop.f32.mrb[115].mxu0  ;;  %v23205_v61 = vpack.c.bf16 %v12579_v17, %v12578_v11  ;;  %v12616_v11 = vld [vmem:[%s23664_s17 + $0x160] sm:$0xff]  ;;  %v23264_v17 = vpack.c.bf16 %v12585_v9, %v12584_v19 }
0x2dee   :  { %v12580_v3 = vld [vmem:[%s23664_s17 + $0x40] sm:$0xff] }
0x2def   :  { %20894 = vrsqrt.f32 %v11331_v63  ;;  %v23207_v63 = vpack.c.bf16 %v12611_v20, %v12610_v24  ;;  %v12617_v24 = vld [vmem:[%s23664_s17 + $0x168] sm:$0xff] }
0x2df0   :  { %v23267_v20 = vpack.c.bf16 %v12617_v24, %v12616_v11 }
0x2df9   :  { %v20895_v35 = vpop.eup %20894 }
0x2dfa   :  { %v11335_v16 = vmul.f32 %v20895_v35, %v23105_v26  ;;  %v23149_v26 = vpack.c.bf16 %v12605_v36, %v12604_v34  ;;  %v12613_v35 = vld [vmem:[%s23664_s17 + $0x148] sm:$0xff]  ;;  %v12631_v34 = vld [vmem:[%s23664_s17 + $0x1d8] sm:$0xff]  ;;  %v23225_v36 = vpack.c.bf16 %v12581_v39, %v12580_v3  ;;  %v23278_v3 = vpack.c.bf16 %v12635_v31, %v12634_v55 }
0x2dfb   :  { %v23227_v37 = vpack.c.bf16 %v12613_v35, %v12612_v59  ;;  %v23235_v44 = vpack.c.bf16 %v12631_v34, %v12630_v58  ;;  %v12587_v39 = vld [vmem:[%s23664_s17 + $0x78] sm:$0xff]  ;;  %v12618_v59 = vld [vmem:[%s23664_s17 + $0x170] sm:$0xff]  ;;  %v12778_v58 = vld [vmem:[#allocation63 + $0x8] sm:$0xff] }
0x2dfc   :  { %vm11336_vm8 = vcmp.ge.f32.partialorder %v11335_v16, 0.0  ;;  %v11337_v38 = vmul.f32 0.2, %v11335_v16  ;;  %v12619_v35 = vld [vmem:[%s23664_s17 + $0x178] sm:$0xff]  ;;  %v12782_v34 = vld [vmem:[#allocation63 + $0x28] sm:$0xff] }
0x2dfe   :  { %v11338_v45 = vsel %vm11336_vm8, %v11335_v16, %v11337_v38  ;;  %v12598_v16 = vld [vmem:[%s23664_s17 + $0xd0] sm:$0xff] }
0x2dff   :  { %v11339_v49 = vpack.c.bf16 %v11338_v45, %v11338_v45  ;;  %v12582_v38 = vld [vmem:[%s23664_s17 + $0x50] sm:$0xff]  ;;  %v23233_v42 = vpack.c.bf16 %v12599_v33, %v12598_v16  ;;  %v23284_v16 = vpack.c.bf16 %v12587_v39, %v12586_v32  ;;  %v23286_v33 = vpack.c.bf16 %v12619_v35, %v12618_v59 }
0x2e00   :  { %v12614_v45 = vld [vmem:[%s23664_s17 + $0x150] sm:$0xff]  ;;  %v23245_v23 = vpack.c.bf16 %v12583_v40, %v12582_v38  ;;  %v23292_v38 = vpack.c.bf16 %v12782_v34, %v12778_v58 }
0x2e01   :  { %12497 = vmatmul.mubr.bf16.vlgmr.msra.gmra.mrb[124].mxu0 %v11339_v49  ;;  %12538 = vmatmul.mubr.bf16.vlgmr.msra.gmra.mrb[120].mxu1 %v11339_v49  ;;  %v12601_v49 = vld [vmem:[%s23664_s17 + $0xe8] sm:$0xff]  ;;  %v23247_v48 = vpack.c.bf16 %v12615_v21, %v12614_v45 }
0x2e02   :  { %18696 = vmatpush3.bf16.msra.mxu0 %v23147_v46  ;;  %18728 = vmatpush3.bf16.msra.mxu1 %v23149_v26  ;;  %v23251_v27 = vpack.c.bf16 %v12601_v49, %v12600_v47 }
0x2e03   :  { %18698 = vmatprep.subr.bf16.mxu0 %v23153_v50  ;;  %18730 = vmatprep.subr.bf16.mxu1 %v23155_v54 }
0x2e06   :  { %18700 = vmatpush3.bf16.msra.mxu0 %v23165_v18  ;;  %18732 = vmatpush3.bf16.msra.mxu1 %v23167_v62 }
0x2e07   :  { %18702 = vmatprep.subr.bf16.mxu0 %v23173_v1  ;;  %18734 = vmatprep.subr.bf16.mxu1 %v23175_v2 }
0x2e0a   :  { %18704 = vmatpush3.bf16.msra.mxu0 %v23185_v10  ;;  %18736 = vmatpush3.bf16.msra.mxu1 %v23187_v25 }
0x2e0b   :  { %18706 = vmatprep.subr.bf16.mxu0 %v23193_v13  ;;  %18738 = vmatprep.subr.bf16.mxu1 %v23195_v15 }
0x2e0e   :  { %18708 = vmatpush3.bf16.msra.mxu0 %v23205_v61  ;;  %18740 = vmatpush3.bf16.msra.mxu1 %v23207_v63 }
0x2e0f   :  { %18710 = vmatprep.subr.bf16.mxu0 %v23213_v6  ;;  %18742 = vmatprep.subr.bf16.mxu1 %v23215_v41 }
0x2e12   :  { %18712 = vmatpush3.bf16.msra.mxu0 %v23225_v36  ;;  %18744 = vmatpush3.bf16.msra.mxu1 %v23227_v37 }
0x2e13   :  { %18714 = vmatprep.subr.bf16.mxu0 %v23233_v42  ;;  %18746 = vmatprep.subr.bf16.mxu1 %v23235_v44 }
0x2e16   :  { %18716 = vmatpush3.bf16.msra.mxu0 %v23245_v23  ;;  %18748 = vmatpush3.bf16.msra.mxu1 %v23247_v48 }
0x2e17   :  { %18718 = vmatprep.subr.bf16.mxu0 %v23251_v27  ;;  %18750 = vmatprep.subr.bf16.mxu1 %v23253_v14 }
0x2e1a   :  { %18720 = vmatpush3.bf16.msra.mxu0 %v23264_v17  ;;  %18752 = vmatpush3.bf16.msra.mxu1 %v23267_v20 }
0x2e1b   :  { %18754 = vmatprep.subr.bf16.mxu1 %v23278_v3 }
0x2e1e   :  { %18756 = vmatpush3.bf16.msra.mxu1 %v23286_v33 }
0x2e1f   :  { %18806 = vmatprep.subr.bf16.mxu1 %v23134_v30 }
0x2e2c   :  { %v12174_v0 = vpop.f32.mrb[116].mxu0 }
0x2e2d   :  { %v12216_v53 = vadd.f32 %v23116_v51, %v12174_v0  ;;  %v12176_v4 = vpop.f32.mrb[117].mxu0  ;;  %v12602_v51 = vld [vmem:[%s23664_s17 + $0xf0] sm:$0xff]  ;;  %v12562_v0 = vsub.s32 3, %v22541_v43 }
0x2e2e   :  { %v12218_v12 = vadd.f32 %v23118_v52, %v12176_v4  ;;  %v12178_v8 = vpop.f32.mrb[118].mxu0  ;;  %v23273_v52 = vpack.c.bf16 %v12603_v22, %v12602_v51  ;;  %v12546_v4 = vld [vmem:[#allocation28] sm:$0xf] }
0x2e2f   :  { %v12179_v28 = vpop.f32.mrb[119].mxu0  ;;  %v23606_v8 = vsub.s32 0, %v22541_v43  ;;  %v12555_v11 = vrot.slane %v12546_v4, %v12554_v57 }
0x2e30   :  { %18722 = vmatprep.subr.bf16.mxu0 %v23273_v52  ;;  %v23605_v28 = vsub.s32 2, %v22541_v43 }
0x2e31   :  { %18724 = vmatpush3.bf16.msra.mxu0 %v23284_v16  ;;  %v12551_v24 = vrot.slane %v12546_v4, %v23606_v8 }
0x2e32   :  { %18758 = vmatprep.subr.bf16.mxu0 %v23292_v38  ;;  %v12559_v22 = vrot.slane %v12546_v4, %v23605_v28 }
0x2e6c   :  { %v12256_v40 = vpop.f32.mrb[120].mxu0 }
0x2e6d   :  { %v12298_v45 = vadd.f32 %v23122_v5, %v12256_v40  ;;  %v12258_v21 = vpop.f32.mrb[121].mxu0  ;;  %v12563_v5 = vrot.slane %v12546_v4, %v12562_v0  ;;  %v12790_v4 = vld [vmem:[#allocation63 + $0x68] sm:$0xff] }
0x2e6e   :  { %v12300_v47 = vadd.f32 %v23124_v7, %v12258_v21  ;;  %v12260_v49 = vpop.f32.mrb[122].mxu0 }
0x2e6f   :  { %v12261_v56 = vpop.f32.mrb[123].mxu0 }
0x2e70   :  { %v12786_v56 = vld [vmem:[#allocation63 + $0x48] sm:$0xff] }
0x2ed4   :  { %v12498_v19 = vpop.f32.mrb[124].mxu0  ;;  %v12539_v9 = vpop.f32.mrb[120].mxu1 }
0x2ed5   :  { %v12499_v7 = vadd.f32 %v12498_v19, %v12216_v53  ;;  %v12540_v51 = vadd.f32 %v12539_v9, %v12298_v45  ;;  %v12500_v55 = vpop.f32.mrb[125].mxu0  ;;  %v12541_v31 = vpop.f32.mrb[121].mxu1  ;;  %v12781_v45 = vld [vmem:[#allocation63 + $0x20] sm:$0xff]  ;;  %v23340_v19 = vpack.c.bf16 %v12790_v4, %v12786_v56 }
0x2ed6   :  { %v12501_v32 = vadd.f32 %v12500_v55, %v12218_v12  ;;  %v12542_v39 = vadd.f32 %v12541_v31, %v12300_v47  ;;  %v12502_v59 = vpop.f32.mrb[126].mxu0  ;;  %v12543_v35 = vpop.f32.mrb[122].mxu1  ;;  %v12777_v12 = vld [vmem:[#allocation63] sm:$0xff] }
0x2ed7   :  { %v12503_v58 = vpop.f32.mrb[127].mxu0  ;;  %v12544_v34 = vpop.f32.mrb[123].mxu1  ;;  %v23313_v53 = vadd.f32 %v12551_v24, %v12499_v7  ;;  %v23315_v49 = vadd.f32 %v12559_v22, %v12540_v51  ;;  %v23337_v47 = vpack.c.bf16 %v12781_v45, %v12777_v12  ;;  %v12785_v9 = vld [vmem:[#allocation63 + $0x40] sm:$0xff]  ;;  %v12780_v7 = vld [vmem:[#allocation63 + $0x18] sm:$0xff]  ;;  %v12779_v35 = vld [vmem:[#allocation63 + $0x10] sm:$0xff] }
0x2ed8   :  { %v23309_v40 = vadd.f32 %v12555_v11, %v12501_v32  ;;  %v23311_v21 = vadd.f32 %v12563_v5, %v12542_v39  ;;  %v12789_v11 = vld [vmem:[#allocation63 + $0x60] sm:$0xff]  ;;  %v12784_v24 = vld [vmem:[#allocation63 + $0x38] sm:$0xff]  ;;  %v12783_v58 = vld [vmem:[#allocation63 + $0x30] sm:$0xff] }
0x2ed9   :  { %v23342_v5 = vpack.c.bf16 %v12789_v11, %v12785_v9  ;;  %v23346_v51 = vpack.c.bf16 %v12784_v24, %v12780_v7  ;;  %v12788_v34 = vld [vmem:[#allocation63 + $0x58] sm:$0xff]  ;;  %v23350_v56 = vpack.c.bf16 %v12783_v58, %v12779_v35  ;;  %v12787_v11 = vld [vmem:[#allocation63 + $0x50] sm:$0xff] }
0x2eda   :  { %12700 = vmatprep.mubr.f32.mxu0 %v23309_v40  ;;  %12770 = vmatprep.mubr.f32.mxu1 %v23311_v21  ;;  %v12792_v12 = vld [vmem:[#allocation63 + $0x78] sm:$0xff]  ;;  %v12791_v7 = vld [vmem:[#allocation63 + $0x70] sm:$0xff] }
0x2edb   :  { %12701 = vmatmul.mubr.f32.vlgmr.msra.gmra.mrb[128].mxu0 %v23313_v53  ;;  %12771 = vmatmul.mubr.f32.vlgmr.msra.gmra.mrb[124].mxu1 %v23315_v49  ;;  %v23352_v9 = vpack.c.bf16 %v12792_v12, %v12788_v34  ;;  %v23356_v24 = vpack.c.bf16 %v12791_v7, %v12787_v11 }
0x2edc   :  { %12860 = vmatprep.mubr.f32.mxu0 %v23603_v60  ;;  %18808 = vmatpush3.bf16.msra.mxu1 %v23149_v26 }
0x2edd   :  { %18810 = vmatprep.subr.bf16.mxu1 %v23155_v54  ;;  %18760 = vmatpush1.bf16.msra.mxu0 %v23337_v47 }
0x2ede   :  { %18762 = vmatprep.subr.bf16.mxu0 %v23340_v19 }
0x2ee0   :  { %18812 = vmatpush3.bf16.msra.mxu1 %v23167_v62 }
0x2ee1   :  { %18814 = vmatprep.subr.bf16.mxu1 %v23175_v2  ;;  %18764 = vmatpush1.bf16.msra.mxu0 %v23342_v5 }
0x2ee2   :  { %18766 = vmatprep.subr.bf16.mxu0 %v23346_v51 }
0x2ee4   :  { %18816 = vmatpush3.bf16.msra.mxu1 %v23187_v25 }
0x2ee5   :  { %18818 = vmatprep.subr.bf16.mxu1 %v23195_v15 }
0x2ee8   :  { %18820 = vmatpush3.bf16.msra.mxu1 %v23207_v63 }
0x2ee9   :  { %18822 = vmatprep.subr.bf16.mxu1 %v23215_v41 }
0x2eec   :  { %18824 = vmatpush3.bf16.msra.mxu1 %v23227_v37 }
0x2eed   :  { %18826 = vmatprep.subr.bf16.mxu1 %v23235_v44 }
0x2ef0   :  { %18828 = vmatpush3.bf16.msra.mxu1 %v23247_v48 }
0x2ef1   :  { %18830 = vmatprep.subr.bf16.mxu1 %v23253_v14 }
0x2ef4   :  { %18832 = vmatpush3.bf16.msra.mxu1 %v23267_v20 }
0x2ef5   :  { %18834 = vmatprep.subr.bf16.mxu1 %v23278_v3 }
0x2ef8   :  { %18836 = vmatpush3.bf16.msra.mxu1 %v23286_v33 }
0x2ef9   :  { %18846 = vmatprep.subr.bf16.mxu1 %v23346_v51 }
0x2fae   :  { %v17389_v22 = vpop.f32.mrb[128].mxu0  ;;  %v17424_v55 = vpop.f32.mrb[124].mxu1 }
0x2faf   :  { %v17390_v31 = vpop.f32.mrb[129].mxu0  ;;  %v17425_v32 = vpop.f32.mrb[125].mxu1 }
0x2fb0   :  { %v17391_v39 = vadd.f32 %v17390_v31, %v17389_v22  ;;  %v17426_v59 = vadd.f32 %v17425_v32, %v17424_v55 }
0x2fb2   :  { %v12773_v45 = vadd.f32 %v17426_v59, %v17391_v39 }
0x2fb4   :  { %v12776_v4 = vmul.f32 0.0625, %v12773_v45 }
0x2fb6   :  { %16395 = vmatmul.mubr.msk.f32.vlgmr.msra.gmra.mrb[130].mxu0 %vm8741_vm2, %v12776_v4 }
0x2fb7   :  { %18768 = vmatpush1.bf16.msra.mxu0 %v23350_v56  ;;  %12931 = vmatprep.mubr.f32.mxu0 %v23603_v60 }
0x2fb8   :  { %18770 = vmatprep.subr.bf16.mxu0 %v23352_v9 }
0x2fbb   :  { %18772 = vmatpush1.bf16.msra.mxu0 %v23356_v24 }
0x2fbc   :  { %18774 = vmatprep.subr.bf16.mxu0 %v23131_v29 }
0x2fbe   :  { %16396 = vmatmul.mubr.msk.f32.vlgmr.msra.gmra.mrb[132].mxu0 %vm8741_vm2, %v12776_v4 }
0x2fbf   :  { %18776 = vmatpush3.bf16.msra.mxu0 %v23147_v46 }
0x2fc0   :  { %18778 = vmatprep.subr.bf16.mxu0 %v23153_v50 }
0x2fc3   :  { %18780 = vmatpush3.bf16.msra.mxu0 %v23165_v18 }
0x2fc4   :  { %18782 = vmatprep.subr.bf16.mxu0 %v23173_v1 }
0x2fc7   :  { %18784 = vmatpush3.bf16.msra.mxu0 %v23185_v10 }
0x2fc8   :  { %18786 = vmatprep.subr.bf16.mxu0 %v23193_v13 }
0x2fcb   :  { %18788 = vmatpush3.bf16.msra.mxu0 %v23205_v61 }
0x2fcc   :  { %18790 = vmatprep.subr.bf16.mxu0 %v23213_v6 }
0x2fcf   :  { %18792 = vmatpush3.bf16.msra.mxu0 %v23225_v36 }
0x2fd0   :  { %18794 = vmatprep.subr.bf16.mxu0 %v23233_v42 }
0x2fd3   :  { %18796 = vmatpush3.bf16.msra.mxu0 %v23245_v23 }
0x2fd4   :  { %18798 = vmatprep.subr.bf16.mxu0 %v23251_v27 }
0x2fd7   :  { %18800 = vmatpush3.bf16.msra.mxu0 %v23264_v17 }
0x2fd8   :  { %18802 = vmatprep.subr.bf16.mxu0 %v23273_v52 }
0x2fdb   :  { %18804 = vmatpush3.bf16.msra.mxu0 %v23284_v16 }
0x2fdc   :  { %18838 = vmatprep.subr.bf16.mxu0 %v23292_v38 }
0x3089   :  { %v12862_v22 = vpop.f32.mrb[130].mxu0 }
0x308a   :  { %v23380_v55 = vsub.f32 %v23313_v53, %v12862_v22  ;;  %v12864_v31 = vpop.f32.mrb[131].mxu0 }
0x308b   :  { %v23383_v32 = vsub.f32 %v23309_v40, %v12864_v31 }
0x308c   :  { %v12942_v59 = vmul.f32 %v23380_v55, %v23380_v55 }
0x308d   :  { %v12943_v39 = vmul.f32 %v23383_v32, %v23383_v32 }
0x308f   :  { %13010 = vmatprep.mubr.f32.mxu0 %v12943_v39 }
0x3090   :  { %13011 = vmatmul.mubr.f32.vlgmr.msra.gmra.mrb[134].mxu0 %v12942_v59  ;;  %v20660_v59 = vld [vmem:[#allocation31] ss:$16 sps:$4 sm:$0xff]  }
0x3091   :  { %v12933_v35 = vpop.f32.mrb[132].mxu0  ;;  %18840 = vmatpush1.bf16.msra.mxu0 %v23337_v47  ;;  %13154 = vmatprep.mubr.f32.mxu0 %v23603_v60 }
0x3092   :  { %v23392_v53 = vsub.f32 %v23315_v49, %v12933_v35  ;;  %v12935_v58 = vpop.f32.mrb[133].mxu0  ;;  %18842 = vmatprep.subr.bf16.mxu0 %v23340_v19  ;;  %v20665_v49 = vld [vmem:[#allocation31 + $0xc] ss:$16 sps:$4 sm:$0xff]   ;;  %v20663_v35 = vld [vmem:[#allocation31 + $0x8] ss:$16 sps:$4 sm:$0xff]  }
0x3093   :  { %v23396_v40 = vsub.f32 %v23311_v21, %v12935_v58  ;;  %v20662_v21 = vld [vmem:[#allocation31 + $0x4] ss:$16 sps:$4 sm:$0xff]  }
0x3094   :  { %v12944_v12 = vmul.f32 %v23392_v53, %v23392_v53 }
0x3095   :  { %v12945_v34 = vmul.f32 %v23396_v40, %v23396_v40  ;;  %18844 = vmatpush1.bf16.msra.mxu0 %v23342_v5 }
0x3096   :  { %14046 = vmatprep.subr.bf16.mxu0 %v20662_v21  ;;  %v20666_v21 = vld [vmem:[#allocation31 + $0x20] ss:$16 sps:$4 sm:$0xff]  }
0x3097   :  { %13080 = vmatprep.mubr.f32.mxu1 %v12945_v34  ;;  %v20668_v34 = vld [vmem:[#allocation31 + $0x24] ss:$16 sps:$4 sm:$0xff]  }
0x3098   :  { %13081 = vmatmul.mubr.f32.vlgmr.msra.gmra.mrb[126].mxu1 %v12944_v12  ;;  %v20671_v12 = vld [vmem:[#allocation31 + $0x2c] ss:$16 sps:$4 sm:$0xff]  }
0x3099   :  { %18848 = vmatpush1.bf16.msra.mxu1 %v23350_v56  ;;  %13225 = vmatprep.mubr.f32.mxu1 %v23603_v60 }
0x309a   :  { %18850 = vmatprep.subr.bf16.mxu1 %v23352_v9 }
0x309d   :  { %18852 = vmatpush1.bf16.msra.mxu1 %v23356_v24 }
0x309e   :  { %14128 = vmatprep.subr.bf16.mxu1 %v20665_v49  ;;  %v20669_v49 = vld [vmem:[#allocation31 + $0x28] ss:$16 sps:$4 sm:$0xff]  }
0x3163   :  { %v17459_v45 = vpop.f32.mrb[134].mxu0 }
0x3164   :  { %v17460_v4 = vpop.f32.mrb[135].mxu0 }
0x3165   :  { %v17461_v11 = vadd.f32 %v17460_v4, %v17459_v45  ;;  %v20674_v45 = vld [vmem:[#allocation31 + $0x44] ss:$16 sps:$4 sm:$0xff]   ;;  %v20677_v4 = vld [vmem:[#allocation31 + $0x4c] ss:$16 sps:$4 sm:$0xff]  }
0x316b   :  { %v17494_v7 = vpop.f32.mrb[126].mxu1 }
0x316c   :  { %v17495_v22 = vpop.f32.mrb[127].mxu1 }
0x316d   :  { %v17496_v31 = vadd.f32 %v17495_v22, %v17494_v7  ;;  %v20675_v7 = vld [vmem:[#allocation31 + $0x48] ss:$16 sps:$4 sm:$0xff]   ;;  %v20680_v22 = vld [vmem:[#allocation31 + $0x64] ss:$16 sps:$4 sm:$0xff]  }
0x316f   :  { %v13083_v39 = vadd.f32 %v17496_v31, %v17461_v11  ;;  %v20672_v11 = vld [vmem:[#allocation31 + $0x40] ss:$16 sps:$4 sm:$0xff]   ;;  %v20683_v31 = vld [vmem:[#allocation31 + $0x6c] ss:$16 sps:$4 sm:$0xff]  }
0x3171   :  { %v13086_v58 = vmul.f32 0.0625, %v13083_v39  ;;  %v20678_v39 = vld [vmem:[#allocation31 + $0x60] ss:$16 sps:$4 sm:$0xff]  }
0x3173   :  { %16397 = vmatmul.mubr.msk.f32.vlgmr.msra.gmra.mrb[136].mxu0 %vm8741_vm2, %v13086_v58  ;;  %16398 = vmatmul.mubr.msk.f32.vlgmr.msra.gmra.mrb[128].mxu1 %vm8741_vm2, %v13086_v58  ;;  %v20681_v58 = vld [vmem:[#allocation31 + $0x68] ss:$16 sps:$4 sm:$0xff]  }
0x3174   :  { %14047 = vmatpush1.bf16.msra.mxu0 %v20660_v59  ;;  %14129 = vmatpush1.bf16.msra.mxu1 %v20663_v35  ;;  %v20686_v59 = vld [vmem:[#allocation31 + $0x84] ss:$16 sps:$4 sm:$0xff]   ;;  %v20689_v35 = vld [vmem:[#allocation31 + $0x8c] ss:$16 sps:$4 sm:$0xff]  }
0x3175   :  { %14048 = vmatprep.subr.bf16.mxu0 %v20668_v34  ;;  %14130 = vmatprep.subr.bf16.mxu1 %v20671_v12  ;;  %v20684_v34 = vld [vmem:[#allocation31 + $0x80] ss:$16 sps:$4 sm:$0xff]   ;;  %v20687_v12 = vld [vmem:[#allocation31 + $0x88] ss:$16 sps:$4 sm:$0xff]  }
0x3178   :  { %14049 = vmatpush1.bf16.msra.mxu0 %v20666_v21  ;;  %14131 = vmatpush1.bf16.msra.mxu1 %v20669_v49  ;;  %v20692_v21 = vld [vmem:[#allocation31 + $0xa4] ss:$16 sps:$4 sm:$0xff]   ;;  %v20695_v49 = vld [vmem:[#allocation31 + $0xac] ss:$16 sps:$4 sm:$0xff]  }
0x3179   :  { %14050 = vmatprep.subr.bf16.mxu0 %v20674_v45  ;;  %14132 = vmatprep.subr.bf16.mxu1 %v20677_v4  ;;  %v20690_v45 = vld [vmem:[#allocation31 + $0xa0] ss:$16 sps:$4 sm:$0xff]   ;;  %v20693_v4 = vld [vmem:[#allocation31 + $0xa8] ss:$16 sps:$4 sm:$0xff]  }
0x317c   :  { %14051 = vmatpush1.bf16.msra.mxu0 %v20672_v11  ;;  %14133 = vmatpush1.bf16.msra.mxu1 %v20675_v7  ;;  %v20698_v11 = vld [vmem:[#allocation31 + $0xc4] ss:$16 sps:$4 sm:$0xff]   ;;  %v20701_v7 = vld [vmem:[#allocation31 + $0xcc] ss:$16 sps:$4 sm:$0xff]  }
0x317d   :  { %14052 = vmatprep.subr.bf16.mxu0 %v20680_v22  ;;  %14134 = vmatprep.subr.bf16.mxu1 %v20683_v31  ;;  %v20696_v22 = vld [vmem:[#allocation31 + $0xc0] ss:$16 sps:$4 sm:$0xff]   ;;  %v20699_v31 = vld [vmem:[#allocation31 + $0xc8] ss:$16 sps:$4 sm:$0xff]  }
0x3180   :  { %14053 = vmatpush1.bf16.msra.mxu0 %v20678_v39  ;;  %14135 = vmatpush1.bf16.msra.mxu1 %v20681_v58  ;;  %v20704_v39 = vld [vmem:[#allocation31 + $0xe4] ss:$16 sps:$4 sm:$0xff]   ;;  %v20707_v58 = vld [vmem:[#allocation31 + $0xec] ss:$16 sps:$4 sm:$0xff]  }
0x3181   :  { %14054 = vmatprep.subr.bf16.mxu0 %v20686_v59  ;;  %14136 = vmatprep.subr.bf16.mxu1 %v20689_v35  ;;  %v20702_v59 = vld [vmem:[#allocation31 + $0xe0] ss:$16 sps:$4 sm:$0xff]   ;;  %v20705_v35 = vld [vmem:[#allocation31 + $0xe8] ss:$16 sps:$4 sm:$0xff]  }
0x3184   :  { %14055 = vmatpush1.bf16.msra.mxu0 %v20684_v34  ;;  %14137 = vmatpush1.bf16.msra.mxu1 %v20687_v12  ;;  %v20710_v34 = vld [vmem:[#allocation31 + $0x104] ss:$16 sps:$4 sm:$0xff]   ;;  %v20713_v12 = vld [vmem:[#allocation31 + $0x10c] ss:$16 sps:$4 sm:$0xff]  }
0x3185   :  { %14056 = vmatprep.subr.bf16.mxu0 %v20692_v21  ;;  %14138 = vmatprep.subr.bf16.mxu1 %v20695_v49  ;;  %v20708_v21 = vld [vmem:[#allocation31 + $0x100] ss:$16 sps:$4 sm:$0xff]   ;;  %v20711_v49 = vld [vmem:[#allocation31 + $0x108] ss:$16 sps:$4 sm:$0xff]  }
0x3188   :  { %14057 = vmatpush1.bf16.msra.mxu0 %v20690_v45  ;;  %14139 = vmatpush1.bf16.msra.mxu1 %v20693_v4  ;;  %v20716_v45 = vld [vmem:[#allocation31 + $0x124] ss:$16 sps:$4 sm:$0xff]   ;;  %v20719_v4 = vld [vmem:[#allocation31 + $0x12c] ss:$16 sps:$4 sm:$0xff]  }
0x3189   :  { %14058 = vmatprep.subr.bf16.mxu0 %v20698_v11  ;;  %14140 = vmatprep.subr.bf16.mxu1 %v20701_v7  ;;  %v20714_v11 = vld [vmem:[#allocation31 + $0x120] ss:$16 sps:$4 sm:$0xff]   ;;  %v20717_v7 = vld [vmem:[#allocation31 + $0x128] ss:$16 sps:$4 sm:$0xff]  }
0x318c   :  { %14059 = vmatpush1.bf16.msra.mxu0 %v20696_v22  ;;  %14141 = vmatpush1.bf16.msra.mxu1 %v20699_v31  ;;  %v20722_v22 = vld [vmem:[#allocation31 + $0x144] ss:$16 sps:$4 sm:$0xff]   ;;  %v20725_v31 = vld [vmem:[#allocation31 + $0x14c] ss:$16 sps:$4 sm:$0xff]  }
0x318d   :  { %14060 = vmatprep.subr.bf16.mxu0 %v20704_v39  ;;  %14142 = vmatprep.subr.bf16.mxu1 %v20707_v58  ;;  %v20720_v39 = vld [vmem:[#allocation31 + $0x140] ss:$16 sps:$4 sm:$0xff]   ;;  %v20723_v58 = vld [vmem:[#allocation31 + $0x148] ss:$16 sps:$4 sm:$0xff]  }
0x3190   :  { %14061 = vmatpush1.bf16.msra.mxu0 %v20702_v59  ;;  %14143 = vmatpush1.bf16.msra.mxu1 %v20705_v35  ;;  %v20728_v59 = vld [vmem:[#allocation31 + $0x164] ss:$16 sps:$4 sm:$0xff]   ;;  %v20731_v35 = vld [vmem:[#allocation31 + $0x16c] ss:$16 sps:$4 sm:$0xff]  }
0x3191   :  { %14062 = vmatprep.subr.bf16.mxu0 %v20710_v34  ;;  %14144 = vmatprep.subr.bf16.mxu1 %v20713_v12  ;;  %v20726_v34 = vld [vmem:[#allocation31 + $0x160] ss:$16 sps:$4 sm:$0xff]   ;;  %v20729_v12 = vld [vmem:[#allocation31 + $0x168] ss:$16 sps:$4 sm:$0xff]  }
0x3194   :  { %14063 = vmatpush1.bf16.msra.mxu0 %v20708_v21  ;;  %14145 = vmatpush1.bf16.msra.mxu1 %v20711_v49  ;;  %v20734_v21 = vld [vmem:[#allocation31 + $0x184] ss:$16 sps:$4 sm:$0xff]   ;;  %v20737_v49 = vld [vmem:[#allocation31 + $0x18c] ss:$16 sps:$4 sm:$0xff]  }
0x3195   :  { %14064 = vmatprep.subr.bf16.mxu0 %v20716_v45  ;;  %14146 = vmatprep.subr.bf16.mxu1 %v20719_v4  ;;  %v20732_v45 = vld [vmem:[#allocation31 + $0x180] ss:$16 sps:$4 sm:$0xff]   ;;  %v20735_v4 = vld [vmem:[#allocation31 + $0x188] ss:$16 sps:$4 sm:$0xff]  }
0x3198   :  { %14065 = vmatpush1.bf16.msra.mxu0 %v20714_v11  ;;  %14147 = vmatpush1.bf16.msra.mxu1 %v20717_v7  ;;  %v20740_v11 = vld [vmem:[#allocation31 + $0x1a4] ss:$16 sps:$4 sm:$0xff]   ;;  %v20743_v7 = vld [vmem:[#allocation31 + $0x1ac] ss:$16 sps:$4 sm:$0xff]  }
0x3199   :  { %14066 = vmatprep.subr.bf16.mxu0 %v20722_v22  ;;  %14148 = vmatprep.subr.bf16.mxu1 %v20725_v31  ;;  %v20738_v22 = vld [vmem:[#allocation31 + $0x1a0] ss:$16 sps:$4 sm:$0xff]   ;;  %v20741_v31 = vld [vmem:[#allocation31 + $0x1a8] ss:$16 sps:$4 sm:$0xff]  }
0x319c   :  { %14067 = vmatpush1.bf16.msra.mxu0 %v20720_v39  ;;  %14149 = vmatpush1.bf16.msra.mxu1 %v20723_v58  ;;  %v20746_v39 = vld [vmem:[#allocation31 + $0x1c4] ss:$16 sps:$4 sm:$0xff]   ;;  %v20749_v58 = vld [vmem:[#allocation31 + $0x1cc] ss:$16 sps:$4 sm:$0xff]  }
0x319d   :  { %14068 = vmatprep.subr.bf16.mxu0 %v20728_v59  ;;  %14150 = vmatprep.subr.bf16.mxu1 %v20731_v35  ;;  %v20744_v59 = vld [vmem:[#allocation31 + $0x1c0] ss:$16 sps:$4 sm:$0xff]   ;;  %v20747_v35 = vld [vmem:[#allocation31 + $0x1c8] ss:$16 sps:$4 sm:$0xff]  }
0x31a0   :  { %14069 = vmatpush1.bf16.msra.mxu0 %v20726_v34  ;;  %14151 = vmatpush1.bf16.msra.mxu1 %v20729_v12  ;;  %v20752_v34 = vld [vmem:[#allocation31 + $0x1e4] ss:$16 sps:$4 sm:$0xff]   ;;  %v20755_v12 = vld [vmem:[#allocation31 + $0x1ec] ss:$16 sps:$4 sm:$0xff]  }
0x31a1   :  { %14070 = vmatprep.subr.bf16.mxu0 %v20734_v21  ;;  %14152 = vmatprep.subr.bf16.mxu1 %v20737_v49  ;;  %v20750_v21 = vld [vmem:[#allocation31 + $0x1e0] ss:$16 sps:$4 sm:$0xff]   ;;  %v20753_v49 = vld [vmem:[#allocation31 + $0x1e8] ss:$16 sps:$4 sm:$0xff]  }
0x31a4   :  { %14071 = vmatpush1.bf16.msra.mxu0 %v20732_v45  ;;  %14153 = vmatpush1.bf16.msra.mxu1 %v20735_v4  ;;  %v20758_v45 = vld [vmem:[#allocation31 + $0x204] ss:$16 sps:$4 sm:$0xff]   ;;  %v20761_v4 = vld [vmem:[#allocation31 + $0x20c] ss:$16 sps:$4 sm:$0xff]  }
0x31a5   :  { %14072 = vmatprep.subr.bf16.mxu0 %v20740_v11  ;;  %14154 = vmatprep.subr.bf16.mxu1 %v20743_v7 }
0x31a8   :  { %14073 = vmatpush1.bf16.msra.mxu0 %v20738_v22  ;;  %14155 = vmatpush1.bf16.msra.mxu1 %v20741_v31 }
0x31a9   :  { %14074 = vmatprep.subr.bf16.mxu0 %v20746_v39  ;;  %14156 = vmatprep.subr.bf16.mxu1 %v20749_v58 }
0x31ac   :  { %14075 = vmatpush1.bf16.msra.mxu0 %v20744_v59  ;;  %14157 = vmatpush1.bf16.msra.mxu1 %v20747_v35 }
0x31ad   :  { %14076 = vmatprep.subr.bf16.mxu0 %v20752_v34  ;;  %14158 = vmatprep.subr.bf16.mxu1 %v20755_v12 }
0x31b0   :  { %14077 = vmatpush1.bf16.msra.mxu0 %v20750_v21  ;;  %14159 = vmatpush1.bf16.msra.mxu1 %v20753_v49 }
0x31b1   :  { %14087 = vmatprep.subr.bf16.mxu0 %v20758_v45  ;;  %14169 = vmatprep.subr.bf16.mxu1 %v20761_v4 }
0x3246   :  { %v13156_v11 = vpop.f32.mrb[136].mxu0  ;;  %v23409_v7 = vpop.f32.mrb[128].mxu1 }
0x3247   :  { %v13157_v22 = vadd.f32 1e-05, %v13156_v11  ;;  %v13158_v31 = vpop.f32.mrb[137].mxu0  ;;  %v13229_v39 = vpop.f32.mrb[129].mxu1 }
0x3248   :  { %v13159_v58 = vadd.f32 1e-05, %v13158_v31  ;;  %v13230_v60 = vadd.f32 1e-05, %v13229_v39 }
0x3249   :  { %20896 = vrsqrt.f32 %v13157_v22 }
0x324a   :  { %20898 = vrsqrt.f32 %v13159_v58  ;;  %v20756_v58 = vld [vmem:[#allocation31 + $0x200] ss:$16 sps:$4 sm:$0xff]  }
0x324b   :  { %20900 = vrsqrt.f32 %v13230_v60  ;;  %v20759_v60 = vld [vmem:[#allocation31 + $0x208] ss:$16 sps:$4 sm:$0xff]  }
0x3253   :  { %v20897_v59 = vpop.eup %20896 }
0x3254   :  { %v13236_v35 = vmul.f32 %v20897_v59, %v23380_v55  ;;  %v20899_v34 = vpop.eup %20898  ;;  %v20764_v55 = vld [vmem:[#allocation31 + $0x224] ss:$16 sps:$4 sm:$0xff]   ;;  %v20767_v59 = vld [vmem:[#allocation31 + $0x22c] ss:$16 sps:$4 sm:$0xff]  }
0x3255   :  { %v20901_v12 = vpop.eup %20900  ;;  %v13237_v21 = vmul.f32 %v20899_v34, %v23383_v32  ;;  %v20765_v34 = vld [vmem:[#allocation31 + $0x228] ss:$16 sps:$4 sm:$0xff]  }
0x3256   :  { %vm13240_vm9 = vcmp.ge.f32.partialorder %v13236_v35, 0.0  ;;  %v13244_v49 = vmul.f32 0.2, %v13236_v35  ;;  %v13239_v45 = vmul.f32 %v20901_v12, %v23396_v40  ;;  %v20762_v40 = vld [vmem:[#allocation31 + $0x220] ss:$16 sps:$4 sm:$0xff]  }
0x3257   :  { %vm13241_vm10 = vcmp.ge.f32.partialorder %v13237_v21, 0.0  ;;  %v13245_v4 = vmul.f32 0.2, %v13237_v21  ;;  %v20773_v12 = vld [vmem:[#allocation31 + $0x24c] ss:$16 sps:$4 sm:$0xff]  }
0x3258   :  { %v13248_v11 = vsel %vm13240_vm9, %v13236_v35, %v13244_v49  ;;  %vm13243_vm11 = vcmp.ge.f32.partialorder %v13239_v45, 0.0  ;;  %v13247_v31 = vmul.f32 0.2, %v13239_v45  ;;  %v20770_v35 = vld [vmem:[#allocation31 + $0x244] ss:$16 sps:$4 sm:$0xff]  }
0x3259   :  { %v13249_v39 = vsel %vm13241_vm10, %v13237_v21, %v13245_v4  ;;  %v13252_v8 = vpack.c.bf16 %v13248_v11, %v13248_v11  ;;  %v20768_v21 = vld [vmem:[#allocation31 + $0x240] ss:$16 sps:$4 sm:$0xff]   ;;  %v20771_v49 = vld [vmem:[#allocation31 + $0x248] ss:$16 sps:$4 sm:$0xff]   ;;  %v20779_v4 = vld [vmem:[#allocation31 + $0x26c] ss:$16 sps:$4 sm:$0xff]  }
0x325a   :  { %v13253_v22 = vpack.c.bf16 %v13249_v39, %v13249_v39  ;;  %v13251_v28 = vsel %vm13243_vm11, %v13239_v45, %v13247_v31  ;;  %v20776_v45 = vld [vmem:[#allocation31 + $0x264] ss:$16 sps:$4 sm:$0xff]   ;;  %v20785_v31 = vld [vmem:[#allocation31 + $0x28c] ss:$16 sps:$4 sm:$0xff]   ;;  %v20780_v39 = vld [vmem:[#allocation31 + $0x280] ss:$16 sps:$4 sm:$0xff]  }
0x325b   :  { %v13255_v32 = vpack.c.bf16 %v13251_v28, %v13251_v28  ;;  %v20777_v28 = vld [vmem:[#allocation31 + $0x268] ss:$16 sps:$4 sm:$0xff]   ;;  %v20782_v11 = vld [vmem:[#allocation31 + $0x284] ss:$16 sps:$4 sm:$0xff]  }
0x325c   :  { %14078 = vmatprep.mubr.bf16.mxu0 %v13253_v22  ;;  %14160 = vmatprep.mubr.bf16.mxu1 %v13253_v22  ;;  %v20783_v22 = vld [vmem:[#allocation31 + $0x288] ss:$16 sps:$4 sm:$0xff]  }
0x325d   :  { %14079 = vmatmul.mubr.bf16.vlgmr.msra.gmra.mrb[140].mxu0 %v13252_v8  ;;  %14161 = vmatmul.mubr.bf16.vlgmr.msra.gmra.mrb[132].mxu1 %v13252_v8  ;;  %v20774_v8 = vld [vmem:[#allocation31 + $0x260] ss:$16 sps:$4 sm:$0xff]  }
0x325e   :  { %14088 = vmatpush1.bf16.msra.mxu0 %v20756_v58  ;;  %14170 = vmatpush1.bf16.msra.mxu1 %v20759_v60  ;;  %v20788_v58 = vld [vmem:[#allocation31 + $0x2a4] ss:$16 sps:$4 sm:$0xff]   ;;  %v20791_v60 = vld [vmem:[#allocation31 + $0x2ac] ss:$16 sps:$4 sm:$0xff]  }
0x325f   :  { %14119 = vmatprep.mubr.bf16.mxu0 %v13255_v32  ;;  %14201 = vmatprep.mubr.bf16.mxu1 %v13255_v32  ;;  %v20794_v32 = vld [vmem:[#allocation31 + $0x2c4] ss:$16 sps:$4 sm:$0xff]  }
0x3260   :  { %14089 = vmatprep.subr.bf16.mxu0 %v20764_v55  ;;  %14171 = vmatprep.subr.bf16.mxu1 %v20767_v59  ;;  %v20786_v55 = vld [vmem:[#allocation31 + $0x2a0] ss:$16 sps:$4 sm:$0xff]   ;;  %v20789_v59 = vld [vmem:[#allocation31 + $0x2a8] ss:$16 sps:$4 sm:$0xff]  }
0x3262   :  { %14090 = vmatpush1.bf16.msra.mxu0 %v20762_v40  ;;  %14172 = vmatpush1.bf16.msra.mxu1 %v20765_v34  ;;  %v20797_v40 = vld [vmem:[#allocation31 + $0x2cc] ss:$16 sps:$4 sm:$0xff]   ;;  %v20792_v34 = vld [vmem:[#allocation31 + $0x2c0] ss:$16 sps:$4 sm:$0xff]  }
0x3263   :  { %14091 = vmatprep.subr.bf16.mxu0 %v20770_v35  ;;  %14173 = vmatprep.subr.bf16.mxu1 %v20773_v12  ;;  %v20795_v35 = vld [vmem:[#allocation31 + $0x2c8] ss:$16 sps:$4 sm:$0xff]   ;;  %v20800_v12 = vld [vmem:[#allocation31 + $0x2e4] ss:$16 sps:$4 sm:$0xff]  }
0x3266   :  { %14092 = vmatpush1.bf16.msra.mxu0 %v20768_v21  ;;  %14174 = vmatpush1.bf16.msra.mxu1 %v20771_v49  ;;  %v20803_v21 = vld [vmem:[#allocation31 + $0x2ec] ss:$16 sps:$4 sm:$0xff]   ;;  %v20798_v49 = vld [vmem:[#allocation31 + $0x2e0] ss:$16 sps:$4 sm:$0xff]  }
0x3267   :  { %14093 = vmatprep.subr.bf16.mxu0 %v20776_v45  ;;  %14175 = vmatprep.subr.bf16.mxu1 %v20779_v4  ;;  %v20801_v45 = vld [vmem:[#allocation31 + $0x2e8] ss:$16 sps:$4 sm:$0xff]   ;;  %v20806_v4 = vld [vmem:[#allocation31 + $0x304] ss:$16 sps:$4 sm:$0xff]  }
0x326a   :  { %14094 = vmatpush1.bf16.msra.mxu0 %v20774_v8  ;;  %14176 = vmatpush1.bf16.msra.mxu1 %v20777_v28  ;;  %v20809_v8 = vld [vmem:[#allocation31 + $0x30c] ss:$16 sps:$4 sm:$0xff]   ;;  %v20804_v28 = vld [vmem:[#allocation31 + $0x300] ss:$16 sps:$4 sm:$0xff]  }
0x326b   :  { %14095 = vmatprep.subr.bf16.mxu0 %v20782_v11  ;;  %14177 = vmatprep.subr.bf16.mxu1 %v20785_v31  ;;  %v20807_v11 = vld [vmem:[#allocation31 + $0x308] ss:$16 sps:$4 sm:$0xff]   ;;  %v20812_v31 = vld [vmem:[#allocation31 + $0x324] ss:$16 sps:$4 sm:$0xff]  }
0x326e   :  { %14096 = vmatpush1.bf16.msra.mxu0 %v20780_v39  ;;  %14178 = vmatpush1.bf16.msra.mxu1 %v20783_v22  ;;  %v20815_v39 = vld [vmem:[#allocation31 + $0x32c] ss:$16 sps:$4 sm:$0xff]   ;;  %v20810_v22 = vld [vmem:[#allocation31 + $0x320] ss:$16 sps:$4 sm:$0xff]  }
0x326f   :  { %14097 = vmatprep.subr.bf16.mxu0 %v20788_v58  ;;  %14179 = vmatprep.subr.bf16.mxu1 %v20791_v60  ;;  %v20813_v58 = vld [vmem:[#allocation31 + $0x328] ss:$16 sps:$4 sm:$0xff]   ;;  %v13228_v60 = vadd.f32 1e-05, %v23409_v7  ;;  %v20830_v7 = vld [vmem:[#allocation31 + $0x384] ss:$16 sps:$4 sm:$0xff]  }
0x3271   :  { %20902 = vrsqrt.f32 %v13228_v60 }
0x3272   :  { %14098 = vmatpush1.bf16.msra.mxu0 %v20786_v55  ;;  %14180 = vmatpush1.bf16.msra.mxu1 %v20789_v59  ;;  %v20818_v55 = vld [vmem:[#allocation31 + $0x344] ss:$16 sps:$4 sm:$0xff]   ;;  %v20821_v59 = vld [vmem:[#allocation31 + $0x34c] ss:$16 sps:$4 sm:$0xff]  }
0x3273   :  { %14099 = vmatprep.subr.bf16.mxu0 %v20794_v32  ;;  %14181 = vmatprep.subr.bf16.mxu1 %v20797_v40  ;;  %v20816_v32 = vld [vmem:[#allocation31 + $0x340] ss:$16 sps:$4 sm:$0xff]   ;;  %v20819_v40 = vld [vmem:[#allocation31 + $0x348] ss:$16 sps:$4 sm:$0xff]  }
0x3276   :  { %14100 = vmatpush1.bf16.msra.mxu0 %v20792_v34  ;;  %14182 = vmatpush1.bf16.msra.mxu1 %v20795_v35  ;;  %v20824_v34 = vld [vmem:[#allocation31 + $0x364] ss:$16 sps:$4 sm:$0xff]   ;;  %v20827_v35 = vld [vmem:[#allocation31 + $0x36c] ss:$16 sps:$4 sm:$0xff]  }
0x3277   :  { %14101 = vmatprep.subr.bf16.mxu0 %v20800_v12  ;;  %14183 = vmatprep.subr.bf16.mxu1 %v20803_v21  ;;  %v20822_v12 = vld [vmem:[#allocation31 + $0x360] ss:$16 sps:$4 sm:$0xff]   ;;  %v20825_v21 = vld [vmem:[#allocation31 + $0x368] ss:$16 sps:$4 sm:$0xff]  }
0x327a   :  { %14102 = vmatpush1.bf16.msra.mxu0 %v20798_v49  ;;  %14184 = vmatpush1.bf16.msra.mxu1 %v20801_v45  ;;  %v20833_v49 = vld [vmem:[#allocation31 + $0x38c] ss:$16 sps:$4 sm:$0xff]   ;;  %v20828_v45 = vld [vmem:[#allocation31 + $0x380] ss:$16 sps:$4 sm:$0xff]  }
0x327b   :  { %14103 = vmatprep.subr.bf16.mxu0 %v20806_v4  ;;  %14185 = vmatprep.subr.bf16.mxu1 %v20809_v8  ;;  %v20831_v4 = vld [vmem:[#allocation31 + $0x388] ss:$16 sps:$4 sm:$0xff]   ;;  %v20836_v8 = vld [vmem:[#allocation31 + $0x3a4] ss:$16 sps:$4 sm:$0xff]  }
0x327e   :  { %14104 = vmatpush1.bf16.msra.mxu0 %v20804_v28  ;;  %14186 = vmatpush1.bf16.msra.mxu1 %v20807_v11  ;;  %v20839_v28 = vld [vmem:[#allocation31 + $0x3ac] ss:$16 sps:$4 sm:$0xff]   ;;  %v20903_v11 = vpop.eup %20902 }
0x327f   :  { %14105 = vmatprep.subr.bf16.mxu0 %v20812_v31  ;;  %14187 = vmatprep.subr.bf16.mxu1 %v20815_v39  ;;  %v20834_v31 = vld [vmem:[#allocation31 + $0x3a0] ss:$16 sps:$4 sm:$0xff]   ;;  %v20837_v39 = vld [vmem:[#allocation31 + $0x3a8] ss:$16 sps:$4 sm:$0xff]   ;;  %v13238_v60 = vmul.f32 %v20903_v11, %v23392_v53 }
0x3281   :  { %vm13242_vm12 = vcmp.ge.f32.partialorder %v13238_v60, 0.0 }
0x3282   :  { %14106 = vmatpush1.bf16.msra.mxu0 %v20810_v22  ;;  %14188 = vmatpush1.bf16.msra.mxu1 %v20813_v58  ;;  %v20842_v22 = vld [vmem:[#allocation31 + $0x3c4] ss:$16 sps:$4 sm:$0xff]   ;;  %v20845_v58 = vld [vmem:[#allocation31 + $0x3cc] ss:$16 sps:$4 sm:$0xff]  }
0x3283   :  { %14107 = vmatprep.subr.bf16.mxu0 %v20818_v55  ;;  %14189 = vmatprep.subr.bf16.mxu1 %v20821_v59  ;;  %v20840_v55 = vld [vmem:[#allocation31 + $0x3c0] ss:$16 sps:$4 sm:$0xff]   ;;  %v20843_v59 = vld [vmem:[#allocation31 + $0x3c8] ss:$16 sps:$4 sm:$0xff]  }
0x3286   :  { %14108 = vmatpush1.bf16.msra.mxu0 %v20816_v32  ;;  %14190 = vmatpush1.bf16.msra.mxu1 %v20819_v40  ;;  %v20848_v32 = vld [vmem:[#allocation31 + $0x3e4] ss:$16 sps:$4 sm:$0xff]   ;;  %v20851_v40 = vld [vmem:[#allocation31 + $0x3ec] ss:$16 sps:$4 sm:$0xff]  }
0x3287   :  { %14109 = vmatprep.subr.bf16.mxu0 %v20824_v34  ;;  %14191 = vmatprep.subr.bf16.mxu1 %v20827_v35  ;;  %v13246_v34 = vmul.f32 0.2, %v13238_v60  ;;  %v20846_v35 = vld [vmem:[#allocation31 + $0x3e0] ss:$16 sps:$4 sm:$0xff]  }
0x328a   :  { %14110 = vmatpush1.bf16.msra.mxu0 %v20822_v12  ;;  %14192 = vmatpush1.bf16.msra.mxu1 %v20825_v21  ;;  %v20849_v12 = vld [vmem:[#allocation31 + $0x3e8] ss:$16 sps:$4 sm:$0xff]   ;;  %v13250_v21 = vsel %vm13242_vm12, %v13238_v60, %v13246_v34 }
0x328b   :  { %14111 = vmatprep.subr.bf16.mxu0 %v20830_v7  ;;  %14193 = vmatprep.subr.bf16.mxu1 %v20833_v49  ;;  %v13254_v53 = vpack.c.bf16 %v13250_v21, %v13250_v21  ;;  %v13384_v7 = vld [vmem:[#allocation30] sm:$0xf] }
0x328c   :  { %v13393_v49 = vrot.slane %v13384_v7, %v12554_v57 }
0x328e   :  { %14112 = vmatpush1.bf16.msra.mxu0 %v20828_v45  ;;  %14194 = vmatpush1.bf16.msra.mxu1 %v20831_v4  ;;  %v13401_v45 = vrot.slane %v13384_v7, %v12562_v0  ;;  %v23665_v4 = vsub.s32 0, %v22541_v43 }
0x328f   :  { %14113 = vmatprep.subr.bf16.mxu0 %v20836_v8  ;;  %14195 = vmatprep.subr.bf16.mxu1 %v20839_v28  ;;  %v23666_v28 = vsub.s32 2, %v22541_v43  ;;  %v23667_v43 = vmov 0.0  }
0x3290   :  { %v13389_v8 = vrot.slane %v13384_v7, %v23665_v4 }
0x3291   :  { %v13397_v11 = vrot.slane %v13384_v7, %v23666_v28  ;;  %v20873_v28 = vld [vmem:[%s22232_s27 + $0xe8] sm:$0xff]  }
0x3292   :  { %14114 = vmatpush1.bf16.msra.mxu0 %v20834_v31  ;;  %14196 = vmatpush1.bf16.msra.mxu1 %v20837_v39 }
0x3293   :  { %14115 = vmatprep.subr.bf16.mxu0 %v20842_v22  ;;  %14197 = vmatprep.subr.bf16.mxu1 %v20845_v58 }
0x3296   :  { %14116 = vmatpush1.bf16.msra.mxu0 %v20840_v55  ;;  %14198 = vmatpush1.bf16.msra.mxu1 %v20843_v59 }
0x3297   :  { %14117 = vmatprep.subr.bf16.mxu0 %v20848_v32  ;;  %14199 = vmatprep.subr.bf16.mxu1 %v20851_v40 }
0x329a   :  { %14118 = vmatpush1.bf16.msra.mxu0 %v20846_v35  ;;  %14200 = vmatpush1.bf16.msra.mxu1 %v20849_v12 }
0x329b   :  { %18854 = vmatprep.subr.bf16.mxu0 %v23131_v29  ;;  %18886 = vmatprep.subr.bf16.mxu1 %v23134_v30 }
0x329d   :  { %14120 = vmatmul.mubr.bf16.vlgmr.msra.gmra.mrb[140].mxu0 %v13254_v53  ;;  %14202 = vmatmul.mubr.bf16.vlgmr.msra.gmra.mrb[132].mxu1 %v13254_v53 }
0x329e   :  { %18856 = vmatpush3.bf16.msra.mxu0 %v23147_v46  ;;  %18888 = vmatpush3.bf16.msra.mxu1 %v23149_v26 }
0x329f   :  { %18858 = vmatprep.subr.bf16.mxu0 %v23153_v50  ;;  %18890 = vmatprep.subr.bf16.mxu1 %v23155_v54 }
0x32a2   :  { %18860 = vmatpush3.bf16.msra.mxu0 %v23165_v18  ;;  %18892 = vmatpush3.bf16.msra.mxu1 %v23167_v62 }
0x32a3   :  { %18862 = vmatprep.subr.bf16.mxu0 %v23173_v1  ;;  %18894 = vmatprep.subr.bf16.mxu1 %v23175_v2 }
0x32a6   :  { %18864 = vmatpush3.bf16.msra.mxu0 %v23185_v10  ;;  %18896 = vmatpush3.bf16.msra.mxu1 %v23187_v25 }
0x32a7   :  { %18866 = vmatprep.subr.bf16.mxu0 %v23193_v13  ;;  %18898 = vmatprep.subr.bf16.mxu1 %v23195_v15 }
0x32aa   :  { %18868 = vmatpush3.bf16.msra.mxu0 %v23205_v61  ;;  %18900 = vmatpush3.bf16.msra.mxu1 %v23207_v63 }
0x32ab   :  { %18870 = vmatprep.subr.bf16.mxu0 %v23213_v6  ;;  %18902 = vmatprep.subr.bf16.mxu1 %v23215_v41 }
0x32ae   :  { %18872 = vmatpush3.bf16.msra.mxu0 %v23225_v36  ;;  %18904 = vmatpush3.bf16.msra.mxu1 %v23227_v37 }
0x32af   :  { %18874 = vmatprep.subr.bf16.mxu0 %v23233_v42  ;;  %18906 = vmatprep.subr.bf16.mxu1 %v23235_v44 }
0x32b2   :  { %18876 = vmatpush3.bf16.msra.mxu0 %v23245_v23  ;;  %18908 = vmatpush3.bf16.msra.mxu1 %v23247_v48 }
0x32b3   :  { %18878 = vmatprep.subr.bf16.mxu0 %v23251_v27  ;;  %18910 = vmatprep.subr.bf16.mxu1 %v23253_v14 }
0x32b6   :  { %18880 = vmatpush3.bf16.msra.mxu0 %v23264_v17  ;;  %18912 = vmatpush3.bf16.msra.mxu1 %v23267_v20 }
0x32b7   :  { %18882 = vmatprep.subr.bf16.mxu0 %v23273_v52  ;;  %18914 = vmatprep.subr.bf16.mxu1 %v23278_v3 }
0x32ba   :  { %18884 = vmatpush3.bf16.msra.mxu0 %v23284_v16  ;;  %18916 = vmatpush3.bf16.msra.mxu1 %v23286_v33 }
0x32bb   :  { %18918 = vmatprep.subr.bf16.mxu0 %v23292_v38  ;;  %18926 = vmatprep.subr.bf16.mxu1 %v23346_v51 }
0x3370   :  { %v14121_v31 = vpop.f32.mrb[140].mxu0  ;;  %v14203_v39 = vpop.f32.mrb[132].mxu1 }
0x3371   :  { %v14123_v22 = vpop.f32.mrb[141].mxu0  ;;  %v14205_v58 = vpop.f32.mrb[133].mxu1  ;;  %v19013_v57 = vadd.f32 %v14121_v31, %v13389_v8  ;;  %v19015_v40 = vadd.f32 %v14203_v39, %v13397_v11  ;;  %v20872_v8 = vld [vmem:[%s22232_s27 + $0x68] sm:$0xff]   ;;  %v20876_v39 = vld [vmem:[%s22232_s27 + $0x70] sm:$0xff]  }
0x3372   :  { %v23458_v60 = vadd.f32 %v14123_v22, %v13393_v49  ;;  %v23460_v55 = vadd.f32 %v14205_v58, %v13401_v45  ;;  %v14125_v59 = vpop.f32.mrb[142].mxu0  ;;  %v14207_v32 = vpop.f32.mrb[134].mxu1  ;;  %v20874_v11 = vld [vmem:[%s22232_s27 + $0x28] sm:$0xff]   ;;  %v20877_v22 = vld [vmem:[%s22232_s27 + $0xf0] sm:$0xff]  }
0x3373   :  { %v14126_v34 = vpop.f32.mrb[143].mxu0  ;;  %v14208_v0 = vpop.f32.mrb[135].mxu1  ;;  %v20875_v31 = vld [vmem:[%s22232_s27 + $0xa8] sm:$0xff]   ;;  %v20878_v58 = vld [vmem:[%s22232_s27 + $0x30] sm:$0xff]   ;;  %v20881_v59 = vld [vmem:[%s22232_s27 + $0xf8] sm:$0xff]  }
0x3374   :  { %14274 = vmatprep.mubr.f32.mxu0 %v23458_v60  ;;  %14344 = vmatprep.mubr.f32.mxu1 %v23460_v55  ;;  %v20882_v32 = vld [vmem:[%s22232_s27 + $0x38] sm:$0xff]  }
0x3375   :  { %14275 = vmatmul.mubr.f32.vlgmr.msra.gmra.mrb[138].mxu0 %v19013_v57  ;;  %14345 = vmatmul.mubr.f32.vlgmr.msra.gmra.mrb[130].mxu1 %v19015_v40 }
0x3376   :  { %18920 = vmatpush1.bf16.msra.mxu0 %v23337_v47  ;;  %18928 = vmatpush1.bf16.msra.mxu1 %v23350_v56 }
0x3377   :  { %18922 = vmatprep.subr.bf16.mxu0 %v23340_v19  ;;  %18930 = vmatprep.subr.bf16.mxu1 %v23352_v9 }
0x3378   :  { %14418 = vmatprep.mubr.f32.mxu0 %v23667_v43  ;;  %14489 = vmatprep.mubr.f32.mxu1 %v23667_v43 }
0x337a   :  { %18924 = vmatpush1.bf16.msra.mxu0 %v23342_v5  ;;  %18932 = vmatpush1.bf16.msra.mxu1 %v23356_v24 }
0x337b   :  { %18934 = vmatprep.subr.bf16.mxu0 %v23131_v29  ;;  %18966 = vmatprep.subr.bf16.mxu1 %v23134_v30 }
0x3448   :  { %v17529_v35 = vpop.f32.mrb[138].mxu0  ;;  %v17564_v12 = vpop.f32.mrb[130].mxu1 }
0x3449   :  { %v17530_v21 = vpop.f32.mrb[139].mxu0  ;;  %v17565_v53 = vpop.f32.mrb[131].mxu1 }
0x344a   :  { %v17531_v7 = vadd.f32 %v17530_v21, %v17529_v35  ;;  %v17566_v49 = vadd.f32 %v17565_v53, %v17564_v12 }
0x344c   :  { %v14347_v45 = vadd.f32 %v17566_v49, %v17531_v7 }
0x344e   :  { %v14350_v4 = vmul.f32 0.0625, %v14347_v45 }
0x3450   :  { %16527 = vmatmul.mubr.msk.f32.vlgmr.msra.gmra.mrb[144].mxu0 %vm8741_vm2, %v14350_v4  ;;  %16528 = vmatmul.mubr.msk.f32.vlgmr.msra.gmra.mrb[136].mxu1 %vm8741_vm2, %v14350_v4 }
0x3451   :  { %18936 = vmatpush3.bf16.msra.mxu0 %v23147_v46  ;;  %18968 = vmatpush3.bf16.msra.mxu1 %v23149_v26 }
0x3452   :  { %18938 = vmatprep.subr.bf16.mxu0 %v23153_v50  ;;  %18970 = vmatprep.subr.bf16.mxu1 %v23155_v54 }
0x3455   :  { %18940 = vmatpush3.bf16.msra.mxu0 %v23165_v18  ;;  %18972 = vmatpush3.bf16.msra.mxu1 %v23167_v62 }
0x3456   :  { %18942 = vmatprep.subr.bf16.mxu0 %v23173_v1  ;;  %18974 = vmatprep.subr.bf16.mxu1 %v23175_v2 }
0x3459   :  { %18944 = vmatpush3.bf16.msra.mxu0 %v23185_v10  ;;  %18976 = vmatpush3.bf16.msra.mxu1 %v23187_v25 }
0x345a   :  { %18946 = vmatprep.subr.bf16.mxu0 %v23193_v13  ;;  %18978 = vmatprep.subr.bf16.mxu1 %v23195_v15  ;;  %v20852_v13 = vld [vmem:[%s22232_s27 + $0x40] sm:$0xff]  }
0x345b   :  { %v20853_v15 = vld [vmem:[%s22232_s27 + $0xc0] sm:$0xff]  }
0x345d   :  { %18948 = vmatpush3.bf16.msra.mxu0 %v23205_v61  ;;  %18980 = vmatpush3.bf16.msra.mxu1 %v23207_v63 }
0x345e   :  { %18950 = vmatprep.subr.bf16.mxu0 %v23213_v6  ;;  %18982 = vmatprep.subr.bf16.mxu1 %v23215_v41 }
0x3461   :  { %18952 = vmatpush3.bf16.msra.mxu0 %v23225_v36  ;;  %18984 = vmatpush3.bf16.msra.mxu1 %v23227_v37 }
0x3462   :  { %18954 = vmatprep.subr.bf16.mxu0 %v23233_v42  ;;  %18986 = vmatprep.subr.bf16.mxu1 %v23235_v44  ;;  %v20854_v44 = vld [vmem:[%s22232_s27] sm:$0xff]  }
0x3465   :  { %18956 = vmatpush3.bf16.msra.mxu0 %v23245_v23  ;;  %18988 = vmatpush3.bf16.msra.mxu1 %v23247_v48  ;;  %v20855_v23 = vld [vmem:[%s22232_s27 + $0x80] sm:$0xff]  }
0x3466   :  { %18958 = vmatprep.subr.bf16.mxu0 %v23251_v27  ;;  %18990 = vmatprep.subr.bf16.mxu1 %v23253_v14  ;;  %v20856_v27 = vld [vmem:[%s22232_s27 + $0x48] sm:$0xff]  }
0x3467   :  { %v20857_v14 = vld [vmem:[%s22232_s27 + $0xc8] sm:$0xff]  }
0x3469   :  { %18960 = vmatpush3.bf16.msra.mxu0 %v23264_v17  ;;  %18992 = vmatpush3.bf16.msra.mxu1 %v23267_v20  ;;  %v20858_v17 = vld [vmem:[%s22232_s27 + $0x8] sm:$0xff]  }
0x346a   :  { %18962 = vmatprep.subr.bf16.mxu0 %v23273_v52  ;;  %18994 = vmatprep.subr.bf16.mxu1 %v23278_v3  ;;  %v20859_v20 = vld [vmem:[%s22232_s27 + $0x88] sm:$0xff]   ;;  %v20860_v52 = vld [vmem:[%s22232_s27 + $0x50] sm:$0xff]  }
0x346b   :  { %v20861_v3 = vld [vmem:[%s22232_s27 + $0xd0] sm:$0xff]  }
0x346d   :  { %18964 = vmatpush3.bf16.msra.mxu0 %v23284_v16  ;;  %18996 = vmatpush3.bf16.msra.mxu1 %v23286_v33  ;;  %v20862_v16 = vld [vmem:[%s22232_s27 + $0x10] sm:$0xff]  }
0x346e   :  { %18998 = vmatprep.subr.bf16.mxu0 %v23292_v38  ;;  %19006 = vmatprep.subr.bf16.mxu1 %v23346_v51  ;;  %v20863_v33 = vld [vmem:[%s22232_s27 + $0x90] sm:$0xff]   ;;  %v20864_v38 = vld [vmem:[%s22232_s27 + $0x58] sm:$0xff]   ;;  %v20868_v51 = vld [vmem:[%s22232_s27 + $0x60] sm:$0xff]  }
0x3523   :  { %v14420_v29 = vpop.f32.mrb[144].mxu0  ;;  %v14491_v30 = vpop.f32.mrb[136].mxu1 }
0x3524   :  { %v23508_v46 = vsub.f32 %v19013_v57, %v14420_v29  ;;  %v23510_v26 = vsub.f32 %v19015_v40, %v14491_v30  ;;  %v14422_v50 = vpop.f32.mrb[145].mxu0  ;;  %v14493_v54 = vpop.f32.mrb[137].mxu1  ;;  %v20883_v57 = vld [vmem:[%s22232_s27 + $0xb8] sm:$0xff]  }
0x3525   :  { %v23513_v18 = vsub.f32 %v23458_v60, %v14422_v50  ;;  %v23516_v62 = vsub.f32 %v23460_v55, %v14493_v54  ;;  %v20879_v60 = vld [vmem:[%s22232_s27 + $0xb0] sm:$0xff]   ;;  %v20880_v55 = vld [vmem:[%s22232_s27 + $0x78] sm:$0xff]  }
0x3526   :  { %v14500_v10 = vmul.f32 %v23508_v46, %v23508_v46  ;;  %v14502_v25 = vmul.f32 %v23510_v26, %v23510_v26 }
0x3527   :  { %v14501_v1 = vmul.f32 %v23513_v18, %v23513_v18  ;;  %v14503_v2 = vmul.f32 %v23516_v62, %v23516_v62 }
0x3529   :  { %14568 = vmatprep.mubr.f32.mxu0 %v14501_v1  ;;  %14638 = vmatprep.mubr.f32.mxu1 %v14503_v2 }
0x352a   :  { %14569 = vmatmul.mubr.f32.vlgmr.msra.gmra.mrb[146].mxu0 %v14500_v10  ;;  %14639 = vmatmul.mubr.f32.vlgmr.msra.gmra.mrb[138].mxu1 %v14502_v25 }
0x352b   :  { %19000 = vmatpush1.bf16.msra.mxu0 %v23337_v47  ;;  %19008 = vmatpush1.bf16.msra.mxu1 %v23350_v56  ;;  %v20865_v47 = vld [vmem:[%s22232_s27 + $0xd8] sm:$0xff]   ;;  %v20869_v56 = vld [vmem:[%s22232_s27 + $0xe0] sm:$0xff]  }
0x352c   :  { %19002 = vmatprep.subr.bf16.mxu0 %v23340_v19  ;;  %19010 = vmatprep.subr.bf16.mxu1 %v23352_v9  ;;  %v20866_v19 = vld [vmem:[%s22232_s27 + $0x18] sm:$0xff]   ;;  %v20870_v9 = vld [vmem:[%s22232_s27 + $0x20] sm:$0xff]  }
0x352d   :  { %14712 = vmatprep.mubr.f32.mxu0 %v23667_v43  ;;  %14783 = vmatprep.mubr.f32.mxu1 %v23667_v43 }
0x352f   :  { %19004 = vmatpush1.bf16.msra.mxu0 %v23342_v5  ;;  %19012 = vmatpush1.bf16.msra.mxu1 %v23356_v24  ;;  %v20867_v5 = vld [vmem:[%s22232_s27 + $0x98] sm:$0xff]   ;;  %v20871_v24 = vld [vmem:[%s22232_s27 + $0xa0] sm:$0xff]  }
0x3530   :  { %17637 = vmatprep.subr.bf16.mxu0 %v20852_v13  ;;  %17659 = vmatprep.subr.bf16.mxu1 %v20853_v15 }
0x35fd   :  { %v17599_v61 = vpop.f32.mrb[146].mxu0  ;;  %v17634_v63 = vpop.f32.mrb[138].mxu1 }
0x35fe   :  { %v17600_v6 = vpop.f32.mrb[147].mxu0  ;;  %v17635_v41 = vpop.f32.mrb[139].mxu1 }
0x35ff   :  { %v17601_v36 = vadd.f32 %v17600_v6, %v17599_v61  ;;  %v17636_v37 = vadd.f32 %v17635_v41, %v17634_v63 }
0x3601   :  { %v14641_v42 = vadd.f32 %v17636_v37, %v17601_v36  ;;  %v16531_v36 = vld [vmem:[#allocation64] ss:$0 sm:$0xff] }
0x3603   :  { %v14644_v48 = vmul.f32 0.0625, %v14641_v42 }
0x3605   :  { %16529 = vmatmul.mubr.msk.f32.vlgmr.msra.gmra.mrb[148].mxu0 %vm8741_vm2, %v14644_v48  ;;  %16530 = vmatmul.mubr.msk.f32.vlgmr.msra.gmra.mrb[140].mxu1 %vm8741_vm2, %v14644_v48 }
0x3606   :  { %17638 = vmatpush3.bf16.msra.mxu0 %v20854_v44  ;;  %17660 = vmatpush3.bf16.msra.mxu1 %v20855_v23 }
0x3607   :  { %17639 = vmatprep.subr.bf16.mxu0 %v20856_v27  ;;  %17661 = vmatprep.subr.bf16.mxu1 %v20857_v14 }
0x360a   :  { %17640 = vmatpush3.bf16.msra.mxu0 %v20858_v17  ;;  %17662 = vmatpush3.bf16.msra.mxu1 %v20859_v20 }
0x360b   :  { %17641 = vmatprep.subr.bf16.mxu0 %v20860_v52  ;;  %17663 = vmatprep.subr.bf16.mxu1 %v20861_v3 }
0x360e   :  { %17642 = vmatpush3.bf16.msra.mxu0 %v20862_v16  ;;  %17664 = vmatpush3.bf16.msra.mxu1 %v20863_v33 }
0x360f   :  { %17643 = vmatprep.subr.bf16.mxu0 %v20864_v38  ;;  %17665 = vmatprep.subr.bf16.mxu1 %v20865_v47 }
0x3612   :  { %17644 = vmatpush3.bf16.msra.mxu0 %v20866_v19  ;;  %17666 = vmatpush3.bf16.msra.mxu1 %v20867_v5 }
0x3613   :  { %17645 = vmatprep.subr.bf16.mxu0 %v20868_v51  ;;  %17667 = vmatprep.subr.bf16.mxu1 %v20869_v56 }
0x3616   :  { %17646 = vmatpush3.bf16.msra.mxu0 %v20870_v9  ;;  %17668 = vmatpush3.bf16.msra.mxu1 %v20871_v24 }
0x3617   :  { %17647 = vmatprep.subr.bf16.mxu0 %v20872_v8  ;;  %17669 = vmatprep.subr.bf16.mxu1 %v20873_v28 }
0x361a   :  { %17648 = vmatpush3.bf16.msra.mxu0 %v20874_v11  ;;  %17670 = vmatpush3.bf16.msra.mxu1 %v20875_v31 }
0x361b   :  { %17649 = vmatprep.subr.bf16.mxu0 %v20876_v39  ;;  %17671 = vmatprep.subr.bf16.mxu1 %v20877_v22 }
0x361e   :  { %17650 = vmatpush3.bf16.msra.mxu0 %v20878_v58  ;;  %17672 = vmatpush3.bf16.msra.mxu1 %v20879_v60 }
0x361f   :  { %17651 = vmatprep.subr.bf16.mxu0 %v20880_v55  ;;  %17673 = vmatprep.subr.bf16.mxu1 %v20881_v59 }
0x3622   :  { %17652 = vmatpush3.bf16.msra.mxu0 %v20882_v32  ;;  %17674 = vmatpush3.bf16.msra.mxu1 %v20883_v57 }
0x36d8   :  { %v14714_v40 = vpop.f32.mrb[148].mxu0  ;;  %v14785_v34 = vpop.f32.mrb[140].mxu1 }
0x36d9   :  { %v14715_v0 = vadd.f32 1e-05, %v14714_v40  ;;  %v14786_v43 = vadd.f32 1e-05, %v14785_v34  ;;  %v14716_v35 = vpop.f32.mrb[149].mxu0  ;;  %v14787_v12 = vpop.f32.mrb[141].mxu1 }
0x36da   :  { %v14717_v21 = vadd.f32 1e-05, %v14716_v35  ;;  %v14788_v53 = vadd.f32 1e-05, %v14787_v12 }
0x36db   :  { %20904 = vrsqrt.f32 %v14715_v0 }
0x36dc   :  { %20906 = vrsqrt.f32 %v14786_v43 }
0x36dd   :  { %20908 = vrsqrt.f32 %v14717_v21 }
0x36de   :  { %20910 = vrsqrt.f32 %v14788_v53 }
0x36e5   :  { %v20905_v7 = vpop.eup %20904 }
0x36e6   :  { %v20907_v49 = vpop.eup %20906  ;;  %v14794_v45 = vmul.f32 %v20905_v7, %v23508_v46 }
0x36e7   :  { %v20909_v4 = vpop.eup %20908  ;;  %v14796_v29 = vmul.f32 %v20907_v49, %v23510_v26 }
0x36e8   :  { %v20911_v30 = vpop.eup %20910  ;;  %v14795_v50 = vmul.f32 %v20909_v4, %v23513_v18  ;;  %vm14798_vm13 = vcmp.ge.f32.partialorder %v14794_v45, 0.0  ;;  %v14802_v54 = vmul.f32 0.2, %v14794_v45 }
0x36e9   :  { %v14797_v1 = vmul.f32 %v20911_v30, %v23516_v62  ;;  %vm14800_vm14 = vcmp.ge.f32.partialorder %v14796_v29, 0.0  ;;  %v14804_v2 = vmul.f32 0.2, %v14796_v29 }
0x36ea   :  { %vm14799_vm15 = vcmp.ge.f32.partialorder %v14795_v50, 0.0  ;;  %v14803_v10 = vmul.f32 0.2, %v14795_v50  ;;  %v14806_v13 = vsel %vm14798_vm13, %v14794_v45, %v14802_v54 }
0x36eb   :  { %vm14801_vm0 = vcmp.ge.f32.partialorder %v14797_v1, 0.0  ;;  %v14805_v25 = vmul.f32 0.2, %v14797_v1  ;;  %v14808_v61 = vsel %vm14800_vm14, %v14796_v29, %v14804_v2  ;;  %v14810_v26 = vpack.c.bf16 %v14806_v13, %v14806_v13 }
0x36ec   :  { %v14807_v15 = vsel %vm14799_vm15, %v14795_v50, %v14803_v10  ;;  %v14812_v41 = vpack.c.bf16 %v14808_v61, %v14808_v61 }
0x36ed   :  { %v14811_v46 = vpack.c.bf16 %v14807_v15, %v14807_v15  ;;  %v14809_v63 = vsel %vm14801_vm0, %v14797_v1, %v14805_v25 }
0x36ee   :  { %v14813_v6 = vpack.c.bf16 %v14809_v63, %v14809_v63 }
0x36ef   :  { %15109 = vmatprep.mubr.bf16.mxu0 %v14811_v46 }
0x36f0   :  { %15149 = vmatprep.mubr.bf16.mxu1 %v14813_v6  ;;  %15110 = vmatmul.mubr.bf16.vlgmr.msra.gmra.mrb[152].mxu0 %v14810_v26 }
0x36f1   :  { %15150 = vmatmul.mubr.bf16.vlgmr.msra.gmra.mrb[144].mxu1 %v14812_v41 }
0x37c3   :  { %v17653_v18 = vpop.f32.mrb[152].mxu0 }
0x37c4   :  { %v17675_v62 = vpop.f32.mrb[144].mxu1  ;;  %v17654_v37 = vpop.f32.mrb[153].mxu0 }
0x37c5   :  { %v17655_v42 = vadd.f32 %v17654_v37, %v17653_v18  ;;  %v17676_v44 = vpop.f32.mrb[145].mxu1  ;;  %v17656_v23 = vpop.f32.mrb[154].mxu0 }
0x37c6   :  { %v17677_v48 = vadd.f32 %v17676_v44, %v17675_v62  ;;  %v17678_v27 = vpop.f32.mrb[146].mxu1  ;;  %v17657_v14 = vpop.f32.mrb[155].mxu0 }
0x37c7   :  { %v15112_v17 = vadd.f32 %v17655_v42, %v16531_v36  ;;  %v17679_v20 = vpop.f32.mrb[147].mxu1 }
0x37c9   :  { %v15152_v52 = vadd.f32 %v17677_v48, %v15112_v17 }
0x37cb   :  { %15158 = vst.msk [vmem:[%s22242_s12] sm:$0x3] %vm15157_vm1, %v15152_v52 }
0x37cc   :  { %15163 = vsyncpa [#allocation3], 1 }
0x37cd   :  { %15164 = vsyncpa [#allocation5], 1 }
0x37ce   :  { %15165 = vsyncpa [#allocation8], 1 }
0x37cf   :  { %15166 = vsyncpa [#allocation11], 1 }
0x37d0   :  { %15167 = vsyncpa [#allocation14], 1 }
0x37d1   :  { %15168 = vsyncpa [#allocation17], 1 }
0x37d2   :  { %15169 = vsyncpa [#allocation20], 1 }
0x37d3   :  { %15170 = vsyncpa [#allocation23], 1 }
0x37d4   :  { %15171 = vsyncpa [#allocation26], 1 }
0x37d5   :  { %15172 = vsyncpa [#allocation29], 1 }
0x37d6   :  { %15173 = vsyncpa [#allocation32], 1 }
0x37d7   :  { %15174 = vsyncpa [#allocation35], 1 }
0x37d8   :  { %15175 = vsyncpa [#allocation38], 1 }
0x37d9   :  { %15176 = vsyncpa [#allocation41], 1 }
0x37da   :  { %15177 = vsyncpa [#allocation44], 1 }
0x37db   :  { %15178 = vsyncpa [#allocation47], 1 }
0x37dc   :  { %15179 = vsyncpa [#allocation50], 1 }
0x37dd   :  { %15180 = vsyncpa [#allocation53], 1 }
0x37de   :  { %15181 = vsyncpa [#allocation56], 1 }
0x37df   :  { %15182 = vsyncpa [#allocation59], 1 }
0x37e0   :  { %15183 = vsyncpa [#allocation62], 1 }
0x37e1   :  { %15184 = vsyncpa [#allocation65], 1 }

</bundles_post_ra>
